<compile_context>
chip_gen: v6e
topology: v6e:2x2x1
jax: 0.10.0
libtpu: 0.0.40
codegen_flags: <defaults>
</compile_context>

<pallas_src>
import functools

import jax
import jax.numpy as jnp
from jax import lax
from jax.experimental import pallas as pl
from jax.experimental.pallas import tpu as pltpu


# ----------------------------------------------------------------------------- #
# Fused NOPAN forward kernel (one batch image per grid step).                    #
# ----------------------------------------------------------------------------- #
def _nopan_kernel(
    # data / constant operators
    x_ref,        # (1, in_c, NP1)  zero-halo padded input, channels-first, flat spatial
    up_ref,       # (NP1, NP2)      nearest-upsample operator (0/1)
    bil_ref,      # (NP1, NP2)      bilinear-upsample operator
    m1_ref,       # (1, NP1)        LR interior mask
    m2_ref,       # (1, NP2)        HR interior mask
    # weights (channels-first, im2col-flattened); per-block weights are stacked on nb
    wf_ref, bf_ref,                              # conv_first:  (nf, 9*in_c), (nf, 1)
    w1ab_ref, k1_ref, k3_ref, k4_ref, c3_ref,    # SCNOPA stacks: (nb, ...)
    wt_ref, bt_ref,                              # trunk_conv
    wu1_ref, bu1_ref,                            # upconv1
    wa1_ref, ba1_ref,                            # att1 (1x1)
    wh1_ref, bh1_ref,                            # HRconv1
    wl_ref, bl_ref,                              # conv_last
    o_ref,                                       # (1, out_c, NP2)
    *, Wp1, NP1, Wp2, NP2,
):
    f32 = jnp.float32
    nb = k1_ref.shape[0]
    gw = k1_ref.shape[1]
    m1 = m1_ref[...]          # (1, NP1)
    m2 = m2_ref[...]          # (1, NP2)

    def lrelu(v):
        return jnp.where(v >= 0, v, 0.2 * v)

    def shift(a, d, npix):
        # y[:, p] = a[:, p + d]; positions that run off the end only affect halo
        # pixels (masked away later).
        C = a.shape[0]
        if d == 0:
            return a
        if d > 0:
            return jnp.concatenate([a[:, d:], jnp.zeros((C, d), f32)], axis=1)
        return jnp.concatenate([jnp.zeros((C, -d), f32), a[:, :npix + d]], axis=1)

    def conv3x3(a, w, bias, act, Wp, npix, mask):
        # Single im2col matmul: (Cout, 9*Cin) @ (9*Cin, npix) on the MXU.
        taps = [shift(a, kh * Wp + kw, npix)
                for kh in (-1, 0, 1) for kw in (-1, 0, 1)]
        patches = jnp.concatenate(taps, axis=0)
        y = jnp.dot(w.astype(f32), patches, preferred_element_type=f32)
        if bias is not None:
            y = y + bias
        if act:
            y = lrelu(y)
        return y * mask            # keep the halo exactly zero for the next conv

    def conv1x1(a, w, bias, act, mask):
        y = jnp.dot(w.astype(f32), a, preferred_element_type=f32)
        if bias is not None:
            y = y + bias
        if act:
            y = lrelu(y)
        return y * mask

    x = x_ref[0].astype(f32)                                          # (in_c, NP1)

    # conv_first
    fea = conv3x3(x, wf_ref[...], bf_ref[...].astype(f32), False, Wp1, NP1, m1)

    # SCNOPA trunk (unrolled; activations never leave VMEM)
    trunk = fea
    for bi in range(nb):
        residual = trunk
        # merged conv1_a | conv1_b (1x1, no bias) + LeakyReLU
        ab = conv1x1(trunk, w1ab_ref[bi], None, True, m1)             # (2*gw, NP1)
        out_a, out_b = ab[:gw], ab[gw:]
        out_a = conv3x3(out_a, k1_ref[bi], None, True, Wp1, NP1, m1)  # k1 + lrelu
        out_b = conv3x3(out_b, k3_ref[bi], None, False, Wp1, NP1, m1) # PAConv.k3
        out_b = conv3x3(out_b, k4_ref[bi], None, True, Wp1, NP1, m1)  # PAConv.k4 + lrelu
        out = conv1x1(jnp.concatenate([out_a, out_b], axis=0),
                      c3_ref[bi], None, False, m1)                    # conv3 (1x1)
        trunk = out + residual

    trunk = conv3x3(trunk, wt_ref[...], bt_ref[...].astype(f32), False, Wp1, NP1, m1)
    fea = fea + trunk

    # nearest-neighbour upsample (LR padded -> HR padded) as one MXU matmul
    fea = jnp.dot(fea, up_ref[...].astype(f32), preferred_element_type=f32)   # (nf, NP2)

    fea = conv3x3(fea, wu1_ref[...], bu1_ref[...].astype(f32), False, Wp2, NP2, m2)  # upconv1
    fea = conv1x1(fea, wa1_ref[...], ba1_ref[...].astype(f32), True, m2)             # lrelu(att1)
    fea = conv3x3(fea, wh1_ref[...], bh1_ref[...].astype(f32), True, Wp2, NP2, m2)   # lrelu(HRconv1)
    out = conv3x3(fea, wl_ref[...], bl_ref[...].astype(f32), False, Wp2, NP2, m2)    # conv_last

    # bilinear ILR of the network input (fused as a matmul) + residual add
    ilr = jnp.dot(x, bil_ref[...].astype(f32), preferred_element_type=f32)    # (out_c, NP2)
    o_ref[...] = (out + ilr)[None].astype(o_ref.dtype)


# ----------------------------------------------------------------------------- #
# Weight flattening helpers (HWIO -> kernel layout).                             #
# ----------------------------------------------------------------------------- #
def _flat3x3(w):
    # HWIO (3, 3, Cin, Cout) -> (Cout, 9*Cin), column order (kh, kw, ci) to match im2col
    kh, kw, ci, co = w.shape
    return jnp.transpose(w, (3, 0, 1, 2)).reshape(co, kh * kw * ci)


def _flat1x1(w):
    # (1, 1, Cin, Cout) -> (Cout, Cin)
    return w[0, 0].T


# ----------------------------------------------------------------------------- #
# Forward wrapper: layout prep + single pallas_call.                             #
# ----------------------------------------------------------------------------- #
@functools.partial(jax.jit, static_argnames=("scale",))
def nopan_forward(x, p, *, scale=2):
    """x: (N, Cin, H, W) NCHW (PyTorch layout).  Returns (N, out_c, H*scale, W*scale)."""
    N, Cin, H, W = x.shape
    assert scale in (2, 3), "this script exercises the scale==2/3 branch"
    out_c = p["conv_last_w"].shape[-1]

    Hp, Wp = H + 2, W + 2
    H2, W2 = H * scale, W * scale
    H2p, W2p = H2 + 2, W2 + 2
    NP1, NP2 = Hp * Wp, H2p * W2p

    # ---- one-time layout prep (plain XLA on tiny tensors) -------------------- #
    # zero-halo padded, channels-first, flat-spatial input (single pad of the
    # network input; no per-layer padding anywhere).
    xp = jnp.pad(x, ((0, 0), (0, 0), (1, 1), (1, 1))).reshape(N, Cin, NP1)

    def embed_lr2hr(m):
        # (H*W, H2*W2) -> (NP1, NP2) in zero-halo padded coordinates
        m4 = jnp.pad(m.reshape(H, W, H2, W2), ((1, 1), (1, 1), (1, 1), (1, 1)))
        return m4.reshape(NP1, NP2)

    # nearest-neighbour upsample operator (== F.interpolate(mode='nearest'), i.e.
    # integer pixel repeat: source index = out_index // scale)
    src = (jnp.arange(H2)[:, None] // scale) * W + (jnp.arange(W2)[None, :] // scale)
    near = jax.nn.one_hot(src.reshape(-1), H * W, dtype=jnp.float32).T       # (H*W, H2*W2)
    up_mat = embed_lr2hr(near)

    # bilinear (align_corners=False / half-pixel) upsample operator: the exact
    # linear map of jax.image.resize, obtained by pushing the identity basis
    # through it once.
    eye = jnp.eye(H * W, dtype=jnp.float32).reshape(H * W, H, W)
    bil = jax.image.resize(eye, (H * W, H2, W2), method="bilinear")
    bil_mat = embed_lr2hr(bil.reshape(H * W, H2 * W2))

    mask1 = jnp.pad(jnp.ones((H, W), jnp.float32), 1).reshape(1, NP1)
    mask2 = jnp.pad(jnp.ones((H2, W2), jnp.float32), 1).reshape(1, NP2)
    const_args = [up_mat, bil_mat, mask1, mask2]

    # ---- weights: channels-first, im2col-flattened, per-block stacks --------- #
    col = lambda b: b.reshape(-1, 1)
    w_args = [
        _flat3x3(p["conv_first_w"]), col(p["conv_first_b"]),
        jnp.stack([jnp.concatenate([_flat1x1(b["conv1_a"]),
                                    _flat1x1(b["conv1_b"])], axis=0)
                   for b in p["blocks"]]),                         # (nb, 2*gw, nf)
        jnp.stack([_flat3x3(b["k1"]) for b in p["blocks"]]),       # (nb, gw, 9*gw)
        jnp.stack([_flat3x3(b["k3"]) for b in p["blocks"]]),
        jnp.stack([_flat3x3(b["k4"]) for b in p["blocks"]]),
        jnp.stack([_flat1x1(b["conv3"]) for b in p["blocks"]]),    # (nb, nf, 2*gw)
        _flat3x3(p["trunk_conv_w"]), col(p["trunk_conv_b"]),
        _flat3x3(p["upconv1_w"]), col(p["upconv1_b"]),
        _flat1x1(p["att1_w"]), col(p["att1_b"]),
        _flat3x3(p["HRconv1_w"]), col(p["HRconv1_b"]),
        _flat3x3(p["conv_last_w"]), col(p["conv_last_b"]),
    ]

    def full_spec(a):
        zeros = (0,) * a.ndim
        return pl.BlockSpec(a.shape, lambda n: zeros)   # resident across the grid

    kernel = functools.partial(_nopan_kernel, Wp1=Wp, NP1=NP1, Wp2=W2p, NP2=NP2)

    out_flat = pl.pallas_call(
        kernel,
        out_shape=jax.ShapeDtypeStruct((N, out_c, NP2), x.dtype),
        grid=(N,),
        in_specs=[pl.BlockSpec((1, Cin, NP1), lambda n: (n, 0, 0))]
                 + [full_spec(a) for a in const_args]
                 + [full_spec(a) for a in w_args],
        out_specs=pl.BlockSpec((1, out_c, NP2), lambda n: (n, 0, 0)),
        compiler_params=pltpu.CompilerParams(
            dimension_semantics=("parallel",),
            vmem_limit_bytes=32 * 1024 * 1024,
        ),
    )(xp, *const_args, *w_args)

    # back to dense NCHW: drop the halo
    return out_flat.reshape(N, out_c, H2p, W2p)[:, :, 1:1 + H2, 1:1 + W2]


# ----------------------------------------------------------------------------- #
# Parameters (deterministic, synthetic), HWIO weight layout.                     #
# ----------------------------------------------------------------------------- #
def _w(key, kh, kw, cin, cout):
    return (jax.random.normal(key, (kh, kw, cin, cout), jnp.float32)
            * (0.1 / (kh * kw * cin) ** 0.5))


def init_params(key, in_c, nf, unf, out_c, nb):
    keys = iter(jax.random.split(key, 64))
    p = {}
    p["conv_first_w"] = _w(next(keys), 3, 3, in_c, nf)
    p["conv_first_b"] = jnp.zeros((nf,), jnp.float32)

    gw = nf // 2  # reduction = 2
    p["blocks"] = []
    for _ in range(nb):
        blk = {
            "conv1_a": _w(next(keys), 1, 1, nf, gw),
            "conv1_b": _w(next(keys), 1, 1, nf, gw),
            "k1": _w(next(keys), 3, 3, gw, gw),
            "k3": _w(next(keys), 3, 3, gw, gw),
            "k4": _w(next(keys), 3, 3, gw, gw),
            "conv3": _w(next(keys), 1, 1, 2 * gw, nf),
        }
        p["blocks"].append(blk)

    p["trunk_conv_w"] = _w(next(keys), 3, 3, nf, nf)
    p["trunk_conv_b"] = jnp.zeros((nf,), jnp.float32)
    p["upconv1_w"] = _w(next(keys), 3, 3, nf, unf)
    p["upconv1_b"] = jnp.zeros((unf,), jnp.float32)
    p["att1_w"] = _w(next(keys), 1, 1, unf, unf)
    p["att1_b"] = jnp.zeros((unf,), jnp.float32)
    p["HRconv1_w"] = _w(next(keys), 3, 3, unf, unf)
    p["HRconv1_b"] = jnp.zeros((unf,), jnp.float32)
    p["conv_last_w"] = _w(next(keys), 3, 3, unf, out_c)
    p["conv_last_b"] = jnp.zeros((out_c,), jnp.float32)
    return p


# ----------------------------------------------------------------------------- #
# Plain-JAX (XLA) reference of the same module, for a numerical sanity check.    #
# ----------------------------------------------------------------------------- #
def _conv_ref(x, w, b=None):
    y = lax.conv_general_dilated(x, w, (1, 1), "SAME",
                                 dimension_numbers=("NCHW", "HWIO", "NCHW"))
    if b is not None:
        y = y + b[None, :, None, None]
    return y


def _lrelu(x):
    return jnp.where(x >= 0, x, 0.2 * x)


def nopan_reference(x, p, *, scale=2):
    fea = _conv_ref(x, p["conv_first_w"], p["conv_first_b"])
    trunk = fea
    for blk in p["blocks"]:
        residual = trunk
        a = _lrelu(_conv_ref(trunk, blk["conv1_a"]))
        b = _lrelu(_conv_ref(trunk, blk["conv1_b"]))
        a = _lrelu(_conv_ref(a, blk["k1"]))
        b = _conv_ref(b, blk["k3"])
        b = _lrelu(_conv_ref(b, blk["k4"]))
        out = _conv_ref(jnp.concatenate([a, b], axis=1), blk["conv3"])
        trunk = out + residual
    trunk = _conv_ref(trunk, p["trunk_conv_w"], p["trunk_conv_b"])
    fea = fea + trunk
    fea = jnp.repeat(jnp.repeat(fea, scale, axis=2), scale, axis=3)
    fea = _conv_ref(fea, p["upconv1_w"], p["upconv1_b"])
    fea = _lrelu(_conv_ref(fea, p["att1_w"], p["att1_b"]))
    fea = _lrelu(_conv_ref(fea, p["HRconv1_w"], p["HRconv1_b"]))
    out = _conv_ref(fea, p["conv_last_w"], p["conv_last_b"])
    N, C, H, W = x.shape
    ilr = jax.image.resize(x, (N, C, H * scale, W * scale), method="bilinear")
    return out + ilr


# ----------------------------------------------------------------------------- #
if __name__ == "__main__":
    # NOPAN args: in_channels=3, out_channels=3, nf=8, unf=8, nb=2, scale=2
    N, H, W = 2, 16, 16
    in_c, out_c, nf, unf, nb, scale = 3, 3, 8, 8, 2, 2

    key = jax.random.PRNGKey(0)
    kx, kp = jax.random.split(key)
    x = jax.random.normal(kx, (N, in_c, H, W), jnp.float32)     # NCHW, like the PyTorch module
    params = init_params(kp, in_c, nf, unf, out_c, nb)

    out = nopan_forward(x, params, scale=scale)
    out = jax.block_until_ready(out)
    assert out.shape == (N, out_c, H * scale, W * scale), out.shape

    # numerical sanity check vs. plain-XLA reference (loose tol: MXU matmul path)
    ref = nopan_reference(x, params, scale=scale)
    assert jnp.allclose(out, ref, atol=2e-2, rtol=2e-2), float(jnp.max(jnp.abs(out - ref)))

    print("KERNEL_OK")
</pallas_src>

<mosaic_0001>
module attributes {stable_mosaic.version = 11 : i64} {
  func.func @_nopan_kernel(%arg0: i32, %arg1: memref<1x3x324xf32, #tpu.memory_space<vmem>>, %arg2: memref<324x1156xf32, #tpu.memory_space<vmem>>, %arg3: memref<324x1156xf32, #tpu.memory_space<vmem>>, %arg4: memref<1x324xf32, #tpu.memory_space<vmem>>, %arg5: memref<1x1156xf32, #tpu.memory_space<vmem>>, %arg6: memref<8x27xf32, #tpu.memory_space<vmem>>, %arg7: memref<8x1xf32, #tpu.memory_space<vmem>>, %arg8: memref<2x8x8xf32, #tpu.memory_space<vmem>>, %arg9: memref<2x4x36xf32, #tpu.memory_space<vmem>>, %arg10: memref<2x4x36xf32, #tpu.memory_space<vmem>>, %arg11: memref<2x4x36xf32, #tpu.memory_space<vmem>>, %arg12: memref<2x8x8xf32, #tpu.memory_space<vmem>>, %arg13: memref<8x72xf32, #tpu.memory_space<vmem>>, %arg14: memref<8x1xf32, #tpu.memory_space<vmem>>, %arg15: memref<8x72xf32, #tpu.memory_space<vmem>>, %arg16: memref<8x1xf32, #tpu.memory_space<vmem>>, %arg17: memref<8x8xf32, #tpu.memory_space<vmem>>, %arg18: memref<8x1xf32, #tpu.memory_space<vmem>>, %arg19: memref<8x72xf32, #tpu.memory_space<vmem>>, %arg20: memref<8x1xf32, #tpu.memory_space<vmem>>, %arg21: memref<3x72xf32, #tpu.memory_space<vmem>>, %arg22: memref<3x1xf32, #tpu.memory_space<vmem>>, %arg23: memref<1x3x1156xf32, #tpu.memory_space<vmem>>) attributes {dimension_semantics = [#tpu.dimension_semantics<parallel>], iteration_bounds = array<i64: 2>, scalar_prefetch = 0 : i64, scratch_operands = 0 : i64, tpu.core_type = #tpu.core_type<tc>, window_params = [{transform_indices = @transform_0, window_bounds = array<i64: 1, 3, 324>}, {pipeline_mode = #tpu.pipeline_mode<synchronous>, transform_indices = @transform_1, window_bounds = array<i64: 324, 1156>}, {pipeline_mode = #tpu.pipeline_mode<synchronous>, transform_indices = @transform_2, window_bounds = array<i64: 324, 1156>}, {pipeline_mode = #tpu.pipeline_mode<synchronous>, transform_indices = @transform_3, window_bounds = array<i64: 1, 324>}, {pipeline_mode = #tpu.pipeline_mode<synchronous>, transform_indices = @transform_4, window_bounds = array<i64: 1, 1156>}, {pipeline_mode = #tpu.pipeline_mode<synchronous>, transform_indices = @transform_5, window_bounds = array<i64: 8, 27>}, {pipeline_mode = #tpu.pipeline_mode<synchronous>, transform_indices = @transform_6, window_bounds = array<i64: 8, 1>}, {pipeline_mode = #tpu.pipeline_mode<synchronous>, transform_indices = @transform_7, window_bounds = array<i64: 2, 8, 8>}, {pipeline_mode = #tpu.pipeline_mode<synchronous>, transform_indices = @transform_8, window_bounds = array<i64: 2, 4, 36>}, {pipeline_mode = #tpu.pipeline_mode<synchronous>, transform_indices = @transform_9, window_bounds = array<i64: 2, 4, 36>}, {pipeline_mode = #tpu.pipeline_mode<synchronous>, transform_indices = @transform_10, window_bounds = array<i64: 2, 4, 36>}, {pipeline_mode = #tpu.pipeline_mode<synchronous>, transform_indices = @transform_11, window_bounds = array<i64: 2, 8, 8>}, {pipeline_mode = #tpu.pipeline_mode<synchronous>, transform_indices = @transform_12, window_bounds = array<i64: 8, 72>}, {pipeline_mode = #tpu.pipeline_mode<synchronous>, transform_indices = @transform_13, window_bounds = array<i64: 8, 1>}, {pipeline_mode = #tpu.pipeline_mode<synchronous>, transform_indices = @transform_14, window_bounds = array<i64: 8, 72>}, {pipeline_mode = #tpu.pipeline_mode<synchronous>, transform_indices = @transform_15, window_bounds = array<i64: 8, 1>}, {pipeline_mode = #tpu.pipeline_mode<synchronous>, transform_indices = @transform_16, window_bounds = array<i64: 8, 8>}, {pipeline_mode = #tpu.pipeline_mode<synchronous>, transform_indices = @transform_17, window_bounds = array<i64: 8, 1>}, {pipeline_mode = #tpu.pipeline_mode<synchronous>, transform_indices = @transform_18, window_bounds = array<i64: 8, 72>}, {pipeline_mode = #tpu.pipeline_mode<synchronous>, transform_indices = @transform_19, window_bounds = array<i64: 8, 1>}, {pipeline_mode = #tpu.pipeline_mode<synchronous>, transform_indices = @transform_20, window_bounds = array<i64: 3, 72>}, {pipeline_mode = #tpu.pipeline_mode<synchronous>, transform_indices = @transform_21, window_bounds = array<i64: 3, 1>}, {transform_indices = @transform_22, window_bounds = array<i64: 1, 3, 1156>}]} {
    %c0 = arith.constant 0 : index
    %c0_0 = arith.constant 0 : index
    %0 = vector.load %arg4[%c0, %c0_0] : memref<1x324xf32, #tpu.memory_space<vmem>>, vector<1x324xf32>
    %c0_1 = arith.constant 0 : index
    %c0_2 = arith.constant 0 : index
    %1 = vector.load %arg5[%c0_1, %c0_2] : memref<1x1156xf32, #tpu.memory_space<vmem>>, vector<1x1156xf32>
    %c0_3 = arith.constant 0 : index
    %c0_4 = arith.constant 0 : index
    %c0_5 = arith.constant 0 : index
    %2 = vector.load %arg1[%c0_3, %c0_4, %c0_5] : memref<1x3x324xf32, #tpu.memory_space<vmem>>, vector<1x3x324xf32>
    %3 = vector.shape_cast %2 : vector<1x3x324xf32> to vector<3x324xf32>
    %c0_6 = arith.constant 0 : index
    %c0_7 = arith.constant 0 : index
    %4 = vector.load %arg6[%c0_6, %c0_7] : memref<8x27xf32, #tpu.memory_space<vmem>>, vector<8x27xf32>
    %c0_8 = arith.constant 0 : index
    %c0_9 = arith.constant 0 : index
    %5 = vector.load %arg7[%c0_8, %c0_9] : memref<8x1xf32, #tpu.memory_space<vmem>>, vector<8x1xf32>
    %cst = arith.constant 0.000000e+00 : f32
    %6 = vector.broadcast %cst : f32 to vector<3x19xf32>
    %7 = vector.extract_strided_slice %3 {offsets = [0, 0], sizes = [3, 305], strides = [1, 1]} : vector<3x324xf32> to vector<3x305xf32>
    %8 = tpu.concatenate %6, %7 in 1 : vector<3x19xf32>, vector<3x305xf32> -> vector<3x324xf32>
    %cst_10 = arith.constant 0.000000e+00 : f32
    %9 = vector.broadcast %cst_10 : f32 to vector<3x18xf32>
    %10 = vector.extract_strided_slice %3 {offsets = [0, 0], sizes = [3, 306], strides = [1, 1]} : vector<3x324xf32> to vector<3x306xf32>
    %11 = tpu.concatenate %9, %10 in 1 : vector<3x18xf32>, vector<3x306xf32> -> vector<3x324xf32>
    %cst_11 = arith.constant 0.000000e+00 : f32
    %12 = vector.broadcast %cst_11 : f32 to vector<3x17xf32>
    %13 = vector.extract_strided_slice %3 {offsets = [0, 0], sizes = [3, 307], strides = [1, 1]} : vector<3x324xf32> to vector<3x307xf32>
    %14 = tpu.concatenate %12, %13 in 1 : vector<3x17xf32>, vector<3x307xf32> -> vector<3x324xf32>
    %cst_12 = arith.constant 0.000000e+00 : f32
    %15 = vector.broadcast %cst_12 : f32 to vector<3x1xf32>
    %16 = vector.extract_strided_slice %3 {offsets = [0, 0], sizes = [3, 323], strides = [1, 1]} : vector<3x324xf32> to vector<3x323xf32>
    %17 = tpu.concatenate %15, %16 in 1 : vector<3x1xf32>, vector<3x323xf32> -> vector<3x324xf32>
    %18 = vector.extract_strided_slice %3 {offsets = [0, 1], sizes = [3, 323], strides = [1, 1]} : vector<3x324xf32> to vector<3x323xf32>
    %cst_13 = arith.constant 0.000000e+00 : f32
    %19 = vector.broadcast %cst_13 : f32 to vector<3x1xf32>
    %20 = tpu.concatenate %18, %19 in 1 : vector<3x323xf32>, vector<3x1xf32> -> vector<3x324xf32>
    %21 = vector.extract_strided_slice %3 {offsets = [0, 17], sizes = [3, 307], strides = [1, 1]} : vector<3x324xf32> to vector<3x307xf32>
    %cst_14 = arith.constant 0.000000e+00 : f32
    %22 = vector.broadcast %cst_14 : f32 to vector<3x17xf32>
    %23 = tpu.concatenate %21, %22 in 1 : vector<3x307xf32>, vector<3x17xf32> -> vector<3x324xf32>
    %24 = vector.extract_strided_slice %3 {offsets = [0, 18], sizes = [3, 306], strides = [1, 1]} : vector<3x324xf32> to vector<3x306xf32>
    %cst_15 = arith.constant 0.000000e+00 : f32
    %25 = vector.broadcast %cst_15 : f32 to vector<3x18xf32>
    %26 = tpu.concatenate %24, %25 in 1 : vector<3x306xf32>, vector<3x18xf32> -> vector<3x324xf32>
    %27 = vector.extract_strided_slice %3 {offsets = [0, 19], sizes = [3, 305], strides = [1, 1]} : vector<3x324xf32> to vector<3x305xf32>
    %cst_16 = arith.constant 0.000000e+00 : f32
    %28 = vector.broadcast %cst_16 : f32 to vector<3x19xf32>
    %29 = tpu.concatenate %27, %28 in 1 : vector<3x305xf32>, vector<3x19xf32> -> vector<3x324xf32>
    %30 = tpu.concatenate %8, %11, %14, %17, %3, %20, %23, %26, %29 in 0 : vector<3x324xf32>, vector<3x324xf32>, vector<3x324xf32>, vector<3x324xf32>, vector<3x324xf32>, vector<3x324xf32>, vector<3x324xf32>, vector<3x324xf32>, vector<3x324xf32> -> vector<27x324xf32>
    %cst_17 = arith.constant dense<0.000000e+00> : vector<8x324xf32>
    %31 = tpu.matmul %4, %30, %cst_17 {dimension_numbers = #tpu.dot_dimension_numbers<[1], [0], [0], [1], [0, 0, 1, 1], [], []>} : vector<8x27xf32>, vector<27x324xf32>, vector<8x324xf32> -> vector<8x324xf32>
    %32 = vector.broadcast %5 : vector<8x1xf32> to vector<8x324xf32>
    %33 = arith.addf %31, %32 : vector<8x324xf32>
    %34 = vector.broadcast %0 : vector<1x324xf32> to vector<8x324xf32>
    %35 = arith.mulf %33, %34 : vector<8x324xf32>
    %c0_18 = arith.constant 0 : index
    %c0_19 = arith.constant 0 : index
    %c0_20 = arith.constant 0 : index
    %36 = vector.load %arg8[%c0_18, %c0_19, %c0_20] : memref<2x8x8xf32, #tpu.memory_space<vmem>>, vector<1x8x8xf32>
    %37 = vector.shape_cast %36 : vector<1x8x8xf32> to vector<8x8xf32>
    %cst_21 = arith.constant dense<0.000000e+00> : vector<8x324xf32>
    %38 = tpu.matmul %37, %35, %cst_21 {dimension_numbers = #tpu.dot_dimension_numbers<[1], [0], [0], [1], [0, 0, 1, 1], [], []>} : vector<8x8xf32>, vector<8x324xf32>, vector<8x324xf32> -> vector<8x324xf32>
    %cst_22 = arith.constant 0.000000e+00 : f32
    %39 = vector.broadcast %cst_22 : f32 to vector<8x324xf32>
    %40 = arith.cmpf oge, %38, %39 : vector<8x324xf32>
    %cst_23 = arith.constant 2.000000e-01 : f32
    %41 = vector.broadcast %cst_23 : f32 to vector<8x324xf32>
    %42 = arith.mulf %41, %38 : vector<8x324xf32>
    %43 = arith.select %40, %38, %42 : vector<8x324xi1>, vector<8x324xf32>
    %44 = vector.broadcast %0 : vector<1x324xf32> to vector<8x324xf32>
    %45 = arith.mulf %43, %44 : vector<8x324xf32>
    %46 = vector.extract_strided_slice %45 {offsets = [0, 0], sizes = [4, 324], strides = [1, 1]} : vector<8x324xf32> to vector<4x324xf32>
    %47 = vector.extract_strided_slice %45 {offsets = [4, 0], sizes = [4, 324], strides = [1, 1]} : vector<8x324xf32> to vector<4x324xf32>
    %c0_24 = arith.constant 0 : index
    %c0_25 = arith.constant 0 : index
    %c0_26 = arith.constant 0 : index
    %48 = vector.load %arg9[%c0_24, %c0_25, %c0_26] : memref<2x4x36xf32, #tpu.memory_space<vmem>>, vector<1x4x36xf32>
    %49 = vector.shape_cast %48 : vector<1x4x36xf32> to vector<4x36xf32>
    %cst_27 = arith.constant 0.000000e+00 : f32
    %50 = vector.broadcast %cst_27 : f32 to vector<4x19xf32>
    %51 = vector.extract_strided_slice %46 {offsets = [0, 0], sizes = [4, 305], strides = [1, 1]} : vector<4x324xf32> to vector<4x305xf32>
    %52 = tpu.concatenate %50, %51 in 1 : vector<4x19xf32>, vector<4x305xf32> -> vector<4x324xf32>
    %cst_28 = arith.constant 0.000000e+00 : f32
    %53 = vector.broadcast %cst_28 : f32 to vector<4x18xf32>
    %54 = vector.extract_strided_slice %46 {offsets = [0, 0], sizes = [4, 306], strides = [1, 1]} : vector<4x324xf32> to vector<4x306xf32>
    %55 = tpu.concatenate %53, %54 in 1 : vector<4x18xf32>, vector<4x306xf32> -> vector<4x324xf32>
    %cst_29 = arith.constant 0.000000e+00 : f32
    %56 = vector.broadcast %cst_29 : f32 to vector<4x17xf32>
    %57 = vector.extract_strided_slice %46 {offsets = [0, 0], sizes = [4, 307], strides = [1, 1]} : vector<4x324xf32> to vector<4x307xf32>
    %58 = tpu.concatenate %56, %57 in 1 : vector<4x17xf32>, vector<4x307xf32> -> vector<4x324xf32>
    %cst_30 = arith.constant 0.000000e+00 : f32
    %59 = vector.broadcast %cst_30 : f32 to vector<4x1xf32>
    %60 = vector.extract_strided_slice %46 {offsets = [0, 0], sizes = [4, 323], strides = [1, 1]} : vector<4x324xf32> to vector<4x323xf32>
    %61 = tpu.concatenate %59, %60 in 1 : vector<4x1xf32>, vector<4x323xf32> -> vector<4x324xf32>
    %62 = vector.extract_strided_slice %46 {offsets = [0, 1], sizes = [4, 323], strides = [1, 1]} : vector<4x324xf32> to vector<4x323xf32>
    %cst_31 = arith.constant 0.000000e+00 : f32
    %63 = vector.broadcast %cst_31 : f32 to vector<4x1xf32>
    %64 = tpu.concatenate %62, %63 in 1 : vector<4x323xf32>, vector<4x1xf32> -> vector<4x324xf32>
    %65 = vector.extract_strided_slice %46 {offsets = [0, 17], sizes = [4, 307], strides = [1, 1]} : vector<4x324xf32> to vector<4x307xf32>
    %cst_32 = arith.constant 0.000000e+00 : f32
    %66 = vector.broadcast %cst_32 : f32 to vector<4x17xf32>
    %67 = tpu.concatenate %65, %66 in 1 : vector<4x307xf32>, vector<4x17xf32> -> vector<4x324xf32>
    %68 = vector.extract_strided_slice %46 {offsets = [0, 18], sizes = [4, 306], strides = [1, 1]} : vector<4x324xf32> to vector<4x306xf32>
    %cst_33 = arith.constant 0.000000e+00 : f32
    %69 = vector.broadcast %cst_33 : f32 to vector<4x18xf32>
    %70 = tpu.concatenate %68, %69 in 1 : vector<4x306xf32>, vector<4x18xf32> -> vector<4x324xf32>
    %71 = vector.extract_strided_slice %46 {offsets = [0, 19], sizes = [4, 305], strides = [1, 1]} : vector<4x324xf32> to vector<4x305xf32>
    %cst_34 = arith.constant 0.000000e+00 : f32
    %72 = vector.broadcast %cst_34 : f32 to vector<4x19xf32>
    %73 = tpu.concatenate %71, %72 in 1 : vector<4x305xf32>, vector<4x19xf32> -> vector<4x324xf32>
    %74 = tpu.concatenate %52, %55, %58, %61, %46, %64, %67, %70, %73 in 0 : vector<4x324xf32>, vector<4x324xf32>, vector<4x324xf32>, vector<4x324xf32>, vector<4x324xf32>, vector<4x324xf32>, vector<4x324xf32>, vector<4x324xf32>, vector<4x324xf32> -> vector<36x324xf32>
    %cst_35 = arith.constant dense<0.000000e+00> : vector<4x324xf32>
    %75 = tpu.matmul %49, %74, %cst_35 {dimension_numbers = #tpu.dot_dimension_numbers<[1], [0], [0], [1], [0, 0, 1, 1], [], []>} : vector<4x36xf32>, vector<36x324xf32>, vector<4x324xf32> -> vector<4x324xf32>
    %cst_36 = arith.constant 0.000000e+00 : f32
    %76 = vector.broadcast %cst_36 : f32 to vector<4x324xf32>
    %77 = arith.cmpf oge, %75, %76 : vector<4x324xf32>
    %cst_37 = arith.constant 2.000000e-01 : f32
    %78 = vector.broadcast %cst_37 : f32 to vector<4x324xf32>
    %79 = arith.mulf %78, %75 : vector<4x324xf32>
    %80 = arith.select %77, %75, %79 : vector<4x324xi1>, vector<4x324xf32>
    %81 = vector.broadcast %0 : vector<1x324xf32> to vector<4x324xf32>
    %82 = arith.mulf %80, %81 : vector<4x324xf32>
    %c0_38 = arith.constant 0 : index
    %c0_39 = arith.constant 0 : index
    %c0_40 = arith.constant 0 : index
    %83 = vector.load %arg10[%c0_38, %c0_39, %c0_40] : memref<2x4x36xf32, #tpu.memory_space<vmem>>, vector<1x4x36xf32>
    %84 = vector.shape_cast %83 : vector<1x4x36xf32> to vector<4x36xf32>
    %cst_41 = arith.constant 0.000000e+00 : f32
    %85 = vector.broadcast %cst_41 : f32 to vector<4x19xf32>
    %86 = vector.extract_strided_slice %47 {offsets = [0, 0], sizes = [4, 305], strides = [1, 1]} : vector<4x324xf32> to vector<4x305xf32>
    %87 = tpu.concatenate %85, %86 in 1 : vector<4x19xf32>, vector<4x305xf32> -> vector<4x324xf32>
    %cst_42 = arith.constant 0.000000e+00 : f32
    %88 = vector.broadcast %cst_42 : f32 to vector<4x18xf32>
    %89 = vector.extract_strided_slice %47 {offsets = [0, 0], sizes = [4, 306], strides = [1, 1]} : vector<4x324xf32> to vector<4x306xf32>
    %90 = tpu.concatenate %88, %89 in 1 : vector<4x18xf32>, vector<4x306xf32> -> vector<4x324xf32>
    %cst_43 = arith.constant 0.000000e+00 : f32
    %91 = vector.broadcast %cst_43 : f32 to vector<4x17xf32>
    %92 = vector.extract_strided_slice %47 {offsets = [0, 0], sizes = [4, 307], strides = [1, 1]} : vector<4x324xf32> to vector<4x307xf32>
    %93 = tpu.concatenate %91, %92 in 1 : vector<4x17xf32>, vector<4x307xf32> -> vector<4x324xf32>
    %cst_44 = arith.constant 0.000000e+00 : f32
    %94 = vector.broadcast %cst_44 : f32 to vector<4x1xf32>
    %95 = vector.extract_strided_slice %47 {offsets = [0, 0], sizes = [4, 323], strides = [1, 1]} : vector<4x324xf32> to vector<4x323xf32>
    %96 = tpu.concatenate %94, %95 in 1 : vector<4x1xf32>, vector<4x323xf32> -> vector<4x324xf32>
    %97 = vector.extract_strided_slice %47 {offsets = [0, 1], sizes = [4, 323], strides = [1, 1]} : vector<4x324xf32> to vector<4x323xf32>
    %cst_45 = arith.constant 0.000000e+00 : f32
    %98 = vector.broadcast %cst_45 : f32 to vector<4x1xf32>
    %99 = tpu.concatenate %97, %98 in 1 : vector<4x323xf32>, vector<4x1xf32> -> vector<4x324xf32>
    %100 = vector.extract_strided_slice %47 {offsets = [0, 17], sizes = [4, 307], strides = [1, 1]} : vector<4x324xf32> to vector<4x307xf32>
    %cst_46 = arith.constant 0.000000e+00 : f32
    %101 = vector.broadcast %cst_46 : f32 to vector<4x17xf32>
    %102 = tpu.concatenate %100, %101 in 1 : vector<4x307xf32>, vector<4x17xf32> -> vector<4x324xf32>
    %103 = vector.extract_strided_slice %47 {offsets = [0, 18], sizes = [4, 306], strides = [1, 1]} : vector<4x324xf32> to vector<4x306xf32>
    %cst_47 = arith.constant 0.000000e+00 : f32
    %104 = vector.broadcast %cst_47 : f32 to vector<4x18xf32>
    %105 = tpu.concatenate %103, %104 in 1 : vector<4x306xf32>, vector<4x18xf32> -> vector<4x324xf32>
    %106 = vector.extract_strided_slice %47 {offsets = [0, 19], sizes = [4, 305], strides = [1, 1]} : vector<4x324xf32> to vector<4x305xf32>
    %cst_48 = arith.constant 0.000000e+00 : f32
    %107 = vector.broadcast %cst_48 : f32 to vector<4x19xf32>
    %108 = tpu.concatenate %106, %107 in 1 : vector<4x305xf32>, vector<4x19xf32> -> vector<4x324xf32>
    %109 = tpu.concatenate %87, %90, %93, %96, %47, %99, %102, %105, %108 in 0 : vector<4x324xf32>, vector<4x324xf32>, vector<4x324xf32>, vector<4x324xf32>, vector<4x324xf32>, vector<4x324xf32>, vector<4x324xf32>, vector<4x324xf32>, vector<4x324xf32> -> vector<36x324xf32>
    %cst_49 = arith.constant dense<0.000000e+00> : vector<4x324xf32>
    %110 = tpu.matmul %84, %109, %cst_49 {dimension_numbers = #tpu.dot_dimension_numbers<[1], [0], [0], [1], [0, 0, 1, 1], [], []>} : vector<4x36xf32>, vector<36x324xf32>, vector<4x324xf32> -> vector<4x324xf32>
    %111 = vector.broadcast %0 : vector<1x324xf32> to vector<4x324xf32>
    %112 = arith.mulf %110, %111 : vector<4x324xf32>
    %c0_50 = arith.constant 0 : index
    %c0_51 = arith.constant 0 : index
    %c0_52 = arith.constant 0 : index
    %113 = vector.load %arg11[%c0_50, %c0_51, %c0_52] : memref<2x4x36xf32, #tpu.memory_space<vmem>>, vector<1x4x36xf32>
    %114 = vector.shape_cast %113 : vector<1x4x36xf32> to vector<4x36xf32>
    %cst_53 = arith.constant 0.000000e+00 : f32
    %115 = vector.broadcast %cst_53 : f32 to vector<4x19xf32>
    %116 = vector.extract_strided_slice %112 {offsets = [0, 0], sizes = [4, 305], strides = [1, 1]} : vector<4x324xf32> to vector<4x305xf32>
    %117 = tpu.concatenate %115, %116 in 1 : vector<4x19xf32>, vector<4x305xf32> -> vector<4x324xf32>
    %cst_54 = arith.constant 0.000000e+00 : f32
    %118 = vector.broadcast %cst_54 : f32 to vector<4x18xf32>
    %119 = vector.extract_strided_slice %112 {offsets = [0, 0], sizes = [4, 306], strides = [1, 1]} : vector<4x324xf32> to vector<4x306xf32>
    %120 = tpu.concatenate %118, %119 in 1 : vector<4x18xf32>, vector<4x306xf32> -> vector<4x324xf32>
    %cst_55 = arith.constant 0.000000e+00 : f32
    %121 = vector.broadcast %cst_55 : f32 to vector<4x17xf32>
    %122 = vector.extract_strided_slice %112 {offsets = [0, 0], sizes = [4, 307], strides = [1, 1]} : vector<4x324xf32> to vector<4x307xf32>
    %123 = tpu.concatenate %121, %122 in 1 : vector<4x17xf32>, vector<4x307xf32> -> vector<4x324xf32>
    %cst_56 = arith.constant 0.000000e+00 : f32
    %124 = vector.broadcast %cst_56 : f32 to vector<4x1xf32>
    %125 = vector.extract_strided_slice %112 {offsets = [0, 0], sizes = [4, 323], strides = [1, 1]} : vector<4x324xf32> to vector<4x323xf32>
    %126 = tpu.concatenate %124, %125 in 1 : vector<4x1xf32>, vector<4x323xf32> -> vector<4x324xf32>
    %127 = vector.extract_strided_slice %112 {offsets = [0, 1], sizes = [4, 323], strides = [1, 1]} : vector<4x324xf32> to vector<4x323xf32>
    %cst_57 = arith.constant 0.000000e+00 : f32
    %128 = vector.broadcast %cst_57 : f32 to vector<4x1xf32>
    %129 = tpu.concatenate %127, %128 in 1 : vector<4x323xf32>, vector<4x1xf32> -> vector<4x324xf32>
    %130 = vector.extract_strided_slice %112 {offsets = [0, 17], sizes = [4, 307], strides = [1, 1]} : vector<4x324xf32> to vector<4x307xf32>
    %cst_58 = arith.constant 0.000000e+00 : f32
    %131 = vector.broadcast %cst_58 : f32 to vector<4x17xf32>
    %132 = tpu.concatenate %130, %131 in 1 : vector<4x307xf32>, vector<4x17xf32> -> vector<4x324xf32>
    %133 = vector.extract_strided_slice %112 {offsets = [0, 18], sizes = [4, 306], strides = [1, 1]} : vector<4x324xf32> to vector<4x306xf32>
    %cst_59 = arith.constant 0.000000e+00 : f32
    %134 = vector.broadcast %cst_59 : f32 to vector<4x18xf32>
    %135 = tpu.concatenate %133, %134 in 1 : vector<4x306xf32>, vector<4x18xf32> -> vector<4x324xf32>
    %136 = vector.extract_strided_slice %112 {offsets = [0, 19], sizes = [4, 305], strides = [1, 1]} : vector<4x324xf32> to vector<4x305xf32>
    %cst_60 = arith.constant 0.000000e+00 : f32
    %137 = vector.broadcast %cst_60 : f32 to vector<4x19xf32>
    %138 = tpu.concatenate %136, %137 in 1 : vector<4x305xf32>, vector<4x19xf32> -> vector<4x324xf32>
    %139 = tpu.concatenate %117, %120, %123, %126, %112, %129, %132, %135, %138 in 0 : vector<4x324xf32>, vector<4x324xf32>, vector<4x324xf32>, vector<4x324xf32>, vector<4x324xf32>, vector<4x324xf32>, vector<4x324xf32>, vector<4x324xf32>, vector<4x324xf32> -> vector<36x324xf32>
    %cst_61 = arith.constant dense<0.000000e+00> : vector<4x324xf32>
    %140 = tpu.matmul %114, %139, %cst_61 {dimension_numbers = #tpu.dot_dimension_numbers<[1], [0], [0], [1], [0, 0, 1, 1], [], []>} : vector<4x36xf32>, vector<36x324xf32>, vector<4x324xf32> -> vector<4x324xf32>
    %cst_62 = arith.constant 0.000000e+00 : f32
    %141 = vector.broadcast %cst_62 : f32 to vector<4x324xf32>
    %142 = arith.cmpf oge, %140, %141 : vector<4x324xf32>
    %cst_63 = arith.constant 2.000000e-01 : f32
    %143 = vector.broadcast %cst_63 : f32 to vector<4x324xf32>
    %144 = arith.mulf %143, %140 : vector<4x324xf32>
    %145 = arith.select %142, %140, %144 : vector<4x324xi1>, vector<4x324xf32>
    %146 = vector.broadcast %0 : vector<1x324xf32> to vector<4x324xf32>
    %147 = arith.mulf %145, %146 : vector<4x324xf32>
    %148 = tpu.concatenate %82, %147 in 0 : vector<4x324xf32>, vector<4x324xf32> -> vector<8x324xf32>
    %c0_64 = arith.constant 0 : index
    %c0_65 = arith.constant 0 : index
    %c0_66 = arith.constant 0 : index
    %149 = vector.load %arg12[%c0_64, %c0_65, %c0_66] : memref<2x8x8xf32, #tpu.memory_space<vmem>>, vector<1x8x8xf32>
    %150 = vector.shape_cast %149 : vector<1x8x8xf32> to vector<8x8xf32>
    %cst_67 = arith.constant dense<0.000000e+00> : vector<8x324xf32>
    %151 = tpu.matmul %150, %148, %cst_67 {dimension_numbers = #tpu.dot_dimension_numbers<[1], [0], [0], [1], [0, 0, 1, 1], [], []>} : vector<8x8xf32>, vector<8x324xf32>, vector<8x324xf32> -> vector<8x324xf32>
    %152 = vector.broadcast %0 : vector<1x324xf32> to vector<8x324xf32>
    %153 = arith.mulf %151, %152 : vector<8x324xf32>
    %154 = arith.addf %153, %35 : vector<8x324xf32>
    %c1 = arith.constant 1 : index
    %c0_68 = arith.constant 0 : index
    %c0_69 = arith.constant 0 : index
    %155 = vector.load %arg8[%c1, %c0_68, %c0_69] : memref<2x8x8xf32, #tpu.memory_space<vmem>>, vector<1x8x8xf32>
    %156 = vector.shape_cast %155 : vector<1x8x8xf32> to vector<8x8xf32>
    %cst_70 = arith.constant dense<0.000000e+00> : vector<8x324xf32>
    %157 = tpu.matmul %156, %154, %cst_70 {dimension_numbers = #tpu.dot_dimension_numbers<[1], [0], [0], [1], [0, 0, 1, 1], [], []>} : vector<8x8xf32>, vector<8x324xf32>, vector<8x324xf32> -> vector<8x324xf32>
    %cst_71 = arith.constant 0.000000e+00 : f32
    %158 = vector.broadcast %cst_71 : f32 to vector<8x324xf32>
    %159 = arith.cmpf oge, %157, %158 : vector<8x324xf32>
    %cst_72 = arith.constant 2.000000e-01 : f32
    %160 = vector.broadcast %cst_72 : f32 to vector<8x324xf32>
    %161 = arith.mulf %160, %157 : vector<8x324xf32>
    %162 = arith.select %159, %157, %161 : vector<8x324xi1>, vector<8x324xf32>
    %163 = vector.broadcast %0 : vector<1x324xf32> to vector<8x324xf32>
    %164 = arith.mulf %162, %163 : vector<8x324xf32>
    %165 = vector.extract_strided_slice %164 {offsets = [0, 0], sizes = [4, 324], strides = [1, 1]} : vector<8x324xf32> to vector<4x324xf32>
    %166 = vector.extract_strided_slice %164 {offsets = [4, 0], sizes = [4, 324], strides = [1, 1]} : vector<8x324xf32> to vector<4x324xf32>
    %c1_73 = arith.constant 1 : index
    %c0_74 = arith.constant 0 : index
    %c0_75 = arith.constant 0 : index
    %167 = vector.load %arg9[%c1_73, %c0_74, %c0_75] : memref<2x4x36xf32, #tpu.memory_space<vmem>>, vector<1x4x36xf32>
    %168 = vector.shape_cast %167 : vector<1x4x36xf32> to vector<4x36xf32>
    %cst_76 = arith.constant 0.000000e+00 : f32
    %169 = vector.broadcast %cst_76 : f32 to vector<4x19xf32>
    %170 = vector.extract_strided_slice %165 {offsets = [0, 0], sizes = [4, 305], strides = [1, 1]} : vector<4x324xf32> to vector<4x305xf32>
    %171 = tpu.concatenate %169, %170 in 1 : vector<4x19xf32>, vector<4x305xf32> -> vector<4x324xf32>
    %cst_77 = arith.constant 0.000000e+00 : f32
    %172 = vector.broadcast %cst_77 : f32 to vector<4x18xf32>
    %173 = vector.extract_strided_slice %165 {offsets = [0, 0], sizes = [4, 306], strides = [1, 1]} : vector<4x324xf32> to vector<4x306xf32>
    %174 = tpu.concatenate %172, %173 in 1 : vector<4x18xf32>, vector<4x306xf32> -> vector<4x324xf32>
    %cst_78 = arith.constant 0.000000e+00 : f32
    %175 = vector.broadcast %cst_78 : f32 to vector<4x17xf32>
    %176 = vector.extract_strided_slice %165 {offsets = [0, 0], sizes = [4, 307], strides = [1, 1]} : vector<4x324xf32> to vector<4x307xf32>
    %177 = tpu.concatenate %175, %176 in 1 : vector<4x17xf32>, vector<4x307xf32> -> vector<4x324xf32>
    %cst_79 = arith.constant 0.000000e+00 : f32
    %178 = vector.broadcast %cst_79 : f32 to vector<4x1xf32>
    %179 = vector.extract_strided_slice %165 {offsets = [0, 0], sizes = [4, 323], strides = [1, 1]} : vector<4x324xf32> to vector<4x323xf32>
    %180 = tpu.concatenate %178, %179 in 1 : vector<4x1xf32>, vector<4x323xf32> -> vector<4x324xf32>
    %181 = vector.extract_strided_slice %165 {offsets = [0, 1], sizes = [4, 323], strides = [1, 1]} : vector<4x324xf32> to vector<4x323xf32>
    %cst_80 = arith.constant 0.000000e+00 : f32
    %182 = vector.broadcast %cst_80 : f32 to vector<4x1xf32>
    %183 = tpu.concatenate %181, %182 in 1 : vector<4x323xf32>, vector<4x1xf32> -> vector<4x324xf32>
    %184 = vector.extract_strided_slice %165 {offsets = [0, 17], sizes = [4, 307], strides = [1, 1]} : vector<4x324xf32> to vector<4x307xf32>
    %cst_81 = arith.constant 0.000000e+00 : f32
    %185 = vector.broadcast %cst_81 : f32 to vector<4x17xf32>
    %186 = tpu.concatenate %184, %185 in 1 : vector<4x307xf32>, vector<4x17xf32> -> vector<4x324xf32>
    %187 = vector.extract_strided_slice %165 {offsets = [0, 18], sizes = [4, 306], strides = [1, 1]} : vector<4x324xf32> to vector<4x306xf32>
    %cst_82 = arith.constant 0.000000e+00 : f32
    %188 = vector.broadcast %cst_82 : f32 to vector<4x18xf32>
    %189 = tpu.concatenate %187, %188 in 1 : vector<4x306xf32>, vector<4x18xf32> -> vector<4x324xf32>
    %190 = vector.extract_strided_slice %165 {offsets = [0, 19], sizes = [4, 305], strides = [1, 1]} : vector<4x324xf32> to vector<4x305xf32>
    %cst_83 = arith.constant 0.000000e+00 : f32
    %191 = vector.broadcast %cst_83 : f32 to vector<4x19xf32>
    %192 = tpu.concatenate %190, %191 in 1 : vector<4x305xf32>, vector<4x19xf32> -> vector<4x324xf32>
    %193 = tpu.concatenate %171, %174, %177, %180, %165, %183, %186, %189, %192 in 0 : vector<4x324xf32>, vector<4x324xf32>, vector<4x324xf32>, vector<4x324xf32>, vector<4x324xf32>, vector<4x324xf32>, vector<4x324xf32>, vector<4x324xf32>, vector<4x324xf32> -> vector<36x324xf32>
    %cst_84 = arith.constant dense<0.000000e+00> : vector<4x324xf32>
    %194 = tpu.matmul %168, %193, %cst_84 {dimension_numbers = #tpu.dot_dimension_numbers<[1], [0], [0], [1], [0, 0, 1, 1], [], []>} : vector<4x36xf32>, vector<36x324xf32>, vector<4x324xf32> -> vector<4x324xf32>
    %cst_85 = arith.constant 0.000000e+00 : f32
    %195 = vector.broadcast %cst_85 : f32 to vector<4x324xf32>
    %196 = arith.cmpf oge, %194, %195 : vector<4x324xf32>
    %cst_86 = arith.constant 2.000000e-01 : f32
    %197 = vector.broadcast %cst_86 : f32 to vector<4x324xf32>
    %198 = arith.mulf %197, %194 : vector<4x324xf32>
    %199 = arith.select %196, %194, %198 : vector<4x324xi1>, vector<4x324xf32>
    %200 = vector.broadcast %0 : vector<1x324xf32> to vector<4x324xf32>
    %201 = arith.mulf %199, %200 : vector<4x324xf32>
    %c1_87 = arith.constant 1 : index
    %c0_88 = arith.constant 0 : index
    %c0_89 = arith.constant 0 : index
    %202 = vector.load %arg10[%c1_87, %c0_88, %c0_89] : memref<2x4x36xf32, #tpu.memory_space<vmem>>, vector<1x4x36xf32>
    %203 = vector.shape_cast %202 : vector<1x4x36xf32> to vector<4x36xf32>
    %cst_90 = arith.constant 0.000000e+00 : f32
    %204 = vector.broadcast %cst_90 : f32 to vector<4x19xf32>
    %205 = vector.extract_strided_slice %166 {offsets = [0, 0], sizes = [4, 305], strides = [1, 1]} : vector<4x324xf32> to vector<4x305xf32>
    %206 = tpu.concatenate %204, %205 in 1 : vector<4x19xf32>, vector<4x305xf32> -> vector<4x324xf32>
    %cst_91 = arith.constant 0.000000e+00 : f32
    %207 = vector.broadcast %cst_91 : f32 to vector<4x18xf32>
    %208 = vector.extract_strided_slice %166 {offsets = [0, 0], sizes = [4, 306], strides = [1, 1]} : vector<4x324xf32> to vector<4x306xf32>
    %209 = tpu.concatenate %207, %208 in 1 : vector<4x18xf32>, vector<4x306xf32> -> vector<4x324xf32>
    %cst_92 = arith.constant 0.000000e+00 : f32
    %210 = vector.broadcast %cst_92 : f32 to vector<4x17xf32>
    %211 = vector.extract_strided_slice %166 {offsets = [0, 0], sizes = [4, 307], strides = [1, 1]} : vector<4x324xf32> to vector<4x307xf32>
    %212 = tpu.concatenate %210, %211 in 1 : vector<4x17xf32>, vector<4x307xf32> -> vector<4x324xf32>
    %cst_93 = arith.constant 0.000000e+00 : f32
    %213 = vector.broadcast %cst_93 : f32 to vector<4x1xf32>
    %214 = vector.extract_strided_slice %166 {offsets = [0, 0], sizes = [4, 323], strides = [1, 1]} : vector<4x324xf32> to vector<4x323xf32>
    %215 = tpu.concatenate %213, %214 in 1 : vector<4x1xf32>, vector<4x323xf32> -> vector<4x324xf32>
    %216 = vector.extract_strided_slice %166 {offsets = [0, 1], sizes = [4, 323], strides = [1, 1]} : vector<4x324xf32> to vector<4x323xf32>
    %cst_94 = arith.constant 0.000000e+00 : f32
    %217 = vector.broadcast %cst_94 : f32 to vector<4x1xf32>
    %218 = tpu.concatenate %216, %217 in 1 : vector<4x323xf32>, vector<4x1xf32> -> vector<4x324xf32>
    %219 = vector.extract_strided_slice %166 {offsets = [0, 17], sizes = [4, 307], strides = [1, 1]} : vector<4x324xf32> to vector<4x307xf32>
    %cst_95 = arith.constant 0.000000e+00 : f32
    %220 = vector.broadcast %cst_95 : f32 to vector<4x17xf32>
    %221 = tpu.concatenate %219, %220 in 1 : vector<4x307xf32>, vector<4x17xf32> -> vector<4x324xf32>
    %222 = vector.extract_strided_slice %166 {offsets = [0, 18], sizes = [4, 306], strides = [1, 1]} : vector<4x324xf32> to vector<4x306xf32>
    %cst_96 = arith.constant 0.000000e+00 : f32
    %223 = vector.broadcast %cst_96 : f32 to vector<4x18xf32>
    %224 = tpu.concatenate %222, %223 in 1 : vector<4x306xf32>, vector<4x18xf32> -> vector<4x324xf32>
    %225 = vector.extract_strided_slice %166 {offsets = [0, 19], sizes = [4, 305], strides = [1, 1]} : vector<4x324xf32> to vector<4x305xf32>
    %cst_97 = arith.constant 0.000000e+00 : f32
    %226 = vector.broadcast %cst_97 : f32 to vector<4x19xf32>
    %227 = tpu.concatenate %225, %226 in 1 : vector<4x305xf32>, vector<4x19xf32> -> vector<4x324xf32>
    %228 = tpu.concatenate %206, %209, %212, %215, %166, %218, %221, %224, %227 in 0 : vector<4x324xf32>, vector<4x324xf32>, vector<4x324xf32>, vector<4x324xf32>, vector<4x324xf32>, vector<4x324xf32>, vector<4x324xf32>, vector<4x324xf32>, vector<4x324xf32> -> vector<36x324xf32>
    %cst_98 = arith.constant dense<0.000000e+00> : vector<4x324xf32>
    %229 = tpu.matmul %203, %228, %cst_98 {dimension_numbers = #tpu.dot_dimension_numbers<[1], [0], [0], [1], [0, 0, 1, 1], [], []>} : vector<4x36xf32>, vector<36x324xf32>, vector<4x324xf32> -> vector<4x324xf32>
    %230 = vector.broadcast %0 : vector<1x324xf32> to vector<4x324xf32>
    %231 = arith.mulf %229, %230 : vector<4x324xf32>
    %c1_99 = arith.constant 1 : index
    %c0_100 = arith.constant 0 : index
    %c0_101 = arith.constant 0 : index
    %232 = vector.load %arg11[%c1_99, %c0_100, %c0_101] : memref<2x4x36xf32, #tpu.memory_space<vmem>>, vector<1x4x36xf32>
    %233 = vector.shape_cast %232 : vector<1x4x36xf32> to vector<4x36xf32>
    %cst_102 = arith.constant 0.000000e+00 : f32
    %234 = vector.broadcast %cst_102 : f32 to vector<4x19xf32>
    %235 = vector.extract_strided_slice %231 {offsets = [0, 0], sizes = [4, 305], strides = [1, 1]} : vector<4x324xf32> to vector<4x305xf32>
    %236 = tpu.concatenate %234, %235 in 1 : vector<4x19xf32>, vector<4x305xf32> -> vector<4x324xf32>
    %cst_103 = arith.constant 0.000000e+00 : f32
    %237 = vector.broadcast %cst_103 : f32 to vector<4x18xf32>
    %238 = vector.extract_strided_slice %231 {offsets = [0, 0], sizes = [4, 306], strides = [1, 1]} : vector<4x324xf32> to vector<4x306xf32>
    %239 = tpu.concatenate %237, %238 in 1 : vector<4x18xf32>, vector<4x306xf32> -> vector<4x324xf32>
    %cst_104 = arith.constant 0.000000e+00 : f32
    %240 = vector.broadcast %cst_104 : f32 to vector<4x17xf32>
    %241 = vector.extract_strided_slice %231 {offsets = [0, 0], sizes = [4, 307], strides = [1, 1]} : vector<4x324xf32> to vector<4x307xf32>
    %242 = tpu.concatenate %240, %241 in 1 : vector<4x17xf32>, vector<4x307xf32> -> vector<4x324xf32>
    %cst_105 = arith.constant 0.000000e+00 : f32
    %243 = vector.broadcast %cst_105 : f32 to vector<4x1xf32>
    %244 = vector.extract_strided_slice %231 {offsets = [0, 0], sizes = [4, 323], strides = [1, 1]} : vector<4x324xf32> to vector<4x323xf32>
    %245 = tpu.concatenate %243, %244 in 1 : vector<4x1xf32>, vector<4x323xf32> -> vector<4x324xf32>
    %246 = vector.extract_strided_slice %231 {offsets = [0, 1], sizes = [4, 323], strides = [1, 1]} : vector<4x324xf32> to vector<4x323xf32>
    %cst_106 = arith.constant 0.000000e+00 : f32
    %247 = vector.broadcast %cst_106 : f32 to vector<4x1xf32>
    %248 = tpu.concatenate %246, %247 in 1 : vector<4x323xf32>, vector<4x1xf32> -> vector<4x324xf32>
    %249 = vector.extract_strided_slice %231 {offsets = [0, 17], sizes = [4, 307], strides = [1, 1]} : vector<4x324xf32> to vector<4x307xf32>
    %cst_107 = arith.constant 0.000000e+00 : f32
    %250 = vector.broadcast %cst_107 : f32 to vector<4x17xf32>
    %251 = tpu.concatenate %249, %250 in 1 : vector<4x307xf32>, vector<4x17xf32> -> vector<4x324xf32>
    %252 = vector.extract_strided_slice %231 {offsets = [0, 18], sizes = [4, 306], strides = [1, 1]} : vector<4x324xf32> to vector<4x306xf32>
    %cst_108 = arith.constant 0.000000e+00 : f32
    %253 = vector.broadcast %cst_108 : f32 to vector<4x18xf32>
    %254 = tpu.concatenate %252, %253 in 1 : vector<4x306xf32>, vector<4x18xf32> -> vector<4x324xf32>
    %255 = vector.extract_strided_slice %231 {offsets = [0, 19], sizes = [4, 305], strides = [1, 1]} : vector<4x324xf32> to vector<4x305xf32>
    %cst_109 = arith.constant 0.000000e+00 : f32
    %256 = vector.broadcast %cst_109 : f32 to vector<4x19xf32>
    %257 = tpu.concatenate %255, %256 in 1 : vector<4x305xf32>, vector<4x19xf32> -> vector<4x324xf32>
    %258 = tpu.concatenate %236, %239, %242, %245, %231, %248, %251, %254, %257 in 0 : vector<4x324xf32>, vector<4x324xf32>, vector<4x324xf32>, vector<4x324xf32>, vector<4x324xf32>, vector<4x324xf32>, vector<4x324xf32>, vector<4x324xf32>, vector<4x324xf32> -> vector<36x324xf32>
    %cst_110 = arith.constant dense<0.000000e+00> : vector<4x324xf32>
    %259 = tpu.matmul %233, %258, %cst_110 {dimension_numbers = #tpu.dot_dimension_numbers<[1], [0], [0], [1], [0, 0, 1, 1], [], []>} : vector<4x36xf32>, vector<36x324xf32>, vector<4x324xf32> -> vector<4x324xf32>
    %cst_111 = arith.constant 0.000000e+00 : f32
    %260 = vector.broadcast %cst_111 : f32 to vector<4x324xf32>
    %261 = arith.cmpf oge, %259, %260 : vector<4x324xf32>
    %cst_112 = arith.constant 2.000000e-01 : f32
    %262 = vector.broadcast %cst_112 : f32 to vector<4x324xf32>
    %263 = arith.mulf %262, %259 : vector<4x324xf32>
    %264 = arith.select %261, %259, %263 : vector<4x324xi1>, vector<4x324xf32>
    %265 = vector.broadcast %0 : vector<1x324xf32> to vector<4x324xf32>
    %266 = arith.mulf %264, %265 : vector<4x324xf32>
    %267 = tpu.concatenate %201, %266 in 0 : vector<4x324xf32>, vector<4x324xf32> -> vector<8x324xf32>
    %c1_113 = arith.constant 1 : index
    %c0_114 = arith.constant 0 : index
    %c0_115 = arith.constant 0 : index
    %268 = vector.load %arg12[%c1_113, %c0_114, %c0_115] : memref<2x8x8xf32, #tpu.memory_space<vmem>>, vector<1x8x8xf32>
    %269 = vector.shape_cast %268 : vector<1x8x8xf32> to vector<8x8xf32>
    %cst_116 = arith.constant dense<0.000000e+00> : vector<8x324xf32>
    %270 = tpu.matmul %269, %267, %cst_116 {dimension_numbers = #tpu.dot_dimension_numbers<[1], [0], [0], [1], [0, 0, 1, 1], [], []>} : vector<8x8xf32>, vector<8x324xf32>, vector<8x324xf32> -> vector<8x324xf32>
    %271 = vector.broadcast %0 : vector<1x324xf32> to vector<8x324xf32>
    %272 = arith.mulf %270, %271 : vector<8x324xf32>
    %273 = arith.addf %272, %154 : vector<8x324xf32>
    %c0_117 = arith.constant 0 : index
    %c0_118 = arith.constant 0 : index
    %274 = vector.load %arg13[%c0_117, %c0_118] : memref<8x72xf32, #tpu.memory_space<vmem>>, vector<8x72xf32>
    %c0_119 = arith.constant 0 : index
    %c0_120 = arith.constant 0 : index
    %275 = vector.load %arg14[%c0_119, %c0_120] : memref<8x1xf32, #tpu.memory_space<vmem>>, vector<8x1xf32>
    %cst_121 = arith.constant 0.000000e+00 : f32
    %276 = vector.broadcast %cst_121 : f32 to vector<8x19xf32>
    %277 = vector.extract_strided_slice %273 {offsets = [0, 0], sizes = [8, 305], strides = [1, 1]} : vector<8x324xf32> to vector<8x305xf32>
    %278 = tpu.concatenate %276, %277 in 1 : vector<8x19xf32>, vector<8x305xf32> -> vector<8x324xf32>
    %cst_122 = arith.constant 0.000000e+00 : f32
    %279 = vector.broadcast %cst_122 : f32 to vector<8x18xf32>
    %280 = vector.extract_strided_slice %273 {offsets = [0, 0], sizes = [8, 306], strides = [1, 1]} : vector<8x324xf32> to vector<8x306xf32>
    %281 = tpu.concatenate %279, %280 in 1 : vector<8x18xf32>, vector<8x306xf32> -> vector<8x324xf32>
    %cst_123 = arith.constant 0.000000e+00 : f32
    %282 = vector.broadcast %cst_123 : f32 to vector<8x17xf32>
    %283 = vector.extract_strided_slice %273 {offsets = [0, 0], sizes = [8, 307], strides = [1, 1]} : vector<8x324xf32> to vector<8x307xf32>
    %284 = tpu.concatenate %282, %283 in 1 : vector<8x17xf32>, vector<8x307xf32> -> vector<8x324xf32>
    %cst_124 = arith.constant 0.000000e+00 : f32
    %285 = vector.broadcast %cst_124 : f32 to vector<8x1xf32>
    %286 = vector.extract_strided_slice %273 {offsets = [0, 0], sizes = [8, 323], strides = [1, 1]} : vector<8x324xf32> to vector<8x323xf32>
    %287 = tpu.concatenate %285, %286 in 1 : vector<8x1xf32>, vector<8x323xf32> -> vector<8x324xf32>
    %288 = vector.extract_strided_slice %273 {offsets = [0, 1], sizes = [8, 323], strides = [1, 1]} : vector<8x324xf32> to vector<8x323xf32>
    %cst_125 = arith.constant 0.000000e+00 : f32
    %289 = vector.broadcast %cst_125 : f32 to vector<8x1xf32>
    %290 = tpu.concatenate %288, %289 in 1 : vector<8x323xf32>, vector<8x1xf32> -> vector<8x324xf32>
    %291 = vector.extract_strided_slice %273 {offsets = [0, 17], sizes = [8, 307], strides = [1, 1]} : vector<8x324xf32> to vector<8x307xf32>
    %cst_126 = arith.constant 0.000000e+00 : f32
    %292 = vector.broadcast %cst_126 : f32 to vector<8x17xf32>
    %293 = tpu.concatenate %291, %292 in 1 : vector<8x307xf32>, vector<8x17xf32> -> vector<8x324xf32>
    %294 = vector.extract_strided_slice %273 {offsets = [0, 18], sizes = [8, 306], strides = [1, 1]} : vector<8x324xf32> to vector<8x306xf32>
    %cst_127 = arith.constant 0.000000e+00 : f32
    %295 = vector.broadcast %cst_127 : f32 to vector<8x18xf32>
    %296 = tpu.concatenate %294, %295 in 1 : vector<8x306xf32>, vector<8x18xf32> -> vector<8x324xf32>
    %297 = vector.extract_strided_slice %273 {offsets = [0, 19], sizes = [8, 305], strides = [1, 1]} : vector<8x324xf32> to vector<8x305xf32>
    %cst_128 = arith.constant 0.000000e+00 : f32
    %298 = vector.broadcast %cst_128 : f32 to vector<8x19xf32>
    %299 = tpu.concatenate %297, %298 in 1 : vector<8x305xf32>, vector<8x19xf32> -> vector<8x324xf32>
    %300 = tpu.concatenate %278, %281, %284, %287, %273, %290, %293, %296, %299 in 0 : vector<8x324xf32>, vector<8x324xf32>, vector<8x324xf32>, vector<8x324xf32>, vector<8x324xf32>, vector<8x324xf32>, vector<8x324xf32>, vector<8x324xf32>, vector<8x324xf32> -> vector<72x324xf32>
    %cst_129 = arith.constant dense<0.000000e+00> : vector<8x324xf32>
    %301 = tpu.matmul %274, %300, %cst_129 {dimension_numbers = #tpu.dot_dimension_numbers<[1], [0], [0], [1], [0, 0, 1, 1], [], []>} : vector<8x72xf32>, vector<72x324xf32>, vector<8x324xf32> -> vector<8x324xf32>
    %302 = vector.broadcast %275 : vector<8x1xf32> to vector<8x324xf32>
    %303 = arith.addf %301, %302 : vector<8x324xf32>
    %304 = vector.broadcast %0 : vector<1x324xf32> to vector<8x324xf32>
    %305 = arith.mulf %303, %304 : vector<8x324xf32>
    %306 = arith.addf %35, %305 : vector<8x324xf32>
    %c0_130 = arith.constant 0 : index
    %c0_131 = arith.constant 0 : index
    %307 = vector.load %arg2[%c0_130, %c0_131] : memref<324x1156xf32, #tpu.memory_space<vmem>>, vector<324x1156xf32>
    %cst_132 = arith.constant dense<0.000000e+00> : vector<8x1156xf32>
    %308 = tpu.matmul %306, %307, %cst_132 {dimension_numbers = #tpu.dot_dimension_numbers<[1], [0], [0], [1], [0, 0, 1, 1], [], []>} : vector<8x324xf32>, vector<324x1156xf32>, vector<8x1156xf32> -> vector<8x1156xf32>
    %c0_133 = arith.constant 0 : index
    %c0_134 = arith.constant 0 : index
    %309 = vector.load %arg15[%c0_133, %c0_134] : memref<8x72xf32, #tpu.memory_space<vmem>>, vector<8x72xf32>
    %c0_135 = arith.constant 0 : index
    %c0_136 = arith.constant 0 : index
    %310 = vector.load %arg16[%c0_135, %c0_136] : memref<8x1xf32, #tpu.memory_space<vmem>>, vector<8x1xf32>
    %cst_137 = arith.constant 0.000000e+00 : f32
    %311 = vector.broadcast %cst_137 : f32 to vector<8x35xf32>
    %312 = vector.extract_strided_slice %308 {offsets = [0, 0], sizes = [8, 1121], strides = [1, 1]} : vector<8x1156xf32> to vector<8x1121xf32>
    %313 = tpu.concatenate %311, %312 in 1 : vector<8x35xf32>, vector<8x1121xf32> -> vector<8x1156xf32>
    %cst_138 = arith.constant 0.000000e+00 : f32
    %314 = vector.broadcast %cst_138 : f32 to vector<8x34xf32>
    %315 = vector.extract_strided_slice %308 {offsets = [0, 0], sizes = [8, 1122], strides = [1, 1]} : vector<8x1156xf32> to vector<8x1122xf32>
    %316 = tpu.concatenate %314, %315 in 1 : vector<8x34xf32>, vector<8x1122xf32> -> vector<8x1156xf32>
    %cst_139 = arith.constant 0.000000e+00 : f32
    %317 = vector.broadcast %cst_139 : f32 to vector<8x33xf32>
    %318 = vector.extract_strided_slice %308 {offsets = [0, 0], sizes = [8, 1123], strides = [1, 1]} : vector<8x1156xf32> to vector<8x1123xf32>
    %319 = tpu.concatenate %317, %318 in 1 : vector<8x33xf32>, vector<8x1123xf32> -> vector<8x1156xf32>
    %cst_140 = arith.constant 0.000000e+00 : f32
    %320 = vector.broadcast %cst_140 : f32 to vector<8x1xf32>
    %321 = vector.extract_strided_slice %308 {offsets = [0, 0], sizes = [8, 1155], strides = [1, 1]} : vector<8x1156xf32> to vector<8x1155xf32>
    %322 = tpu.concatenate %320, %321 in 1 : vector<8x1xf32>, vector<8x1155xf32> -> vector<8x1156xf32>
    %323 = vector.extract_strided_slice %308 {offsets = [0, 1], sizes = [8, 1155], strides = [1, 1]} : vector<8x1156xf32> to vector<8x1155xf32>
    %cst_141 = arith.constant 0.000000e+00 : f32
    %324 = vector.broadcast %cst_141 : f32 to vector<8x1xf32>
    %325 = tpu.concatenate %323, %324 in 1 : vector<8x1155xf32>, vector<8x1xf32> -> vector<8x1156xf32>
    %326 = vector.extract_strided_slice %308 {offsets = [0, 33], sizes = [8, 1123], strides = [1, 1]} : vector<8x1156xf32> to vector<8x1123xf32>
    %cst_142 = arith.constant 0.000000e+00 : f32
    %327 = vector.broadcast %cst_142 : f32 to vector<8x33xf32>
    %328 = tpu.concatenate %326, %327 in 1 : vector<8x1123xf32>, vector<8x33xf32> -> vector<8x1156xf32>
    %329 = vector.extract_strided_slice %308 {offsets = [0, 34], sizes = [8, 1122], strides = [1, 1]} : vector<8x1156xf32> to vector<8x1122xf32>
    %cst_143 = arith.constant 0.000000e+00 : f32
    %330 = vector.broadcast %cst_143 : f32 to vector<8x34xf32>
    %331 = tpu.concatenate %329, %330 in 1 : vector<8x1122xf32>, vector<8x34xf32> -> vector<8x1156xf32>
    %332 = vector.extract_strided_slice %308 {offsets = [0, 35], sizes = [8, 1121], strides = [1, 1]} : vector<8x1156xf32> to vector<8x1121xf32>
    %cst_144 = arith.constant 0.000000e+00 : f32
    %333 = vector.broadcast %cst_144 : f32 to vector<8x35xf32>
    %334 = tpu.concatenate %332, %333 in 1 : vector<8x1121xf32>, vector<8x35xf32> -> vector<8x1156xf32>
    %335 = tpu.concatenate %313, %316, %319, %322, %308, %325, %328, %331, %334 in 0 : vector<8x1156xf32>, vector<8x1156xf32>, vector<8x1156xf32>, vector<8x1156xf32>, vector<8x1156xf32>, vector<8x1156xf32>, vector<8x1156xf32>, vector<8x1156xf32>, vector<8x1156xf32> -> vector<72x1156xf32>
    %cst_145 = arith.constant dense<0.000000e+00> : vector<8x1156xf32>
    %336 = tpu.matmul %309, %335, %cst_145 {dimension_numbers = #tpu.dot_dimension_numbers<[1], [0], [0], [1], [0, 0, 1, 1], [], []>} : vector<8x72xf32>, vector<72x1156xf32>, vector<8x1156xf32> -> vector<8x1156xf32>
    %337 = vector.broadcast %310 : vector<8x1xf32> to vector<8x1156xf32>
    %338 = arith.addf %336, %337 : vector<8x1156xf32>
    %339 = vector.broadcast %1 : vector<1x1156xf32> to vector<8x1156xf32>
    %340 = arith.mulf %338, %339 : vector<8x1156xf32>
    %c0_146 = arith.constant 0 : index
    %c0_147 = arith.constant 0 : index
    %341 = vector.load %arg17[%c0_146, %c0_147] : memref<8x8xf32, #tpu.memory_space<vmem>>, vector<8x8xf32>
    %c0_148 = arith.constant 0 : index
    %c0_149 = arith.constant 0 : index
    %342 = vector.load %arg18[%c0_148, %c0_149] : memref<8x1xf32, #tpu.memory_space<vmem>>, vector<8x1xf32>
    %cst_150 = arith.constant dense<0.000000e+00> : vector<8x1156xf32>
    %343 = tpu.matmul %341, %340, %cst_150 {dimension_numbers = #tpu.dot_dimension_numbers<[1], [0], [0], [1], [0, 0, 1, 1], [], []>} : vector<8x8xf32>, vector<8x1156xf32>, vector<8x1156xf32> -> vector<8x1156xf32>
    %344 = vector.broadcast %342 : vector<8x1xf32> to vector<8x1156xf32>
    %345 = arith.addf %343, %344 : vector<8x1156xf32>
    %cst_151 = arith.constant 0.000000e+00 : f32
    %346 = vector.broadcast %cst_151 : f32 to vector<8x1156xf32>
    %347 = arith.cmpf oge, %345, %346 : vector<8x1156xf32>
    %cst_152 = arith.constant 2.000000e-01 : f32
    %348 = vector.broadcast %cst_152 : f32 to vector<8x1156xf32>
    %349 = arith.mulf %348, %345 : vector<8x1156xf32>
    %350 = arith.select %347, %345, %349 : vector<8x1156xi1>, vector<8x1156xf32>
    %351 = vector.broadcast %1 : vector<1x1156xf32> to vector<8x1156xf32>
    %352 = arith.mulf %350, %351 : vector<8x1156xf32>
    %c0_153 = arith.constant 0 : index
    %c0_154 = arith.constant 0 : index
    %353 = vector.load %arg19[%c0_153, %c0_154] : memref<8x72xf32, #tpu.memory_space<vmem>>, vector<8x72xf32>
    %c0_155 = arith.constant 0 : index
    %c0_156 = arith.constant 0 : index
    %354 = vector.load %arg20[%c0_155, %c0_156] : memref<8x1xf32, #tpu.memory_space<vmem>>, vector<8x1xf32>
    %cst_157 = arith.constant 0.000000e+00 : f32
    %355 = vector.broadcast %cst_157 : f32 to vector<8x35xf32>
    %356 = vector.extract_strided_slice %352 {offsets = [0, 0], sizes = [8, 1121], strides = [1, 1]} : vector<8x1156xf32> to vector<8x1121xf32>
    %357 = tpu.concatenate %355, %356 in 1 : vector<8x35xf32>, vector<8x1121xf32> -> vector<8x1156xf32>
    %cst_158 = arith.constant 0.000000e+00 : f32
    %358 = vector.broadcast %cst_158 : f32 to vector<8x34xf32>
    %359 = vector.extract_strided_slice %352 {offsets = [0, 0], sizes = [8, 1122], strides = [1, 1]} : vector<8x1156xf32> to vector<8x1122xf32>
    %360 = tpu.concatenate %358, %359 in 1 : vector<8x34xf32>, vector<8x1122xf32> -> vector<8x1156xf32>
    %cst_159 = arith.constant 0.000000e+00 : f32
    %361 = vector.broadcast %cst_159 : f32 to vector<8x33xf32>
    %362 = vector.extract_strided_slice %352 {offsets = [0, 0], sizes = [8, 1123], strides = [1, 1]} : vector<8x1156xf32> to vector<8x1123xf32>
    %363 = tpu.concatenate %361, %362 in 1 : vector<8x33xf32>, vector<8x1123xf32> -> vector<8x1156xf32>
    %cst_160 = arith.constant 0.000000e+00 : f32
    %364 = vector.broadcast %cst_160 : f32 to vector<8x1xf32>
    %365 = vector.extract_strided_slice %352 {offsets = [0, 0], sizes = [8, 1155], strides = [1, 1]} : vector<8x1156xf32> to vector<8x1155xf32>
    %366 = tpu.concatenate %364, %365 in 1 : vector<8x1xf32>, vector<8x1155xf32> -> vector<8x1156xf32>
    %367 = vector.extract_strided_slice %352 {offsets = [0, 1], sizes = [8, 1155], strides = [1, 1]} : vector<8x1156xf32> to vector<8x1155xf32>
    %cst_161 = arith.constant 0.000000e+00 : f32
    %368 = vector.broadcast %cst_161 : f32 to vector<8x1xf32>
    %369 = tpu.concatenate %367, %368 in 1 : vector<8x1155xf32>, vector<8x1xf32> -> vector<8x1156xf32>
    %370 = vector.extract_strided_slice %352 {offsets = [0, 33], sizes = [8, 1123], strides = [1, 1]} : vector<8x1156xf32> to vector<8x1123xf32>
    %cst_162 = arith.constant 0.000000e+00 : f32
    %371 = vector.broadcast %cst_162 : f32 to vector<8x33xf32>
    %372 = tpu.concatenate %370, %371 in 1 : vector<8x1123xf32>, vector<8x33xf32> -> vector<8x1156xf32>
    %373 = vector.extract_strided_slice %352 {offsets = [0, 34], sizes = [8, 1122], strides = [1, 1]} : vector<8x1156xf32> to vector<8x1122xf32>
    %cst_163 = arith.constant 0.000000e+00 : f32
    %374 = vector.broadcast %cst_163 : f32 to vector<8x34xf32>
    %375 = tpu.concatenate %373, %374 in 1 : vector<8x1122xf32>, vector<8x34xf32> -> vector<8x1156xf32>
    %376 = vector.extract_strided_slice %352 {offsets = [0, 35], sizes = [8, 1121], strides = [1, 1]} : vector<8x1156xf32> to vector<8x1121xf32>
    %cst_164 = arith.constant 0.000000e+00 : f32
    %377 = vector.broadcast %cst_164 : f32 to vector<8x35xf32>
    %378 = tpu.concatenate %376, %377 in 1 : vector<8x1121xf32>, vector<8x35xf32> -> vector<8x1156xf32>
    %379 = tpu.concatenate %357, %360, %363, %366, %352, %369, %372, %375, %378 in 0 : vector<8x1156xf32>, vector<8x1156xf32>, vector<8x1156xf32>, vector<8x1156xf32>, vector<8x1156xf32>, vector<8x1156xf32>, vector<8x1156xf32>, vector<8x1156xf32>, vector<8x1156xf32> -> vector<72x1156xf32>
    %cst_165 = arith.constant dense<0.000000e+00> : vector<8x1156xf32>
    %380 = tpu.matmul %353, %379, %cst_165 {dimension_numbers = #tpu.dot_dimension_numbers<[1], [0], [0], [1], [0, 0, 1, 1], [], []>} : vector<8x72xf32>, vector<72x1156xf32>, vector<8x1156xf32> -> vector<8x1156xf32>
    %381 = vector.broadcast %354 : vector<8x1xf32> to vector<8x1156xf32>
    %382 = arith.addf %380, %381 : vector<8x1156xf32>
    %cst_166 = arith.constant 0.000000e+00 : f32
    %383 = vector.broadcast %cst_166 : f32 to vector<8x1156xf32>
    %384 = arith.cmpf oge, %382, %383 : vector<8x1156xf32>
    %cst_167 = arith.constant 2.000000e-01 : f32
    %385 = vector.broadcast %cst_167 : f32 to vector<8x1156xf32>
    %386 = arith.mulf %385, %382 : vector<8x1156xf32>
    %387 = arith.select %384, %382, %386 : vector<8x1156xi1>, vector<8x1156xf32>
    %388 = vector.broadcast %1 : vector<1x1156xf32> to vector<8x1156xf32>
    %389 = arith.mulf %387, %388 : vector<8x1156xf32>
    %c0_168 = arith.constant 0 : index
    %c0_169 = arith.constant 0 : index
    %390 = vector.load %arg21[%c0_168, %c0_169] : memref<3x72xf32, #tpu.memory_space<vmem>>, vector<3x72xf32>
    %c0_170 = arith.constant 0 : index
    %c0_171 = arith.constant 0 : index
    %391 = vector.load %arg22[%c0_170, %c0_171] : memref<3x1xf32, #tpu.memory_space<vmem>>, vector<3x1xf32>
    %cst_172 = arith.constant 0.000000e+00 : f32
    %392 = vector.broadcast %cst_172 : f32 to vector<8x35xf32>
    %393 = vector.extract_strided_slice %389 {offsets = [0, 0], sizes = [8, 1121], strides = [1, 1]} : vector<8x1156xf32> to vector<8x1121xf32>
    %394 = tpu.concatenate %392, %393 in 1 : vector<8x35xf32>, vector<8x1121xf32> -> vector<8x1156xf32>
    %cst_173 = arith.constant 0.000000e+00 : f32
    %395 = vector.broadcast %cst_173 : f32 to vector<8x34xf32>
    %396 = vector.extract_strided_slice %389 {offsets = [0, 0], sizes = [8, 1122], strides = [1, 1]} : vector<8x1156xf32> to vector<8x1122xf32>
    %397 = tpu.concatenate %395, %396 in 1 : vector<8x34xf32>, vector<8x1122xf32> -> vector<8x1156xf32>
    %cst_174 = arith.constant 0.000000e+00 : f32
    %398 = vector.broadcast %cst_174 : f32 to vector<8x33xf32>
    %399 = vector.extract_strided_slice %389 {offsets = [0, 0], sizes = [8, 1123], strides = [1, 1]} : vector<8x1156xf32> to vector<8x1123xf32>
    %400 = tpu.concatenate %398, %399 in 1 : vector<8x33xf32>, vector<8x1123xf32> -> vector<8x1156xf32>
    %cst_175 = arith.constant 0.000000e+00 : f32
    %401 = vector.broadcast %cst_175 : f32 to vector<8x1xf32>
    %402 = vector.extract_strided_slice %389 {offsets = [0, 0], sizes = [8, 1155], strides = [1, 1]} : vector<8x1156xf32> to vector<8x1155xf32>
    %403 = tpu.concatenate %401, %402 in 1 : vector<8x1xf32>, vector<8x1155xf32> -> vector<8x1156xf32>
    %404 = vector.extract_strided_slice %389 {offsets = [0, 1], sizes = [8, 1155], strides = [1, 1]} : vector<8x1156xf32> to vector<8x1155xf32>
    %cst_176 = arith.constant 0.000000e+00 : f32
    %405 = vector.broadcast %cst_176 : f32 to vector<8x1xf32>
    %406 = tpu.concatenate %404, %405 in 1 : vector<8x1155xf32>, vector<8x1xf32> -> vector<8x1156xf32>
    %407 = vector.extract_strided_slice %389 {offsets = [0, 33], sizes = [8, 1123], strides = [1, 1]} : vector<8x1156xf32> to vector<8x1123xf32>
    %cst_177 = arith.constant 0.000000e+00 : f32
    %408 = vector.broadcast %cst_177 : f32 to vector<8x33xf32>
    %409 = tpu.concatenate %407, %408 in 1 : vector<8x1123xf32>, vector<8x33xf32> -> vector<8x1156xf32>
    %410 = vector.extract_strided_slice %389 {offsets = [0, 34], sizes = [8, 1122], strides = [1, 1]} : vector<8x1156xf32> to vector<8x1122xf32>
    %cst_178 = arith.constant 0.000000e+00 : f32
    %411 = vector.broadcast %cst_178 : f32 to vector<8x34xf32>
    %412 = tpu.concatenate %410, %411 in 1 : vector<8x1122xf32>, vector<8x34xf32> -> vector<8x1156xf32>
    %413 = vector.extract_strided_slice %389 {offsets = [0, 35], sizes = [8, 1121], strides = [1, 1]} : vector<8x1156xf32> to vector<8x1121xf32>
    %cst_179 = arith.constant 0.000000e+00 : f32
    %414 = vector.broadcast %cst_179 : f32 to vector<8x35xf32>
    %415 = tpu.concatenate %413, %414 in 1 : vector<8x1121xf32>, vector<8x35xf32> -> vector<8x1156xf32>
    %416 = tpu.concatenate %394, %397, %400, %403, %389, %406, %409, %412, %415 in 0 : vector<8x1156xf32>, vector<8x1156xf32>, vector<8x1156xf32>, vector<8x1156xf32>, vector<8x1156xf32>, vector<8x1156xf32>, vector<8x1156xf32>, vector<8x1156xf32>, vector<8x1156xf32> -> vector<72x1156xf32>
    %cst_180 = arith.constant dense<0.000000e+00> : vector<3x1156xf32>
    %417 = tpu.matmul %390, %416, %cst_180 {dimension_numbers = #tpu.dot_dimension_numbers<[1], [0], [0], [1], [0, 0, 1, 1], [], []>} : vector<3x72xf32>, vector<72x1156xf32>, vector<3x1156xf32> -> vector<3x1156xf32>
    %418 = vector.broadcast %391 : vector<3x1xf32> to vector<3x1156xf32>
    %419 = arith.addf %417, %418 : vector<3x1156xf32>
    %420 = vector.broadcast %1 : vector<1x1156xf32> to vector<3x1156xf32>
    %421 = arith.mulf %419, %420 : vector<3x1156xf32>
    %c0_181 = arith.constant 0 : index
    %c0_182 = arith.constant 0 : index
    %422 = vector.load %arg3[%c0_181, %c0_182] : memref<324x1156xf32, #tpu.memory_space<vmem>>, vector<324x1156xf32>
    %cst_183 = arith.constant dense<0.000000e+00> : vector<3x1156xf32>
    %423 = tpu.matmul %3, %422, %cst_183 {dimension_numbers = #tpu.dot_dimension_numbers<[1], [0], [0], [1], [0, 0, 1, 1], [], []>} : vector<3x324xf32>, vector<324x1156xf32>, vector<3x1156xf32> -> vector<3x1156xf32>
    %424 = arith.addf %421, %423 : vector<3x1156xf32>
    %425 = vector.shape_cast %424 : vector<3x1156xf32> to vector<1x3x1156xf32>
    %c0_184 = arith.constant 0 : index
    %c0_185 = arith.constant 0 : index
    %c0_186 = arith.constant 0 : index
    %426 = vector.load %arg23[%c0_184, %c0_185, %c0_186] : memref<1x3x1156xf32, #tpu.memory_space<vmem>>, vector<1x3x1156xf32>
    tpu.vector_store %arg23[%c0_184, %c0_185, %c0_186], %425 {strides = array<i32>} : memref<1x3x1156xf32, #tpu.memory_space<vmem>>, vector<1x3x1156xf32>,
    return
  }
  func.func @transform_0(%arg0: i32) -> (i32, i32, i32) {
    %c0_i32 = arith.constant 0 : i32
    %c0_i32_0 = arith.constant 0 : i32
    %c0_i32_1 = arith.constant 0 : i32
    return %arg0, %c0_i32, %c0_i32_0 : i32, i32, i32
  }
  func.func @transform_1(%arg0: i32) -> (i32, i32) {
    %c0_i32 = arith.constant 0 : i32
    %c0_i32_0 = arith.constant 0 : i32
    %c0_i32_1 = arith.constant 0 : i32
    return %c0_i32, %c0_i32_0 : i32, i32
  }
  func.func @transform_2(%arg0: i32) -> (i32, i32) {
    %c0_i32 = arith.constant 0 : i32
    %c0_i32_0 = arith.constant 0 : i32
    %c0_i32_1 = arith.constant 0 : i32
    return %c0_i32, %c0_i32_0 : i32, i32
  }
  func.func @transform_3(%arg0: i32) -> (i32, i32) {
    %c0_i32 = arith.constant 0 : i32
    %c0_i32_0 = arith.constant 0 : i32
    %c0_i32_1 = arith.constant 0 : i32
    return %c0_i32, %c0_i32_0 : i32, i32
  }
  func.func @transform_4(%arg0: i32) -> (i32, i32) {
    %c0_i32 = arith.constant 0 : i32
    %c0_i32_0 = arith.constant 0 : i32
    %c0_i32_1 = arith.constant 0 : i32
    return %c0_i32, %c0_i32_0 : i32, i32
  }
  func.func @transform_5(%arg0: i32) -> (i32, i32) {
    %c0_i32 = arith.constant 0 : i32
    %c0_i32_0 = arith.constant 0 : i32
    %c0_i32_1 = arith.constant 0 : i32
    return %c0_i32, %c0_i32_0 : i32, i32
  }
  func.func @transform_6(%arg0: i32) -> (i32, i32) {
    %c0_i32 = arith.constant 0 : i32
    %c0_i32_0 = arith.constant 0 : i32
    %c0_i32_1 = arith.constant 0 : i32
    return %c0_i32, %c0_i32_0 : i32, i32
  }
  func.func @transform_7(%arg0: i32) -> (i32, i32, i32) {
    %c0_i32 = arith.constant 0 : i32
    %c0_i32_0 = arith.constant 0 : i32
    %c0_i32_1 = arith.constant 0 : i32
    %c0_i32_2 = arith.constant 0 : i32
    return %c0_i32, %c0_i32_0, %c0_i32_1 : i32, i32, i32
  }
  func.func @transform_8(%arg0: i32) -> (i32, i32, i32) {
    %c0_i32 = arith.constant 0 : i32
    %c0_i32_0 = arith.constant 0 : i32
    %c0_i32_1 = arith.constant 0 : i32
    %c0_i32_2 = arith.constant 0 : i32
    return %c0_i32, %c0_i32_0, %c0_i32_1 : i32, i32, i32
  }
  func.func @transform_9(%arg0: i32) -> (i32, i32, i32) {
    %c0_i32 = arith.constant 0 : i32
    %c0_i32_0 = arith.constant 0 : i32
    %c0_i32_1 = arith.constant 0 : i32
    %c0_i32_2 = arith.constant 0 : i32
    return %c0_i32, %c0_i32_0, %c0_i32_1 : i32, i32, i32
  }
  func.func @transform_10(%arg0: i32) -> (i32, i32, i32) {
    %c0_i32 = arith.constant 0 : i32
    %c0_i32_0 = arith.constant 0 : i32
    %c0_i32_1 = arith.constant 0 : i32
    %c0_i32_2 = arith.constant 0 : i32
    return %c0_i32, %c0_i32_0, %c0_i32_1 : i32, i32, i32
  }
  func.func @transform_11(%arg0: i32) -> (i32, i32, i32) {
    %c0_i32 = arith.constant 0 : i32
    %c0_i32_0 = arith.constant 0 : i32
    %c0_i32_1 = arith.constant 0 : i32
    %c0_i32_2 = arith.constant 0 : i32
    return %c0_i32, %c0_i32_0, %c0_i32_1 : i32, i32, i32
  }
  func.func @transform_12(%arg0: i32) -> (i32, i32) {
    %c0_i32 = arith.constant 0 : i32
    %c0_i32_0 = arith.constant 0 : i32
    %c0_i32_1 = arith.constant 0 : i32
    return %c0_i32, %c0_i32_0 : i32, i32
  }
  func.func @transform_13(%arg0: i32) -> (i32, i32) {
    %c0_i32 = arith.constant 0 : i32
    %c0_i32_0 = arith.constant 0 : i32
    %c0_i32_1 = arith.constant 0 : i32
    return %c0_i32, %c0_i32_0 : i32, i32
  }
  func.func @transform_14(%arg0: i32) -> (i32, i32) {
    %c0_i32 = arith.constant 0 : i32
    %c0_i32_0 = arith.constant 0 : i32
    %c0_i32_1 = arith.constant 0 : i32
    return %c0_i32, %c0_i32_0 : i32, i32
  }
  func.func @transform_15(%arg0: i32) -> (i32, i32) {
    %c0_i32 = arith.constant 0 : i32
    %c0_i32_0 = arith.constant 0 : i32
    %c0_i32_1 = arith.constant 0 : i32
    return %c0_i32, %c0_i32_0 : i32, i32
  }
  func.func @transform_16(%arg0: i32) -> (i32, i32) {
    %c0_i32 = arith.constant 0 : i32
    %c0_i32_0 = arith.constant 0 : i32
    %c0_i32_1 = arith.constant 0 : i32
    return %c0_i32, %c0_i32_0 : i32, i32
  }
  func.func @transform_17(%arg0: i32) -> (i32, i32) {
    %c0_i32 = arith.constant 0 : i32
    %c0_i32_0 = arith.constant 0 : i32
    %c0_i32_1 = arith.constant 0 : i32
    return %c0_i32, %c0_i32_0 : i32, i32
  }
  func.func @transform_18(%arg0: i32) -> (i32, i32) {
    %c0_i32 = arith.constant 0 : i32
    %c0_i32_0 = arith.constant 0 : i32
    %c0_i32_1 = arith.constant 0 : i32
    return %c0_i32, %c0_i32_0 : i32, i32
  }
  func.func @transform_19(%arg0: i32) -> (i32, i32) {
    %c0_i32 = arith.constant 0 : i32
    %c0_i32_0 = arith.constant 0 : i32
    %c0_i32_1 = arith.constant 0 : i32
    return %c0_i32, %c0_i32_0 : i32, i32
  }
  func.func @transform_20(%arg0: i32) -> (i32, i32) {
    %c0_i32 = arith.constant 0 : i32
    %c0_i32_0 = arith.constant 0 : i32
    %c0_i32_1 = arith.constant 0 : i32
    return %c0_i32, %c0_i32_0 : i32, i32
  }
  func.func @transform_21(%arg0: i32) -> (i32, i32) {
    %c0_i32 = arith.constant 0 : i32
    %c0_i32_0 = arith.constant 0 : i32
    %c0_i32_1 = arith.constant 0 : i32
    return %c0_i32, %c0_i32_0 : i32, i32
  }
  func.func @transform_22(%arg0: i32) -> (i32, i32, i32) {
    %c0_i32 = arith.constant 0 : i32
    %c0_i32_0 = arith.constant 0 : i32
    %c0_i32_1 = arith.constant 0 : i32
    return %arg0, %c0_i32, %c0_i32_0 : i32, i32, i32
  }
}

</mosaic_0001>

<bundles_post_ra>
// kernel: nopan_forward.1
= control target key start
LH: loop header
LB: loop body
LE: loop exit
PB: predicated region body
PF: predicated region fallthrough
CT: control target
= control target key end

     0   :  { %s14170_s0 = inlined_call_operand.vmem [shape: f32[2,3,324], index: 0, kind: input, shape index: {}]   ;;  %s14171_s1 = inlined_call_operand.vmem [shape: f32[324,1156], index: 1, kind: input, shape index: {}]   ;;  %s14172_s2 = inlined_call_operand.vmem [shape: f32[324,1156], index: 2, kind: input, shape index: {}]   ;;  %s14173_s3 = inlined_call_operand.vmem [shape: f32[1,324], index: 3, kind: input, shape index: {}]   ;;  %s14174_s4 = inlined_call_operand.vmem [shape: f32[1,1156], index: 4, kind: input, shape index: {}]   ;;  %s14175_s5 = inlined_call_operand.vmem [shape: f32[8,27], index: 5, kind: input, shape index: {}]   ;;  %s14176_s6 = inlined_call_operand.vmem [shape: f32[8,1], index: 6, kind: input, shape index: {}]   ;;  %s14177_s7 = inlined_call_operand.vmem [shape: f32[2,8,8], index: 7, kind: input, shape index: {}]   ;;  %s14178_s8 = inlined_call_operand.vmem [shape: f32[2,4,36], index: 8, kind: input, shape index: {}]   ;;  %s14179_s9 = inlined_call_operand.vmem [shape: f32[2,4,36], index: 9, kind: input, shape index: {}]   ;;  %s14180_s10 = inlined_call_operand.vmem [shape: f32[2,4,36], index: 10, kind: input, shape index: {}]   ;;  %s14181_s11 = inlined_call_operand.vmem [shape: f32[2,8,8], index: 11, kind: input, shape index: {}]   ;;  %s14182_s12 = inlined_call_operand.vmem [shape: f32[8,72], index: 12, kind: input, shape index: {}]   ;;  %s14183_s13 = inlined_call_operand.vmem [shape: f32[8,1], index: 13, kind: input, shape index: {}]   ;;  %s14184_s14 = inlined_call_operand.vmem [shape: f32[8,72], index: 14, kind: input, shape index: {}]   ;;  %s14185_s15 = inlined_call_operand.vmem [shape: f32[8,1], index: 15, kind: input, shape index: {}]   ;;  %s14186_s16 = inlined_call_operand.vmem [shape: f32[8,8], index: 16, kind: input, shape index: {}]   ;;  %s14187_s17 = inlined_call_operand.vmem [shape: f32[8,1], index: 17, kind: input, shape index: {}]   ;;  %s14188_s18 = inlined_call_operand.vmem [shape: f32[8,72], index: 18, kind: input, shape index: {}]   ;;  %s14189_s19 = inlined_call_operand.vmem [shape: f32[8,1], index: 19, kind: input, shape index: {}]   ;;  %s14190_s20 = inlined_call_operand.vmem [shape: f32[3,72], index: 20, kind: input, shape index: {}]   ;;  %s14191_s21 = inlined_call_operand.vmem [shape: f32[3,1], index: 21, kind: input, shape index: {}]   ;;  %s14192_s22 = inlined_call_operand.vmem [shape: f32[2,3,1156], index: 22, kind: output, shape index: {}]  }
   0x1   :  { %14216 = sst [smem:[#allocation2_spill]] %s14170_s0 }
   0x2   :  { %14217 = sst [smem:[#allocation3_spill]] %s14171_s1 }
   0x3   :  { %14218 = sst [smem:[#allocation4_spill]] %s14172_s2 }
   0x4   :  { %14219 = sst [smem:[#allocation5_spill]] %s14173_s3  ;;  %s9099_s3 = smov 0  }
   0x5   :  { %14220 = sst [smem:[#allocation6_spill]] %s14174_s4 }
   0x6   :  { %14221 = sst [smem:[#allocation7_spill]] %s14175_s5 }
   0x7   :  { %14222 = sst [smem:[#allocation8_spill]] %s14176_s6 }
   0x8 LB: > { %s8577_s28 = sadd.s32 4294967295, %s8965_s3   ;;  %p8581_p0 = scmp.ge.s32.totalorder %s8965_s3, 1  ;;  %s8965_s3 = sphi %s9099_s3, %s32_s3  }
   0x9   : > { %p612_p1 = scmp.lt.s32.totalorder %s8965_s3, 3 }
   0xb   : > { %p613_p2 = pnand %p8581_p0, %p612_p1 }
   0xc   : > { %p674_p3 = scmp.lt.s32.totalorder (!%p613_p2), %s8577_s28, 1  ;;  %s14223_s0 = sld [smem:[#allocation2_spill]] (!%p613_p2) }
   0xd   : > { %616 = sbr.rel (%p613_p2) target bundleno = 4944 (0x1350), region = 108  ;;  %s8967_s1 = smov (!%p613_p2), 111  }
   0xe   : > { %s8968_s5 = smov (!%p613_p2), 127   ;;  %s8969_s24 = smov (!%p613_p2), 17  }
   0xf   : > { %s14203_s6 = smov (!%p613_p2), 1   ;;  %s8972_s25 = smov (!%p613_p2), 110  }
  0x10   : > { %s8973_s26 = smov (!%p613_p2), 109   ;;  %s8974_s2 = smov (!%p613_p2), 18  }
  0x11   : > { %s8975_s27 = smov (!%p613_p2), 19   ;;  %s14224_s4 = sld [smem:[#allocation8_spill]] (!%p613_p2) }
  0x12   : > { %s14315_s28 = smov (!%p674_p3, %s8577_s28), 1  ;;  %v8971_v3 = vmov 0.0   ;;  %vm8976_vm0 = vmmov 0   ;;  %v8977_v4 = vmov 0   ;;  %vm735_vm1 = vcmask 7168   ;;  %s14225_s30 = sld [smem:[#allocation7_spill]] }
  0x13   : > { %s8923_s29 = smul.u32 12, %s14315_s28  ;;  %8793 = vmatprep.subr.mxu1 %v8971_v3  ;;  %942 = vmatprep.mubr.f32.mxu0 %v8971_v3  ;;  %vm14196_vm2 = vcmask 416768   ;;  %vm14202_vm3 = vcmask 547840   ;;  %vm724_vm4 = vcmask 138240   ;;  %vm14198_vm5 = vcmask 908288  }
  0x14   : > { %8801 = vmatprep.mubr.msk.f32.mxu1 %vm8976_vm0, %v8971_v3  ;;  %8950 = vset.pattern.permute.xlu0 %v8977_v4  ;;  %vm854_vm6 = vcmask 1041408   ;;  %vm746_vm7 = vcmask 1039360   ;;  %vm842_vm8 = vcmask 1040384   ;;  %vm14197_vm9 = vcmask 408576  }
  0x15   : > { %s9113_s23 = scalar_lea.vmem %s14223_s0, %s8923_s29  ;;  %8951 = vset.pattern.permute.xlu1 %v8977_v4  ;;  %vm770_vm10 = vcmask 900096   ;;  %vm14206_vm11 = vcmask 1043456   ;;  %vm782_vm12 = vcmask 891904   ;;  %vm786_vm13 = vcmask 400384   ;;  %s14226_s29 = sld [smem:[#allocation5_spill]] }
  0x16   : > { %v9116_v0 = vld [vmem:[%s9113_s23 + $0x8] sm:$0x7]  ;;  %v9119_v1 = vld [vmem:[%s9113_s23] sm:$0x77]  ;;  %vm850_vm14 = vcmask 1046528   ;;  %vm14199_vm15 = vcmask 1042432  }
  0x17   : > { %756 = vrot.lane.b32.xlu1 %v9116_v0, %s8967_s1  ;;  %744 = vrot.lane.b32.xlu0 %v9116_v0, %s8968_s5  ;;  %v9127_v2 = vcombine.high %v9119_v1, %v9119_v1  ;;  %v690_v5 = vld [vmem:[%s14224_s4] sm:$0xff]  ;;  %v809_v21 = vcombine.low %v9119_v1, %v9119_v1  ;;  %s8979_s4 = smov 93   ;;  %s8980_s0 = smov 95  }
  0x1b   : > { %718 = vrot.lane.b32.xlu0 %v9119_v1, %s8969_s24  ;;  %754 = vrot.lane.b32.xlu1 %v9127_v2, %s8967_s1 }
  0x1f   : > { %720 = vrot.lane.b32.xlu1 %v9127_v2, %s8969_s24  ;;  %742 = vrot.lane.b32.xlu0 %v9127_v2, %s8968_s5 }
  0x23   : > { %731 = vrot.lane.b32.xlu1 %v9127_v2, %s14203_s6  ;;  %729 = vrot.lane.b32.xlu0 %v9119_v1, %s14203_s6 }
  0x27   : > { %752 = vrot.lane.b32.xlu1 %v9119_v1, %s8967_s1  ;;  %740 = vrot.lane.b32.xlu0 %v9119_v1, %s8968_s5 }
  0x2b   : > { %768 = vrot.lane.b32.xlu1 %v9116_v0, %s8972_s25  ;;  %766 = vrot.lane.b32.xlu0 %v9127_v2, %s8972_s25 }
  0x2f   : > { %778 = vrot.lane.b32.xlu1 %v9127_v2, %s8973_s26  ;;  %764 = vrot.lane.b32.xlu0 %v9119_v1, %s8972_s25 }
  0x33   : > { %776 = vrot.lane.b32.xlu1 %v9119_v1, %s8973_s26  ;;  %780 = vrot.lane.b32.xlu0 %v9116_v0, %s8973_s26 }
  0x37   : > { %709 = vrot.lane.b32.xlu1 %v9127_v2, %s8974_s2  ;;  %707 = vrot.lane.b32.xlu0 %v9119_v1, %s8974_s2 }
  0x3b   : > { %696 = vrot.lane.b32.xlu1 %v9127_v2, %s8975_s27  ;;  %694 = vrot.lane.b32.xlu0 %v9119_v1, %s8975_s27 }
  0x3f   : > { %733 = vrot.lane.b32.xlu1 %v9116_v0, %s14203_s6  ;;  %722 = vrot.lane.b32.xlu0 %v9116_v0, %s8969_s24 }
  0x43   : > { %698 = vrot.lane.b32.xlu1 %v9116_v0, %s8975_s27  ;;  %711 = vrot.lane.b32.xlu0 %v9116_v0, %s8974_s2 }
  0x47   : > { %864 = vperm.xlu0 %8950, %v690_v5  }
  0x89   : > { %v757_v6 = vpop.permute.xlu1 %756  ;;  %v745_v7 = vpop.permute.xlu0 %744 }
  0x8a   : > { %v763_v17 = vsel %vm14196_vm2, %v757_v6, 0.0  ;;  %v9194_v22 = vsel %vm14202_vm3, %v745_v7, 0.0  ;;  %vm858_vm2 = vcmask 1044480  }
  0x8b   : > { %v823_v24 = vrot.slane %v763_v17, 6  ;;  %v816_v34 = vrot.slane %v9194_v22, 1  ;;  %v1020_v22 = vlaneseq }
  0x8d   : > { %v719_v8 = vpop.permute.xlu0 %718  ;;  %v755_v9 = vpop.permute.xlu1 %754  ;;  %v857_v53 = vsel %vm854_vm6, %v816_v34, %v823_v24 }
  0x8e   : > { %v728_v35 = vsel %vm724_vm4, 0.0, %v719_v8  ;;  %v760_v36 = vsel %vm14198_vm5, %v755_v9, %v757_v6 }
  0x8f   : > { %v796_v45 = vrot.slane %v728_v35, 2  ;;  %v822_v46 = vrot.slane %v760_v36, 6  ;;  %v9267_v36 = vshrl.u32 %v1020_v22, 7 }
  0x91   : > { %v9180_v10 = vpop.permute.xlu1 %720  ;;  %v743_v11 = vpop.permute.xlu0 %742 }
  0x92   : > { %v9189_v18 = vsel %vm724_vm4, %v719_v8, %v9180_v10  ;;  %v748_v26 = vsel %vm746_vm7, %v743_v11, %v745_v7 }
  0x93   : > { %v797_v25 = vrot.slane %v9189_v18, 2  ;;  %v815_v38 = vrot.slane %v748_v26, 1  ;;  %v810_v18 = vcombine.low %v9116_v0, %v9116_v0 }
  0x95   : > { %v9182_v12 = vpop.permute.xlu1 %731  ;;  %v730_v13 = vpop.permute.xlu0 %729  ;;  %v856_v54 = vsel %vm854_vm6, %v815_v38, %v822_v46  ;;  %v1030_v46 = vsub.s32 2, %v9267_v36 }
  0x96   : > { %v736_v16 = vsel %vm735_vm1, %v730_v13, %v9182_v12  ;;  %v739_v27 = vsel %vm735_vm1, 0.0, %v730_v13 }
  0x97   : > { %v804_v23 = vrot.slane %v736_v16, 7  ;;  %v803_v39 = vrot.slane %v739_v27, 7 }
  0x99   : > { %v753_v14 = vpop.permute.xlu1 %752  ;;  %v741_v15 = vpop.permute.xlu0 %740  ;;  %v844_v40 = vsel %vm842_vm8, %v797_v25, %v804_v23  ;;  %v843_v56 = vsel %vm842_vm8, %v796_v45, %v803_v39  ;;  %v684_v39 = vld [vmem:[%s14226_s29] sm:$0x7]  ;;  %s14266_s29 = smov 1  }
  0x9a   : > { %v759_v28 = vsel %vm14198_vm5, %v753_v14, %v755_v9  ;;  %v747_v29 = vsel %vm746_vm7, %v741_v15, %v743_v11  ;;  %v848_v55 = vsel %vm14206_vm11, %v844_v40, %v9119_v1  ;;  %v847_v5 = vsel %vm14206_vm11, %v843_v56, %v809_v21 }
  0x9b   : > { %v821_v41 = vrot.slane %v759_v28, 6  ;;  %v814_v42 = vrot.slane %v747_v29, 1  ;;  %v852_v4 = vsel %vm850_vm14, %v848_v55, %v815_v38  ;;  %vm867_vm5 = vcmask 220160  }
  0x9d   : > { %v769_v19 = vpop.permute.xlu1 %768  ;;  %v767_v20 = vpop.permute.xlu0 %766  ;;  %v855_v59 = vsel %vm854_vm6, %v814_v42, %v821_v41  ;;  %v851_v6 = vsel %vm850_vm14, %v847_v5, %v814_v42  ;;  %vm14200_vm6 = vcmask 154624  }
  0x9e   : > { %v775_v30 = vsel %vm14197_vm9, %v769_v19, 0.0  ;;  %v772_v31 = vsel %vm770_vm10, %v767_v20, %v769_v19  ;;  %vm713_vm9 = vcmask 146432  }
  0x9f   : > { %v830_v43 = vrot.slane %v775_v30, 3  ;;  %v829_v44 = vrot.slane %v772_v31, 3 }
  0xa1   : > { %v779_v32 = vpop.permute.xlu1 %778  ;;  %v765_v33 = vpop.permute.xlu0 %764  ;;  %v860_v57 = vsel %vm858_vm2, %v856_v54, %v829_v44  ;;  %v861_v58 = vsel %vm858_vm2, %v857_v53, %v830_v43 }
  0xa2   : > { %v771_v37 = vsel %vm770_vm10, %v765_v33, %v767_v20  ;;  %v689_v20 = vld [vmem:[%s14225_s30] sm:$0xff]  ;;  %s14264_s30 = sld [smem:[#allocation3_spill]] }
  0xa3   : > { %v828_v47 = vrot.slane %v771_v37, 3  ;;  %v9273_v37 = vsub.s32 0, %v9267_v36 }
  0xa5   : > { %v777_v48 = vpop.permute.xlu1 %776  ;;  %v781_v49 = vpop.permute.xlu0 %780  ;;  %v859_v62 = vsel %vm858_vm2, %v855_v59, %v828_v47  ;;  %vm838_vm2 = vcmask 1045504   ;;  %v9282_v44 = vrot.slane %v684_v39, %v9273_v37 }
  0xa6   : > { %v784_v50 = vsel %vm782_vm12, %v779_v32, %v781_v49  ;;  %v787_v51 = vsel %vm786_vm13, %v781_v49, 0.0  ;;  %v783_v52 = vsel %vm782_vm12, %v777_v48, %v779_v32  ;;  %v1038_v49 = vld [vmem:[%s14177_s7] sm:$0xff] }
  0xa7   : > { %8584 = vmatprep.subr.msk.mxu0 %vm14199_vm15, %v784_v50  ;;  %8794 = vmatpush3.msk.msra.mxu1 %vm14199_vm15, %v787_v51  ;;  %v9298_v50 = vrot.slane %v684_v39, %v1030_v46 }
  0xa8   : > { %8585 = vmatpush1.msk.msra.mxu0 %vm14199_vm15, %v783_v52  ;;  %8795 = vmatprep.subr.mxu1 %v8971_v3 }
  0xa9   : > { %v710_v60 = vpop.permute.xlu1 %709  ;;  %904 = vmatprep.subr.mxu0 %v860_v57  ;;  %8796 = vmatpush3.msra.mxu1 %v861_v58  ;;  %v708_v61 = vpop.permute.xlu0 %707 }
  0xaa   : > { %v714_v63 = vsel %vm713_vm9, %v708_v61, %v710_v60  ;;  %v717_v1 = vsel %vm713_vm9, 0.0, %v708_v61  ;;  %905 = vmatpush1.msra.mxu0 %v859_v62  ;;  %8797 = vmatprep.subr.mxu1 %v8971_v3 }
  0xab   : > { %906 = vmatprep.subr.mxu0 %v852_v4  ;;  %v789_v7 = vrot.slane %v717_v1, 5  ;;  %v790_v8 = vrot.slane %v714_v63, 5 }
  0xac   : > { %907 = vmatpush1.msra.mxu0 %v851_v6 }
  0xad   : > { %v697_v9 = vpop.permute.xlu1 %696  ;;  %v695_v11 = vpop.permute.xlu0 %694 }
  0xae   : > { %v701_v13 = vsel %vm14200_vm6, %v695_v11, %v697_v9  ;;  %v706_v14 = vsel %vm14200_vm6, 0.0, %v695_v11 }
  0xaf   : > { %v836_v15 = vsel %vm14199_vm15, %v701_v13, %v790_v8  ;;  %v835_v16 = vsel %vm14199_vm15, %v706_v14, %v789_v7 }
  0xb0   : > { %v840_v17 = vsel %vm838_vm2, %v836_v15, %v797_v25  ;;  %v839_v19 = vsel %vm838_vm2, %v835_v16, %v796_v45 }
  0xb1   : > { %v734_v21 = vpop.permute.xlu1 %733  ;;  %908 = vmatprep.subr.mxu0 %v840_v17  ;;  %v723_v23 = vpop.permute.xlu0 %722 }
  0xb2   : > { %v737_v24 = vsel %vm735_vm1, %v9182_v12, %v734_v21  ;;  %v726_v26 = vsel %vm724_vm4, %v9180_v10, %v723_v23  ;;  %909 = vmatpush1.msra.mxu0 %v839_v19 }
  0xb3   : > { %v805_v25 = vrot.slane %v737_v24, 7  ;;  %v798_v27 = vrot.slane %v726_v26, 2  ;;  %8586 = vmatmul.mubr.msk.f32.vlgmr.msra.gmra.mxu0 %vm867_vm5, %v689_v20 }
  0xb4   : > { %1107 = vmatprep.mubr.f32.mxu0 %v8971_v3 }
  0xb5   : > { %v699_v28 = vpop.permute.xlu1 %698  ;;  %v712_v29 = vpop.permute.xlu0 %711  ;;  %v845_v30 = vsel %vm842_vm8, %v798_v27, %v805_v25 }
  0xb6   : > { %v715_v31 = vsel %vm713_vm9, %v710_v60, %v712_v29  ;;  %v849_v12 = vsel %vm14206_vm11, %v845_v30, %v810_v18  ;;  %v702_v0 = vsel %vm14200_vm6, %v697_v9, %v699_v28 }
  0xb7   : > { %v791_v32 = vrot.slane %v715_v31, 5  ;;  %v853_v10 = vsel %vm850_vm14, %v849_v12, %v816_v34  ;;  %v9270_v34 = vsub.s32 1, %v9267_v36 }
  0xb8   : > { %8798 = vmatpush3.msra.mxu1 %v853_v10 }
  0xb9   : > { %8799 = vmatprep.subr.mxu1 %v8971_v3  ;;  %v837_v33 = vsel %vm14199_vm15, %v702_v0, %v791_v32  ;;  %v9279_v41 = vrot.slane %v684_v39, %v9270_v34 }
  0xba   : > { %v841_v35 = vsel %vm838_vm2, %v837_v33, %v798_v27 }
  0xbb   : > { %8800 = vmatpush3.msra.mxu1 %v841_v35 }
  0xbc   : > { %8802 = vmatmul.mubr.msk.f32.vlgmr.msra.gmra.mxu1 %vm867_vm5, %v689_v20  ;;  %8809 = vmatprep.subr.mxu1 %v8971_v3  ;;  %vm1039_vm5 = vcmask 64512  }
  0xbd   : > { %8819 = vmatprep.mubr.msk.f32.mxu1 %vm8976_vm0, %v8971_v3 }
  0xc2   : > { %v865_v38 = vpop.permute.xlu0 %864 }
 0x173   : > { %v944_v40 = vpop.f32.mrf.mxu0 }
 0x174   : > { %v945_v42 = vadd.f32 %v944_v40, %v865_v38 }
 0x175   : > { %v946_v43 = vpop.f32.mrf.mxu0 }
 0x176   : > { %v947_v45 = vadd.f32 %v946_v43, %v865_v38  ;;  %v9289_v48 = vmul.f32 %v9282_v44, %v945_v42 }
 0x178   : > { %v9286_v47 = vmul.f32 %v9279_v41, %v947_v45 }
 0x17a   : > { %1073 = vmatprep.subr.mxu0 %v9286_v47 }
 0x17b   : > { %1074 = vmatpush1.msra.mxu0 %v9289_v48 }
 0x17c   : > { %v1015_v51 = vpop.f32.mrf.mxu1  ;;  %8589 = vmatmul.mubr.msk.f32.vlgmr.msra.gmra.mxu0 %vm1039_vm5, %v1038_v49  ;;  %8804 = vmatprep.subr.mxu0 %v8971_v3 }
 0x17d   : > { %v1016_v52 = vadd.f32 %v1015_v51, %v865_v38  ;;  %8806 = vmatprep.mubr.msk.f32.mxu0 %vm8976_vm0, %v8971_v3 }
 0x17e   : > { %v8803_v53 = vpop.f32.mrf.mxu1 }
 0x17f   : > { %v9305_v54 = vmul.f32 %v9298_v50, %v1016_v52 }
 0x181   : > { %8805 = vmatpush3.msra.mxu0 %v9305_v54 }
 0x182   : > { %8807 = vmatmul.mubr.msk.f32.vlgmr.msra.gmra.mxu0 %vm1039_vm5, %v1038_v49 }
 0x183   : > { %1401 = vmatprep.mubr.f32.mxu0 %v8971_v3 }
 0x23c   : > { %v1109_v55 = vpop.f32.mrf.mxu0 }
 0x23d   : > { %vm1184_vm8 = vcmp.ge.f32.partialorder %v1109_v55, 0.0  ;;  %v1187_v56 = vmul.f32 0.2, %v1109_v55 }
 0x23e   : > { %v1111_v59 = vpop.f32.mrf.mxu0 }
 0x23f   : > { %v1190_v57 = vsel %vm1184_vm8, %v1109_v55, %v1187_v56  ;;  %v1188_v62 = vmul.f32 0.2, %v1111_v59  ;;  %vm1185_vm14 = vcmp.ge.f32.partialorder %v1111_v59, 0.0  ;;  %vm14227_vm8 = vcmask 908288  }
 0x240   : > { %v9311_v58 = vmul.f32 %v1190_v57, %v9282_v44 }
 0x241   : > { %v1191_v63 = vsel %vm1185_vm14, %v1111_v59, %v1188_v62  ;;  %vm14228_vm14 = vcmask 408576  }
 0x242   : > { %1276 = vrot.lane.b32.xlu1 %v9311_v58, %s8973_s26  ;;  %1266 = vrot.lane.b32.xlu0 %v9311_v58, %s8972_s25  ;;  %v1180_v60 = vpop.f32.mrf.mxu0  ;;  %v9326_v1 = vmul.f32 %v1191_v63, %v9279_v41  ;;  %v9341_v4 = vrot.slane %v9311_v58, 4 }
 0x243   : > { %v1189_v5 = vmul.f32 0.2, %v1180_v60  ;;  %vm1186_vm2 = vcmp.ge.f32.partialorder %v1180_v60, 0.0 }
 0x244   : > { %v8808_v61 = vpop.f32.mrf.mxu0  ;;  %v9379_v8 = vrot.slane %v9326_v1, 4 }
 0x245   : > { %v1192_v6 = vsel %vm1186_vm2, %v1180_v60, %v1189_v5  ;;  %vm14229_vm2 = vmmov %vm14227_vm8 }
 0x246   : > { %1254 = vrot.lane.b32.xlu1 %v9311_v58, %s8967_s1  ;;  %1244 = vrot.lane.b32.xlu0 %v9311_v58, %s8968_s5  ;;  %v9352_v7 = vmul.f32 %v1192_v6, %v9298_v50 }
 0x248   : > { %v9386_v9 = vrot.slane %v9352_v7, 4 }
 0x24a   : > { %1200 = vrot.lane.b32.xlu1 %v9311_v58, %s8975_s27  ;;  %1234 = vrot.lane.b32.xlu0 %v9311_v58, %s14203_s6 }
 0x24e   : > { %1212 = vrot.lane.b32.xlu0 %v9311_v58, %s8974_s2  ;;  %1268 = vrot.lane.b32.xlu1 %v9326_v1, %s8972_s25 }
 0x252   : > { %1222 = vrot.lane.b32.xlu0 %v9311_v58, %s8969_s24  ;;  %1278 = vrot.lane.b32.xlu1 %v9326_v1, %s8973_s26 }
 0x256   : > { %1202 = vrot.lane.b32.xlu0 %v9326_v1, %s8975_s27  ;;  %1246 = vrot.lane.b32.xlu1 %v9326_v1, %s8968_s5 }
 0x25a   : > { %1528 = vrot.lane.b32.xlu0 %v9341_v4, %s14203_s6  ;;  %1256 = vrot.lane.b32.xlu1 %v9326_v1, %s8967_s1 }
 0x25e   : > { %1506 = vrot.lane.b32.xlu0 %v9341_v4, %s8974_s2  ;;  %1236 = vrot.lane.b32.xlu1 %v9326_v1, %s14203_s6 }
 0x262   : > { %1516 = vrot.lane.b32.xlu0 %v9341_v4, %s8969_s24  ;;  %1214 = vrot.lane.b32.xlu1 %v9326_v1, %s8974_s2 }
 0x266   : > { %1224 = vrot.lane.b32.xlu1 %v9326_v1, %s8969_s24  ;;  %1280 = vrot.lane.b32.xlu0 %v9352_v7, %s8973_s26 }
 0x26a   : > { %1494 = vrot.lane.b32.xlu1 %v9341_v4, %s8975_s27  ;;  %1248 = vrot.lane.b32.xlu0 %v9352_v7, %s8968_s5 }
 0x26e   : > { %1258 = vrot.lane.b32.xlu0 %v9352_v7, %s8967_s1  ;;  %1270 = vrot.lane.b32.xlu1 %v9352_v7, %s8972_s25 }
 0x272   : > { %1238 = vrot.lane.b32.xlu0 %v9352_v7, %s14203_s6  ;;  %1216 = vrot.lane.b32.xlu1 %v9352_v7, %s8974_s2 }
 0x276   : > { %1226 = vrot.lane.b32.xlu0 %v9352_v7, %s8969_s24  ;;  %1204 = vrot.lane.b32.xlu1 %v9352_v7, %s8975_s27 }
 0x27a   : > { %1496 = vrot.lane.b32.xlu0 %v9379_v8, %s8975_s27  ;;  %1530 = vrot.lane.b32.xlu1 %v9379_v8, %s14203_s6 }
 0x27e   : > { %1508 = vrot.lane.b32.xlu1 %v9379_v8, %s8974_s2  ;;  %1532 = vrot.lane.b32.xlu0 %v9386_v9, %s14203_s6 }
 0x282   : > { %1518 = vrot.lane.b32.xlu1 %v9379_v8, %s8969_s24  ;;  %1520 = vrot.lane.b32.xlu0 %v9386_v9, %s8969_s24 }
 0x286   : > { %1510 = vrot.lane.b32.xlu1 %v9386_v9, %s8974_s2 }
 0x28a   : > { %1498 = vrot.lane.b32.xlu1 %v9386_v9, %s8975_s27 }
 0x2b4   : > { %v1277_v11 = vpop.permute.xlu1 %1276  ;;  %v1267_v13 = vpop.permute.xlu0 %1266 }
 0x2b8   : > { %v1255_v14 = vpop.permute.xlu1 %1254  ;;  %v1245_v15 = vpop.permute.xlu0 %1244 }
 0x2bc   : > { %v9400_v16 = vpop.permute.xlu1 %1200  ;;  %v1235_v17 = vpop.permute.xlu0 %1234 }
 0x2bd   : > { %v1243_v5 = vsel %vm735_vm1, 0.0, %v1235_v17 }
 0x2c0   : > { %v1213_v19 = vpop.permute.xlu0 %1212  ;;  %v1269_v20 = vpop.permute.xlu1 %1268 }
 0x2c1   : > { %v9429_v22 = vsel %vm770_vm10, %v1267_v13, %v1269_v20  ;;  %v1221_v6 = vsel %vm713_vm9, 0.0, %v1213_v19 }
 0x2c2   : > { %v1308_v42 = vrot.slane %v9429_v22, 4 }
 0x2c4   : > { %v1223_v21 = vpop.permute.xlu0 %1222  ;;  %v1279_v23 = vpop.permute.xlu1 %1278 }
 0x2c5   : > { %v9417_v0 = vsel %vm782_vm12, %v1277_v11, %v1279_v23 }
 0x2c8   : > { %v9402_v24 = vpop.permute.xlu0 %1202  ;;  %v1247_v26 = vpop.permute.xlu1 %1246 }
 0x2c9   : > { %v9432_v38 = vsel %vm746_vm7, %v1245_v15, %v1247_v26 }
 0x2ca   : > { %v1301_v49 = vrot.slane %v9432_v38, 4 }
 0x2cc   : > { %v9404_v18 = vpop.permute.xlu0 %1528  ;;  %v1257_v25 = vpop.permute.xlu1 %1256 }
 0x2cd   : > { %v9443_v51 = vsel %vm14227_vm8, %v1255_v14, %v1257_v25  ;;  %vm14230_vm8 = vcmask 416768  }
 0x2d0   : > { %v9406_v27 = vpop.permute.xlu0 %1506  ;;  %v1237_v28 = vpop.permute.xlu1 %1236 }
 0x2d1   : > { %v1240_v60 = vsel %vm735_vm1, %v1235_v17, %v1237_v28  ;;  %v1323_v17 = vsel %vm14206_vm11, %v9443_v51, %v1308_v42  ;;  %v1320_v42 = vsel %vm14206_vm11, %v9311_v58, %v1301_v49  ;;  %v1211_v49 = vsel %vm14200_vm6, 0.0, %v9400_v16 }
 0x2d4   : > { %v9408_v29 = vpop.permute.xlu0 %1516  ;;  %v1215_v30 = vpop.permute.xlu1 %1214 }
 0x2d5   : > { %v1218_v61 = vsel %vm713_vm9, %v1213_v19, %v1215_v30  ;;  %v1295_v19 = vrot.slane %v1240_v60, 4 }
 0x2d8   : > { %v1225_v31 = vpop.permute.xlu1 %1224  ;;  %v1281_v12 = vpop.permute.xlu0 %1280 }
 0x2d9   : > { %v9411_v32 = vsel %vm786_vm13, %v1281_v12, 0.0  ;;  %v9414_v10 = vsel %vm782_vm12, %v1279_v23, %v1281_v12  ;;  %v1228_v23 = vsel %vm724_vm4, %v1223_v21, %v1225_v31 }
 0x2da   : > { %8591 = vmatprep.subr.msk.mxu0 %vm14206_vm11, %v9414_v10  ;;  %8810 = vmatpush3.msk.msra.mxu1 %vm14206_vm11, %v9411_v32  ;;  %v1318_v60 = vsel %vm14206_vm11, %v1228_v23, %v1295_v19  ;;  %v1527_v19 = vsel %vm724_vm4, 0.0, %v9408_v29 }
 0x2db   : > { %8592 = vmatpush1.msk.msra.mxu0 %vm14206_vm11, %v9417_v0  ;;  %8811 = vmatprep.subr.mxu1 %v8971_v3 }
 0x2dc   : > { %v9426_v33 = vpop.permute.xlu1 %1494  ;;  %v1249_v35 = vpop.permute.xlu0 %1248 }
 0x2dd   : > { %v9435_v39 = vsel %vm746_vm7, %v1247_v26, %v1249_v35  ;;  %v9438_v40 = vsel %vm14202_vm3, %v1249_v35, 0.0 }
 0x2de   : > { %v1302_v55 = vrot.slane %v9435_v39, 4  ;;  %v1303_v56 = vrot.slane %v9438_v40, 4 }
 0x2e0   : > { %v1259_v43 = vpop.permute.xlu0 %1258  ;;  %v1271_v45 = vpop.permute.xlu1 %1270  ;;  %v1321_v12 = vsel %vm14206_vm11, %v9326_v1, %v1302_v55  ;;  %v1322_v35 = vsel %vm14206_vm11, %v9352_v7, %v1303_v56  ;;  %v1206_v1 = vsel %vm14200_vm6, %v9400_v16, %v9402_v24  ;;  %v1560_v16 = vrot.slane %v9443_v51, 4 }
 0x2e1   : > { %v9446_v52 = vsel %vm770_vm10, %v1269_v20, %v1271_v45  ;;  %v9449_v53 = vsel %vm14228_vm14, %v1271_v45, 0.0  ;;  %v9458_v62 = vsel %vm14229_vm2, %v1257_v25, %v1259_v43  ;;  %v9461_v63 = vsel %vm14230_vm8, %v1259_v43, 0.0 }
 0x2e2   : > { %v1309_v57 = vrot.slane %v9446_v52, 4  ;;  %v1310_v59 = vrot.slane %v9449_v53, 4  ;;  %v1233_v20 = vsel %vm724_vm4, 0.0, %v1223_v21  ;;  %v1288_v25 = vrot.slane %v1218_v61, 4 }
 0x2e3   : > { %v1294_v43 = vrot.slane %v1243_v5, 4  ;;  %v1287_v21 = vrot.slane %v1221_v6, 4  ;;  %v1567_v5 = vrot.slane %v9414_v10, 4  ;;  %v1561_v6 = vrot.slane %v9458_v62, 4 }
 0x2e4   : > { %v1239_v11 = vpop.permute.xlu0 %1238  ;;  %v1217_v13 = vpop.permute.xlu1 %1216  ;;  %v1324_v14 = vsel %vm14206_vm11, %v9458_v62, %v1309_v57  ;;  %v1325_v15 = vsel %vm14206_vm11, %v9461_v63, %v1310_v59  ;;  %v1315_v56 = vsel %vm14206_vm11, %v1206_v1, %v1288_v25  ;;  %vm14201_vm14 = vcmask 293888  }
 0x2e5   : > { %v1241_v26 = vsel %vm735_vm1, %v1237_v28, %v1239_v11  ;;  %1361 = vmatprep.subr.mxu0 %v1324_v14  ;;  %8812 = vmatpush3.msra.mxu1 %v1325_v15  ;;  %v1219_v28 = vsel %vm713_vm9, %v1215_v30, %v1217_v13  ;;  %v1317_v58 = vsel %vm14206_vm11, %v1233_v20, %v1294_v43  ;;  %v1562_v11 = vrot.slane %v9461_v63, 4 }
 0x2e6   : > { %1362 = vmatpush1.msra.mxu0 %v1323_v17  ;;  %8813 = vmatprep.subr.mxu1 %v8971_v3  ;;  %v1296_v45 = vrot.slane %v1241_v26, 4  ;;  %v1289_v55 = vrot.slane %v1219_v28, 4  ;;  %v1566_v14 = vrot.slane %v9417_v0, 4  ;;  %v1568_v15 = vrot.slane %v9411_v32, 4 }
 0x2e7   : > { %1363 = vmatprep.subr.mxu0 %v1321_v12  ;;  %8814 = vmatpush3.msra.mxu1 %v1322_v35  ;;  %v1579_v51 = vsel %vm14206_vm11, %v1561_v6, %v9446_v52  ;;  %v1578_v0 = vsel %vm14206_vm11, %v1560_v16, %v9429_v22  ;;  %v1576_v32 = vsel %vm14206_vm11, %v9379_v8, %v9435_v39  ;;  %v1537_v17 = vsel %vm735_vm1, 0.0, %v9404_v18 }
 0x2e8   : > { %v1227_v57 = vpop.permute.xlu0 %1226  ;;  %1364 = vmatpush1.msra.mxu0 %v1320_v42  ;;  %v1205_v59 = vpop.permute.xlu1 %1204  ;;  %8815 = vmatprep.subr.mxu1 %v8971_v3  ;;  %v1580_v23 = vsel %vm14206_vm11, %v1562_v11, %v9449_v53  ;;  %v1575_v8 = vsel %vm14206_vm11, %v9341_v4, %v9432_v38  ;;  %v1515_v39 = vsel %vm713_vm9, 0.0, %v9406_v27  ;;  %v1577_v53 = vsel %vm14206_vm11, %v9386_v9, %v9438_v40 }
 0x2e9   : > { %v1229_v7 = vsel %vm724_vm4, %v1225_v31, %v1227_v57  ;;  %v1207_v30 = vsel %vm14200_vm6, %v9402_v24, %v1205_v59  ;;  %1365 = vmatprep.subr.mxu0 %v1318_v60  ;;  %v1314_v24 = vsel %vm14206_vm11, %v1211_v49, %v1287_v21  ;;  %v1196_v31 = vld [vmem:[%s14178_s8] sm:$0xf]  ;;  %v1550_v4 = vrot.slane %v1537_v17, 4 }
 0x2ea   : > { %1366 = vmatpush1.msra.mxu0 %v1317_v58  ;;  %v1319_v61 = vsel %vm14206_vm11, %v1229_v7, %v1296_v45  ;;  %v1316_v62 = vsel %vm14206_vm11, %v1207_v30, %v1289_v55  ;;  %v1505_v9 = vsel %vm14200_vm6, 0.0, %v9426_v33  ;;  %v1543_v28 = vrot.slane %v1515_v39, 4 }
 0x2eb   : > { %1367 = vmatprep.subr.mxu0 %v1315_v56  ;;  %8816 = vmatpush3.msra.mxu1 %v1319_v61  ;;  %vm14231_vm2 = vcmask 408576  }
 0x2ec   : > { %v9503_v13 = vpop.permute.xlu0 %1496  ;;  %1368 = vmatpush1.msra.mxu0 %v1314_v24  ;;  %8817 = vmatprep.subr.mxu1 %v8971_v3  ;;  %v1531_v10 = vpop.permute.xlu1 %1530  ;;  %v1569_v60 = vsel %vm14206_vm11, %v1505_v9, %v1543_v28 }
 0x2ed   : > { %8818 = vmatpush3.msra.mxu1 %v1316_v62  ;;  %8596 = vmatprep.subr.msk.mxu0 %vm14206_vm11, %v1567_v5  ;;  %v1534_v26 = vsel %vm735_vm1, %v9404_v18, %v1531_v10  ;;  %v1500_v42 = vsel %vm14200_vm6, %v9426_v33, %v9503_v13  ;;  %v1490_v33 = vld [vmem:[%s14179_s9] sm:$0xf] }
 0x2ee   : > { %8593 = vmatmul.mubr.msk.f32.vlgmr.msra.gmra.mxu0 %vm14201_vm14, %v1196_v31  ;;  %8822 = vmatprep.subr.mxu1 %v8971_v3  ;;  %v1551_v18 = vrot.slane %v1534_v26, 4 }
 0x2ef   : > { %8597 = vmatpush1.msk.msra.mxu0 %vm14206_vm11, %v1566_v14  ;;  %8820 = vmatmul.mubr.msk.f32.vlgmr.msra.gmra.mxu1 %vm14201_vm14, %v1196_v31 }
 0x2f0   : > { %1614 = vmatprep.subr.mxu0 %v1579_v51  ;;  %8823 = vmatpush3.msk.msra.mxu1 %vm14206_vm11, %v1568_v15  ;;  %v1509_v63 = vpop.permute.xlu1 %1508  ;;  %v1533_v20 = vpop.permute.xlu0 %1532 }
 0x2f1   : > { %1615 = vmatpush1.msra.mxu0 %v1578_v0  ;;  %8824 = vmatprep.subr.mxu1 %v8971_v3  ;;  %v1512_v52 = vsel %vm713_vm9, %v9406_v27, %v1509_v63  ;;  %v1535_v22 = vsel %vm735_vm1, %v1531_v10, %v1533_v20 }
 0x2f2   : > { %1616 = vmatprep.subr.mxu0 %v1576_v32  ;;  %8825 = vmatpush3.msra.mxu1 %v1580_v23  ;;  %v1544_v25 = vrot.slane %v1512_v52, 4  ;;  %v1552_v12 = vrot.slane %v1535_v22, 4 }
 0x2f3   : > { %1617 = vmatpush1.msra.mxu0 %v1575_v8  ;;  %8826 = vmatprep.subr.mxu1 %v8971_v3 }
 0x2f4   : > { %8827 = vmatpush3.msra.mxu1 %v1577_v53  ;;  %v1519_v35 = vpop.permute.xlu1 %1518  ;;  %v1521_v43 = vpop.permute.xlu0 %1520  ;;  %8832 = vmatprep.mubr.msk.f32.mxu1 %vm8976_vm0, %v8971_v3  ;;  %v1570_v57 = vsel %vm14206_vm11, %v1500_v42, %v1544_v25 }
 0x2f5   : > { %v1522_v27 = vsel %vm724_vm4, %v9408_v29, %v1519_v35  ;;  %v1523_v38 = vsel %vm724_vm4, %v1519_v35, %v1521_v43  ;;  %8828 = vmatprep.subr.mxu1 %v8971_v3  ;;  %1654 = vmatprep.mubr.f32.mxu0 %v8971_v3  ;;  %v1572_v29 = vsel %vm14206_vm11, %v1527_v19, %v1550_v4 }
 0x2f6   : > { %v1573_v40 = vsel %vm14206_vm11, %v1522_v27, %v1551_v18  ;;  %v1574_v21 = vsel %vm14206_vm11, %v1523_v38, %v1552_v12 }
 0x2f7   : > { %1618 = vmatprep.subr.mxu0 %v1573_v40  ;;  %8829 = vmatpush3.msra.mxu1 %v1574_v21 }
 0x2f8   : > { %1619 = vmatpush1.msra.mxu0 %v1572_v29  ;;  %v1511_v45 = vpop.permute.xlu1 %1510  ;;  %8830 = vmatprep.subr.mxu1 %v8971_v3 }
 0x2f9   : > { %v1513_v59 = vsel %vm713_vm9, %v1509_v63, %v1511_v45  ;;  %1620 = vmatprep.subr.mxu0 %v1570_v57 }
 0x2fa   : > { %1621 = vmatpush1.msra.mxu0 %v1569_v60  ;;  %v1545_v1 = vrot.slane %v1513_v59, 4 }
 0x2fb   : > { %8598 = vmatmul.mubr.msk.f32.vlgmr.msra.gmra.mxu0 %vm14201_vm14, %v1490_v33 }
 0x2fc   : > { %v1499_v7 = vpop.permute.xlu1 %1498  ;;  %1938 = vmatprep.mubr.f32.mxu0 %v8971_v3 }
 0x2fd   : > { %v1501_v30 = vsel %vm14200_vm6, %v9503_v13, %v1499_v7 }
 0x2fe   : > { %v1571_v58 = vsel %vm14206_vm11, %v1501_v30, %v1545_v1 }
 0x2ff   : > { %8831 = vmatpush3.msra.mxu1 %v1571_v58 }
 0x300   : > { %8833 = vmatmul.mubr.msk.f32.vlgmr.msra.gmra.mxu1 %vm14201_vm14, %v1490_v33  ;;  %8835 = vmatprep.subr.mxu1 %v8971_v3 }
 0x301   : > { %8845 = vmatprep.mubr.msk.f32.mxu1 %vm8976_vm0, %v8971_v3 }
 0x3ae   : > { %v9576_v56 = vpop.f32.mrf.mxu0 }
 0x3af   : > { %v9574_v49 = vpop.f32.mrf.mxu1  ;;  %vm1478_vm15 = vcmp.ge.f32.partialorder %v9576_v56, 0.0 }
 0x3b0   : > { %v9578_v61 = vpop.f32.mrf.mxu0 }
 0x3b1   : > { %v8821_v55 = vpop.f32.mrf.mxu1 }
 0x3bb   : > { %v1656_v6 = vpop.f32.mrf.mxu0 }
 0x3bc   : > { %v9584_v16 = vmul.f32 %v1656_v6, %v9282_v44 }
 0x3bd   : > { %v1658_v11 = vpop.f32.mrf.mxu0 }
 0x3be   : > { %v9593_v13 = vmul.f32 %v1658_v11, %v9279_v41 }
 0x3c0   : > { %v1727_v5 = vpop.f32.mrf.mxu1 }
 0x3c1   : > { %v1733_v24 = vmul.f32 %v1727_v5, %v9298_v50 }
 0x3c2   : > { %v8834_v31 = vpop.f32.mrf.mxu1 }
 0x3c3   : > { %1818 = vrot.lane.b32.xlu0 %v1733_v24, %s8973_s26  ;;  %1808 = vrot.lane.b32.xlu1 %v1733_v24, %s8972_s25 }
 0x3c7   : > { %1786 = vrot.lane.b32.xlu0 %v1733_v24, %s8968_s5  ;;  %1814 = vrot.lane.b32.xlu1 %v9584_v16, %s8973_s26 }
 0x3cb   : > { %1796 = vrot.lane.b32.xlu0 %v1733_v24, %s8967_s1  ;;  %1792 = vrot.lane.b32.xlu1 %v9584_v16, %s8967_s1 }
 0x3cf   : > { %1804 = vrot.lane.b32.xlu0 %v9584_v16, %s8972_s25  ;;  %1816 = vrot.lane.b32.xlu1 %v9593_v13, %s8973_s26 }
 0x3d3   : > { %1782 = vrot.lane.b32.xlu0 %v9584_v16, %s8968_s5  ;;  %1784 = vrot.lane.b32.xlu1 %v9593_v13, %s8968_s5 }
 0x3d7   : > { %1772 = vrot.lane.b32.xlu0 %v9584_v16, %s14203_s6  ;;  %1794 = vrot.lane.b32.xlu1 %v9593_v13, %s8967_s1 }
 0x3db   : > { %1750 = vrot.lane.b32.xlu0 %v9584_v16, %s8974_s2  ;;  %1774 = vrot.lane.b32.xlu1 %v9593_v13, %s14203_s6 }
 0x3df   : > { %1752 = vrot.lane.b32.xlu1 %v9593_v13, %s8974_s2  ;;  %1806 = vrot.lane.b32.xlu0 %v9593_v13, %s8972_s25 }
 0x3e3   : > { %1762 = vrot.lane.b32.xlu1 %v9593_v13, %s8969_s24  ;;  %1760 = vrot.lane.b32.xlu0 %v9584_v16, %s8969_s24 }
 0x3e7   : > { %1740 = vrot.lane.b32.xlu1 %v9593_v13, %s8975_s27  ;;  %1738 = vrot.lane.b32.xlu0 %v9584_v16, %s8975_s27 }
 0x3eb   : > { %1754 = vrot.lane.b32.xlu1 %v1733_v24, %s8974_s2  ;;  %1776 = vrot.lane.b32.xlu0 %v1733_v24, %s14203_s6 }
 0x3ef   : > { %1742 = vrot.lane.b32.xlu1 %v1733_v24, %s8975_s27  ;;  %1764 = vrot.lane.b32.xlu0 %v1733_v24, %s8969_s24 }
 0x435   : > { %v1819_v10 = vpop.permute.xlu0 %1818  ;;  %v1809_v62 = vpop.permute.xlu1 %1808 }
 0x436   : > { %v1823_v14 = vsel %vm786_vm13, %v1819_v10, 0.0  ;;  %v1813_v0 = vsel %vm14231_vm2, %v1809_v62, 0.0  ;;  %vm14232_vm2 = vcmask 908288  }
 0x437   : > { %8836 = vmatpush3.msk.msra.mxu1 %vm14206_vm11, %v1823_v14  ;;  %v1848_v20 = vrot.slane %v1813_v0, 4 }
 0x438   : > { %8837 = vmatprep.subr.mxu1 %v8971_v3 }
 0x439   : > { %v1787_v15 = vpop.permute.xlu0 %1786  ;;  %v1815_v51 = vpop.permute.xlu1 %1814 }
 0x43a   : > { %v1791_v63 = vsel %vm14202_vm3, %v1787_v15, 0.0 }
 0x43b   : > { %v1841_v32 = vrot.slane %v1791_v63, 4 }
 0x43d   : > { %v1797_v23 = vpop.permute.xlu0 %1796  ;;  %v1793_v26 = vpop.permute.xlu1 %1792  ;;  %v1860_v39 = vsel %vm14206_vm11, %v1733_v24, %v1841_v32 }
 0x43e   : > { %v1803_v52 = vsel %vm14230_vm8, %v1797_v23, 0.0  ;;  %vm14233_vm8 = vmmov %vm14232_vm2 }
 0x43f   : > { %v1863_v22 = vsel %vm14206_vm11, %v1803_v52, %v1848_v20 }
 0x440   : > { %8838 = vmatpush3.msra.mxu1 %v1863_v22 }
 0x441   : > { %8839 = vmatprep.subr.mxu1 %v8971_v3  ;;  %v1805_v17 = vpop.permute.xlu0 %1804  ;;  %v1817_v8 = vpop.permute.xlu1 %1816 }
 0x442   : > { %v1820_v53 = vsel %vm782_vm12, %v1815_v51, %v1817_v8  ;;  %8840 = vmatpush3.msra.mxu1 %v1860_v39  ;;  %v1821_v19 = vsel %vm782_vm12, %v1817_v8, %v1819_v10 }
 0x443   : > { %8601 = vmatprep.subr.msk.mxu0 %vm14206_vm11, %v1821_v19  ;;  %8841 = vmatprep.subr.mxu1 %v8971_v3 }
 0x444   : > { %8602 = vmatpush1.msk.msra.mxu0 %vm14206_vm11, %v1820_v53 }
 0x445   : > { %v1783_v18 = vpop.permute.xlu0 %1782  ;;  %v1785_v25 = vpop.permute.xlu1 %1784 }
 0x446   : > { %v1789_v27 = vsel %vm746_vm7, %v1785_v25, %v1787_v15  ;;  %v1788_v38 = vsel %vm746_vm7, %v1783_v18, %v1785_v25 }
 0x447   : > { %v1840_v42 = vrot.slane %v1789_v27, 4  ;;  %v1839_v57 = vrot.slane %v1788_v38, 4  ;;  %v1482_v38 = vmul.f32 0.2, %v9578_v61 }
 0x449   : > { %v1773_v12 = vpop.permute.xlu0 %1772  ;;  %v1795_v35 = vpop.permute.xlu1 %1794  ;;  %v1859_v10 = vsel %vm14206_vm11, %v9593_v13, %v1840_v42  ;;  %v1858_v14 = vsel %vm14206_vm11, %v9584_v16, %v1839_v57  ;;  %v1734_v16 = vld [vmem:[%s14180_s10] sm:$0xf] }
 0x44a   : > { %v1798_v59 = vsel %vm14232_vm2, %v1793_v26, %v1795_v35  ;;  %v1799_v60 = vsel %vm14233_vm8, %v1795_v35, %v1797_v23  ;;  %v1781_v1 = vsel %vm735_vm1, 0.0, %v1773_v12  ;;  %vm1479_vm8 = vcmp.ge.f32.partialorder %v9578_v61, 0.0 }
 0x44d   : > { %v1751_v43 = vpop.permute.xlu0 %1750  ;;  %v1775_v4 = vpop.permute.xlu1 %1774 }
 0x44e   : > { %v1778_v33 = vsel %vm735_vm1, %v1773_v12, %v1775_v4  ;;  %v1759_v5 = vsel %vm713_vm9, 0.0, %v1751_v43 }
 0x44f   : > { %v1833_v31 = vrot.slane %v1778_v33, 4  ;;  %v1825_v15 = vrot.slane %v1759_v5, 4 }
 0x451   : > { %v1753_v9 = vpop.permute.xlu1 %1752  ;;  %v1807_v40 = vpop.permute.xlu0 %1806 }
 0x452   : > { %v1810_v21 = vsel %vm770_vm10, %v1805_v17, %v1807_v40  ;;  %v1811_v28 = vsel %vm770_vm10, %v1807_v40, %v1809_v62  ;;  %v1756_v6 = vsel %vm713_vm9, %v1751_v43, %v1753_v9  ;;  %v1832_v62 = vrot.slane %v1781_v1, 4 }
 0x453   : > { %v1846_v29 = vrot.slane %v1810_v21, 4  ;;  %v1847_v45 = vrot.slane %v1811_v28, 4  ;;  %v1826_v51 = vrot.slane %v1756_v6, 4  ;;  %v1481_v40 = vmul.f32 0.2, %v9576_v56 }
 0x454   : > { %v1483_v1 = vmul.f32 0.2, %v9574_v49 }
 0x455   : > { %v1763_v7 = vpop.permute.xlu1 %1762  ;;  %v1761_v30 = vpop.permute.xlu0 %1760  ;;  %v1862_v58 = vsel %vm14206_vm11, %v1799_v60, %v1847_v45  ;;  %v1861_v55 = vsel %vm14206_vm11, %v1798_v59, %v1846_v29  ;;  %v1485_v45 = vsel %vm1479_vm8, %v9578_v61, %v1482_v38  ;;  %v1484_v59 = vsel %vm1478_vm15, %v9576_v56, %v1481_v40  ;;  %v2039_v56 = vld [vmem:[%s14181_s11] sm:$0xff] }
 0x456   : > { %v1766_v24 = vsel %vm724_vm4, %v1761_v30, %v1763_v7  ;;  %1898 = vmatprep.subr.mxu0 %v1862_v58  ;;  %v1771_v11 = vsel %vm724_vm4, 0.0, %v1761_v30  ;;  %v1487_v58 = vmul.f32 %v1484_v59, %v9282_v44  ;;  %vm14234_vm8 = vcmask 408576  }
 0x457   : > { %1899 = vmatpush1.msra.mxu0 %v1861_v55  ;;  %v1856_v20 = vsel %vm14206_vm11, %v1766_v24, %v1833_v31  ;;  %v1855_v26 = vsel %vm14206_vm11, %v1771_v11, %v1832_v62 }
 0x458   : > { %1900 = vmatprep.subr.mxu0 %v1859_v10 }
 0x459   : > { %v1741_v0 = vpop.permute.xlu1 %1740  ;;  %1901 = vmatpush1.msra.mxu0 %v1858_v14  ;;  %v1739_v63 = vpop.permute.xlu0 %1738 }
 0x45a   : > { %v1744_v32 = vsel %vm14200_vm6, %v1739_v63, %v1741_v0  ;;  %v1749_v23 = vsel %vm14200_vm6, 0.0, %v1739_v63  ;;  %1902 = vmatprep.subr.mxu0 %v1856_v20 }
 0x45b   : > { %1903 = vmatpush1.msra.mxu0 %v1855_v26  ;;  %v1853_v13 = vsel %vm14206_vm11, %v1744_v32, %v1826_v51  ;;  %v1852_v52 = vsel %vm14206_vm11, %v1749_v23, %v1825_v15 }
 0x45c   : > { %1904 = vmatprep.subr.mxu0 %v1853_v13 }
 0x45d   : > { %v1755_v22 = vpop.permute.xlu1 %1754  ;;  %1905 = vmatpush1.msra.mxu0 %v1852_v52  ;;  %v1777_v17 = vpop.permute.xlu0 %1776  ;;  %v8608_v52 = vld [vmem:[%s14177_s7 + $0x8] sm:$0xff] }
 0x45e   : > { %v1779_v8 = vsel %vm735_vm1, %v1775_v4, %v1777_v17  ;;  %8603 = vmatmul.mubr.msk.f32.vlgmr.msra.gmra.mxu0 %vm14201_vm14, %v1734_v16  ;;  %v1757_v39 = vsel %vm713_vm9, %v1753_v9, %v1755_v22 }
 0x45f   : > { %2107 = vmatprep.mubr.f32.mxu0 %v8971_v3  ;;  %v1834_v53 = vrot.slane %v1779_v8, 4  ;;  %v1827_v35 = vrot.slane %v1757_v39, 4 }
 0x461   : > { %v1743_v19 = vpop.permute.xlu1 %1742  ;;  %v1765_v18 = vpop.permute.xlu0 %1764 }
 0x462   : > { %v1745_v25 = vsel %vm14200_vm6, %v1741_v0, %v1743_v19  ;;  %v1767_v12 = vsel %vm724_vm4, %v1763_v7, %v1765_v18  ;;  %v1488_v7 = vmul.f32 %v1485_v45, %v9279_v41 }
 0x463   : > { %v1857_v43 = vsel %vm14206_vm11, %v1767_v12, %v1834_v53  ;;  %v1854_v4 = vsel %vm14206_vm11, %v1745_v25, %v1827_v35 }
 0x464   : > { %8842 = vmatpush3.msra.mxu1 %v1857_v43 }
 0x465   : > { %8843 = vmatprep.subr.mxu1 %v8971_v3 }
 0x466   : > { %8844 = vmatpush3.msra.mxu1 %v1854_v4 }
 0x467   : > { %8846 = vmatmul.mubr.msk.f32.vlgmr.msra.gmra.mxu1 %vm14201_vm14, %v1734_v16  ;;  %8848 = vmatprep.subr.mxu1 %v8971_v3  ;;  %vm1480_vm14 = vcmp.ge.f32.partialorder %v9574_v49, 0.0 }
 0x468   : > { %8850 = vmatprep.mubr.msk.f32.mxu1 %vm8976_vm0, %v8971_v3  ;;  %v1486_v31 = vsel %vm1480_vm14, %v9574_v49, %v1483_v1 }
 0x469   : > { %v1489_v62 = vmul.f32 %v1486_v31, %v9298_v50 }
 0x51e   : > { %v1940_v27 = vpop.f32.mrf.mxu0 }
 0x51f   : > { %vm2015_vm2 = vcmp.ge.f32.partialorder %v1940_v27, 0.0  ;;  %v2018_v9 = vmul.f32 0.2, %v1940_v27 }
 0x520   : > { %v1942_v21 = vpop.f32.mrf.mxu0 }
 0x521   : > { %v2021_v28 = vsel %vm2015_vm2, %v1940_v27, %v2018_v9  ;;  %vm2016_vm6 = vcmp.ge.f32.partialorder %v1942_v21, 0.0  ;;  %v2019_v42 = vmul.f32 0.2, %v1942_v21 }
 0x522   : > { %v2024_v29 = vmul.f32 %v2021_v28, %v9282_v44 }
 0x523   : > { %v2022_v57 = vsel %vm2016_vm6, %v1942_v21, %v2019_v42 }
 0x524   : > { %v2025_v60 = vmul.f32 %v2022_v57, %v9279_v41  ;;  %v2030_v33 = vrot.slane %v2024_v29, 4 }
 0x526   : > { %v2031_v30 = vrot.slane %v2025_v60, 4  ;;  %v2036_v24 = vsel %vm14206_vm11, %v1487_v58, %v2030_v33 }
 0x527   : > { %v2011_v55 = vpop.f32.mrf.mxu1 }
 0x528   : > { %vm2017_vm2 = vcmp.ge.f32.partialorder %v2011_v55, 0.0  ;;  %v2020_v5 = vmul.f32 0.2, %v2011_v55  ;;  %v2037_v61 = vsel %vm14206_vm11, %v1488_v7, %v2031_v30 }
 0x529   : > { %v8847_v6 = vpop.f32.mrf.mxu1  ;;  %2073 = vmatprep.subr.mxu0 %v2037_v61 }
 0x52a   : > { %v2023_v11 = vsel %vm2017_vm2, %v2011_v55, %v2020_v5  ;;  %2074 = vmatpush1.msra.mxu0 %v2036_v24  ;;  %vm14235_vm2 = vcmask 416768  }
 0x52b   : > { %v2026_v10 = vmul.f32 %v2023_v11, %v9298_v50  ;;  %8606 = vmatmul.mubr.msk.f32.vlgmr.msra.gmra.mxu0 %vm1039_vm5, %v2039_v56 }
 0x52c   : > { %2259 = vmatprep.mubr.f32.mxu0 %v8971_v3 }
 0x52d   : > { %v2032_v14 = vrot.slane %v2026_v10, 4 }
 0x52f   : > { %v2038_v15 = vsel %vm14206_vm11, %v1489_v62, %v2032_v14 }
 0x530   : > { %8849 = vmatpush3.msra.mxu1 %v2038_v15 }
 0x531   : > { %8851 = vmatmul.mubr.msk.f32.vlgmr.msra.gmra.mxu1 %vm1039_vm5, %v2039_v56  ;;  %8853 = vmatprep.subr.mxu1 %v8971_v3 }
 0x532   : > { %8855 = vmatprep.mubr.msk.f32.mxu1 %vm8976_vm0, %v8971_v3 }
 0x5eb   : > { %v2109_v49 = vpop.f32.mrf.mxu0 }
 0x5ec   : > { %v2184_v51 = vmul.f32 %v2109_v49, %v9282_v44 }
 0x5ed   : > { %v2111_v0 = vpop.f32.mrf.mxu0 }
 0x5ee   : > { %v2185_v63 = vmul.f32 %v2111_v0, %v9279_v41  ;;  %v9714_v32 = vadd.f32 %v2184_v51, %v9289_v48 }
 0x5f0   : > { %v9711_v20 = vadd.f32 %v2185_v63, %v9286_v47 }
 0x5f1   : > { %v2180_v23 = vpop.f32.mrf.mxu1 }
 0x5f2   : > { %v2186_v26 = vmul.f32 %v2180_v23, %v9298_v50  ;;  %2225 = vmatprep.subr.mxu0 %v9711_v20 }
 0x5f3   : > { %v8852_v13 = vpop.f32.mrf.mxu1  ;;  %2226 = vmatpush1.msra.mxu0 %v9714_v32 }
 0x5f4   : > { %v9723_v16 = vadd.f32 %v2186_v26, %v9305_v54  ;;  %8609 = vmatmul.mubr.msk.f32.vlgmr.msra.gmra.mxu0 %vm1039_vm5, %v8608_v52 }
 0x5f5   : > { %2553 = vmatprep.mubr.f32.mxu0 %v8971_v3 }
 0x5f6   : > { %8854 = vmatpush3.msra.mxu1 %v9723_v16 }
 0x5f7   : > { %8856 = vmatmul.mubr.msk.f32.vlgmr.msra.gmra.mxu1 %vm1039_vm5, %v8608_v52  ;;  %8858 = vmatprep.subr.mxu1 %v8971_v3 }
 0x5f8   : > { %8868 = vmatprep.mubr.msk.f32.mxu1 %vm8976_vm0, %v8971_v3 }
 0x6b4   : > { %v2261_v19 = vpop.f32.mrf.mxu0 }
 0x6b5   : > { %v2339_v18 = vmul.f32 0.2, %v2261_v19  ;;  %vm2336_vm6 = vcmp.ge.f32.partialorder %v2261_v19, 0.0 }
 0x6b6   : > { %v2263_v35 = vpop.f32.mrf.mxu0 }
 0x6b7   : > { %v2332_v22 = vpop.f32.mrf.mxu1  ;;  %v2342_v25 = vsel %vm2336_vm6, %v2261_v19, %v2339_v18  ;;  %v2340_v43 = vmul.f32 0.2, %v2263_v35  ;;  %vm2337_vm14 = vcmp.ge.f32.partialorder %v2263_v35, 0.0 }
 0x6b8   : > { %vm2338_vm15 = vcmp.ge.f32.partialorder %v2332_v22, 0.0  ;;  %v2341_v17 = vmul.f32 0.2, %v2332_v22  ;;  %v9744_v12 = vmul.f32 %v2342_v25, %v9282_v44 }
 0x6b9   : > { %v8857_v8 = vpop.f32.mrf.mxu1  ;;  %v2343_v27 = vsel %vm2337_vm14, %v2263_v35, %v2340_v43  ;;  %vm14238_vm14 = vcmask 154624  }
 0x6ba   : > { %v2344_v39 = vsel %vm2338_vm15, %v2332_v22, %v2341_v17  ;;  %v9766_v38 = vmul.f32 %v2343_v27, %v9279_v41  ;;  %v9793_v9 = vrot.slane %v9744_v12, 4  ;;  %vm14236_vm15 = vcmask 908288  }
 0x6bb   : > { %v9733_v53 = vmul.f32 %v2344_v39, %v9298_v50  ;;  %vm14237_vm6 = vmmov %vm14236_vm15 }
 0x6bc   : > { %v9800_v40 = vrot.slane %v9766_v38, 4 }
 0x6bd   : > { %2433 = vrot.lane.b32.xlu0 %v9733_v53, %s8973_s26  ;;  %2423 = vrot.lane.b32.xlu1 %v9733_v53, %s8972_s25  ;;  %v9759_v4 = vrot.slane %v9733_v53, 4 }
 0x6c1   : > { %2401 = vrot.lane.b32.xlu0 %v9733_v53, %s8968_s5  ;;  %2369 = vrot.lane.b32.xlu1 %v9733_v53, %s8974_s2 }
 0x6c5   : > { %2411 = vrot.lane.b32.xlu0 %v9733_v53, %s8967_s1  ;;  %2357 = vrot.lane.b32.xlu1 %v9733_v53, %s8975_s27 }
 0x6c9   : > { %2391 = vrot.lane.b32.xlu0 %v9733_v53, %s14203_s6  ;;  %2429 = vrot.lane.b32.xlu1 %v9744_v12, %s8973_s26 }
 0x6cd   : > { %2379 = vrot.lane.b32.xlu0 %v9733_v53, %s8969_s24  ;;  %2407 = vrot.lane.b32.xlu1 %v9744_v12, %s8967_s1 }
 0x6d1   : > { %2685 = vrot.lane.b32.xlu0 %v9759_v4, %s14203_s6  ;;  %2353 = vrot.lane.b32.xlu1 %v9744_v12, %s8975_s27 }
 0x6d5   : > { %2419 = vrot.lane.b32.xlu0 %v9744_v12, %s8972_s25  ;;  %2431 = vrot.lane.b32.xlu1 %v9766_v38, %s8973_s26 }
 0x6d9   : > { %2397 = vrot.lane.b32.xlu0 %v9744_v12, %s8968_s5  ;;  %2399 = vrot.lane.b32.xlu1 %v9766_v38, %s8968_s5 }
 0x6dd   : > { %2387 = vrot.lane.b32.xlu0 %v9744_v12, %s14203_s6  ;;  %2409 = vrot.lane.b32.xlu1 %v9766_v38, %s8967_s1 }
 0x6e1   : > { %2365 = vrot.lane.b32.xlu0 %v9744_v12, %s8974_s2  ;;  %2389 = vrot.lane.b32.xlu1 %v9766_v38, %s14203_s6 }
 0x6e5   : > { %2375 = vrot.lane.b32.xlu0 %v9744_v12, %s8969_s24  ;;  %2367 = vrot.lane.b32.xlu1 %v9766_v38, %s8974_s2 }
 0x6e9   : > { %2377 = vrot.lane.b32.xlu1 %v9766_v38, %s8969_s24  ;;  %2421 = vrot.lane.b32.xlu0 %v9766_v38, %s8972_s25 }
 0x6ed   : > { %2647 = vrot.lane.b32.xlu1 %v9793_v9, %s8975_s27  ;;  %2355 = vrot.lane.b32.xlu0 %v9766_v38, %s8975_s27 }
 0x6f1   : > { %2681 = vrot.lane.b32.xlu0 %v9793_v9, %s14203_s6  ;;  %2683 = vrot.lane.b32.xlu1 %v9800_v40, %s14203_s6 }
 0x6f5   : > { %2659 = vrot.lane.b32.xlu0 %v9793_v9, %s8974_s2  ;;  %2661 = vrot.lane.b32.xlu1 %v9800_v40, %s8974_s2 }
 0x6f9   : > { %2669 = vrot.lane.b32.xlu0 %v9793_v9, %s8969_s24  ;;  %2671 = vrot.lane.b32.xlu1 %v9800_v40, %s8969_s24 }
 0x6fd   : > { %2649 = vrot.lane.b32.xlu0 %v9800_v40, %s8975_s27  ;;  %2663 = vrot.lane.b32.xlu1 %v9759_v4, %s8974_s2 }
 0x701   : > { %2673 = vrot.lane.b32.xlu0 %v9759_v4, %s8969_s24  ;;  %2651 = vrot.lane.b32.xlu1 %v9759_v4, %s8975_s27 }
 0x72f   : > { %v2434_v21 = vpop.permute.xlu0 %2433  ;;  %v2424_v28 = vpop.permute.xlu1 %2423 }
 0x730   : > { %v9823_v42 = vsel %vm786_vm13, %v2434_v21, 0.0  ;;  %v9829_v57 = vsel %vm14234_vm8, %v2424_v28, 0.0  ;;  %vm14239_vm8 = vmmov %vm14238_vm14 }
 0x731   : > { %8859 = vmatpush3.msk.msra.mxu1 %vm14206_vm11, %v9823_v42  ;;  %v2463_v60 = vrot.slane %v9829_v57, 4 }
 0x732   : > { %8860 = vmatprep.subr.mxu1 %v8971_v3 }
 0x733   : > { %v2402_v29 = vpop.permute.xlu0 %2401  ;;  %v2370_v45 = vpop.permute.xlu1 %2369 }
 0x734   : > { %v9832_v59 = vsel %vm14202_vm3, %v2402_v29, 0.0 }
 0x735   : > { %v2456_v33 = vrot.slane %v9832_v59, 4 }
 0x737   : > { %v2412_v1 = vpop.permute.xlu0 %2411  ;;  %v2358_v7 = vpop.permute.xlu1 %2357  ;;  %v2475_v61 = vsel %vm14206_vm11, %v9733_v53, %v2456_v33 }
 0x738   : > { %v9837_v30 = vsel %vm14235_vm2, %v2412_v1, 0.0  ;;  %vm14240_vm2 = vcmask 293888  }
 0x739   : > { %v2478_v58 = vsel %vm14206_vm11, %v9837_v30, %v2463_v60 }
 0x73a   : > { %8861 = vmatpush3.msra.mxu1 %v2478_v58 }
 0x73b   : > { %v2392_v55 = vpop.permute.xlu0 %2391  ;;  %8862 = vmatprep.subr.mxu1 %v8971_v3  ;;  %v2430_v5 = vpop.permute.xlu1 %2429 }
 0x73c   : > { %8863 = vmatpush3.msra.mxu1 %v2475_v61 }
 0x73d   : > { %8864 = vmatprep.subr.mxu1 %v8971_v3 }
 0x73f   : > { %v2380_v56 = vpop.permute.xlu0 %2379  ;;  %v2408_v6 = vpop.permute.xlu1 %2407 }
 0x743   : > { %v9845_v24 = vpop.permute.xlu0 %2685  ;;  %v9847_v31 = vpop.permute.xlu1 %2353 }
 0x747   : > { %v2420_v11 = vpop.permute.xlu0 %2419  ;;  %v2432_v10 = vpop.permute.xlu1 %2431 }
 0x748   : > { %v9850_v62 = vsel %vm782_vm12, %v2430_v5, %v2432_v10  ;;  %v9853_v14 = vsel %vm782_vm12, %v2432_v10, %v2434_v21 }
 0x749   : > { %8612 = vmatprep.subr.msk.mxu0 %vm14206_vm11, %v9853_v14 }
 0x74a   : > { %8613 = vmatpush1.msk.msra.mxu0 %vm14206_vm11, %v9850_v62 }
 0x74b   : > { %v2398_v15 = vpop.permute.xlu0 %2397  ;;  %v2400_v49 = vpop.permute.xlu1 %2399 }
 0x74c   : > { %v9860_v52 = vsel %vm746_vm7, %v2398_v15, %v2400_v49  ;;  %v9864_v17 = vsel %vm746_vm7, %v2400_v49, %v2402_v29 }
 0x74d   : > { %v2454_v8 = vrot.slane %v9860_v52, 4  ;;  %v2455_v27 = vrot.slane %v9864_v17, 4 }
 0x74f   : > { %v2388_v51 = vpop.permute.xlu0 %2387  ;;  %v2410_v0 = vpop.permute.xlu1 %2409 }
 0x750   : > { %v2396_v33 = vsel %vm735_vm1, 0.0, %v2388_v51  ;;  %v9884_v58 = vsel %vm14237_vm6, %v2410_v0, %v2412_v1  ;;  %v2715_v1 = vrot.slane %v9837_v30, 4  ;;  %v8611_v30 = vld [vmem:[%s14178_s8 + $0x4] sm:$0xf]  ;;  %vm14242_vm6 = vmmov %vm14240_vm2 }
 0x753   : > { %v2366_v63 = vpop.permute.xlu0 %2365  ;;  %v2390_v23 = vpop.permute.xlu1 %2389 }
 0x754   : > { %v2394_v22 = vsel %vm735_vm1, %v2390_v23, %v2392_v55  ;;  %v2393_v55 = vsel %vm735_vm1, %v2388_v51, %v2390_v23  ;;  %v2474_v23 = vsel %vm14206_vm11, %v9766_v38, %v2455_v27 }
 0x755   : > { %v2449_v39 = vrot.slane %v2394_v22, 4  ;;  %v2448_v51 = vrot.slane %v2393_v55, 4 }
 0x757   : > { %v2376_v26 = vpop.permute.xlu0 %2375  ;;  %v2368_v13 = vpop.permute.xlu1 %2367 }
 0x758   : > { %v2372_v18 = vsel %vm713_vm9, %v2368_v13, %v2370_v45  ;;  %v9881_v45 = vsel %vm14236_vm15, %v2408_v6, %v2410_v0  ;;  %v2371_v6 = vsel %vm713_vm9, %v2366_v63, %v2368_v13  ;;  %v2386_v0 = vsel %vm724_vm4, 0.0, %v2376_v26  ;;  %vm14241_vm15 = vmmov %vm14239_vm8 }
 0x759   : > { %v2442_v5 = vrot.slane %v2372_v18, 4  ;;  %v2364_v27 = vsel %vm14241_vm15, 0.0, %v9847_v31  ;;  %vm14245_vm15 = vmmov %vm14242_vm6 }
 0x75b   : > { %v2378_v53 = vpop.permute.xlu1 %2377  ;;  %v2422_v19 = vpop.permute.xlu0 %2421 }
 0x75c   : > { %v2382_v25 = vsel %vm724_vm4, %v2378_v53, %v2380_v56  ;;  %v9870_v35 = vsel %vm770_vm10, %v2420_v11, %v2422_v19  ;;  %v9873_v43 = vsel %vm770_vm10, %v2422_v19, %v2424_v28  ;;  %v2374_v28 = vsel %vm713_vm9, 0.0, %v2366_v63 }
 0x75d   : > { %v2461_v21 = vrot.slane %v9870_v35, 4  ;;  %v2462_v29 = vrot.slane %v9873_v43, 4  ;;  %v2472_v60 = vsel %vm14206_vm11, %v2382_v25, %v2449_v39  ;;  %v2381_v15 = vsel %vm724_vm4, %v2376_v26, %v2378_v53 }
 0x75e   : > { %8865 = vmatpush3.msra.mxu1 %v2472_v60  ;;  %v2447_v39 = vrot.slane %v2396_v33, 4  ;;  %v2440_v63 = vrot.slane %v2374_v28, 4  ;;  %v2721_v26 = vrot.slane %v9823_v42, 4  ;;  %v2441_v53 = vrot.slane %v2371_v6, 4 }
 0x75f   : > { %v9888_v61 = vpop.permute.xlu1 %2647  ;;  %v2356_v56 = vpop.permute.xlu0 %2355  ;;  %v2477_v11 = vsel %vm14206_vm11, %v9884_v58, %v2462_v29  ;;  %v2476_v10 = vsel %vm14206_vm11, %v9881_v45, %v2461_v21  ;;  %8866 = vmatprep.subr.mxu1 %v8971_v3  ;;  %v2471_v18 = vsel %vm14206_vm11, %v2381_v15, %v2448_v51  ;;  %v2720_v42 = vrot.slane %v9853_v14, 4 }
 0x760   : > { %v2360_v49 = vsel %vm14238_vm14, %v2356_v56, %v2358_v7  ;;  %2513 = vmatprep.subr.mxu0 %v2477_v11  ;;  %v2359_v13 = vsel %vm14239_vm8, %v9847_v31, %v2356_v56  ;;  %v2473_v7 = vsel %vm14206_vm11, %v9744_v12, %v2454_v8  ;;  %v2470_v25 = vsel %vm14206_vm11, %v2386_v0, %v2447_v39  ;;  %vm14243_vm14 = vmmov %vm14239_vm8 }
 0x761   : > { %2514 = vmatpush1.msra.mxu0 %v2476_v10  ;;  %v2469_v22 = vsel %vm14206_vm11, %v2360_v49, %v2442_v5  ;;  %v2468_v12 = vsel %vm14206_vm11, %v2359_v13, %v2441_v53  ;;  %v2733_v8 = vsel %vm14206_vm11, %v2715_v1, %v9829_v57  ;;  %v2467_v21 = vsel %vm14206_vm11, %v2364_v27, %v2440_v63 }
 0x762   : > { %2515 = vmatprep.subr.mxu0 %v2474_v23  ;;  %8867 = vmatpush3.msra.mxu1 %v2469_v22  ;;  %v2730_v31 = vsel %vm14206_vm11, %v9759_v4, %v9832_v59  ;;  %v2719_v33 = vrot.slane %v9850_v62, 4  ;;  %v2714_v14 = vrot.slane %v9884_v58, 4  ;;  %v2713_v57 = vrot.slane %v9881_v45, 4 }
 0x763   : > { %2516 = vmatpush1.msra.mxu0 %v2473_v7  ;;  %8871 = vmatprep.subr.mxu1 %v8971_v3  ;;  %v2682_v38 = vpop.permute.xlu0 %2681  ;;  %v2684_v19 = vpop.permute.xlu1 %2683  ;;  %v2729_v1 = vsel %vm14206_vm11, %v9800_v40, %v9864_v17 }
 0x764   : > { %2517 = vmatprep.subr.mxu0 %v2471_v18  ;;  %8869 = vmatmul.mubr.msk.f32.vlgmr.msra.gmra.mxu1 %vm14240_vm2, %v8611_v30  ;;  %v2690_v55 = vsel %vm735_vm1, 0.0, %v2682_v38  ;;  %v2687_v28 = vsel %vm735_vm1, %v2682_v38, %v2684_v19  ;;  %v2732_v4 = vsel %vm14206_vm11, %v2714_v14, %v9873_v43  ;;  %v2731_v5 = vsel %vm14206_vm11, %v2713_v57, %v9870_v35  ;;  %vm14244_vm2 = vmmov %vm14239_vm8 }
 0x765   : > { %8872 = vmatpush3.msk.msra.mxu1 %vm14206_vm11, %v2721_v26  ;;  %2518 = vmatpush1.msra.mxu0 %v2470_v25  ;;  %v2703_v59 = vrot.slane %v2690_v55, 4  ;;  %v2704_v62 = vrot.slane %v2687_v28, 4  ;;  %v2728_v35 = vsel %vm14206_vm11, %v9793_v9, %v9860_v52  ;;  %v2688_v40 = vsel %vm735_vm1, %v2684_v19, %v9845_v24  ;;  %v8617_v24 = vld [vmem:[%s14179_s9 + $0x4] sm:$0xf] }
 0x766   : > { %8873 = vmatprep.subr.mxu1 %v8971_v3  ;;  %2519 = vmatprep.subr.mxu0 %v2468_v12  ;;  %v2658_v9 = vsel %vm14239_vm8, 0.0, %v9888_v61  ;;  %v2705_v39 = vrot.slane %v2688_v40, 4  ;;  %vm14247_vm8 = vcmask 416768  }
 0x767   : > { %8874 = vmatpush3.msra.mxu1 %v2733_v8  ;;  %2520 = vmatpush1.msra.mxu0 %v2467_v21  ;;  %v2660_v29 = vpop.permute.xlu0 %2659  ;;  %v2662_v60 = vpop.permute.xlu1 %2661 }
 0x768   : > { %8875 = vmatprep.subr.mxu1 %v8971_v3  ;;  %8618 = vmatprep.subr.msk.mxu0 %vm14206_vm11, %v2720_v42  ;;  %v2668_v58 = vsel %vm713_vm9, 0.0, %v2660_v29  ;;  %v2665_v11 = vsel %vm713_vm9, %v2660_v29, %v2662_v60 }
 0x769   : > { %8876 = vmatpush3.msra.mxu1 %v2730_v31  ;;  %8614 = vmatmul.mubr.msk.f32.vlgmr.msra.gmra.mxu0 %vm14242_vm6, %v8611_v30  ;;  %v2696_v49 = vrot.slane %v2668_v58, 4  ;;  %v2697_v51 = vrot.slane %v2665_v11, 4 }
 0x76a   : > { %8619 = vmatpush1.msk.msra.mxu0 %vm14206_vm11, %v2719_v33  ;;  %8877 = vmatprep.subr.mxu1 %v8971_v3 }
 0x76b   : > { %2767 = vmatprep.subr.mxu0 %v2732_v4  ;;  %v2670_v56 = vpop.permute.xlu0 %2669  ;;  %v2672_v45 = vpop.permute.xlu1 %2671  ;;  %8881 = vmatprep.mubr.msk.f32.mxu1 %vm8976_vm0, %v8971_v3  ;;  %v2722_v30 = vsel %vm14206_vm11, %v2658_v9, %v2696_v49 }
 0x76c   : > { %2768 = vmatpush1.msra.mxu0 %v2731_v5  ;;  %v2680_v43 = vsel %vm724_vm4, 0.0, %v2670_v56  ;;  %v2675_v10 = vsel %vm724_vm4, %v2670_v56, %v2672_v45  ;;  %2807 = vmatprep.mubr.f32.mxu0 %v8971_v3 }
 0x76d   : > { %2769 = vmatprep.subr.mxu0 %v2729_v1  ;;  %v2726_v6 = vsel %vm14206_vm11, %v2675_v10, %v2704_v62  ;;  %v2725_v15 = vsel %vm14206_vm11, %v2680_v43, %v2703_v59 }
 0x76e   : > { %2770 = vmatpush1.msra.mxu0 %v2728_v35 }
 0x76f   : > { %2771 = vmatprep.subr.mxu0 %v2726_v6  ;;  %v2650_v0 = vpop.permute.xlu0 %2649  ;;  %v2664_v23 = vpop.permute.xlu1 %2663 }
 0x770   : > { %v2653_v17 = vsel %vm14243_vm14, %v9888_v61, %v2650_v0  ;;  %2772 = vmatpush1.msra.mxu0 %v2725_v15  ;;  %v2666_v22 = vsel %vm713_vm9, %v2662_v60, %v2664_v23  ;;  %vm14246_vm14 = vcmask 408576  }
 0x771   : > { %v2723_v52 = vsel %vm14206_vm11, %v2653_v17, %v2697_v51  ;;  %v2698_v61 = vrot.slane %v2666_v22, 4 }
 0x772   : > { %2773 = vmatprep.subr.mxu0 %v2723_v52 }
 0x773   : > { %v2674_v63 = vpop.permute.xlu0 %2673  ;;  %v2652_v13 = vpop.permute.xlu1 %2651  ;;  %2774 = vmatpush1.msra.mxu0 %v2722_v30 }
 0x774   : > { %v2676_v7 = vsel %vm724_vm4, %v2672_v45, %v2674_v63  ;;  %v2654_v26 = vsel %vm14244_vm2, %v2650_v0, %v2652_v13  ;;  %8620 = vmatmul.mubr.msk.f32.vlgmr.msra.gmra.mxu0 %vm14245_vm15, %v8617_v24  ;;  %vm14248_vm2 = vcmask 908288  }
 0x775   : > { %v2727_v53 = vsel %vm14206_vm11, %v2676_v7, %v2705_v39  ;;  %3092 = vmatprep.mubr.f32.mxu0 %v8971_v3  ;;  %v2724_v38 = vsel %vm14206_vm11, %v2654_v26, %v2698_v61  ;;  %vm14249_vm15 = vmmov %vm14248_vm2 }
 0x776   : > { %8878 = vmatpush3.msra.mxu1 %v2727_v53 }
 0x777   : > { %8879 = vmatprep.subr.mxu1 %v8971_v3 }
 0x778   : > { %8880 = vmatpush3.msra.mxu1 %v2724_v38 }
 0x779   : > { %8882 = vmatmul.mubr.msk.f32.vlgmr.msra.gmra.mxu1 %vm14242_vm6, %v8617_v24  ;;  %8884 = vmatprep.subr.mxu1 %v8971_v3  ;;  %vm14250_vm6 = vcmask 154624  }
 0x77a   : > { %8894 = vmatprep.mubr.msk.f32.mxu1 %vm8976_vm0, %v8971_v3 }
 0x824   : > { %v9979_v19 = vpop.f32.mrf.mxu1 }
 0x826   : > { %v8870_v18 = vpop.f32.mrf.mxu1 }
 0x829   : > { %v9981_v25 = vpop.f32.mrf.mxu0 }
 0x82b   : > { %v9983_v27 = vpop.f32.mrf.mxu0 }
 0x834   : > { %v2809_v42 = vpop.f32.mrf.mxu0 }
 0x835   : > { %v9989_v29 = vmul.f32 %v2809_v42, %v9282_v44 }
 0x836   : > { %v2811_v60 = vpop.f32.mrf.mxu0 }
 0x837   : > { %v9998_v31 = vmul.f32 %v2811_v60, %v9279_v41 }
 0x839   : > { %v2880_v12 = vpop.f32.mrf.mxu1 }
 0x83a   : > { %v2886_v8 = vmul.f32 %v2880_v12, %v9298_v50 }
 0x83b   : > { %v8883_v21 = vpop.f32.mrf.mxu1 }
 0x83c   : > { %2972 = vrot.lane.b32.xlu0 %v2886_v8, %s8973_s26  ;;  %2962 = vrot.lane.b32.xlu1 %v2886_v8, %s8972_s25 }
 0x840   : > { %2940 = vrot.lane.b32.xlu0 %v2886_v8, %s8968_s5  ;;  %2968 = vrot.lane.b32.xlu1 %v9989_v29, %s8973_s26 }
 0x844   : > { %2950 = vrot.lane.b32.xlu0 %v2886_v8, %s8967_s1  ;;  %2946 = vrot.lane.b32.xlu1 %v9989_v29, %s8967_s1 }
 0x848   : > { %2958 = vrot.lane.b32.xlu0 %v9989_v29, %s8972_s25  ;;  %2970 = vrot.lane.b32.xlu1 %v9998_v31, %s8973_s26 }
 0x84c   : > { %2936 = vrot.lane.b32.xlu0 %v9989_v29, %s8968_s5  ;;  %2938 = vrot.lane.b32.xlu1 %v9998_v31, %s8968_s5 }
 0x850   : > { %2926 = vrot.lane.b32.xlu0 %v9989_v29, %s14203_s6  ;;  %2948 = vrot.lane.b32.xlu1 %v9998_v31, %s8967_s1 }
 0x854   : > { %2904 = vrot.lane.b32.xlu0 %v9989_v29, %s8974_s2  ;;  %2928 = vrot.lane.b32.xlu1 %v9998_v31, %s14203_s6 }
 0x858   : > { %2914 = vrot.lane.b32.xlu0 %v9989_v29, %s8969_s24  ;;  %2906 = vrot.lane.b32.xlu1 %v9998_v31, %s8974_s2 }
 0x85c   : > { %2916 = vrot.lane.b32.xlu1 %v9998_v31, %s8969_s24  ;;  %2960 = vrot.lane.b32.xlu0 %v9998_v31, %s8972_s25 }
 0x860   : > { %2894 = vrot.lane.b32.xlu1 %v9998_v31, %s8975_s27  ;;  %2892 = vrot.lane.b32.xlu0 %v9989_v29, %s8975_s27 }
 0x864   : > { %2908 = vrot.lane.b32.xlu1 %v2886_v8, %s8974_s2  ;;  %2930 = vrot.lane.b32.xlu0 %v2886_v8, %s14203_s6 }
 0x868   : > { %2896 = vrot.lane.b32.xlu1 %v2886_v8, %s8975_s27  ;;  %2918 = vrot.lane.b32.xlu0 %v2886_v8, %s8969_s24 }
 0x8ae   : > { %v2973_v33 = vpop.permute.xlu0 %2972  ;;  %v2963_v14 = vpop.permute.xlu1 %2962 }
 0x8af   : > { %v2977_v55 = vsel %vm786_vm13, %v2973_v33, 0.0  ;;  %v2967_v4 = vsel %vm14246_vm14, %v2963_v14, 0.0  ;;  %vm14251_vm14 = vmmov %vm14250_vm6 }
 0x8b0   : > { %8885 = vmatpush3.msk.msra.mxu1 %vm14206_vm11, %v2977_v55  ;;  %v3002_v62 = vrot.slane %v2967_v4, 4 }
 0x8b1   : > { %8886 = vmatprep.subr.mxu1 %v8971_v3 }
 0x8b2   : > { %v2941_v28 = vpop.permute.xlu0 %2940  ;;  %v2969_v57 = vpop.permute.xlu1 %2968 }
 0x8b3   : > { %v2945_v59 = vsel %vm14202_vm3, %v2941_v28, 0.0 }
 0x8b4   : > { %v2995_v58 = vrot.slane %v2945_v59, 4 }
 0x8b6   : > { %v2951_v5 = vpop.permute.xlu0 %2950  ;;  %v2947_v56 = vpop.permute.xlu1 %2946  ;;  %v3014_v1 = vsel %vm14206_vm11, %v2886_v8, %v2995_v58 }
 0x8b7   : > { %v2957_v45 = vsel %vm14247_vm8, %v2951_v5, 0.0  ;;  %vm14252_vm8 = vmmov %vm14250_vm6 }
 0x8b8   : > { %v3017_v11 = vsel %vm14206_vm11, %v2957_v45, %v3002_v62 }
 0x8b9   : > { %8887 = vmatpush3.msra.mxu1 %v3017_v11 }
 0x8ba   : > { %8888 = vmatprep.subr.mxu1 %v8971_v3  ;;  %v2959_v43 = vpop.permute.xlu0 %2958  ;;  %v2971_v10 = vpop.permute.xlu1 %2970 }
 0x8bb   : > { %v2974_v35 = vsel %vm782_vm12, %v2969_v57, %v2971_v10  ;;  %8889 = vmatpush3.msra.mxu1 %v3014_v1  ;;  %v2975_v6 = vsel %vm782_vm12, %v2971_v10, %v2973_v33 }
 0x8bc   : > { %8624 = vmatprep.subr.msk.mxu0 %vm14206_vm11, %v2975_v6  ;;  %8890 = vmatprep.subr.mxu1 %v8971_v3 }
 0x8bd   : > { %8625 = vmatpush1.msk.msra.mxu0 %vm14206_vm11, %v2974_v35 }
 0x8be   : > { %v2937_v15 = vpop.permute.xlu0 %2936  ;;  %v2939_v49 = vpop.permute.xlu1 %2938 }
 0x8bf   : > { %v2943_v52 = vsel %vm746_vm7, %v2939_v49, %v2941_v28  ;;  %v2942_v22 = vsel %vm746_vm7, %v2937_v15, %v2939_v49 }
 0x8c0   : > { %v2994_v24 = vrot.slane %v2943_v52, 4  ;;  %v2993_v61 = vrot.slane %v2942_v22, 4 }
 0x8c2   : > { %v2927_v51 = vpop.permute.xlu0 %2926  ;;  %v2949_v0 = vpop.permute.xlu1 %2948  ;;  %v3013_v4 = vsel %vm14206_vm11, %v9998_v31, %v2994_v24  ;;  %v3012_v58 = vsel %vm14206_vm11, %v9989_v29, %v2993_v61  ;;  %v8623_v29 = vld [vmem:[%s14180_s10 + $0x4] sm:$0xf] }
 0x8c3   : > { %v2952_v53 = vsel %vm14248_vm2, %v2947_v56, %v2949_v0  ;;  %v2953_v38 = vsel %vm14249_vm15, %v2949_v0, %v2951_v5  ;;  %v2935_v12 = vsel %vm735_vm1, 0.0, %v2927_v51  ;;  %vm14253_vm2 = vcmask 293888  }
 0x8c4   : > { %v2986_v59 = vrot.slane %v2935_v12, 4  ;;  %vm14254_vm15 = vmmov %vm14253_vm2 }
 0x8c6   : > { %v2905_v23 = vpop.permute.xlu0 %2904  ;;  %v2929_v40 = vpop.permute.xlu1 %2928 }
 0x8c7   : > { %v2932_v18 = vsel %vm735_vm1, %v2927_v51, %v2929_v40  ;;  %v2913_v55 = vsel %vm713_vm9, 0.0, %v2905_v23 }
 0x8c8   : > { %v2987_v28 = vrot.slane %v2932_v18, 4  ;;  %v2979_v10 = vrot.slane %v2913_v55, 4 }
 0x8ca   : > { %v2915_v17 = vpop.permute.xlu0 %2914  ;;  %v2907_v9 = vpop.permute.xlu1 %2906 }
 0x8cb   : > { %v2910_v33 = vsel %vm713_vm9, %v2905_v23, %v2907_v9  ;;  %v2925_v57 = vsel %vm724_vm4, 0.0, %v2915_v17 }
 0x8cc   : > { %v2980_v5 = vrot.slane %v2910_v33, 4  ;;  %v3009_v31 = vsel %vm14206_vm11, %v2925_v57, %v2986_v59 }
 0x8ce   : > { %v2917_v30 = vpop.permute.xlu1 %2916  ;;  %v2961_v39 = vpop.permute.xlu0 %2960 }
 0x8cf   : > { %v2964_v63 = vsel %vm770_vm10, %v2959_v43, %v2961_v39  ;;  %v2965_v13 = vsel %vm770_vm10, %v2961_v39, %v2963_v14  ;;  %v2920_v14 = vsel %vm724_vm4, %v2915_v17, %v2917_v30 }
 0x8d0   : > { %v3000_v7 = vrot.slane %v2964_v63, 4  ;;  %v3001_v26 = vrot.slane %v2965_v13, 4  ;;  %v3010_v43 = vsel %vm14206_vm11, %v2920_v14, %v2987_v28  ;;  %v2633_v63 = vmul.f32 0.2, %v9981_v25 }
 0x8d2   : > { %v2895_v42 = vpop.permute.xlu1 %2894  ;;  %v2893_v8 = vpop.permute.xlu0 %2892  ;;  %v3016_v21 = vsel %vm14206_vm11, %v2953_v38, %v3001_v26  ;;  %v3015_v60 = vsel %vm14206_vm11, %v2952_v53, %v3000_v7  ;;  %v2635_v26 = vmul.f32 0.2, %v9979_v19 }
 0x8d3   : > { %3052 = vmatprep.subr.mxu0 %v3016_v21  ;;  %v2898_v62 = vsel %vm14250_vm6, %v2893_v8, %v2895_v42  ;;  %v2903_v56 = vsel %vm14251_vm14, 0.0, %v2893_v8  ;;  %vm2631_vm14 = vcmp.ge.f32.partialorder %v9983_v27, 0.0 }
 0x8d4   : > { %3053 = vmatpush1.msra.mxu0 %v3015_v60  ;;  %v3007_v35 = vsel %vm14206_vm11, %v2898_v62, %v2980_v5  ;;  %v3006_v15 = vsel %vm14206_vm11, %v2903_v56, %v2979_v10 }
 0x8d5   : > { %3054 = vmatprep.subr.mxu0 %v3013_v4 }
 0x8d6   : > { %v2909_v45 = vpop.permute.xlu1 %2908  ;;  %3055 = vmatpush1.msra.mxu0 %v3012_v58  ;;  %v2931_v11 = vpop.permute.xlu0 %2930 }
 0x8d7   : > { %v2933_v1 = vsel %vm735_vm1, %v2929_v40, %v2931_v11  ;;  %3056 = vmatprep.subr.mxu0 %v3010_v43  ;;  %v2911_v6 = vsel %vm713_vm9, %v2907_v9, %v2909_v45 }
 0x8d8   : > { %3057 = vmatpush1.msra.mxu0 %v3009_v31  ;;  %v2988_v49 = vrot.slane %v2933_v1, 4  ;;  %v2981_v17 = vrot.slane %v2911_v6, 4 }
 0x8d9   : > { %3058 = vmatprep.subr.mxu0 %v3007_v35 }
 0x8da   : > { %v2897_v51 = vpop.permute.xlu1 %2896  ;;  %3059 = vmatpush1.msra.mxu0 %v3006_v15  ;;  %v2919_v0 = vpop.permute.xlu0 %2918 }
 0x8db   : > { %v2899_v23 = vsel %vm14252_vm8, %v2895_v42, %v2897_v51  ;;  %v2921_v40 = vsel %vm724_vm4, %v2917_v30, %v2919_v0  ;;  %8626 = vmatmul.mubr.msk.f32.vlgmr.msra.gmra.mxu0 %vm14253_vm2, %v8623_v29  ;;  %v2634_v30 = vmul.f32 0.2, %v9983_v27  ;;  %vm2630_vm8 = vcmp.ge.f32.partialorder %v9981_v25, 0.0 }
 0x8dc   : > { %v3011_v52 = vsel %vm14206_vm11, %v2921_v40, %v2988_v49  ;;  %3262 = vmatprep.mubr.f32.mxu0 %v8971_v3  ;;  %v3008_v9 = vsel %vm14206_vm11, %v2899_v23, %v2981_v17  ;;  %v2636_v12 = vsel %vm2630_vm8, %v9981_v25, %v2633_v63  ;;  %v8629_v25 = vld [vmem:[%s14181_s11 + $0x8] sm:$0xff]  ;;  %vm14259_vm8 = vcmask 154624  }
 0x8dd   : > { %8891 = vmatpush3.msra.mxu1 %v3011_v52  ;;  %v2637_v53 = vsel %vm2631_vm14, %v9983_v27, %v2634_v30  ;;  %v2639_v57 = vmul.f32 %v2636_v12, %v9282_v44  ;;  %vm8636_vm14 = vmneg %vm713_vm9 }
 0x8de   : > { %8892 = vmatprep.subr.mxu1 %v8971_v3  ;;  %v2640_v14 = vmul.f32 %v2637_v53, %v9279_v41 }
 0x8df   : > { %8893 = vmatpush3.msra.mxu1 %v3008_v9 }
 0x8e0   : > { %8895 = vmatmul.mubr.msk.f32.vlgmr.msra.gmra.mxu1 %vm14254_vm15, %v8623_v29  ;;  %8897 = vmatprep.subr.mxu1 %v8971_v3  ;;  %vm2632_vm15 = vcmp.ge.f32.partialorder %v9979_v19, 0.0 }
 0x8e1   : > { %8899 = vmatprep.mubr.msk.f32.mxu1 %vm8976_vm0, %v8971_v3  ;;  %v2638_v33 = vsel %vm2632_vm15, %v9979_v19, %v2635_v26  ;;  %vm14260_vm15 = vmmov %vm14259_vm8 }
 0x8e2   : > { %v2641_v59 = vmul.f32 %v2638_v33, %v9298_v50 }
 0x99b   : > { %v3094_v22 = vpop.f32.mrf.mxu0 }
 0x99c   : > { %vm3169_vm6 = vcmp.ge.f32.partialorder %v3094_v22, 0.0  ;;  %v3172_v39 = vmul.f32 0.2, %v3094_v22 }
 0x99d   : > { %v3096_v13 = vpop.f32.mrf.mxu0 }
 0x99e   : > { %v3175_v24 = vsel %vm3169_vm6, %v3094_v22, %v3172_v39  ;;  %vm3170_vm2 = vcmp.ge.f32.partialorder %v3096_v13, 0.0  ;;  %v3173_v7 = vmul.f32 0.2, %v3096_v13 }
 0x99f   : > { %v3178_v61 = vmul.f32 %v3175_v24, %v9282_v44 }
 0x9a0   : > { %v3176_v38 = vsel %vm3170_vm2, %v3096_v13, %v3173_v7  ;;  %v3165_v18 = vpop.f32.mrf.mxu1  ;;  %vm8638_vm2 = vmneg %vm14259_vm8 }
 0x9a1   : > { %v3179_v42 = vmul.f32 %v3176_v38, %v9279_v41  ;;  %vm3171_vm3 = vcmp.ge.f32.partialorder %v3165_v18, 0.0  ;;  %v3174_v8 = vmul.f32 0.2, %v3165_v18  ;;  %v3184_v21 = vrot.slane %v3178_v61, 4 }
 0x9a2   : > { %v8896_v60 = vpop.f32.mrf.mxu1 }
 0x9a3   : > { %v3185_v55 = vrot.slane %v3179_v42, 4  ;;  %v3177_v28 = vsel %vm3171_vm3, %v3165_v18, %v3174_v8  ;;  %v3190_v19 = vsel %vm14206_vm11, %v2639_v57, %v3184_v21  ;;  %vm14255_vm3 = vcmask 908288   ;;  %v3345_v57 = vld [vmem:[%s14182_s12] sm:$0xff] }
 0x9a4   : > { %v3180_v27 = vmul.f32 %v3177_v28, %v9298_v50  ;;  %vm14256_vm6 = vmmov %vm14255_vm3 }
 0x9a5   : > { %v3191_v4 = vsel %vm14206_vm11, %v2640_v14, %v3185_v55 }
 0x9a6   : > { %v3186_v62 = vrot.slane %v3180_v27, 4  ;;  %3228 = vmatprep.subr.mxu0 %v3191_v4 }
 0x9a7   : > { %3229 = vmatpush1.msra.mxu0 %v3190_v19 }
 0x9a8   : > { %8630 = vmatmul.mubr.msk.f32.vlgmr.msra.gmra.mxu0 %vm1039_vm5, %v8629_v25  ;;  %v3192_v58 = vsel %vm14206_vm11, %v2641_v59, %v3186_v62 }
 0x9a9   : > { %8898 = vmatpush3.msra.mxu1 %v3192_v58  ;;  %3519 = vmatprep.mubr.f32.mxu0 %v8971_v3 }
 0x9aa   : > { %8900 = vmatmul.mubr.msk.f32.vlgmr.msra.gmra.mxu1 %vm1039_vm5, %v8629_v25 }
 0x9ab   : > { %4181 = vmatprep.mubr.f32.mxu1 %v8971_v3 }
 0xa68   : > { %v3264_v43 = vpop.f32.mrf.mxu0 }
 0xa69   : > { %v3339_v10 = vmul.f32 %v3264_v43, %v9282_v44  ;;  %v3742_v43 = vld [vmem:[%s14264_s30 + $0x460] sm:$0xff] }
 0xa6a   : > { %v3335_v5 = vpop.f32.mrf.mxu1  ;;  %v3266_v31 = vpop.f32.mrf.mxu0 }
 0xa6b   : > { %v3341_v56 = vmul.f32 %v3335_v5, %v9298_v50  ;;  %v3342_v1 = vadd.f32 %v3339_v10, %v9714_v32  ;;  %v3753_v5 = vld [vmem:[%s14264_s30 + $0x4b8] sm:$0xff] }
 0xa6c   : > { %v8901_v45 = vpop.f32.mrf.mxu1  ;;  %v3733_v10 = vld [vmem:[%s14264_s30 + $0x418] sm:$0xff] }
 0xa6d   : > { %v10113_v11 = vadd.f32 %v3341_v56, %v9723_v16  ;;  %v3340_v16 = vmul.f32 %v3266_v31, %v9279_v41  ;;  %v3752_v45 = vld [vmem:[%s14264_s30 + $0x4b0] sm:$0xff]  ;;  %v3723_v31 = vld [vmem:[%s14264_s30 + $0x3c8] sm:$0xff] }
 0xa6f   : > { %3426 = vrot.lane.b32.xlu0 %v10113_v11, %s8972_s25  ;;  %3438 = vrot.lane.b32.xlu1 %v10113_v11, %s8973_s26  ;;  %v3343_v35 = vadd.f32 %v3340_v16, %v9711_v20  ;;  %v3346_v20 = vld [vmem:[%s14183_s13] sm:$0xff] }
 0xa70   : > { %v3722_v16 = vld [vmem:[%s14264_s30 + $0x3c0] sm:$0xff] }
 0xa73   : > { %3402 = vrot.lane.b32.xlu0 %v10113_v11, %s8968_s5  ;;  %3414 = vrot.lane.b32.xlu1 %v10113_v11, %s8967_s1 }
 0xa77   : > { %3434 = vrot.lane.b32.xlu0 %v3342_v1, %s8973_s26  ;;  %3422 = vrot.lane.b32.xlu1 %v3342_v1, %s8972_s25 }
 0xa7b   : > { %3410 = vrot.lane.b32.xlu0 %v3342_v1, %s8967_s1  ;;  %3398 = vrot.lane.b32.xlu1 %v3342_v1, %s8968_s5 }
 0xa7f   : > { %3386 = vrot.lane.b32.xlu0 %v3342_v1, %s14203_s6  ;;  %3424 = vrot.lane.b32.xlu1 %v3343_v35, %s8972_s25  ;;  %s14209_s25 = smov 35  }
 0xa83   : > { %3436 = vrot.lane.b32.xlu0 %v3343_v35, %s8973_s26  ;;  %3400 = vrot.lane.b32.xlu1 %v3343_v35, %s8968_s5  ;;  %s14275_s26 = smov 35  }
 0xa87   : > { %3412 = vrot.lane.b32.xlu0 %v3343_v35, %s8967_s1  ;;  %3388 = vrot.lane.b32.xlu1 %v3343_v35, %s14203_s6  ;;  %s14211_s1 = smov 34  }
 0xa8b   : > { %3374 = vrot.lane.b32.xlu0 %v3342_v1, %s8969_s24  ;;  %3376 = vrot.lane.b32.xlu1 %v3343_v35, %s8969_s24 }
 0xa8f   : > { %3362 = vrot.lane.b32.xlu0 %v3342_v1, %s8974_s2  ;;  %3364 = vrot.lane.b32.xlu1 %v3343_v35, %s8974_s2 }
 0xa93   : > { %3350 = vrot.lane.b32.xlu0 %v3342_v1, %s8975_s27  ;;  %3352 = vrot.lane.b32.xlu1 %v3343_v35, %s8975_s27 }
 0xa97   : > { %3390 = vrot.lane.b32.xlu0 %v10113_v11, %s14203_s6  ;;  %3378 = vrot.lane.b32.xlu1 %v10113_v11, %s8969_s24  ;;  %s8981_s6 = smov 33   ;;  %s14274_s24 = smov 34  }
 0xa9b   : > { %3366 = vrot.lane.b32.xlu0 %v10113_v11, %s8974_s2  ;;  %3354 = vrot.lane.b32.xlu1 %v10113_v11, %s8975_s27  ;;  %s8978_s27 = smov 94   ;;  %s14273_s2 = sld [smem:[#allocation6_spill]] }
 0xa9f   : > { %3448 = vperm.xlu0 %8950, %v3346_v20   ;;  %v3712_v20 = vld [vmem:[%s14264_s30 + $0x370] sm:$0xff] }
 0xae1   : > { %v3427_v32 = vpop.permute.xlu0 %3426  ;;  %v3439_v29 = vpop.permute.xlu1 %3438 }
 0xae5   : > { %v10154_v6 = vpop.permute.xlu0 %3402  ;;  %v3415_v15 = vpop.permute.xlu1 %3414 }
 0xae9   : > { %v3435_v49 = vpop.permute.xlu0 %3434  ;;  %v3423_v51 = vpop.permute.xlu1 %3422 }
 0xaed   : > { %v3411_v0 = vpop.permute.xlu0 %3410  ;;  %v3399_v23 = vpop.permute.xlu1 %3398 }
 0xaf1   : > { %v3387_v40 = vpop.permute.xlu0 %3386  ;;  %v3425_v17 = vpop.permute.xlu1 %3424 }
 0xaf2   : > { %v3429_v39 = vsel %vm770_vm10, %v3425_v17, %v3427_v32  ;;  %v3428_v24 = vsel %vm770_vm10, %v3423_v51, %v3425_v17  ;;  %vm8634_vm10 = vmneg %vm724_vm4  ;;  %v3682_v51 = vld [vmem:[%s14264_s30 + $0x280] sm:$0xff] }
 0xaf3   : > { %v3662_v17 = vld [vmem:[%s14264_s30 + $0x1e0] sm:$0xff] }
 0xaf5   : > { %v3437_v52 = vpop.permute.xlu0 %3436  ;;  %v3401_v9 = vpop.permute.xlu1 %3400 }
 0xaf6   : > { %v3441_v22 = vsel %vm782_vm12, %v3437_v52, %v3439_v29  ;;  %v3440_v30 = vsel %vm782_vm12, %v3435_v49, %v3437_v52  ;;  %v3405_v61 = vsel %vm746_vm7, %v3401_v9, %v10154_v6  ;;  %v3404_v18 = vsel %vm746_vm7, %v3399_v23, %v3401_v9  ;;  %vm10166_vm12 = vmneg %vm735_vm1  ;;  %v3683_v49 = vld [vmem:[%s14264_s30 + $0x288] sm:$0xff]  ;;  %v3672_v23 = vld [vmem:[%s14264_s30 + $0x230] sm:$0xff] }
 0xaf7   : > { %3469 = vmatprep.subr.mxu0 %v3441_v22  ;;  %v3653_v52 = vld [vmem:[%s14264_s30 + $0x198] sm:$0xff]  ;;  %v3652_v9 = vld [vmem:[%s14264_s30 + $0x190] sm:$0xff]  ;;  %v3643_v22 = vld [vmem:[%s14264_s30 + $0x148] sm:$0xff] }
 0xaf8   : > { %3470 = vmatpush1.msra.mxu0 %v3440_v30  ;;  %v3642_v30 = vld [vmem:[%s14264_s30 + $0x140] sm:$0xff] }
 0xaf9   : > { %v3413_v63 = vpop.permute.xlu0 %3412  ;;  %3471 = vmatprep.subr.mxu0 %v3429_v39  ;;  %v3389_v13 = vpop.permute.xlu1 %3388  ;;  %v3633_v39 = vld [vmem:[%s14264_s30 + $0xf8] sm:$0xff] }
 0xafa   : > { %3472 = vmatpush1.msra.mxu0 %v3428_v24  ;;  %v3417_v7 = vsel %vm14255_vm3, %v3413_v63, %v3415_v15  ;;  %v3416_v26 = vsel %vm14256_vm6, %v3411_v0, %v3413_v63  ;;  %v3392_v42 = vsel %vm735_vm1, %v3387_v40, %v3389_v13  ;;  %vm3451_vm3 = vcmask 588800   ;;  %v3673_v0 = vld [vmem:[%s14264_s30 + $0x238] sm:$0xff]  ;;  %v3632_v63 = vld [vmem:[%s14264_s30 + $0xf0] sm:$0xff]  ;;  %v3622_v24 = vld [vmem:[%s14264_s30 + $0xa0] sm:$0xff] }
 0xafb   : > { %3473 = vmatprep.subr.mxu0 %v3417_v7  ;;  %vm14261_vm6 = vcmask 408576   ;;  %v3613_v7 = vld [vmem:[%s14264_s30 + $0x58] sm:$0xff] }
 0xafc   : > { %3474 = vmatpush1.msra.mxu0 %v3416_v26  ;;  %v3612_v26 = vld [vmem:[%s14264_s30 + $0x50] sm:$0xff] }
 0xafd   : > { %v3375_v53 = vpop.permute.xlu0 %3374  ;;  %3475 = vmatprep.subr.mxu0 %v3405_v61  ;;  %v3377_v38 = vpop.permute.xlu1 %3376  ;;  %v3603_v61 = vld [vmem:[%s14264_s30 + $0x8] sm:$0xff] }
 0xafe   : > { %3476 = vmatpush1.msra.mxu0 %v3404_v18  ;;  %v3380_v60 = vsel %vm724_vm4, %v3375_v53, %v3377_v38  ;;  %v3912_v18 = vld [vmem:[%s14264_s30 + $0x9b0] sm:$0xff] }
 0xaff   : > { %3477 = vmatprep.subr.mxu0 %v3343_v35  ;;  %v3713_v35 = vld [vmem:[%s14264_s30 + $0x378] sm:$0xff] }
 0xb00   : > { %3478 = vmatpush1.msra.mxu0 %v3342_v1  ;;  %v3732_v1 = vld [vmem:[%s14264_s30 + $0x410] sm:$0xff] }
 0xb01   : > { %v3363_v8 = vpop.permute.xlu0 %3362  ;;  %3479 = vmatprep.subr.mxu0 %v3392_v42  ;;  %v3365_v21 = vpop.permute.xlu1 %3364  ;;  %v3903_v42 = vld [vmem:[%s14264_s30 + $0x968] sm:$0xff] }
 0xb02   : > { %8633 = vmatpush1.msk.msra.mxu0 %vm10166_vm12, %v3387_v40  ;;  %v3368_v33 = vsel %vm713_vm9, %v3363_v8, %v3365_v21  ;;  %v3663_v40 = vld [vmem:[%s14264_s30 + $0x1e8] sm:$0xff] }
 0xb03   : > { %3481 = vmatprep.subr.mxu0 %v3380_v60  ;;  %v3892_v60 = vld [vmem:[%s14264_s30 + $0x910] sm:$0xff] }
 0xb04   : > { %8635 = vmatpush1.msk.msra.mxu0 %vm8634_vm10, %v3375_v53  ;;  %vm14262_vm10 = vcmask 416768   ;;  %v3602_v53 = vld [vmem:[%s14264_s30] sm:$0xff] }
 0xb05   : > { %v3351_v14 = vpop.permute.xlu0 %3350  ;;  %3483 = vmatprep.subr.mxu0 %v3368_v33  ;;  %v3353_v55 = vpop.permute.xlu1 %3352  ;;  %v3883_v33 = vld [vmem:[%s14264_s30 + $0x8c8] sm:$0xff] }
 0xb06   : > { %8637 = vmatpush1.msk.msra.mxu0 %vm8636_vm14, %v3363_v8  ;;  %v3356_v28 = vsel %vm14260_vm15, %v3351_v14, %v3353_v55  ;;  %vm14263_vm14 = vcmask 547840   ;;  %v3902_v8 = vld [vmem:[%s14264_s30 + $0x960] sm:$0xff] }
 0xb07   : > { %3485 = vmatprep.subr.mxu0 %v3356_v28  ;;  %v3872_v28 = vld [vmem:[%s14264_s30 + $0x870] sm:$0xff] }
 0xb08   : > { %8639 = vmatpush1.msk.msra.mxu0 %vm8638_vm2, %v3351_v14  ;;  %v3882_v14 = vld [vmem:[%s14264_s30 + $0x8c0] sm:$0xff]  ;;  %vm4861_vm2 = vcmask 269312  }
 0xb09   : > { %8640 = vmatmul.mubr.msk.f32.vlgmr.msra.gmra.mxu0 %vm3451_vm3, %v3345_v57  ;;  %8902 = vmatprep.subr.mxu0 %v8971_v3  ;;  %v3391_v27 = vpop.permute.xlu0 %3390  ;;  %v3379_v4 = vpop.permute.xlu1 %3378  ;;  %vm11707_vm15 = vmneg %vm4861_vm2 }
 0xb0a   : > { %8903 = vmatpush3.msk.msra.mxu0 %vm786_vm13, %v3439_v29  ;;  %8920 = vmatprep.mubr.msk.f32.mxu0 %vm8976_vm0, %v8971_v3  ;;  %v3393_v25 = vsel %vm735_vm1, %v3389_v13, %v3391_v27  ;;  %v3381_v62 = vsel %vm724_vm4, %v3377_v38, %v3379_v4  ;;  %vm14265_vm0 = vmmov %vm14259_vm8  ;;  %v3702_v29 = vld [vmem:[%s14264_s30 + $0x320] sm:$0xff]  ;;  %v3623_v13 = vld [vmem:[%s14264_s30 + $0xa8] sm:$0xff]  ;;  %vm14205_vm4 = vcmask 556032   ;;  %vm5024_vm13 = vcmask 769024  }
 0xb0b   : > { %8904 = vmatprep.subr.mxu0 %v8971_v3  ;;  %v3913_v38 = vld [vmem:[%s14264_s30 + $0x9b8] sm:$0xff]  ;;  %v3862_v27 = vld [vmem:[%s14264_s30 + $0x820] sm:$0xff]  ;;  %vm4983_vm8 = vcmask 777216  }
 0xb0c   : > { %8905 = vmatpush3.msk.msra.mxu0 %vm14261_vm6, %v3427_v32  ;;  %v3703_v32 = vld [vmem:[%s14264_s30 + $0x328] sm:$0xff]  ;;  %v3853_v4 = vld [vmem:[%s14264_s30 + $0x7d8] sm:$0xff]  ;;  %vm4823_vm6 = vcmask 277504  }
 0xb0d   : > { %8906 = vmatprep.subr.mxu0 %v8971_v3  ;;  %v3367_v59 = vpop.permute.xlu0 %3366  ;;  %v3355_v19 = vpop.permute.xlu1 %3354 }
 0xb0e   : > { %8907 = vmatpush3.msk.msra.mxu0 %vm14262_vm10, %v3415_v15  ;;  %v3369_v58 = vsel %vm713_vm9, %v3365_v21, %v3367_v59  ;;  %v3357_v56 = vsel %vm14265_vm0, %v3353_v55, %v3355_v19  ;;  %v3692_v15 = vld [vmem:[%s14264_s30 + $0x2d0] sm:$0xff]  ;;  %v3893_v21 = vld [vmem:[%s14264_s30 + $0x918] sm:$0xff]  ;;  %v3843_v59 = vld [vmem:[%s14264_s30 + $0x788] sm:$0xff]  ;;  %vm14208_vm9 = vcmask 760832  }
 0xb0f   : > { %8908 = vmatprep.subr.mxu0 %v8971_v3  ;;  %v3873_v55 = vld [vmem:[%s14264_s30 + $0x878] sm:$0xff]  ;;  %vm11725_vm10 = vmneg %vm4823_vm6 }
 0xb10   : > { %8909 = vmatpush3.msk.msra.mxu0 %vm14263_vm14, %v10154_v6  ;;  %v3693_v6 = vld [vmem:[%s14264_s30 + $0x2d8] sm:$0xff]  ;;  %vm4785_vm14 = vcmask 285696  }
 0xb11   : > { %8910 = vmatprep.subr.mxu0 %v8971_v3  ;;  %v3833_v19 = vld [vmem:[%s14264_s30 + $0x738] sm:$0xff]  ;;  %vm11739_vm0 = vmneg %vm4785_vm14 }
 0xb12   : > { %8911 = vmatpush3.msra.mxu0 %v10113_v11  ;;  %v3743_v11 = vld [vmem:[%s14264_s30 + $0x468] sm:$0xff] }
 0xb13   : > { %8912 = vmatprep.subr.mxu0 %v8971_v3 }
 0xb14   : > { %8913 = vmatpush3.msra.mxu0 %v3393_v25  ;;  %v3852_v25 = vld [vmem:[%s14264_s30 + $0x7d0] sm:$0xff] }
 0xb15   : > { %8914 = vmatprep.subr.mxu0 %v8971_v3 }
 0xb16   : > { %8915 = vmatpush3.msra.mxu0 %v3381_v62  ;;  %v3842_v62 = vld [vmem:[%s14264_s30 + $0x780] sm:$0xff] }
 0xb17   : > { %8916 = vmatprep.subr.mxu0 %v8971_v3 }
 0xb18   : > { %8917 = vmatpush3.msra.mxu0 %v3369_v58  ;;  %v3832_v58 = vld [vmem:[%s14264_s30 + $0x730] sm:$0xff] }
 0xb19   : > { %8918 = vmatprep.subr.mxu0 %v8971_v3 }
 0xb1a   : > { %8919 = vmatpush3.msra.mxu0 %v3357_v56  ;;  %v3822_v56 = vld [vmem:[%s14264_s30 + $0x6e0] sm:$0xff] }
 0xb1b   : > { %8921 = vmatmul.mubr.msk.f32.vlgmr.msra.gmra.mxu0 %vm3451_vm3, %v3345_v57  ;;  %4046 = vmatprep.subr.mxu0 %v3753_v5  ;;  %v3863_v57 = vld [vmem:[%s14264_s30 + $0x828] sm:$0xff] }
 0xb1c   : > { %4047 = vmatpush1.msra.mxu0 %v3752_v45  ;;  %v3823_v5 = vld [vmem:[%s14264_s30 + $0x6e8] sm:$0xff]  ;;  %v3813_v45 = vld [vmem:[%s14264_s30 + $0x698] sm:$0xff] }
 0xb1d   : > { %4048 = vmatprep.subr.mxu0 %v3743_v11  ;;  %v3812_v11 = vld [vmem:[%s14264_s30 + $0x690] sm:$0xff] }
 0xb1e   : > { %4049 = vmatpush1.msra.mxu0 %v3742_v43  ;;  %v3803_v43 = vld [vmem:[%s14264_s30 + $0x648] sm:$0xff] }
 0xb1f   : > { %4050 = vmatprep.subr.mxu0 %v3733_v10  ;;  %v3802_v10 = vld [vmem:[%s14264_s30 + $0x640] sm:$0xff] }
 0xb20   : > { %4051 = vmatpush1.msra.mxu0 %v3732_v1  ;;  %v4003_v1 = vld [vmem:[%s14264_s30 + $0xc88] sm:$0xf] }
 0xb21   : > { %4052 = vmatprep.subr.mxu0 %v3723_v31  ;;  %v3793_v31 = vld [vmem:[%s14264_s30 + $0x5f8] sm:$0xff]  ;;  %8646 = vmatprep.subr.msk.mxu1 %vm14206_vm11, %v4003_v1  ;;  %v3934_v1 = vld [vmem:[%s14264_s30 + $0xa60] sm:$0xff] }
 0xb22   : > { %4053 = vmatpush1.msra.mxu0 %v3722_v16  ;;  %v4002_v16 = vld [vmem:[%s14264_s30 + $0xc80] sm:$0xf] }
 0xb23   : > { %4054 = vmatprep.subr.mxu0 %v3713_v35  ;;  %v3792_v35 = vld [vmem:[%s14264_s30 + $0x5f0] sm:$0xff]  ;;  %8647 = vmatpush1.msk.msra.mxu1 %vm14206_vm11, %v4002_v16  ;;  %v3754_v16 = vld [vmem:[%s14264_s30 + $0x4c0] sm:$0xff] }
 0xb24   : > { %4055 = vmatpush1.msra.mxu0 %v3712_v20  ;;  %v3993_v20 = vld [vmem:[%s14264_s30 + $0xc38] sm:$0xff] }
 0xb25   : > { %4056 = vmatprep.subr.mxu0 %v3703_v32  ;;  %v3783_v32 = vld [vmem:[%s14264_s30 + $0x5a8] sm:$0xff]  ;;  %4133 = vmatprep.subr.mxu1 %v3993_v20  ;;  %v3744_v20 = vld [vmem:[%s14264_s30 + $0x470] sm:$0xff] }
 0xb26   : > { %4057 = vmatpush1.msra.mxu0 %v3702_v29  ;;  %v3992_v29 = vld [vmem:[%s14264_s30 + $0xc30] sm:$0xff] }
 0xb27   : > { %4058 = vmatprep.subr.mxu0 %v3693_v6  ;;  %v3782_v6 = vld [vmem:[%s14264_s30 + $0x5a0] sm:$0xff]  ;;  %4134 = vmatpush1.msra.mxu1 %v3992_v29  ;;  %v3735_v29 = vld [vmem:[%s14264_s30 + $0x428] sm:$0xff] }
 0xb28   : > { %4059 = vmatpush1.msra.mxu0 %v3692_v15  ;;  %v3983_v15 = vld [vmem:[%s14264_s30 + $0xbe8] sm:$0xff] }
 0xb29   : > { %4060 = vmatprep.subr.mxu0 %v3683_v49  ;;  %v3773_v49 = vld [vmem:[%s14264_s30 + $0x558] sm:$0xff]  ;;  %4135 = vmatprep.subr.mxu1 %v3983_v15  ;;  %v3734_v15 = vld [vmem:[%s14264_s30 + $0x420] sm:$0xff] }
 0xb2a   : > { %4061 = vmatpush1.msra.mxu0 %v3682_v51  ;;  %v3982_v51 = vld [vmem:[%s14264_s30 + $0xbe0] sm:$0xff] }
 0xb2b   : > { %4062 = vmatprep.subr.mxu0 %v3673_v0  ;;  %v3772_v0 = vld [vmem:[%s14264_s30 + $0x550] sm:$0xff]  ;;  %4136 = vmatpush1.msra.mxu1 %v3982_v51  ;;  %v3725_v51 = vld [vmem:[%s14264_s30 + $0x3d8] sm:$0xff] }
 0xb2c   : > { %4063 = vmatpush1.msra.mxu0 %v3672_v23  ;;  %v3973_v23 = vld [vmem:[%s14264_s30 + $0xb98] sm:$0xff] }
 0xb2d   : > { %4064 = vmatprep.subr.mxu0 %v3663_v40  ;;  %v3763_v40 = vld [vmem:[%s14264_s30 + $0x508] sm:$0xff]  ;;  %4137 = vmatprep.subr.mxu1 %v3973_v23  ;;  %v3724_v23 = vld [vmem:[%s14264_s30 + $0x3d0] sm:$0xff] }
 0xb2e   : > { %4065 = vmatpush1.msra.mxu0 %v3662_v17  ;;  %v3972_v17 = vld [vmem:[%s14264_s30 + $0xb90] sm:$0xff] }
 0xb2f   : > { %4066 = vmatprep.subr.mxu0 %v3653_v52  ;;  %v3762_v52 = vld [vmem:[%s14264_s30 + $0x500] sm:$0xff]  ;;  %4138 = vmatpush1.msra.mxu1 %v3972_v17  ;;  %v3715_v17 = vld [vmem:[%s14264_s30 + $0x388] sm:$0xff] }
 0xb30   : > { %4067 = vmatpush1.msra.mxu0 %v3652_v9  ;;  %v3963_v9 = vld [vmem:[%s14264_s30 + $0xb48] sm:$0xff] }
 0xb31   : > { %4068 = vmatprep.subr.mxu0 %v3643_v22  ;;  %v4005_v22 = vld [vmem:[%s14264_s30 + $0xc98] sm:$0xf]  ;;  %4139 = vmatprep.subr.mxu1 %v3963_v9  ;;  %v3714_v9 = vld [vmem:[%s14264_s30 + $0x380] sm:$0xff] }
 0xb32   : > { %4069 = vmatpush1.msra.mxu0 %v3642_v30  ;;  %v3962_v30 = vld [vmem:[%s14264_s30 + $0xb40] sm:$0xff] }
 0xb33   : > { %4070 = vmatprep.subr.mxu0 %v3633_v39  ;;  %4140 = vmatpush1.msra.mxu1 %v3962_v30  ;;  %v3953_v39 = vld [vmem:[%s14264_s30 + $0xaf8] sm:$0xff] }
 0xb34   : > { %4071 = vmatpush1.msra.mxu0 %v3632_v63  ;;  %4141 = vmatprep.subr.mxu1 %v3953_v39  ;;  %v3952_v63 = vld [vmem:[%s14264_s30 + $0xaf0] sm:$0xff]  ;;  %v3705_v30 = vld [vmem:[%s14264_s30 + $0x338] sm:$0xff]  ;;  %v3726_v39 = vld [vmem:[%s14264_s30 + $0x3e0] sm:$0xff] }
 0xb35   : > { %4072 = vmatprep.subr.mxu0 %v3623_v13  ;;  %4142 = vmatpush1.msra.mxu1 %v3952_v63  ;;  %v3943_v13 = vld [vmem:[%s14264_s30 + $0xaa8] sm:$0xff]  ;;  %v3704_v63 = vld [vmem:[%s14264_s30 + $0x330] sm:$0xff] }
 0xb36   : > { %4073 = vmatpush1.msra.mxu0 %v3622_v24  ;;  %4143 = vmatprep.subr.mxu1 %v3943_v13  ;;  %v3942_v24 = vld [vmem:[%s14264_s30 + $0xaa0] sm:$0xff]  ;;  %v3717_v13 = vld [vmem:[%s14264_s30 + $0x398] sm:$0xff] }
 0xb37   : > { %4074 = vmatprep.subr.mxu0 %v3613_v7  ;;  %4144 = vmatpush1.msra.mxu1 %v3942_v24  ;;  %v3933_v7 = vld [vmem:[%s14264_s30 + $0xa58] sm:$0xff]  ;;  %v3695_v24 = vld [vmem:[%s14264_s30 + $0x2e8] sm:$0xff] }
 0xb38   : > { %4075 = vmatpush1.msra.mxu0 %v3612_v26  ;;  %4145 = vmatprep.subr.mxu1 %v3933_v7  ;;  %v3932_v26 = vld [vmem:[%s14264_s30 + $0xa50] sm:$0xff] }
 0xb39   : > { %4076 = vmatprep.subr.mxu0 %v3603_v61  ;;  %4146 = vmatpush1.msra.mxu1 %v3932_v26  ;;  %v3923_v61 = vld [vmem:[%s14264_s30 + $0xa08] sm:$0xff]  ;;  %v3716_v7 = vld [vmem:[%s14264_s30 + $0x390] sm:$0xff]  ;;  %v3694_v26 = vld [vmem:[%s14264_s30 + $0x2e0] sm:$0xff] }
 0xb3a   : > { %4077 = vmatpush1.msra.mxu0 %v3602_v53  ;;  %4147 = vmatprep.subr.mxu1 %v3923_v61  ;;  %v3922_v53 = vld [vmem:[%s14264_s30 + $0xa00] sm:$0xff]  ;;  %v3707_v61 = vld [vmem:[%s14264_s30 + $0x348] sm:$0xff] }
 0xb3b   : > { %4078 = vmatprep.subr.mxu0 %v3913_v38  ;;  %4148 = vmatpush1.msra.mxu1 %v3922_v53  ;;  %v3755_v38 = vld [vmem:[%s14264_s30 + $0x4c8] sm:$0xff]  ;;  %v3685_v53 = vld [vmem:[%s14264_s30 + $0x298] sm:$0xff] }
 0xb3c   : > { %4079 = vmatpush2.msra.mxu0 %v3912_v18  ;;  %4188 = vmatprep.subr.mxu1 %v3755_v38  ;;  %v3449_v18 = vpop.permute.xlu0 %3448  ;;  %v3706_v38 = vld [vmem:[%s14264_s30 + $0x340] sm:$0xff] }
 0xb3d   : > { %4080 = vmatprep.subr.mxu0 %v3903_v42 }
 0xb3e   : > { %4081 = vmatpush2.msra.mxu0 %v3902_v8 }
 0xb3f   : > { %4082 = vmatprep.subr.mxu0 %v3893_v21 }
 0xb40   : > { %4083 = vmatpush2.msra.mxu0 %v3892_v60 }
 0xb41   : > { %4084 = vmatprep.subr.mxu0 %v3883_v33 }
 0xb42   : > { %4085 = vmatpush2.msra.mxu0 %v3882_v14 }
 0xb43   : > { %4086 = vmatprep.subr.mxu0 %v3873_v55 }
 0xb44   : > { %4087 = vmatpush2.msra.mxu0 %v3872_v28 }
 0xb45   : > { %4088 = vmatprep.subr.mxu0 %v3863_v57  ;;  %v4004_v57 = vld [vmem:[%s14264_s30 + $0xc90] sm:$0xf] }
 0xb46   : > { %4089 = vmatpush2.msra.mxu0 %v3862_v27  ;;  %v3995_v27 = vld [vmem:[%s14264_s30 + $0xc48] sm:$0xff] }
 0xb47   : > { %4090 = vmatprep.subr.mxu0 %v3853_v4  ;;  %v3974_v4 = vld [vmem:[%s14264_s30 + $0xba0] sm:$0xff] }
 0xb48   : > { %4091 = vmatpush2.msra.mxu0 %v3852_v25  ;;  %v3965_v25 = vld [vmem:[%s14264_s30 + $0xb58] sm:$0xff] }
 0xb49   : > { %4092 = vmatprep.subr.mxu0 %v3843_v59  ;;  %v3964_v59 = vld [vmem:[%s14264_s30 + $0xb50] sm:$0xff] }
 0xb4a   : > { %4093 = vmatpush2.msra.mxu0 %v3842_v62  ;;  %v3955_v62 = vld [vmem:[%s14264_s30 + $0xb08] sm:$0xff] }
 0xb4b   : > { %4094 = vmatprep.subr.mxu0 %v3833_v19 }
 0xb4c   : > { %4095 = vmatpush2.msra.mxu0 %v3832_v58  ;;  %v3954_v58 = vld [vmem:[%s14264_s30 + $0xb00] sm:$0xff] }
 0xb4d   : > { %4096 = vmatprep.subr.mxu0 %v3823_v5 }
 0xb4e   : > { %4097 = vmatpush2.msra.mxu0 %v3822_v56  ;;  %v3945_v56 = vld [vmem:[%s14264_s30 + $0xab8] sm:$0xff] }
 0xb4f   : > { %4098 = vmatprep.subr.mxu0 %v3813_v45 }
 0xb50   : > { %4099 = vmatpush2.msra.mxu0 %v3812_v11  ;;  %v3944_v11 = vld [vmem:[%s14264_s30 + $0xab0] sm:$0xff] }
 0xb51   : > { %4100 = vmatprep.subr.mxu0 %v3803_v43 }
 0xb52   : > { %4101 = vmatpush2.msra.mxu0 %v3802_v10  ;;  %v3935_v10 = vld [vmem:[%s14264_s30 + $0xa68] sm:$0xff] }
 0xb53   : > { %4102 = vmatprep.subr.mxu0 %v3793_v31 }
 0xb54   : > { %4103 = vmatpush2.msra.mxu0 %v3792_v35  ;;  %v3745_v35 = vld [vmem:[%s14264_s30 + $0x478] sm:$0xff] }
 0xb55   : > { %4104 = vmatprep.subr.mxu0 %v3783_v32  ;;  %v3757_v32 = vld [vmem:[%s14264_s30 + $0x4d8] sm:$0xff] }
 0xb56   : > { %4105 = vmatpush2.msra.mxu0 %v3782_v6  ;;  %v3756_v6 = vld [vmem:[%s14264_s30 + $0x4d0] sm:$0xff] }
 0xb57   : > { %4106 = vmatprep.subr.mxu0 %v3773_v49  ;;  %v3747_v49 = vld [vmem:[%s14264_s30 + $0x488] sm:$0xff] }
 0xb58   : > { %4107 = vmatpush2.msra.mxu0 %v3772_v0  ;;  %v3746_v0 = vld [vmem:[%s14264_s30 + $0x480] sm:$0xff] }
 0xb59   : > { %4108 = vmatprep.subr.mxu0 %v3763_v40  ;;  %v3737_v40 = vld [vmem:[%s14264_s30 + $0x438] sm:$0xff] }
 0xb5a   : > { %4109 = vmatpush2.msra.mxu0 %v3762_v52  ;;  %v3736_v52 = vld [vmem:[%s14264_s30 + $0x430] sm:$0xff] }
 0xb5b   : > { %8649 = vmatprep.subr.msk.mxu0 %vm14206_vm11, %v4005_v22  ;;  %v3727_v22 = vld [vmem:[%s14264_s30 + $0x3e8] sm:$0xff] }
 0xbc9   : > { %v3521_v42 = vpop.f32.mrf.mxu0 }
 0xbca   : > { %v3522_v8 = vadd.f32 %v3521_v42, %v3449_v18  ;;  %v3697_v42 = vld [vmem:[%s14264_s30 + $0x2f8] sm:$0xff] }
 0xbcb   : > { %v3523_v21 = vpop.f32.mrf.mxu0 }
 0xbcc   : > { %v3524_v60 = vadd.f32 %v3523_v21, %v3449_v18  ;;  %v3596_v33 = vmul.f32 %v3522_v8, %v9282_v44  ;;  %v3985_v44 = vld [vmem:[%s14264_s30 + $0xbf8] sm:$0xff]  ;;  %v3675_v8 = vld [vmem:[%s14264_s30 + $0x248] sm:$0xff]  ;;  %v3696_v21 = vld [vmem:[%s14264_s30 + $0x2f0] sm:$0xff] }
 0xbce   : > { %v3597_v14 = vmul.f32 %v3524_v60, %v9279_v41  ;;  %v10466_v28 = vadd.f32 %v3596_v33, %v9289_v48  ;;  %v3994_v41 = vld [vmem:[%s14264_s30 + $0xc40] sm:$0xff]  ;;  %v3975_v48 = vld [vmem:[%s14264_s30 + $0xba8] sm:$0xff] }
 0xbcf   : > { %v3674_v60 = vld [vmem:[%s14264_s30 + $0x240] sm:$0xff]  ;;  %v3687_v33 = vld [vmem:[%s14264_s30 + $0x2a8] sm:$0xff] }
 0xbd0   : > { %v10463_v55 = vadd.f32 %v3597_v14, %v9286_v47  ;;  %v3984_v47 = vld [vmem:[%s14264_s30 + $0xbf0] sm:$0xff]  ;;  %v3665_v14 = vld [vmem:[%s14264_s30 + $0x1f8] sm:$0xff] }
 0xbd2   : > { %4110 = vmatprep.mubr.f32.mxu0 %v10463_v55 }
 0xbd3   : > { %4111 = vmatmul.mubr.f32.vlgmr.msra.gmra.mxu0 %v10466_v28 }
 0xbd4   : > { %8650 = vmatpush1.msk.msra.mxu0 %vm14206_vm11, %v4004_v57  ;;  %4323 = vmatprep.mubr.f32.mxu0 %v8971_v3  ;;  %v3686_v57 = vld [vmem:[%s14264_s30 + $0x2a0] sm:$0xff] }
 0xbd5   : > { %4275 = vmatprep.subr.mxu0 %v3995_v27  ;;  %v3664_v27 = vld [vmem:[%s14264_s30 + $0x1f0] sm:$0xff] }
 0xbd6   : > { %4276 = vmatpush1.msra.mxu0 %v3994_v41  ;;  %v3677_v41 = vld [vmem:[%s14264_s30 + $0x258] sm:$0xff] }
 0xbd7   : > { %4277 = vmatprep.subr.mxu0 %v3985_v44  ;;  %v3655_v44 = vld [vmem:[%s14264_s30 + $0x1a8] sm:$0xff] }
 0xbd8   : > { %4278 = vmatpush1.msra.mxu0 %v3984_v47  ;;  %v3676_v47 = vld [vmem:[%s14264_s30 + $0x250] sm:$0xff] }
 0xbd9   : > { %4279 = vmatprep.subr.mxu0 %v3975_v48  ;;  %v3654_v48 = vld [vmem:[%s14264_s30 + $0x1a0] sm:$0xff] }
 0xbda   : > { %4280 = vmatpush1.msra.mxu0 %v3974_v4  ;;  %v3667_v4 = vld [vmem:[%s14264_s30 + $0x208] sm:$0xff] }
 0xbdb   : > { %4281 = vmatprep.subr.mxu0 %v3965_v25  ;;  %v3592_v19 = vpop.f32.mrf.mxu0  ;;  %v3645_v25 = vld [vmem:[%s14264_s30 + $0x158] sm:$0xff] }
 0xbdc   : > { %v3593_v5 = vadd.f32 %v3592_v19, %v3449_v18  ;;  %4282 = vmatpush1.msra.mxu0 %v3964_v59  ;;  %v3684_v18 = vld [vmem:[%s14264_s30 + $0x290] sm:$0xff]  ;;  %v3666_v59 = vld [vmem:[%s14264_s30 + $0x200] sm:$0xff]  ;;  %v3657_v19 = vld [vmem:[%s14264_s30 + $0x1b8] sm:$0xff] }
 0xbdd   : > { %4283 = vmatprep.subr.mxu0 %v3955_v62  ;;  %v8922_v45 = vpop.f32.mrf.mxu0  ;;  %v3644_v62 = vld [vmem:[%s14264_s30 + $0x150] sm:$0xff] }
 0xbde   : > { %v3598_v43 = vmul.f32 %v3593_v5, %v9298_v50  ;;  %4284 = vmatpush1.msra.mxu0 %v3954_v58  ;;  %v3925_v50 = vld [vmem:[%s14264_s30 + $0xa18] sm:$0xff]  ;;  %v3635_v58 = vld [vmem:[%s14264_s30 + $0x108] sm:$0xff]  ;;  %v3656_v5 = vld [vmem:[%s14264_s30 + $0x1b0] sm:$0xff] }
 0xbdf   : > { %4285 = vmatprep.subr.mxu0 %v3945_v56  ;;  %v3634_v56 = vld [vmem:[%s14264_s30 + $0x100] sm:$0xff]  ;;  %v3647_v45 = vld [vmem:[%s14264_s30 + $0x168] sm:$0xff] }
 0xbe0   : > { %v10519_v31 = vadd.f32 %v3598_v43, %v9305_v54  ;;  %4286 = vmatpush1.msra.mxu0 %v3944_v11  ;;  %v3924_v54 = vld [vmem:[%s14264_s30 + $0xa10] sm:$0xff]  ;;  %v3625_v11 = vld [vmem:[%s14264_s30 + $0xb8] sm:$0xff]  ;;  %v3646_v43 = vld [vmem:[%s14264_s30 + $0x160] sm:$0xff] }
 0xbe1   : > { %4287 = vmatprep.subr.mxu0 %v3935_v10  ;;  %v3624_v10 = vld [vmem:[%s14264_s30 + $0xb0] sm:$0xff] }
 0xbe2   : > { %4288 = vmatpush1.msra.mxu0 %v3934_v1  ;;  %8648 = vmatmul.mubr.msk.f32.vlgmr.msra.gmra.mxu1 %vm14205_vm4, %v10519_v31  ;;  %v3637_v1 = vld [vmem:[%s14264_s30 + $0x118] sm:$0xff] }
 0xbe3   : > { %4189 = vmatpush1.msra.mxu1 %v3754_v16  ;;  %4289 = vmatprep.subr.mxu0 %v3925_v50  ;;  %v3615_v16 = vld [vmem:[%s14264_s30 + $0x68] sm:$0xff]  ;;  %v3636_v50 = vld [vmem:[%s14264_s30 + $0x110] sm:$0xff] }
 0xbe4   : > { %4190 = vmatprep.subr.mxu1 %v3745_v35  ;;  %4252 = vmatprep.mubr.f32.mxu1 %v10463_v55  ;;  %v3614_v35 = vld [vmem:[%s14264_s30 + $0x60] sm:$0xff] }
 0xbe5   : > { %4290 = vmatpush1.msra.mxu0 %v3924_v54  ;;  %4191 = vmatpush1.msra.mxu1 %v3744_v20  ;;  %v3627_v54 = vld [vmem:[%s14264_s30 + $0xc8] sm:$0xff]  ;;  %v3605_v20 = vld [vmem:[%s14264_s30 + $0x18] sm:$0xff] }
 0xbe6   : > { %8651 = vmatmul.mubr.msk.f32.vlgmr.msra.gmra.mxu0 %vm14205_vm4, %v10519_v31  ;;  %4330 = vmatprep.subr.mxu0 %v3757_v32  ;;  %v3626_v32 = vld [vmem:[%s14264_s30 + $0xc0] sm:$0xff] }
 0xbe7   : > { %4192 = vmatprep.subr.mxu1 %v3735_v29  ;;  %4331 = vmatpush1.msra.mxu0 %v3756_v6  ;;  %v3604_v29 = vld [vmem:[%s14264_s30 + $0x10] sm:$0xff]  ;;  %v3617_v6 = vld [vmem:[%s14264_s30 + $0x78] sm:$0xff] }
 0xbe8   : > { %4394 = vmatprep.mubr.f32.mxu0 %v10463_v55  ;;  %4193 = vmatpush1.msra.mxu1 %v3734_v15  ;;  %v3915_v15 = vld [vmem:[%s14264_s30 + $0x9c8] sm:$0xff] }
 0xbe9   : > { %4332 = vmatprep.subr.mxu0 %v3747_v49  ;;  %4194 = vmatprep.subr.mxu1 %v3725_v51  ;;  %v3616_v49 = vld [vmem:[%s14264_s30 + $0x70] sm:$0xff]  ;;  %v3914_v51 = vld [vmem:[%s14264_s30 + $0x9c0] sm:$0xff] }
 0xbea   : > { %4333 = vmatpush1.msra.mxu0 %v3746_v0  ;;  %4195 = vmatpush1.msra.mxu1 %v3724_v23  ;;  %v3607_v0 = vld [vmem:[%s14264_s30 + $0x28] sm:$0xff]  ;;  %v3905_v23 = vld [vmem:[%s14264_s30 + $0x978] sm:$0xff] }
 0xbeb   : > { %4334 = vmatprep.subr.mxu0 %v3737_v40  ;;  %4196 = vmatprep.subr.mxu1 %v3715_v17  ;;  %v3606_v40 = vld [vmem:[%s14264_s30 + $0x20] sm:$0xff]  ;;  %v3904_v17 = vld [vmem:[%s14264_s30 + $0x970] sm:$0xff] }
 0xbec   : > { %4335 = vmatpush1.msra.mxu0 %v3736_v52  ;;  %4197 = vmatpush1.msra.mxu1 %v3714_v9  ;;  %v3917_v52 = vld [vmem:[%s14264_s30 + $0x9d8] sm:$0xff]  ;;  %v3895_v9 = vld [vmem:[%s14264_s30 + $0x928] sm:$0xff] }
 0xbed   : > { %4336 = vmatprep.subr.mxu0 %v3727_v22  ;;  %4198 = vmatprep.subr.mxu1 %v3705_v30  ;;  %v3916_v22 = vld [vmem:[%s14264_s30 + $0x9d0] sm:$0xff]  ;;  %v3894_v30 = vld [vmem:[%s14264_s30 + $0x920] sm:$0xff] }
 0xbee   : > { %4337 = vmatpush1.msra.mxu0 %v3726_v39  ;;  %4199 = vmatpush1.msra.mxu1 %v3704_v63  ;;  %v3907_v39 = vld [vmem:[%s14264_s30 + $0x988] sm:$0xff]  ;;  %v3885_v63 = vld [vmem:[%s14264_s30 + $0x8d8] sm:$0xff] }
 0xbef   : > { %4338 = vmatprep.subr.mxu0 %v3717_v13  ;;  %4200 = vmatprep.subr.mxu1 %v3695_v24  ;;  %v3906_v13 = vld [vmem:[%s14264_s30 + $0x980] sm:$0xff]  ;;  %v3884_v24 = vld [vmem:[%s14264_s30 + $0x8d0] sm:$0xff] }
 0xbf0   : > { %4339 = vmatpush1.msra.mxu0 %v3716_v7  ;;  %4201 = vmatpush1.msra.mxu1 %v3694_v26  ;;  %v3897_v7 = vld [vmem:[%s14264_s30 + $0x938] sm:$0xff]  ;;  %v3875_v26 = vld [vmem:[%s14264_s30 + $0x888] sm:$0xff] }
 0xbf1   : > { %4340 = vmatprep.subr.mxu0 %v3707_v61  ;;  %4202 = vmatprep.subr.mxu1 %v3685_v53  ;;  %v3896_v61 = vld [vmem:[%s14264_s30 + $0x930] sm:$0xff]  ;;  %v3874_v53 = vld [vmem:[%s14264_s30 + $0x880] sm:$0xff] }
 0xbf2   : > { %4341 = vmatpush1.msra.mxu0 %v3706_v38  ;;  %4203 = vmatpush1.msra.mxu1 %v3684_v18  ;;  %v3887_v38 = vld [vmem:[%s14264_s30 + $0x8e8] sm:$0xff]  ;;  %v3865_v18 = vld [vmem:[%s14264_s30 + $0x838] sm:$0xff] }
 0xbf3   : > { %4342 = vmatprep.subr.mxu0 %v3697_v42  ;;  %4204 = vmatprep.subr.mxu1 %v3675_v8  ;;  %v3886_v42 = vld [vmem:[%s14264_s30 + $0x8e0] sm:$0xff]  ;;  %v3864_v8 = vld [vmem:[%s14264_s30 + $0x830] sm:$0xff] }
 0xbf4   : > { %4343 = vmatpush1.msra.mxu0 %v3696_v21  ;;  %4205 = vmatpush1.msra.mxu1 %v3674_v60  ;;  %v3877_v21 = vld [vmem:[%s14264_s30 + $0x898] sm:$0xff]  ;;  %v3855_v60 = vld [vmem:[%s14264_s30 + $0x7e8] sm:$0xff] }
 0xbf5   : > { %4344 = vmatprep.subr.mxu0 %v3687_v33  ;;  %4206 = vmatprep.subr.mxu1 %v3665_v14  ;;  %v3876_v33 = vld [vmem:[%s14264_s30 + $0x890] sm:$0xff]  ;;  %v3854_v14 = vld [vmem:[%s14264_s30 + $0x7e0] sm:$0xff] }
 0xbf6   : > { %4345 = vmatpush1.msra.mxu0 %v3686_v57  ;;  %4207 = vmatpush1.msra.mxu1 %v3664_v27  ;;  %v3867_v57 = vld [vmem:[%s14264_s30 + $0x848] sm:$0xff]  ;;  %v3845_v27 = vld [vmem:[%s14264_s30 + $0x798] sm:$0xff] }
 0xbf7   : > { %4346 = vmatprep.subr.mxu0 %v3677_v41  ;;  %4208 = vmatprep.subr.mxu1 %v3655_v44  ;;  %v3866_v41 = vld [vmem:[%s14264_s30 + $0x840] sm:$0xff]  ;;  %v3844_v44 = vld [vmem:[%s14264_s30 + $0x790] sm:$0xff] }
 0xbf8   : > { %4347 = vmatpush1.msra.mxu0 %v3676_v47  ;;  %4209 = vmatpush1.msra.mxu1 %v3654_v48  ;;  %v3857_v47 = vld [vmem:[%s14264_s30 + $0x7f8] sm:$0xff]  ;;  %v3835_v48 = vld [vmem:[%s14264_s30 + $0x748] sm:$0xff] }
 0xbf9   : > { %4348 = vmatprep.subr.mxu0 %v3667_v4  ;;  %4210 = vmatprep.subr.mxu1 %v3645_v25  ;;  %v3856_v4 = vld [vmem:[%s14264_s30 + $0x7f0] sm:$0xff]  ;;  %v3834_v25 = vld [vmem:[%s14264_s30 + $0x740] sm:$0xff] }
 0xbfa   : > { %4349 = vmatpush1.msra.mxu0 %v3666_v59  ;;  %4211 = vmatpush1.msra.mxu1 %v3644_v62  ;;  %v3847_v59 = vld [vmem:[%s14264_s30 + $0x7a8] sm:$0xff]  ;;  %v3825_v62 = vld [vmem:[%s14264_s30 + $0x6f8] sm:$0xff] }
 0xbfb   : > { %4350 = vmatprep.subr.mxu0 %v3657_v19  ;;  %4212 = vmatprep.subr.mxu1 %v3635_v58  ;;  %v3846_v19 = vld [vmem:[%s14264_s30 + $0x7a0] sm:$0xff]  ;;  %v3824_v58 = vld [vmem:[%s14264_s30 + $0x6f0] sm:$0xff] }
 0xbfc   : > { %4351 = vmatpush1.msra.mxu0 %v3656_v5  ;;  %4213 = vmatpush1.msra.mxu1 %v3634_v56  ;;  %v3837_v5 = vld [vmem:[%s14264_s30 + $0x758] sm:$0xff]  ;;  %v3815_v56 = vld [vmem:[%s14264_s30 + $0x6a8] sm:$0xff] }
 0xbfd   : > { %4352 = vmatprep.subr.mxu0 %v3647_v45  ;;  %4214 = vmatprep.subr.mxu1 %v3625_v11  ;;  %v3836_v45 = vld [vmem:[%s14264_s30 + $0x750] sm:$0xff]  ;;  %v3814_v11 = vld [vmem:[%s14264_s30 + $0x6a0] sm:$0xff] }
 0xbfe   : > { %4353 = vmatpush1.msra.mxu0 %v3646_v43  ;;  %4215 = vmatpush1.msra.mxu1 %v3624_v10  ;;  %v3827_v43 = vld [vmem:[%s14264_s30 + $0x708] sm:$0xff]  ;;  %v3805_v10 = vld [vmem:[%s14264_s30 + $0x658] sm:$0xff] }
 0xbff   : > { %4354 = vmatprep.subr.mxu0 %v3637_v1  ;;  %4216 = vmatprep.subr.mxu1 %v3615_v16  ;;  %v3826_v1 = vld [vmem:[%s14264_s30 + $0x700] sm:$0xff]  ;;  %v3804_v16 = vld [vmem:[%s14264_s30 + $0x650] sm:$0xff] }
 0xc00   : > { %4355 = vmatpush1.msra.mxu0 %v3636_v50  ;;  %4217 = vmatpush1.msra.mxu1 %v3614_v35  ;;  %v3817_v50 = vld [vmem:[%s14264_s30 + $0x6b8] sm:$0xff]  ;;  %v3795_v35 = vld [vmem:[%s14264_s30 + $0x608] sm:$0xff] }
 0xc01   : > { %4356 = vmatprep.subr.mxu0 %v3627_v54  ;;  %4218 = vmatprep.subr.mxu1 %v3605_v20  ;;  %v3816_v54 = vld [vmem:[%s14264_s30 + $0x6b0] sm:$0xff]  ;;  %v3794_v20 = vld [vmem:[%s14264_s30 + $0x600] sm:$0xff] }
 0xc02   : > { %4357 = vmatpush1.msra.mxu0 %v3626_v32  ;;  %4219 = vmatpush1.msra.mxu1 %v3604_v29  ;;  %v3807_v32 = vld [vmem:[%s14264_s30 + $0x668] sm:$0xff]  ;;  %v3785_v29 = vld [vmem:[%s14264_s30 + $0x5b8] sm:$0xff] }
 0xc03   : > { %4358 = vmatprep.subr.mxu0 %v3617_v6  ;;  %4220 = vmatprep.subr.mxu1 %v3915_v15  ;;  %v3806_v6 = vld [vmem:[%s14264_s30 + $0x660] sm:$0xff]  ;;  %v3784_v15 = vld [vmem:[%s14264_s30 + $0x5b0] sm:$0xff] }
 0xc04   : > { %4359 = vmatpush1.msra.mxu0 %v3616_v49  ;;  %4221 = vmatpush2.msra.mxu1 %v3914_v51  ;;  %v3797_v49 = vld [vmem:[%s14264_s30 + $0x618] sm:$0xff]  ;;  %v3775_v51 = vld [vmem:[%s14264_s30 + $0x568] sm:$0xff] }
 0xc05   : > { %4360 = vmatprep.subr.mxu0 %v3607_v0  ;;  %4222 = vmatprep.subr.mxu1 %v3905_v23  ;;  %v3796_v0 = vld [vmem:[%s14264_s30 + $0x610] sm:$0xff]  ;;  %v3774_v23 = vld [vmem:[%s14264_s30 + $0x560] sm:$0xff] }
 0xc06   : > { %4361 = vmatpush1.msra.mxu0 %v3606_v40  ;;  %4223 = vmatpush2.msra.mxu1 %v3904_v17  ;;  %v3787_v40 = vld [vmem:[%s14264_s30 + $0x5c8] sm:$0xff]  ;;  %v3765_v17 = vld [vmem:[%s14264_s30 + $0x518] sm:$0xff] }
 0xc07   : > { %4362 = vmatprep.subr.mxu0 %v3917_v52  ;;  %4224 = vmatprep.subr.mxu1 %v3895_v9  ;;  %v3786_v52 = vld [vmem:[%s14264_s30 + $0x5c0] sm:$0xff]  ;;  %v3764_v9 = vld [vmem:[%s14264_s30 + $0x510] sm:$0xff] }
 0xc08   : > { %4363 = vmatpush2.msra.mxu0 %v3916_v22  ;;  %4225 = vmatpush2.msra.mxu1 %v3894_v30  ;;  %v3777_v22 = vld [vmem:[%s14264_s30 + $0x578] sm:$0xff]  ;;  %v3776_v30 = vld [vmem:[%s14264_s30 + $0x570] sm:$0xff] }
 0xc09   : > { %4364 = vmatprep.subr.mxu0 %v3907_v39  ;;  %4226 = vmatprep.subr.mxu1 %v3885_v63  ;;  %v4007_v39 = vld [vmem:[%s14264_s30 + $0xca8] sm:$0xf] }
 0xc0a   : > { %4365 = vmatpush2.msra.mxu0 %v3906_v13  ;;  %4227 = vmatpush2.msra.mxu1 %v3884_v24  ;;  %v3767_v63 = vld [vmem:[%s14264_s30 + $0x528] sm:$0xff]  ;;  %v4006_v13 = vld [vmem:[%s14264_s30 + $0xca0] sm:$0xf] }
 0xc0b   : > { %4366 = vmatprep.subr.mxu0 %v3897_v7  ;;  %4228 = vmatprep.subr.mxu1 %v3875_v26  ;;  %v3766_v24 = vld [vmem:[%s14264_s30 + $0x520] sm:$0xff]  ;;  %v3997_v7 = vld [vmem:[%s14264_s30 + $0xc58] sm:$0xff]  ;;  %v3996_v26 = vld [vmem:[%s14264_s30 + $0xc50] sm:$0xff] }
 0xc0c   : > { %4367 = vmatpush2.msra.mxu0 %v3896_v61  ;;  %4229 = vmatpush2.msra.mxu1 %v3874_v53  ;;  %v4009_v61 = vld [vmem:[%s14264_s30 + $0xcb8] sm:$0xf]  ;;  %v3987_v53 = vld [vmem:[%s14264_s30 + $0xc08] sm:$0xff] }
 0xc0d   : > { %4368 = vmatprep.subr.mxu0 %v3887_v38  ;;  %4230 = vmatprep.subr.mxu1 %v3865_v18  ;;  %v4008_v38 = vld [vmem:[%s14264_s30 + $0xcb0] sm:$0xf]  ;;  %v3986_v18 = vld [vmem:[%s14264_s30 + $0xc00] sm:$0xff] }
 0xc0e   : > { %4369 = vmatpush2.msra.mxu0 %v3886_v42  ;;  %4231 = vmatpush2.msra.mxu1 %v3864_v8  ;;  %v3999_v42 = vld [vmem:[%s14264_s30 + $0xc68] sm:$0xff]  ;;  %v3977_v8 = vld [vmem:[%s14264_s30 + $0xbb8] sm:$0xff] }
 0xc0f   : > { %4370 = vmatprep.subr.mxu0 %v3877_v21  ;;  %4232 = vmatprep.subr.mxu1 %v3855_v60  ;;  %v3998_v21 = vld [vmem:[%s14264_s30 + $0xc60] sm:$0xff]  ;;  %v3976_v60 = vld [vmem:[%s14264_s30 + $0xbb0] sm:$0xff] }
 0xc10   : > { %4371 = vmatpush2.msra.mxu0 %v3876_v33  ;;  %4233 = vmatpush2.msra.mxu1 %v3854_v14  ;;  %v3989_v33 = vld [vmem:[%s14264_s30 + $0xc18] sm:$0xff]  ;;  %v3967_v14 = vld [vmem:[%s14264_s30 + $0xb68] sm:$0xff] }
 0xc11   : > { %4372 = vmatprep.subr.mxu0 %v3867_v57  ;;  %4234 = vmatprep.subr.mxu1 %v3845_v27  ;;  %v3988_v57 = vld [vmem:[%s14264_s30 + $0xc10] sm:$0xff]  ;;  %v3966_v27 = vld [vmem:[%s14264_s30 + $0xb60] sm:$0xff] }
 0xc12   : > { %4373 = vmatpush2.msra.mxu0 %v3866_v41  ;;  %4235 = vmatpush2.msra.mxu1 %v3844_v44  ;;  %v3979_v41 = vld [vmem:[%s14264_s30 + $0xbc8] sm:$0xff]  ;;  %v3957_v44 = vld [vmem:[%s14264_s30 + $0xb18] sm:$0xff] }
 0xc13   : > { %4374 = vmatprep.subr.mxu0 %v3857_v47  ;;  %4236 = vmatprep.subr.mxu1 %v3835_v48  ;;  %v3978_v47 = vld [vmem:[%s14264_s30 + $0xbc0] sm:$0xff]  ;;  %v3956_v48 = vld [vmem:[%s14264_s30 + $0xb10] sm:$0xff] }
 0xc14   : > { %4375 = vmatpush2.msra.mxu0 %v3856_v4  ;;  %4237 = vmatpush2.msra.mxu1 %v3834_v25  ;;  %v3969_v4 = vld [vmem:[%s14264_s30 + $0xb78] sm:$0xff]  ;;  %v3947_v25 = vld [vmem:[%s14264_s30 + $0xac8] sm:$0xff] }
 0xc15   : > { %4376 = vmatprep.subr.mxu0 %v3847_v59  ;;  %4238 = vmatprep.subr.mxu1 %v3825_v62  ;;  %v3968_v59 = vld [vmem:[%s14264_s30 + $0xb70] sm:$0xff]  ;;  %v3946_v62 = vld [vmem:[%s14264_s30 + $0xac0] sm:$0xff] }
 0xc16   : > { %4377 = vmatpush2.msra.mxu0 %v3846_v19  ;;  %4239 = vmatpush2.msra.mxu1 %v3824_v58  ;;  %v3959_v19 = vld [vmem:[%s14264_s30 + $0xb28] sm:$0xff]  ;;  %v3937_v58 = vld [vmem:[%s14264_s30 + $0xa78] sm:$0xff] }
 0xc17   : > { %4378 = vmatprep.subr.mxu0 %v3837_v5  ;;  %4240 = vmatprep.subr.mxu1 %v3815_v56  ;;  %v3958_v5 = vld [vmem:[%s14264_s30 + $0xb20] sm:$0xff]  ;;  %v3936_v56 = vld [vmem:[%s14264_s30 + $0xa70] sm:$0xff] }
 0xc18   : > { %4379 = vmatpush2.msra.mxu0 %v3836_v45  ;;  %4241 = vmatpush2.msra.mxu1 %v3814_v11  ;;  %v3949_v45 = vld [vmem:[%s14264_s30 + $0xad8] sm:$0xff]  ;;  %v3927_v11 = vld [vmem:[%s14264_s30 + $0xa28] sm:$0xff] }
 0xc19   : > { %4380 = vmatprep.subr.mxu0 %v3827_v43  ;;  %4242 = vmatprep.subr.mxu1 %v3805_v10  ;;  %v3948_v43 = vld [vmem:[%s14264_s30 + $0xad0] sm:$0xff]  ;;  %v3926_v10 = vld [vmem:[%s14264_s30 + $0xa20] sm:$0xff] }
 0xc1a   : > { %4381 = vmatpush2.msra.mxu0 %v3826_v1  ;;  %4243 = vmatpush2.msra.mxu1 %v3804_v16  ;;  %v3939_v1 = vld [vmem:[%s14264_s30 + $0xa88] sm:$0xff] }
 0xc1b   : > { %4382 = vmatprep.subr.mxu0 %v3817_v50  ;;  %4244 = vmatprep.subr.mxu1 %v3795_v35  ;;  %v3759_v16 = vld [vmem:[%s14264_s30 + $0x4e8] sm:$0xff]  ;;  %v3938_v50 = vld [vmem:[%s14264_s30 + $0xa80] sm:$0xff] }
 0xc1c   : > { %4383 = vmatpush2.msra.mxu0 %v3816_v54  ;;  %4245 = vmatpush2.msra.mxu1 %v3794_v20  ;;  %v3758_v35 = vld [vmem:[%s14264_s30 + $0x4e0] sm:$0xff]  ;;  %v3929_v54 = vld [vmem:[%s14264_s30 + $0xa38] sm:$0xff] }
 0xc1d   : > { %4384 = vmatprep.subr.mxu0 %v3807_v32  ;;  %4246 = vmatprep.subr.mxu1 %v3785_v29  ;;  %v3749_v20 = vld [vmem:[%s14264_s30 + $0x498] sm:$0xff]  ;;  %v3928_v32 = vld [vmem:[%s14264_s30 + $0xa30] sm:$0xff] }
 0xc1e   : > { %4385 = vmatpush2.msra.mxu0 %v3806_v6  ;;  %4247 = vmatpush2.msra.mxu1 %v3784_v15  ;;  %v3748_v29 = vld [vmem:[%s14264_s30 + $0x490] sm:$0xff]  ;;  %v3761_v6 = vld [vmem:[%s14264_s30 + $0x4f8] sm:$0xff]  ;;  %v3739_v15 = vld [vmem:[%s14264_s30 + $0x448] sm:$0xff] }
 0xc1f   : > { %4386 = vmatprep.subr.mxu0 %v3797_v49  ;;  %4248 = vmatprep.subr.mxu1 %v3775_v51  ;;  %v3760_v49 = vld [vmem:[%s14264_s30 + $0x4f0] sm:$0xff]  ;;  %v3738_v51 = vld [vmem:[%s14264_s30 + $0x440] sm:$0xff] }
 0xc20   : > { %4387 = vmatpush2.msra.mxu0 %v3796_v0  ;;  %4249 = vmatpush2.msra.mxu1 %v3774_v23  ;;  %v3751_v0 = vld [vmem:[%s14264_s30 + $0x4a8] sm:$0xff]  ;;  %v3729_v23 = vld [vmem:[%s14264_s30 + $0x3f8] sm:$0xff] }
 0xc21   : > { %4388 = vmatprep.subr.mxu0 %v3787_v40  ;;  %4250 = vmatprep.subr.mxu1 %v3765_v17  ;;  %v3750_v40 = vld [vmem:[%s14264_s30 + $0x4a0] sm:$0xff]  ;;  %v3728_v17 = vld [vmem:[%s14264_s30 + $0x3f0] sm:$0xff] }
 0xc22   : > { %4389 = vmatpush2.msra.mxu0 %v3786_v52  ;;  %4251 = vmatpush2.msra.mxu1 %v3764_v9  ;;  %v3741_v52 = vld [vmem:[%s14264_s30 + $0x458] sm:$0xff]  ;;  %v3719_v9 = vld [vmem:[%s14264_s30 + $0x3a8] sm:$0xff] }
 0xc23   : > { %4390 = vmatprep.subr.mxu0 %v3777_v22  ;;  %4253 = vmatmul.mubr.f32.vlgmr.msra.gmra.mxu1 %v10466_v28  ;;  %v3740_v22 = vld [vmem:[%s14264_s30 + $0x450] sm:$0xff] }
 0xc24   : > { %4391 = vmatpush2.msra.mxu0 %v3776_v30  ;;  %8652 = vmatprep.subr.msk.mxu1 %vm14206_vm11, %v4007_v39  ;;  %v3718_v30 = vld [vmem:[%s14264_s30 + $0x3a0] sm:$0xff]  ;;  %v3709_v39 = vld [vmem:[%s14264_s30 + $0x358] sm:$0xff] }
 0xc25   : > { %4392 = vmatprep.subr.mxu0 %v3767_v63  ;;  %8653 = vmatpush1.msk.msra.mxu1 %vm14206_vm11, %v4006_v13  ;;  %v3730_v63 = vld [vmem:[%s14264_s30 + $0x400] sm:$0xff]  ;;  %v3708_v13 = vld [vmem:[%s14264_s30 + $0x350] sm:$0xff] }
 0xc26   : > { %4393 = vmatpush2.msra.mxu0 %v3766_v24  ;;  %4417 = vmatprep.subr.mxu1 %v3997_v7  ;;  %v3721_v24 = vld [vmem:[%s14264_s30 + $0x3b8] sm:$0xff]  ;;  %v3699_v7 = vld [vmem:[%s14264_s30 + $0x308] sm:$0xff] }
 0xc27   : > { %4395 = vmatmul.mubr.f32.vlgmr.msra.gmra.mxu0 %v10466_v28  ;;  %4418 = vmatpush1.msra.mxu1 %v3996_v26  ;;  %v3720_v26 = vld [vmem:[%s14264_s30 + $0x3b0] sm:$0xff] }
 0xc28   : > { %8655 = vmatprep.subr.msk.mxu0 %vm14206_vm11, %v4009_v61  ;;  %4419 = vmatprep.subr.mxu1 %v3987_v53  ;;  %v3698_v61 = vld [vmem:[%s14264_s30 + $0x300] sm:$0xff]  ;;  %v3711_v53 = vld [vmem:[%s14264_s30 + $0x368] sm:$0xff] }
 0xc29   : > { %8656 = vmatpush1.msk.msra.mxu0 %vm14206_vm11, %v4008_v38  ;;  %4420 = vmatpush1.msra.mxu1 %v3986_v18  ;;  %v3689_v38 = vld [vmem:[%s14264_s30 + $0x2b8] sm:$0xff]  ;;  %v3710_v18 = vld [vmem:[%s14264_s30 + $0x360] sm:$0xff] }
 0xc2a   : > { %4559 = vmatprep.subr.mxu0 %v3999_v42  ;;  %4421 = vmatprep.subr.mxu1 %v3977_v8  ;;  %v3688_v42 = vld [vmem:[%s14264_s30 + $0x2b0] sm:$0xff]  ;;  %v3701_v8 = vld [vmem:[%s14264_s30 + $0x318] sm:$0xff] }
 0xc2b   : > { %4560 = vmatpush1.msra.mxu0 %v3998_v21  ;;  %4422 = vmatpush1.msra.mxu1 %v3976_v60  ;;  %v3679_v21 = vld [vmem:[%s14264_s30 + $0x268] sm:$0xff]  ;;  %v3700_v60 = vld [vmem:[%s14264_s30 + $0x310] sm:$0xff] }
 0xc2c   : > { %4561 = vmatprep.subr.mxu0 %v3989_v33  ;;  %4423 = vmatprep.subr.mxu1 %v3967_v14  ;;  %v3678_v33 = vld [vmem:[%s14264_s30 + $0x260] sm:$0xff]  ;;  %v3691_v14 = vld [vmem:[%s14264_s30 + $0x2c8] sm:$0xff] }
 0xc2d   : > { %4562 = vmatpush1.msra.mxu0 %v3988_v57  ;;  %4424 = vmatpush1.msra.mxu1 %v3966_v27  ;;  %v3669_v57 = vld [vmem:[%s14264_s30 + $0x218] sm:$0xff]  ;;  %v3690_v27 = vld [vmem:[%s14264_s30 + $0x2c0] sm:$0xff] }
 0xc2e   : > { %4563 = vmatprep.subr.mxu0 %v3979_v41  ;;  %4425 = vmatprep.subr.mxu1 %v3957_v44  ;;  %v3668_v41 = vld [vmem:[%s14264_s30 + $0x210] sm:$0xff]  ;;  %v3681_v44 = vld [vmem:[%s14264_s30 + $0x278] sm:$0xff] }
 0xc2f   : > { %4564 = vmatpush1.msra.mxu0 %v3978_v47  ;;  %4426 = vmatpush1.msra.mxu1 %v3956_v48  ;;  %v3659_v47 = vld [vmem:[%s14264_s30 + $0x1c8] sm:$0xff]  ;;  %v3680_v48 = vld [vmem:[%s14264_s30 + $0x270] sm:$0xff] }
 0xc30   : > { %4565 = vmatprep.subr.mxu0 %v3969_v4  ;;  %4427 = vmatprep.subr.mxu1 %v3947_v25  ;;  %v3658_v4 = vld [vmem:[%s14264_s30 + $0x1c0] sm:$0xff]  ;;  %v3671_v25 = vld [vmem:[%s14264_s30 + $0x228] sm:$0xff] }
 0xc31   : > { %4566 = vmatpush1.msra.mxu0 %v3968_v59  ;;  %4428 = vmatpush1.msra.mxu1 %v3946_v62  ;;  %v3649_v59 = vld [vmem:[%s14264_s30 + $0x178] sm:$0xff]  ;;  %v3670_v62 = vld [vmem:[%s14264_s30 + $0x220] sm:$0xff] }
 0xc32   : > { %4567 = vmatprep.subr.mxu0 %v3959_v19  ;;  %4429 = vmatprep.subr.mxu1 %v3937_v58  ;;  %v3648_v19 = vld [vmem:[%s14264_s30 + $0x170] sm:$0xff]  ;;  %v3661_v58 = vld [vmem:[%s14264_s30 + $0x1d8] sm:$0xff] }
 0xc33   : > { %4568 = vmatpush1.msra.mxu0 %v3958_v5  ;;  %4430 = vmatpush1.msra.mxu1 %v3936_v56  ;;  %v3639_v5 = vld [vmem:[%s14264_s30 + $0x128] sm:$0xff]  ;;  %v3660_v56 = vld [vmem:[%s14264_s30 + $0x1d0] sm:$0xff] }
 0xc34   : > { %4569 = vmatprep.subr.mxu0 %v3949_v45  ;;  %4431 = vmatprep.subr.mxu1 %v3927_v11  ;;  %v3638_v45 = vld [vmem:[%s14264_s30 + $0x120] sm:$0xff]  ;;  %v3651_v11 = vld [vmem:[%s14264_s30 + $0x188] sm:$0xff] }
 0xc35   : > { %4570 = vmatpush1.msra.mxu0 %v3948_v43  ;;  %4432 = vmatpush1.msra.mxu1 %v3926_v10  ;;  %v3629_v43 = vld [vmem:[%s14264_s30 + $0xd8] sm:$0xff]  ;;  %v3650_v10 = vld [vmem:[%s14264_s30 + $0x180] sm:$0xff] }
 0xc36   : > { %4465 = vmatprep.mubr.f32.mxu1 %v8971_v3  ;;  %4571 = vmatprep.subr.mxu0 %v3939_v1  ;;  %v3628_v1 = vld [vmem:[%s14264_s30 + $0xd0] sm:$0xff] }
 0xc37   : > { %8654 = vmatmul.mubr.msk.f32.vlgmr.msra.gmra.mxu1 %vm14205_vm4, %v10519_v31  ;;  %4472 = vmatprep.subr.mxu1 %v3759_v16  ;;  %v3641_v16 = vld [vmem:[%s14264_s30 + $0x138] sm:$0xff] }
 0xc38   : > { %4572 = vmatpush1.msra.mxu0 %v3938_v50  ;;  %4473 = vmatpush1.msra.mxu1 %v3758_v35  ;;  %v3619_v50 = vld [vmem:[%s14264_s30 + $0x88] sm:$0xff]  ;;  %v3640_v35 = vld [vmem:[%s14264_s30 + $0x130] sm:$0xff] }
 0xc39   : > { %4536 = vmatprep.mubr.f32.mxu1 %v10463_v55  ;;  %4573 = vmatprep.subr.mxu0 %v3929_v54  ;;  %v3618_v54 = vld [vmem:[%s14264_s30 + $0x80] sm:$0xff] }
 0xc3a   : > { %4474 = vmatprep.subr.mxu1 %v3749_v20  ;;  %4574 = vmatpush1.msra.mxu0 %v3928_v32  ;;  %v3631_v20 = vld [vmem:[%s14264_s30 + $0xe8] sm:$0xff]  ;;  %v3609_v32 = vld [vmem:[%s14264_s30 + $0x38] sm:$0xff] }
 0xc3b   : > { %4607 = vmatprep.mubr.f32.mxu0 %v8971_v3  ;;  %4475 = vmatpush1.msra.mxu1 %v3748_v29  ;;  %v3630_v29 = vld [vmem:[%s14264_s30 + $0xe0] sm:$0xff] }
 0xc3c   : > { %8657 = vmatmul.mubr.msk.f32.vlgmr.msra.gmra.mxu0 %vm14205_vm4, %v10519_v31  ;;  %4614 = vmatprep.subr.mxu0 %v3761_v6  ;;  %v3608_v6 = vld [vmem:[%s14264_s30 + $0x30] sm:$0xff] }
 0xc3d   : > { %4476 = vmatprep.subr.mxu1 %v3739_v15  ;;  %4615 = vmatpush1.msra.mxu0 %v3760_v49  ;;  %v3621_v15 = vld [vmem:[%s14264_s30 + $0x98] sm:$0xff]  ;;  %v3919_v49 = vld [vmem:[%s14264_s30 + $0x9e8] sm:$0xff] }
 0xc3e   : > { %4678 = vmatprep.mubr.f32.mxu0 %v10463_v55  ;;  %4477 = vmatpush1.msra.mxu1 %v3738_v51  ;;  %v3731_v55 = vld [vmem:[%s14264_s30 + $0x408] sm:$0xff]  ;;  %v3620_v51 = vld [vmem:[%s14264_s30 + $0x90] sm:$0xff] }
 0xc3f   : > { %4616 = vmatprep.subr.mxu0 %v3751_v0  ;;  %4478 = vmatprep.subr.mxu1 %v3729_v23  ;;  %v3918_v0 = vld [vmem:[%s14264_s30 + $0x9e0] sm:$0xff]  ;;  %v3611_v23 = vld [vmem:[%s14264_s30 + $0x48] sm:$0xff] }
 0xc40   : > { %4617 = vmatpush1.msra.mxu0 %v3750_v40  ;;  %4479 = vmatpush1.msra.mxu1 %v3728_v17  ;;  %v3909_v40 = vld [vmem:[%s14264_s30 + $0x998] sm:$0xff]  ;;  %v3610_v17 = vld [vmem:[%s14264_s30 + $0x40] sm:$0xff] }
 0xc41   : > { %4618 = vmatprep.subr.mxu0 %v3741_v52  ;;  %4480 = vmatprep.subr.mxu1 %v3719_v9  ;;  %v3908_v52 = vld [vmem:[%s14264_s30 + $0x990] sm:$0xff]  ;;  %v3921_v9 = vld [vmem:[%s14264_s30 + $0x9f8] sm:$0xff] }
 0xc42   : > { %4619 = vmatpush1.msra.mxu0 %v3740_v22  ;;  %4481 = vmatpush1.msra.mxu1 %v3718_v30  ;;  %v3899_v22 = vld [vmem:[%s14264_s30 + $0x948] sm:$0xff]  ;;  %v3920_v30 = vld [vmem:[%s14264_s30 + $0x9f0] sm:$0xff] }
 0xc43   : > { %4620 = vmatprep.subr.mxu0 %v3731_v55  ;;  %4482 = vmatprep.subr.mxu1 %v3709_v39  ;;  %v3898_v55 = vld [vmem:[%s14264_s30 + $0x940] sm:$0xff]  ;;  %v3911_v39 = vld [vmem:[%s14264_s30 + $0x9a8] sm:$0xff] }
 0xc44   : > { %4621 = vmatpush1.msra.mxu0 %v3730_v63  ;;  %4483 = vmatpush1.msra.mxu1 %v3708_v13  ;;  %v3889_v63 = vld [vmem:[%s14264_s30 + $0x8f8] sm:$0xff]  ;;  %v3910_v13 = vld [vmem:[%s14264_s30 + $0x9a0] sm:$0xff] }
 0xc45   : > { %4622 = vmatprep.subr.mxu0 %v3721_v24  ;;  %4484 = vmatprep.subr.mxu1 %v3699_v7  ;;  %v3888_v24 = vld [vmem:[%s14264_s30 + $0x8f0] sm:$0xff]  ;;  %v3901_v7 = vld [vmem:[%s14264_s30 + $0x958] sm:$0xff] }
 0xc46   : > { %4623 = vmatpush1.msra.mxu0 %v3720_v26  ;;  %4485 = vmatpush1.msra.mxu1 %v3698_v61  ;;  %v3879_v26 = vld [vmem:[%s14264_s30 + $0x8a8] sm:$0xff]  ;;  %v3900_v61 = vld [vmem:[%s14264_s30 + $0x950] sm:$0xff] }
 0xc47   : > { %4624 = vmatprep.subr.mxu0 %v3711_v53  ;;  %4486 = vmatprep.subr.mxu1 %v3689_v38  ;;  %v3878_v53 = vld [vmem:[%s14264_s30 + $0x8a0] sm:$0xff]  ;;  %v3891_v38 = vld [vmem:[%s14264_s30 + $0x908] sm:$0xff] }
 0xc48   : > { %4625 = vmatpush1.msra.mxu0 %v3710_v18  ;;  %4487 = vmatpush1.msra.mxu1 %v3688_v42  ;;  %v3869_v18 = vld [vmem:[%s14264_s30 + $0x858] sm:$0xff]  ;;  %v3890_v42 = vld [vmem:[%s14264_s30 + $0x900] sm:$0xff] }
 0xc49   : > { %4626 = vmatprep.subr.mxu0 %v3701_v8  ;;  %4488 = vmatprep.subr.mxu1 %v3679_v21  ;;  %v3868_v8 = vld [vmem:[%s14264_s30 + $0x850] sm:$0xff]  ;;  %v3881_v21 = vld [vmem:[%s14264_s30 + $0x8b8] sm:$0xff] }
 0xc4a   : > { %4627 = vmatpush1.msra.mxu0 %v3700_v60  ;;  %4489 = vmatpush1.msra.mxu1 %v3678_v33  ;;  %v3859_v60 = vld [vmem:[%s14264_s30 + $0x808] sm:$0xff]  ;;  %v3880_v33 = vld [vmem:[%s14264_s30 + $0x8b0] sm:$0xff] }
 0xc4b   : > { %4628 = vmatprep.subr.mxu0 %v3691_v14  ;;  %4490 = vmatprep.subr.mxu1 %v3669_v57  ;;  %v3858_v14 = vld [vmem:[%s14264_s30 + $0x800] sm:$0xff]  ;;  %v3871_v57 = vld [vmem:[%s14264_s30 + $0x868] sm:$0xff] }
 0xc4c   : > { %4629 = vmatpush1.msra.mxu0 %v3690_v27  ;;  %4491 = vmatpush1.msra.mxu1 %v3668_v41  ;;  %v3849_v27 = vld [vmem:[%s14264_s30 + $0x7b8] sm:$0xff]  ;;  %v3870_v41 = vld [vmem:[%s14264_s30 + $0x860] sm:$0xff] }
 0xc4d   : > { %4630 = vmatprep.subr.mxu0 %v3681_v44  ;;  %4492 = vmatprep.subr.mxu1 %v3659_v47  ;;  %v3848_v44 = vld [vmem:[%s14264_s30 + $0x7b0] sm:$0xff]  ;;  %v3861_v47 = vld [vmem:[%s14264_s30 + $0x818] sm:$0xff] }
 0xc4e   : > { %4631 = vmatpush1.msra.mxu0 %v3680_v48  ;;  %4493 = vmatpush1.msra.mxu1 %v3658_v4  ;;  %v3839_v48 = vld [vmem:[%s14264_s30 + $0x768] sm:$0xff]  ;;  %v3860_v4 = vld [vmem:[%s14264_s30 + $0x810] sm:$0xff] }
 0xc4f   : > { %4632 = vmatprep.subr.mxu0 %v3671_v25  ;;  %4494 = vmatprep.subr.mxu1 %v3649_v59  ;;  %v3838_v25 = vld [vmem:[%s14264_s30 + $0x760] sm:$0xff]  ;;  %v3851_v59 = vld [vmem:[%s14264_s30 + $0x7c8] sm:$0xff] }
 0xc50   : > { %4633 = vmatpush1.msra.mxu0 %v3670_v62  ;;  %4495 = vmatpush1.msra.mxu1 %v3648_v19  ;;  %v3829_v62 = vld [vmem:[%s14264_s30 + $0x718] sm:$0xff]  ;;  %v3850_v19 = vld [vmem:[%s14264_s30 + $0x7c0] sm:$0xff] }
 0xc51   : > { %4634 = vmatprep.subr.mxu0 %v3661_v58  ;;  %4496 = vmatprep.subr.mxu1 %v3639_v5  ;;  %v3828_v58 = vld [vmem:[%s14264_s30 + $0x710] sm:$0xff]  ;;  %v3841_v5 = vld [vmem:[%s14264_s30 + $0x778] sm:$0xff] }
 0xc52   : > { %4635 = vmatpush1.msra.mxu0 %v3660_v56  ;;  %4497 = vmatpush1.msra.mxu1 %v3638_v45  ;;  %v3819_v56 = vld [vmem:[%s14264_s30 + $0x6c8] sm:$0xff]  ;;  %v3840_v45 = vld [vmem:[%s14264_s30 + $0x770] sm:$0xff] }
 0xc53   : > { %4636 = vmatprep.subr.mxu0 %v3651_v11  ;;  %4498 = vmatprep.subr.mxu1 %v3629_v43  ;;  %v3818_v11 = vld [vmem:[%s14264_s30 + $0x6c0] sm:$0xff]  ;;  %v3831_v43 = vld [vmem:[%s14264_s30 + $0x728] sm:$0xff] }
 0xc54   : > { %4637 = vmatpush1.msra.mxu0 %v3650_v10  ;;  %4499 = vmatpush1.msra.mxu1 %v3628_v1  ;;  %v3809_v10 = vld [vmem:[%s14264_s30 + $0x678] sm:$0xff]  ;;  %v3830_v1 = vld [vmem:[%s14264_s30 + $0x720] sm:$0xff] }
 0xc55   : > { %4638 = vmatprep.subr.mxu0 %v3641_v16  ;;  %4500 = vmatprep.subr.mxu1 %v3619_v50  ;;  %v3808_v16 = vld [vmem:[%s14264_s30 + $0x670] sm:$0xff]  ;;  %v3821_v50 = vld [vmem:[%s14264_s30 + $0x6d8] sm:$0xff] }
 0xc56   : > { %4639 = vmatpush1.msra.mxu0 %v3640_v35  ;;  %4501 = vmatpush1.msra.mxu1 %v3618_v54  ;;  %v3799_v35 = vld [vmem:[%s14264_s30 + $0x628] sm:$0xff]  ;;  %v3820_v54 = vld [vmem:[%s14264_s30 + $0x6d0] sm:$0xff] }
 0xc57   : > { %4640 = vmatprep.subr.mxu0 %v3631_v20  ;;  %4502 = vmatprep.subr.mxu1 %v3609_v32  ;;  %v3798_v20 = vld [vmem:[%s14264_s30 + $0x620] sm:$0xff]  ;;  %v3811_v32 = vld [vmem:[%s14264_s30 + $0x688] sm:$0xff] }
 0xc58   : > { %4641 = vmatpush1.msra.mxu0 %v3630_v29  ;;  %4503 = vmatpush1.msra.mxu1 %v3608_v6  ;;  %v3789_v29 = vld [vmem:[%s14264_s30 + $0x5d8] sm:$0xff]  ;;  %v3810_v6 = vld [vmem:[%s14264_s30 + $0x680] sm:$0xff] }
 0xc59   : > { %4642 = vmatprep.subr.mxu0 %v3621_v15  ;;  %4504 = vmatprep.subr.mxu1 %v3919_v49  ;;  %v3788_v15 = vld [vmem:[%s14264_s30 + $0x5d0] sm:$0xff]  ;;  %v3801_v49 = vld [vmem:[%s14264_s30 + $0x638] sm:$0xff] }
 0xc5a   : > { %4643 = vmatpush1.msra.mxu0 %v3620_v51  ;;  %4505 = vmatpush2.msra.mxu1 %v3918_v0  ;;  %v3779_v51 = vld [vmem:[%s14264_s30 + $0x588] sm:$0xff]  ;;  %v3800_v0 = vld [vmem:[%s14264_s30 + $0x630] sm:$0xff] }
 0xc5b   : > { %4644 = vmatprep.subr.mxu0 %v3611_v23  ;;  %4506 = vmatprep.subr.mxu1 %v3909_v40  ;;  %v3778_v23 = vld [vmem:[%s14264_s30 + $0x580] sm:$0xff]  ;;  %v3791_v40 = vld [vmem:[%s14264_s30 + $0x5e8] sm:$0xff] }
 0xc5c   : > { %4645 = vmatpush1.msra.mxu0 %v3610_v17  ;;  %4507 = vmatpush2.msra.mxu1 %v3908_v52  ;;  %v3769_v17 = vld [vmem:[%s14264_s30 + $0x538] sm:$0xff]  ;;  %v3790_v52 = vld [vmem:[%s14264_s30 + $0x5e0] sm:$0xff] }
 0xc5d   : > { %4646 = vmatprep.subr.mxu0 %v3921_v9  ;;  %4508 = vmatprep.subr.mxu1 %v3899_v22  ;;  %v3768_v9 = vld [vmem:[%s14264_s30 + $0x530] sm:$0xff]  ;;  %v3781_v22 = vld [vmem:[%s14264_s30 + $0x598] sm:$0xff] }
 0xc5e   : > { %4647 = vmatpush2.msra.mxu0 %v3920_v30  ;;  %4509 = vmatpush2.msra.mxu1 %v3898_v55  ;;  %v3780_v30 = vld [vmem:[%s14264_s30 + $0x590] sm:$0xff]  ;;  %v4011_v55 = vld [vmem:[%s14264_s30 + $0xcc8] sm:$0xf] }
 0xc5f   : > { %4648 = vmatprep.subr.mxu0 %v3911_v39  ;;  %4510 = vmatprep.subr.mxu1 %v3889_v63  ;;  %v3771_v39 = vld [vmem:[%s14264_s30 + $0x548] sm:$0xff]  ;;  %v4010_v63 = vld [vmem:[%s14264_s30 + $0xcc0] sm:$0xf] }
 0xc60   : > { %4649 = vmatpush2.msra.mxu0 %v3910_v13  ;;  %4511 = vmatpush2.msra.mxu1 %v3888_v24  ;;  %v3770_v13 = vld [vmem:[%s14264_s30 + $0x540] sm:$0xff]  ;;  %v4001_v24 = vld [vmem:[%s14264_s30 + $0xc78] sm:$0xff] }
 0xc61   : > { %4650 = vmatprep.subr.mxu0 %v3901_v7  ;;  %4512 = vmatprep.subr.mxu1 %v3879_v26  ;;  %v4000_v7 = vld [vmem:[%s14264_s30 + $0xc70] sm:$0xff]  ;;  %v3991_v26 = vld [vmem:[%s14264_s30 + $0xc28] sm:$0xff] }
 0xc62   : > { %4651 = vmatpush2.msra.mxu0 %v3900_v61  ;;  %4513 = vmatpush2.msra.mxu1 %v3878_v53  ;;  %v3990_v61 = vld [vmem:[%s14264_s30 + $0xc20] sm:$0xff]  ;;  %v3981_v53 = vld [vmem:[%s14264_s30 + $0xbd8] sm:$0xff] }
 0xc63   : > { %4652 = vmatprep.subr.mxu0 %v3891_v38  ;;  %4514 = vmatprep.subr.mxu1 %v3869_v18  ;;  %v3980_v38 = vld [vmem:[%s14264_s30 + $0xbd0] sm:$0xff]  ;;  %v3971_v18 = vld [vmem:[%s14264_s30 + $0xb88] sm:$0xff] }
 0xc64   : > { %4653 = vmatpush2.msra.mxu0 %v3890_v42  ;;  %4515 = vmatpush2.msra.mxu1 %v3868_v8  ;;  %v3961_v42 = vld [vmem:[%s14264_s30 + $0xb38] sm:$0xff]  ;;  %v3960_v8 = vld [vmem:[%s14264_s30 + $0xb30] sm:$0xff] }
 0xc65   : > { %4654 = vmatprep.subr.mxu0 %v3881_v21  ;;  %4516 = vmatprep.subr.mxu1 %v3859_v60  ;;  %v3951_v21 = vld [vmem:[%s14264_s30 + $0xae8] sm:$0xff]  ;;  %v3950_v60 = vld [vmem:[%s14264_s30 + $0xae0] sm:$0xff] }
 0xc66   : > { %4655 = vmatpush2.msra.mxu0 %v3880_v33  ;;  %4517 = vmatpush2.msra.mxu1 %v3858_v14  ;;  %v3941_v33 = vld [vmem:[%s14264_s30 + $0xa98] sm:$0xff]  ;;  %v3940_v14 = vld [vmem:[%s14264_s30 + $0xa90] sm:$0xff] }
 0xc67   : > { %4656 = vmatprep.subr.mxu0 %v3871_v57  ;;  %4518 = vmatprep.subr.mxu1 %v3849_v27  ;;  %v3931_v57 = vld [vmem:[%s14264_s30 + $0xa48] sm:$0xff]  ;;  %v3930_v27 = vld [vmem:[%s14264_s30 + $0xa40] sm:$0xff] }
 0xc68   : > { %4657 = vmatpush2.msra.mxu0 %v3870_v41  ;;  %4519 = vmatpush2.msra.mxu1 %v3848_v44 }
 0xc69   : > { %4658 = vmatprep.subr.mxu0 %v3861_v47  ;;  %4520 = vmatprep.subr.mxu1 %v3839_v48 }
 0xc6a   : > { %4659 = vmatpush2.msra.mxu0 %v3860_v4  ;;  %4521 = vmatpush2.msra.mxu1 %v3838_v25 }
 0xc6b   : > { %4660 = vmatprep.subr.mxu0 %v3851_v59  ;;  %4522 = vmatprep.subr.mxu1 %v3829_v62 }
 0xc6c   : > { %4661 = vmatpush2.msra.mxu0 %v3850_v19  ;;  %4523 = vmatpush2.msra.mxu1 %v3828_v58 }
 0xc6d   : > { %4662 = vmatprep.subr.mxu0 %v3841_v5  ;;  %4524 = vmatprep.subr.mxu1 %v3819_v56 }
 0xc6e   : > { %4663 = vmatpush2.msra.mxu0 %v3840_v45  ;;  %4525 = vmatpush2.msra.mxu1 %v3818_v11 }
 0xc6f   : > { %4664 = vmatprep.subr.mxu0 %v3831_v43  ;;  %4526 = vmatprep.subr.mxu1 %v3809_v10 }
 0xc70   : > { %4665 = vmatpush2.msra.mxu0 %v3830_v1  ;;  %4527 = vmatpush2.msra.mxu1 %v3808_v16 }
 0xc71   : > { %4666 = vmatprep.subr.mxu0 %v3821_v50  ;;  %4528 = vmatprep.subr.mxu1 %v3799_v35 }
 0xc72   : > { %4667 = vmatpush2.msra.mxu0 %v3820_v54  ;;  %4529 = vmatpush2.msra.mxu1 %v3798_v20 }
 0xc73   : > { %4668 = vmatprep.subr.mxu0 %v3811_v32  ;;  %4530 = vmatprep.subr.mxu1 %v3789_v29 }
 0xc74   : > { %4669 = vmatpush2.msra.mxu0 %v3810_v6  ;;  %4531 = vmatpush2.msra.mxu1 %v3788_v15 }
 0xc75   : > { %4670 = vmatprep.subr.mxu0 %v3801_v49  ;;  %4532 = vmatprep.subr.mxu1 %v3779_v51 }
 0xc76   : > { %4671 = vmatpush2.msra.mxu0 %v3800_v0  ;;  %4533 = vmatpush2.msra.mxu1 %v3778_v23 }
 0xc77   : > { %4672 = vmatprep.subr.mxu0 %v3791_v40  ;;  %4534 = vmatprep.subr.mxu1 %v3769_v17 }
 0xc78   : > { %4673 = vmatpush2.msra.mxu0 %v3790_v52  ;;  %4535 = vmatpush2.msra.mxu1 %v3768_v9 }
 0xc79   : > { %4674 = vmatprep.subr.mxu0 %v3781_v22  ;;  %4537 = vmatmul.mubr.f32.vlgmr.msra.gmra.mxu1 %v10466_v28 }
 0xc7a   : > { %4675 = vmatpush2.msra.mxu0 %v3780_v30  ;;  %8658 = vmatprep.subr.msk.mxu1 %vm14206_vm11, %v4011_v55 }
 0xc7b   : > { %4676 = vmatprep.subr.mxu0 %v3771_v39  ;;  %8659 = vmatpush1.msk.msra.mxu1 %vm14206_vm11, %v4010_v63  ;;  %vm5043_vm11 = vcmask 801792  }
 0xc7c   : > { %4677 = vmatpush2.msra.mxu0 %v3770_v13  ;;  %4701 = vmatprep.subr.mxu1 %v4001_v24 }
 0xc7d   : > { %4679 = vmatmul.mubr.f32.vlgmr.msra.gmra.mxu0 %v10466_v28  ;;  %4702 = vmatpush1.msra.mxu1 %v4000_v7  ;;  %v3970_v28 = vld [vmem:[%s14264_s30 + $0xb80] sm:$0xff] }
 0xc7e   : > { %4703 = vmatprep.subr.mxu1 %v3991_v26  ;;  %4749 = vmatprep.mubr.f32.mxu1 %v8971_v3 }
 0xc7f   : > { %4704 = vmatpush1.msra.mxu1 %v3990_v61  ;;  %5371 = vmatprep.mubr.f32.mxu0 %v8971_v3 }
 0xc80   : > { %4705 = vmatprep.subr.mxu1 %v3981_v53 }
 0xc81   : > { %4706 = vmatpush1.msra.mxu1 %v3980_v38 }
 0xc82   : > { %4707 = vmatprep.subr.mxu1 %v3971_v18 }
 0xc83   : > { %4708 = vmatpush1.msra.mxu1 %v3970_v28 }
 0xc84   : > { %4709 = vmatprep.subr.mxu1 %v3961_v42 }
 0xc85   : > { %4710 = vmatpush1.msra.mxu1 %v3960_v8 }
 0xc86   : > { %4711 = vmatprep.subr.mxu1 %v3951_v21 }
 0xc87   : > { %4712 = vmatpush1.msra.mxu1 %v3950_v60 }
 0xc88   : > { %4713 = vmatprep.subr.mxu1 %v3941_v33 }
 0xc89   : > { %4714 = vmatpush1.msra.mxu1 %v3940_v14 }
 0xc8a   : > { %4715 = vmatprep.subr.mxu1 %v3931_v57 }
 0xc8b   : > { %4716 = vmatpush1.msra.mxu1 %v3930_v27 }
 0xc8c   : > { %8660 = vmatmul.mubr.msk.f32.vlgmr.msra.gmra.mxu1 %vm14205_vm4, %v10519_v31  ;;  %vm14207_vm4 = vcmask 793600  }
 0xc8d   : > { %5158 = vmatprep.mubr.f32.mxu1 %v8971_v3 }
 0xc93   : > { %v4112_v41 = vpop.f32.mrf.mxu0 }
 0xc95   : > { %v4114_v31 = vpop.f32.mrf.mxu0 }
 0xca2   : > { %v4183_v44 = vpop.f32.mrf.mxu1 }
 0xca3   : > { %v11483_v47 = vadd.f32 %v4183_v44, %v4112_v41 }
 0xca4   : > { %v4185_v48 = vpop.f32.mrf.mxu1 }
 0xca5   : > { %5004 = vrot.lane.b32.xlu0 %v11483_v47, %s8978_s27  ;;  %5045 = vrot.lane.b32.xlu1 %v11483_v47, %s8979_s4  ;;  %v11493_v4 = vadd.f32 %v4185_v48, %v4114_v31 }
 0xca6   : > { %v4325_v25 = vpop.f32.mrf.mxu0 }
 0xca8   : > { %v4327_v58 = vpop.f32.mrf.mxu0 }
 0xca9   : > { %4922 = vrot.lane.b32.xlu0 %v11483_v47, %s8968_s5  ;;  %4963 = vrot.lane.b32.xlu1 %v11483_v47, %s8980_s0 }
 0xcad   : > { %5006 = vrot.lane.b32.xlu0 %v11493_v4, %s8978_s27  ;;  %4882 = vrot.lane.b32.xlu1 %v11483_v47, %s14266_s29 }
 0xcb1   : > { %4924 = vrot.lane.b32.xlu0 %v11493_v4, %s8968_s5  ;;  %4843 = vrot.lane.b32.xlu1 %v11483_v47, %s8981_s6 }
 0xcb5   : > { %4884 = vrot.lane.b32.xlu0 %v11493_v4, %s14266_s29  ;;  %4805 = vrot.lane.b32.xlu1 %v11483_v47, %s14211_s1 }
 0xcb9   : > { %4845 = vrot.lane.b32.xlu0 %v11493_v4, %s8981_s6  ;;  %4767 = vrot.lane.b32.xlu1 %v11483_v47, %s14209_s25 }
 0xcbd   : > { %4807 = vrot.lane.b32.xlu0 %v11493_v4, %s14211_s1  ;;  %5047 = vrot.lane.b32.xlu1 %v11493_v4, %s8979_s4 }
 0xcc1   : > { %4769 = vrot.lane.b32.xlu0 %v11493_v4, %s14209_s25  ;;  %4965 = vrot.lane.b32.xlu1 %v11493_v4, %s8980_s0 }
 0xce3   : > { %v4254_v59 = vpop.f32.mrf.mxu1 }
 0xce4   : > { %v11519_v62 = vadd.f32 %v4325_v25, %v4254_v59 }
 0xce5   : > { %v4256_v19 = vpop.f32.mrf.mxu1 }
 0xce6   : > { %5049 = vrot.lane.b32.xlu0 %v11519_v62, %s8979_s4  ;;  %5008 = vrot.lane.b32.xlu1 %v11519_v62, %s8978_s27  ;;  %v11529_v5 = vadd.f32 %v4327_v58, %v4256_v19 }
 0xce7   : > { %v4396_v45 = vpop.f32.mrf.mxu0 }
 0xce9   : > { %v4398_v10 = vpop.f32.mrf.mxu0 }
 0xcea   : > { %4967 = vrot.lane.b32.xlu0 %v11519_v62, %s8980_s0  ;;  %4926 = vrot.lane.b32.xlu1 %v11519_v62, %s8968_s5 }
 0xcee   : > { %4888 = vrot.lane.b32.xlu0 %v11529_v5, %s14266_s29  ;;  %4886 = vrot.lane.b32.xlu1 %v11519_v62, %s14266_s29 }
 0xcf2   : > { %4849 = vrot.lane.b32.xlu0 %v11529_v5, %s8981_s6  ;;  %4847 = vrot.lane.b32.xlu1 %v11519_v62, %s8981_s6 }
 0xcf6   : > { %4811 = vrot.lane.b32.xlu0 %v11529_v5, %s14211_s1  ;;  %4809 = vrot.lane.b32.xlu1 %v11519_v62, %s14211_s1 }
 0xcf7   : > { %v4467_v56 = vpop.f32.mrf.mxu1 }
 0xcf8   : > { %v11547_v11 = vadd.f32 %v4467_v56, %v4396_v45 }
 0xcf9   : > { %v4469_v43 = vpop.f32.mrf.mxu1 }
 0xcfa   : > { %4773 = vrot.lane.b32.xlu0 %v11529_v5, %s14209_s25  ;;  %4771 = vrot.lane.b32.xlu1 %v11519_v62, %s14209_s25  ;;  %v11565_v1 = vadd.f32 %v4469_v43, %v4398_v10 }
 0xcfc   : > { %v4609_v29 = vpop.f32.mrf.mxu0 }
 0xcfe   : > { %5053 = vrot.lane.b32.xlu0 %v11547_v11, %s8979_s4  ;;  %5051 = vrot.lane.b32.xlu1 %v11529_v5, %s8979_s4  ;;  %v4611_v23 = vpop.f32.mrf.mxu0 }
 0xd02   : > { %5012 = vrot.lane.b32.xlu0 %v11547_v11, %s8978_s27  ;;  %5010 = vrot.lane.b32.xlu1 %v11529_v5, %s8978_s27 }
 0xd06   : > { %4971 = vrot.lane.b32.xlu0 %v11547_v11, %s8980_s0  ;;  %4969 = vrot.lane.b32.xlu1 %v11529_v5, %s8980_s0 }
 0xd0a   : > { %4930 = vrot.lane.b32.xlu0 %v11547_v11, %s8968_s5  ;;  %4928 = vrot.lane.b32.xlu1 %v11529_v5, %s8968_s5 }
 0xd0e   : > { %4892 = vrot.lane.b32.xlu0 %v11565_v1, %s14266_s29  ;;  %4890 = vrot.lane.b32.xlu1 %v11547_v11, %s14266_s29 }
 0xd12   : > { %4853 = vrot.lane.b32.xlu0 %v11565_v1, %s8981_s6  ;;  %4851 = vrot.lane.b32.xlu1 %v11547_v11, %s8981_s6 }
 0xd16   : > { %4815 = vrot.lane.b32.xlu0 %v11565_v1, %s14211_s1  ;;  %4813 = vrot.lane.b32.xlu1 %v11547_v11, %s14211_s1 }
 0xd17   : > { %v5005_v16 = vpop.permute.xlu0 %5004  ;;  %v5046_v50 = vpop.permute.xlu1 %5045 }
 0xd1a   : > { %4777 = vrot.lane.b32.xlu0 %v11565_v1, %s14209_s25  ;;  %4775 = vrot.lane.b32.xlu1 %v11547_v11, %s14209_s25 }
 0xd1b   : > { %v11591_v35 = vpop.permute.xlu0 %4922  ;;  %v11593_v54 = vpop.permute.xlu1 %4963 }
 0xd1e   : > { %5055 = vrot.lane.b32.xlu1 %v11565_v1, %s8979_s4 }
 0xd1f   : > { %v5007_v20 = vpop.permute.xlu0 %5006  ;;  %v11595_v32 = vpop.permute.xlu1 %4882 }
 0xd20   : > { %v5025_v33 = vsel %vm5024_vm13, %v5005_v16, %v5007_v20 }
 0xd22   : > { %5014 = vrot.lane.b32.xlu1 %v11565_v1, %s8978_s27 }
 0xd23   : > { %v11599_v49 = vpop.permute.xlu0 %4924  ;;  %v11601_v51 = vpop.permute.xlu1 %4843 }
 0xd24   : > { %v4942_v48 = vsel %vm746_vm7, %v11591_v35, %v11599_v49  ;;  %v11752_v35 = vld [vmem:[%s14184_s14] sm:$0xff] }
 0xd26   : > { %4973 = vrot.lane.b32.xlu1 %v11565_v1, %s8980_s0 }
 0xd27   : > { %v11611_v40 = vpop.permute.xlu0 %4884  ;;  %v11613_v17 = vpop.permute.xlu1 %4805 }
 0xd28   : > { %v4902_v59 = vsel %vm735_vm1, %v11595_v32, %v11611_v40 }
 0xd2a   : > { %4932 = vrot.lane.b32.xlu1 %v11565_v1, %s8968_s5 }
 0xd2b   : > { %v11621_v9 = vpop.permute.xlu0 %4845  ;;  %v11623_v22 = vpop.permute.xlu1 %4767 }
 0xd2c   : > { %v4862_v58 = vsel %vm4861_vm2, %v11601_v51, %v11621_v9 }
 0xd2f   : > { %v11633_v30 = vpop.permute.xlu0 %4807  ;;  %v5048_v55 = vpop.permute.xlu1 %5047 }
 0xd30   : > { %v5066_v42 = vsel %vm14208_vm9, %v5046_v50, %v5048_v55  ;;  %v4824_v45 = vsel %vm4823_vm6, %v11613_v17, %v11633_v30 }
 0xd33   : > { %v11641_v24 = vpop.permute.xlu0 %4769  ;;  %v4966_v7 = vpop.permute.xlu1 %4965 }
 0xd34   : > { %v4984_v57 = vsel %vm4983_vm8, %v11593_v54, %v4966_v7  ;;  %v4786_v50 = vsel %vm4785_vm14, %v11623_v22, %v11641_v24 }
 0xd39   : > { %v4538_v6 = vpop.f32.mrf.mxu1 }
 0xd3a   : > { %v11597_v15 = vadd.f32 %v4609_v29, %v4538_v6 }
 0xd3b   : > { %v4540_v0 = vpop.f32.mrf.mxu1 }
 0xd3c   : > { %5057 = vrot.lane.b32.xlu0 %v11597_v15, %s8979_s4  ;;  %4894 = vrot.lane.b32.xlu1 %v11597_v15, %s14266_s29  ;;  %v11615_v52 = vadd.f32 %v4611_v23, %v4540_v0 }
 0xd3d   : > { %v4680_v63 = vpop.f32.mrf.mxu0 }
 0xd3f   : > { %v4682_v38 = vpop.f32.mrf.mxu0 }
 0xd40   : > { %5016 = vrot.lane.b32.xlu0 %v11597_v15, %s8978_s27  ;;  %4855 = vrot.lane.b32.xlu1 %v11597_v15, %s8981_s6 }
 0xd44   : > { %4975 = vrot.lane.b32.xlu0 %v11597_v15, %s8980_s0  ;;  %5059 = vrot.lane.b32.xlu1 %v11615_v52, %s8979_s4 }
 0xd48   : > { %4934 = vrot.lane.b32.xlu0 %v11597_v15, %s8968_s5  ;;  %5018 = vrot.lane.b32.xlu1 %v11615_v52, %s8978_s27 }
 0xd4c   : > { %4896 = vrot.lane.b32.xlu0 %v11615_v52, %s14266_s29  ;;  %4977 = vrot.lane.b32.xlu1 %v11615_v52, %s8980_s0  ;;  %v4751_v39 = vpop.f32.mrf.mxu1 }
 0xd4d   : > { %v11639_v13 = vadd.f32 %v4751_v39, %v4680_v63 }
 0xd4e   : > { %v4753_v26 = vpop.f32.mrf.mxu1 }
 0xd4f   : > { %v11657_v28 = vadd.f32 %v4753_v26, %v4682_v38 }
 0xd50   : > { %4857 = vrot.lane.b32.xlu0 %v11615_v52, %s8981_s6  ;;  %4936 = vrot.lane.b32.xlu1 %v11615_v52, %s8968_s5 }
 0xd54   : > { %5061 = vrot.lane.b32.xlu0 %v11639_v13, %s8979_s4  ;;  %4817 = vrot.lane.b32.xlu1 %v11597_v15, %s14211_s1 }
 0xd58   : > { %5020 = vrot.lane.b32.xlu0 %v11639_v13, %s8978_s27  ;;  %4779 = vrot.lane.b32.xlu1 %v11597_v15, %s14209_s25  ;;  %v11651_v61 = vpop.permute.xlu0 %5049  ;;  %v11653_v53 = vpop.permute.xlu1 %5008 }
 0xd59   : > { %v5067_v18 = vsel %vm14208_vm9, %v5048_v55, %v11651_v61  ;;  %v5026_v21 = vsel %vm5024_vm13, %v5007_v20, %v11653_v53 }
 0xd5a   : > { %5108 = vmatprep.subr.mxu1 %v5067_v18 }
 0xd5b   : > { %5109 = vmatpush1.msra.mxu1 %v5066_v42 }
 0xd5c   : > { %4979 = vrot.lane.b32.xlu0 %v11639_v13, %s8980_s0  ;;  %5063 = vrot.lane.b32.xlu1 %v11657_v28, %s8979_s4  ;;  %v11664_v8 = vpop.permute.xlu0 %4967  ;;  %v11668_v60 = vpop.permute.xlu1 %4926 }
 0xd5d   : > { %5110 = vmatprep.subr.mxu1 %v5026_v21  ;;  %v4985_v14 = vsel %vm4983_vm8, %v4966_v7, %v11664_v8  ;;  %v4943_v44 = vsel %vm746_vm7, %v11599_v49, %v11668_v60 }
 0xd5e   : > { %5111 = vmatpush1.msra.mxu1 %v5025_v33 }
 0xd5f   : > { %5112 = vmatprep.subr.mxu1 %v4985_v14 }
 0xd60   : > { %4938 = vrot.lane.b32.xlu0 %v11639_v13, %s8968_s5  ;;  %4981 = vrot.lane.b32.xlu1 %v11657_v28, %s8980_s0  ;;  %v11679_v27 = vpop.permute.xlu0 %4888  ;;  %v11681_v41 = vpop.permute.xlu1 %4886 }
 0xd61   : > { %5113 = vmatpush1.msra.mxu1 %v4984_v57  ;;  %v4904_v38 = vsel %vm735_vm1, %v11681_v41, %v11679_v27  ;;  %v4903_v18 = vsel %vm735_vm1, %v11611_v40, %v11681_v41 }
 0xd62   : > { %5114 = vmatprep.subr.mxu1 %v4943_v44 }
 0xd63   : > { %5115 = vmatpush1.msra.mxu1 %v4942_v48 }
 0xd64   : > { %4819 = vrot.lane.b32.xlu0 %v11615_v52, %s14211_s1  ;;  %4898 = vrot.lane.b32.xlu1 %v11639_v13, %s14266_s29  ;;  %v11693_v31 = vpop.permute.xlu0 %4849  ;;  %v11695_v25 = vpop.permute.xlu1 %4847 }
 0xd65   : > { %5116 = vmatprep.subr.mxu1 %v11493_v4  ;;  %v4864_v42 = vsel %vm4861_vm2, %v11695_v25, %v11693_v31 }
 0xd66   : > { %5117 = vmatpush1.msra.mxu1 %v11483_v47 }
 0xd67   : > { %5118 = vmatprep.subr.mxu1 %v4902_v59 }
 0xd68   : > { %4781 = vrot.lane.b32.xlu0 %v11615_v52, %s14209_s25  ;;  %4859 = vrot.lane.b32.xlu1 %v11639_v13, %s8981_s6  ;;  %v11711_v4 = vpop.permute.xlu0 %4811  ;;  %v11713_v47 = vpop.permute.xlu1 %4809 }
 0xd69   : > { %8662 = vmatpush1.msk.msra.mxu1 %vm10166_vm12, %v11595_v32  ;;  %v4825_v40 = vsel %vm4823_vm6, %v11633_v30, %v11713_v47 }
 0xd6a   : > { %5120 = vmatprep.subr.mxu1 %v4862_v58 }
 0xd6b   : > { %8664 = vmatpush1.msk.msra.mxu1 %vm11707_vm15, %v11601_v51 }
 0xd6c   : > { %5022 = vrot.lane.b32.xlu0 %v11657_v28, %s8978_s27  ;;  %4783 = vrot.lane.b32.xlu1 %v11639_v13, %s14209_s25  ;;  %v11736_v43 = vpop.permute.xlu0 %4773  ;;  %v4772_v10 = vpop.permute.xlu1 %4771 }
 0xd6d   : > { %5122 = vmatprep.subr.mxu1 %v4824_v45  ;;  %v4788_v21 = vsel %vm4785_vm14, %v4772_v10, %v11736_v43 }
 0xd6e   : > { %8666 = vmatpush1.msk.msra.mxu1 %vm11725_vm10, %v11613_v17 }
 0xd6f   : > { %5124 = vmatprep.subr.mxu1 %v4786_v50 }
 0xd70   : > { %8668 = vmatpush1.msk.msra.mxu1 %vm11739_vm0, %v11623_v22  ;;  %4940 = vrot.lane.b32.xlu0 %v11657_v28, %s8968_s5  ;;  %v11759_v54 = vpop.permute.xlu0 %5053  ;;  %v5052_v20 = vpop.permute.xlu1 %5051  ;;  %v4757_v22 = vld [vmem:[%s14185_s15] sm:$0xff] }
 0xd71   : > { %8669 = vmatmul.mubr.msk.f32.vlgmr.msra.gmra.mxu1 %vm3451_vm3, %v11752_v35  ;;  %v5069_v32 = vsel %vm14208_vm9, %v5052_v20, %v11759_v54  ;;  %v5068_v29 = vsel %vm14208_vm9, %v11651_v61, %v5052_v20 }
 0xd72   : > { %5179 = vmatprep.subr.mxu1 %v5069_v32  ;;  %5229 = vmatprep.mubr.f32.mxu1 %v8971_v3 }
 0xd73   : > { %5180 = vmatpush1.msra.mxu1 %v5068_v29 }
 0xd74   : > { %4900 = vrot.lane.b32.xlu0 %v11657_v28, %s14266_s29  ;;  %v11770_v6 = vpop.permute.xlu0 %5012  ;;  %v5011_v49 = vpop.permute.xlu1 %5010 }
 0xd75   : > { %v5028_v51 = vsel %vm5024_vm13, %v5011_v49, %v11770_v6  ;;  %v5027_v0 = vsel %vm5024_vm13, %v11653_v53, %v5011_v49 }
 0xd76   : > { %5181 = vmatprep.subr.mxu1 %v5028_v51 }
 0xd77   : > { %5182 = vmatpush1.msra.mxu1 %v5027_v0 }
 0xd78   : > { %4821 = vrot.lane.b32.xlu0 %v11639_v13, %s14211_s1  ;;  %v11778_v23 = vpop.permute.xlu0 %4971  ;;  %v4970_v17 = vpop.permute.xlu1 %4969 }
 0xd79   : > { %v4987_v55 = vsel %vm4983_vm8, %v4970_v17, %v11778_v23  ;;  %v4986_v39 = vsel %vm4983_vm8, %v11664_v8, %v4970_v17 }
 0xd7a   : > { %5183 = vmatprep.subr.mxu1 %v4987_v55 }
 0xd7b   : > { %5184 = vmatpush1.msra.mxu1 %v4986_v39 }
 0xd7c   : > { %5088 = vperm.xlu0 %8950, %v4757_v22   ;;  %v4931_v63 = vpop.permute.xlu0 %4930  ;;  %v4929_v7 = vpop.permute.xlu1 %4928 }
 0xd7d   : > { %v4945_v26 = vsel %vm746_vm7, %v4929_v7, %v4931_v63  ;;  %v4944_v61 = vsel %vm746_vm7, %v11668_v60, %v4929_v7  ;;  %v4787_v60 = vsel %vm4785_vm14, %v11641_v24, %v4772_v10 }
 0xd7e   : > { %5185 = vmatprep.subr.mxu1 %v4945_v26 }
 0xd7f   : > { %5186 = vmatpush1.msra.mxu1 %v4944_v61 }
 0xd80   : > { %5187 = vmatprep.subr.mxu1 %v11529_v5  ;;  %v4891_v53 = vpop.permute.xlu1 %4890  ;;  %v4863_v5 = vsel %vm4861_vm2, %v11621_v9, %v11695_v25  ;;  %v11817_v14 = vpop.permute.xlu0 %4892 }
 0xd81   : > { %5188 = vmatpush1.msra.mxu1 %v11519_v62  ;;  %v4826_v62 = vsel %vm4823_vm6, %v11713_v47, %v11711_v4  ;;  %v4906_v7 = vsel %vm735_vm1, %v4891_v53, %v11817_v14 }
 0xd82   : > { %5189 = vmatprep.subr.mxu1 %v4904_v38 }
 0xd83   : > { %5190 = vmatpush1.msra.mxu1 %v4903_v18 }
 0xd84   : > { %5191 = vmatprep.subr.mxu1 %v4864_v42  ;;  %v4852_v8 = vpop.permute.xlu1 %4851  ;;  %v11819_v30 = vpop.permute.xlu0 %4853 }
 0xd85   : > { %5192 = vmatpush1.msra.mxu1 %v4863_v5  ;;  %v4866_v26 = vsel %vm4861_vm2, %v4852_v8, %v11819_v30 }
 0xd86   : > { %5193 = vmatprep.subr.mxu1 %v4826_v62 }
 0xd87   : > { %5194 = vmatpush1.msra.mxu1 %v4825_v40 }
 0xd88   : > { %5195 = vmatprep.subr.mxu1 %v4788_v21  ;;  %v4814_v9 = vpop.permute.xlu1 %4813  ;;  %v11821_v44 = vpop.permute.xlu0 %4815 }
 0xd89   : > { %5196 = vmatpush1.msra.mxu1 %v4787_v60  ;;  %v4827_v38 = vsel %vm4823_vm6, %v11711_v4, %v4814_v9 }
 0xd8a   : > { %8670 = vmatmul.mubr.msk.f32.vlgmr.msra.gmra.mxu1 %vm3451_vm3, %v11752_v35 }
 0xd8b   : > { %5300 = vmatprep.mubr.f32.mxu1 %v8971_v3 }
 0xd8c   : > { %v4776_v33 = vpop.permute.xlu1 %4775  ;;  %v11823_v25 = vpop.permute.xlu0 %4777 }
 0xd8d   : > { %v4789_v42 = vsel %vm4785_vm14, %v11736_v43, %v4776_v33 }
 0xd90   : > { %v5056_v57 = vpop.permute.xlu1 %5055 }
 0xd91   : > { %v5070_v45 = vsel %vm14208_vm9, %v11759_v54, %v5056_v57 }
 0xd94   : > { %v5015_v41 = vpop.permute.xlu1 %5014 }
 0xd95   : > { %v5029_v32 = vsel %vm5024_vm13, %v11770_v6, %v5015_v41 }
 0xd98   : > { %v4974_v48 = vpop.permute.xlu1 %4973 }
 0xd99   : > { %v4988_v0 = vsel %vm4983_vm8, %v11778_v23, %v4974_v48  ;;  %v4905_v23 = vsel %vm735_vm1, %v11679_v27, %v4891_v53  ;;  %v4790_v27 = vsel %vm4785_vm14, %v4776_v33, %v11823_v25 }
 0xd9c   : > { %v4933_v24 = vpop.permute.xlu1 %4932 }
 0xd9d   : > { %v4946_v55 = vsel %vm746_vm7, %v4931_v63, %v4933_v24 }
 0xdae   : > { %v5058_v59 = vpop.permute.xlu0 %5057  ;;  %v11825_v47 = vpop.permute.xlu1 %4894 }
 0xdaf   : > { %v5071_v58 = vsel %vm14208_vm9, %v5056_v57, %v5058_v59 }
 0xdb0   : > { %5250 = vmatprep.subr.mxu1 %v5071_v58 }
 0xdb1   : > { %5251 = vmatpush1.msra.mxu1 %v5070_v45  ;;  %v4907_v45 = vsel %vm735_vm1, %v11817_v14, %v11825_v47 }
 0xdb2   : > { %v5017_v10 = vpop.permute.xlu0 %5016  ;;  %v11830_v50 = vpop.permute.xlu1 %4855 }
 0xdb3   : > { %v5030_v20 = vsel %vm5024_vm13, %v5015_v41, %v5017_v10 }
 0xdb4   : > { %5252 = vmatprep.subr.mxu1 %v5030_v20 }
 0xdb5   : > { %5253 = vmatpush1.msra.mxu1 %v5029_v32 }
 0xdb6   : > { %v4976_v29 = vpop.permute.xlu0 %4975  ;;  %v5060_v49 = vpop.permute.xlu1 %5059 }
 0xdb7   : > { %v4989_v51 = vsel %vm4983_vm8, %v4974_v48, %v4976_v29  ;;  %v5072_v5 = vsel %vm14208_vm9, %v5058_v59, %v5060_v49  ;;  %v5512_v48 = vld [vmem:[%s14187_s17] sm:$0xff] }
 0xdb8   : > { %5254 = vmatprep.subr.mxu1 %v4989_v51  ;;  %5515 = vperm.xlu1 %8951, %v5512_v48  }
 0xdb9   : > { %5255 = vmatpush1.msra.mxu1 %v4988_v0 }
 0xdba   : > { %v4935_v54 = vpop.permute.xlu0 %4934  ;;  %v5019_v17 = vpop.permute.xlu1 %5018 }
 0xdbb   : > { %v4947_v22 = vsel %vm746_vm7, %v4933_v24, %v4935_v54  ;;  %v5031_v43 = vsel %vm5024_vm13, %v5017_v10, %v5019_v17 }
 0xdbc   : > { %5256 = vmatprep.subr.mxu1 %v4947_v22 }
 0xdbd   : > { %5257 = vmatpush1.msra.mxu1 %v4946_v55 }
 0xdbe   : > { %v11840_v39 = vpop.permute.xlu0 %4896  ;;  %5258 = vmatprep.subr.mxu1 %v11565_v1  ;;  %v4978_v6 = vpop.permute.xlu1 %4977  ;;  %v4865_v1 = vsel %vm4861_vm2, %v11693_v31, %v4852_v8 }
 0xdbf   : > { %5259 = vmatpush1.msra.mxu1 %v11547_v11  ;;  %v4828_v11 = vsel %vm4823_vm6, %v4814_v9, %v11821_v44  ;;  %v4990_v33 = vsel %vm4983_vm8, %v4976_v29, %v4978_v6  ;;  %v4908_v58 = vsel %vm735_vm1, %v11825_v47, %v11840_v39 }
 0xdc0   : > { %5260 = vmatprep.subr.mxu1 %v4906_v7 }
 0xdc1   : > { %5261 = vmatpush1.msra.mxu1 %v4905_v23 }
 0xdc2   : > { %v11850_v63 = vpop.permute.xlu0 %4857  ;;  %5262 = vmatprep.subr.mxu1 %v4866_v26  ;;  %v4937_v61 = vpop.permute.xlu1 %4936 }
 0xdc3   : > { %5263 = vmatpush1.msra.mxu1 %v4865_v1  ;;  %v4948_v24 = vsel %vm746_vm7, %v4935_v54, %v4937_v61  ;;  %v4868_v20 = vsel %vm4861_vm2, %v11830_v50, %v11850_v63 }
 0xdc4   : > { %5264 = vmatprep.subr.mxu1 %v4828_v11 }
 0xdc5   : > { %5265 = vmatpush1.msra.mxu1 %v4827_v38 }
 0xdc6   : > { %v5062_v53 = vpop.permute.xlu0 %5061  ;;  %5266 = vmatprep.subr.mxu1 %v4790_v27  ;;  %v4818_v18 = vpop.permute.xlu1 %4817 }
 0xdc7   : > { %5267 = vmatpush1.msra.mxu1 %v4789_v42  ;;  %v5073_v31 = vsel %vm14208_vm9, %v5060_v49, %v5062_v53  ;;  %v4829_v29 = vsel %vm4823_vm6, %v11821_v44, %v4818_v18 }
 0xdc8   : > { %8671 = vmatmul.mubr.msk.f32.vlgmr.msra.gmra.mxu1 %vm3451_vm3, %v11752_v35  ;;  %5321 = vmatprep.subr.mxu0 %v5073_v31 }
 0xdc9   : > { %5322 = vmatpush1.msra.mxu0 %v5072_v5  ;;  %5392 = vmatprep.subr.mxu1 %v8971_v3 }
 0xdca   : > { %v5021_v4 = vpop.permute.xlu0 %5020  ;;  %v4780_v62 = vpop.permute.xlu1 %4779  ;;  %5442 = vmatprep.mubr.f32.mxu1 %v8971_v3 }
 0xdcb   : > { %v5032_v8 = vsel %vm5024_vm13, %v5019_v17, %v5021_v4  ;;  %v4791_v49 = vsel %vm4785_vm14, %v11823_v25, %v4780_v62 }
 0xdcc   : > { %5323 = vmatprep.subr.mxu0 %v5032_v8 }
 0xdcd   : > { %5324 = vmatpush1.msra.mxu0 %v5031_v43 }
 0xdce   : > { %v4980_v40 = vpop.permute.xlu0 %4979  ;;  %v5064_v21 = vpop.permute.xlu1 %5063 }
 0xdcf   : > { %v5074_v60 = vsel %vm14208_vm9, %v5062_v53, %v5064_v21  ;;  %v4991_v9 = vsel %vm4983_vm8, %v4978_v6, %v4980_v40  ;;  %vm14213_vm9 = vcmask 23552   ;;  %v5511_v53 = vld [vmem:[%s14186_s16] sm:$0xff]  ;;  %v5473_v21 = vsub.s32 5, %v9267_v36 }
 0xdd0   : > { %5325 = vmatprep.subr.mxu0 %v4991_v9  ;;  %8673 = vmatpush1.msk.msra.mxu1 %vm14207_vm4, %v5074_v60  ;;  %vm14214_vm4 = vcmask 809984   ;;  %v5469_v60 = vsub.s32 4, %v9267_v36 }
 0xdd1   : > { %5326 = vmatpush1.msra.mxu0 %v4990_v33  ;;  %5394 = vmatprep.subr.mxu1 %v8971_v3 }
 0xdd2   : > { %v4939_v57 = vpop.permute.xlu0 %4938  ;;  %v4982_v10 = vpop.permute.xlu1 %4981 }
 0xdd3   : > { %v4949_v41 = vsel %vm746_vm7, %v4937_v61, %v4939_v57 }
 0xdd4   : > { %5327 = vmatprep.subr.mxu0 %v4949_v41 }
 0xdd5   : > { %5328 = vmatpush1.msra.mxu0 %v4948_v24 }
 0xdd6   : > { %v4820_v59 = vpop.permute.xlu0 %4819  ;;  %5329 = vmatprep.subr.mxu0 %v11615_v52  ;;  %v4899_v51 = vpop.permute.xlu1 %4898 }
 0xdd7   : > { %5330 = vmatpush1.msra.mxu0 %v11597_v15  ;;  %v4867_v15 = vsel %vm4861_vm2, %v11819_v30, %v11830_v50  ;;  %v4830_v52 = vsel %vm4823_vm6, %v4818_v18, %v4820_v59  ;;  %v4992_v30 = vsel %vm4983_vm8, %v4980_v40, %v4982_v10  ;;  %v4909_v22 = vsel %vm735_vm1, %v11840_v39, %v4899_v51 }
 0xdd8   : > { %5331 = vmatprep.subr.mxu0 %v4908_v58  ;;  %v5465_v18 = vsub.s32 3, %v9267_v36  ;;  %v5481_v58 = vsub.s32 7, %v9267_v36 }
 0xdd9   : > { %5332 = vmatpush1.msra.mxu0 %v4907_v45  ;;  %v5477_v45 = vsub.s32 6, %v9267_v36  ;;  %v686_v36 = vld [vmem:[%s14273_s2 + $0x8] sm:$0x3] }
 0xdda   : > { %v4782_v32 = vpop.permute.xlu0 %4781  ;;  %5333 = vmatprep.subr.mxu0 %v4868_v20  ;;  %v4860_v50 = vpop.permute.xlu1 %4859 }
 0xddb   : > { %5334 = vmatpush1.msra.mxu0 %v4867_v15  ;;  %v4792_v14 = vsel %vm4785_vm14, %v4780_v62, %v4782_v32  ;;  %v4869_v6 = vsel %vm4861_vm2, %v11850_v63, %v4860_v50 }
 0xddc   : > { %5335 = vmatprep.subr.mxu0 %v4830_v52 }
 0xddd   : > { %5336 = vmatpush1.msra.mxu0 %v4829_v29 }
 0xdde   : > { %v5023_v47 = vpop.permute.xlu0 %5022  ;;  %5337 = vmatprep.subr.mxu0 %v4792_v14  ;;  %v4784_v7 = vpop.permute.xlu1 %4783 }
 0xddf   : > { %v5033_v0 = vsel %vm5024_vm13, %v5021_v4, %v5023_v47  ;;  %5338 = vmatpush1.msra.mxu0 %v4791_v49 }
 0xde0   : > { %8672 = vmatmul.mubr.msk.f32.vlgmr.msra.gmra.mxu0 %vm3451_vm3, %v11752_v35  ;;  %8674 = vmatpush1.msk.msra.mxu1 %vm5043_vm11, %v5033_v0 }
 0xde1   : > { %5396 = vmatprep.subr.mxu1 %v8971_v3  ;;  %5585 = vmatprep.mubr.f32.mxu0 %v8971_v3 }
 0xde2   : > { %v4941_v44 = vpop.permute.xlu0 %4940  ;;  %8675 = vmatpush1.msk.msra.mxu1 %vm14214_vm4, %v4992_v30  ;;  %v11976_v30 = vrot.slane %v686_v36, %v9273_v37 }
 0xde3   : > { %8676 = vmatprep.subr.msk.mxu1 %vm14213_vm9, %v4941_v44  ;;  %v4950_v25 = vsel %vm746_vm7, %v4939_v57, %v4941_v44 }
 0xde4   : > { %5399 = vmatpush1.msra.mxu1 %v4950_v25 }
 0xde5   : > { %5400 = vmatprep.subr.mxu1 %v11657_v28  ;;  %v685_v28 = vld [vmem:[%s14273_s2] sm:$0xff] }
 0xde6   : > { %v4901_v54 = vpop.permute.xlu0 %4900  ;;  %5401 = vmatpush1.msra.mxu1 %v11639_v13  ;;  %v4793_v13 = vsel %vm4785_vm14, %v4782_v32, %v4784_v7  ;;  %v11926_v63 = vrot.slane %v685_v28, %v9270_v34  ;;  %v11929_v1 = vrot.slane %v685_v28, %v9273_v37  ;;  %v11939_v31 = vrot.slane %v685_v28, %v5465_v18 }
 0xde7   : > { %v4910_v17 = vsel %vm735_vm1, %v4899_v51, %v4901_v54  ;;  %v11943_v4 = vrot.slane %v685_v28, %v1030_v46  ;;  %v11951_v33 = vrot.slane %v685_v28, %v5473_v21  ;;  %v11953_v57 = vrot.slane %v685_v28, %v5469_v60 }
 0xde8   : > { %5402 = vmatprep.subr.mxu1 %v4910_v17  ;;  %v11961_v20 = vrot.slane %v685_v28, %v5481_v58  ;;  %v11963_v15 = vrot.slane %v685_v28, %v5477_v45  ;;  %v11973_v51 = vrot.slane %v686_v36, %v9270_v34 }
 0xde9   : > { %5403 = vmatpush1.msra.mxu1 %v4909_v22 }
 0xdea   : > { %v4822_v55 = vpop.permute.xlu0 %4821  ;;  %5404 = vmatprep.subr.mxu1 %v4860_v50 }
 0xdeb   : > { %5405 = vmatpush1.msra.mxu1 %v4869_v6  ;;  %v4831_v23 = vsel %vm4823_vm6, %v4820_v59, %v4822_v55 }
 0xdec   : > { %5406 = vmatprep.subr.mxu1 %v4822_v55 }
 0xded   : > { %5407 = vmatpush1.msra.mxu1 %v4831_v23 }
 0xdee   : > { %5408 = vmatprep.subr.mxu1 %v4784_v7 }
 0xdef   : > { %5409 = vmatpush1.msra.mxu1 %v4793_v13 }
 0xdf0   : > { %8677 = vmatmul.mubr.msk.f32.vlgmr.msra.gmra.mxu1 %vm3451_vm3, %v11752_v35 }
 0xdf1   : > { %5798 = vmatprep.mubr.f32.mxu1 %v8971_v3 }
 0xdf7   : > { %v5089_v26 = vpop.permute.xlu0 %5088 }
 0xe31   : > { %v5160_v39 = vpop.f32.mrf.mxu1 }
 0xe32   : > { %v5161_v61 = vadd.f32 %v5160_v39, %v5089_v26 }
 0xe33   : > { %v5162_v11 = vpop.f32.mrf.mxu1  ;;  %v11982_v17 = vpop.permute.xlu1 %5515 }
 0xe34   : > { %v5163_v38 = vadd.f32 %v5162_v11, %v5089_v26  ;;  %v5501_v35 = vmul.f32 %v11929_v1, %v5161_v61 }
 0xe36   : > { %v5502_v27 = vmul.f32 %v11926_v63, %v5163_v38 }
 0xe38   : > { %5551 = vmatprep.subr.mxu0 %v5502_v27 }
 0xe39   : > { %5552 = vmatpush1.msra.mxu0 %v5501_v35 }
 0xe3a   : > { %8678 = vmatmul.mubr.msk.f32.vlgmr.msra.gmra.mxu0 %vm1039_vm5, %v5511_v53 }
 0xe3b   : > { %5656 = vmatprep.mubr.f32.mxu0 %v8971_v3 }
 0xe4a   : > { %v5231_v42 = vpop.f32.mrf.mxu1 }
 0xe4b   : > { %v5232_v5 = vadd.f32 %v5231_v42, %v5089_v26 }
 0xe4c   : > { %v5233_v62 = vpop.f32.mrf.mxu1 }
 0xe4d   : > { %v5234_v8 = vadd.f32 %v5233_v62, %v5089_v26  ;;  %v5503_v40 = vmul.f32 %v11943_v4, %v5232_v5 }
 0xe4f   : > { %v5504_v43 = vmul.f32 %v11939_v31, %v5234_v8 }
 0xe51   : > { %5622 = vmatprep.subr.mxu0 %v5504_v43 }
 0xe52   : > { %5623 = vmatpush1.msra.mxu0 %v5503_v40 }
 0xe53   : > { %8679 = vmatmul.mubr.msk.f32.vlgmr.msra.gmra.mxu0 %vm1039_vm5, %v5511_v53 }
 0xe54   : > { %5727 = vmatprep.mubr.f32.mxu0 %v8971_v3 }
 0xe88   : > { %v5302_v9 = vpop.f32.mrf.mxu1 }
 0xe89   : > { %v5303_v46 = vadd.f32 %v5302_v9, %v5089_v26 }
 0xe8a   : > { %v5304_v41 = vpop.f32.mrf.mxu1 }
 0xe8b   : > { %v5305_v48 = vadd.f32 %v5304_v41, %v5089_v26  ;;  %v5505_v59 = vmul.f32 %v11953_v57, %v5303_v46 }
 0xe8d   : > { %v5506_v24 = vmul.f32 %v11951_v33, %v5305_v48 }
 0xe8f   : > { %5693 = vmatprep.subr.mxu0 %v5506_v24 }
 0xe90   : > { %5694 = vmatpush1.msra.mxu0 %v5505_v59 }
 0xe91   : > { %8680 = vmatmul.mubr.msk.f32.vlgmr.msra.gmra.mxu0 %vm1039_vm5, %v5511_v53 }
 0xe92   : > { %5869 = vmatprep.mubr.f32.mxu0 %v8971_v3 }
 0xea0   : > { %v5373_v10 = vpop.f32.mrf.mxu0 }
 0xea1   : > { %v5374_v32 = vadd.f32 %v5373_v10, %v5089_v26 }
 0xea2   : > { %v5375_v52 = vpop.f32.mrf.mxu0 }
 0xea3   : > { %v5376_v29 = vadd.f32 %v5375_v52, %v5089_v26  ;;  %v5507_v47 = vmul.f32 %v11963_v15, %v5374_v32 }
 0xea5   : > { %v5508_v14 = vmul.f32 %v11961_v20, %v5376_v29 }
 0xea7   : > { %5764 = vmatprep.subr.mxu1 %v5508_v14 }
 0xea8   : > { %5765 = vmatpush1.msra.mxu1 %v5507_v47 }
 0xea9   : > { %8681 = vmatmul.mubr.msk.f32.vlgmr.msra.gmra.mxu1 %vm1039_vm5, %v5511_v53 }
 0xeaa   : > { %6308 = vmatprep.mubr.f32.mxu1 %v8971_v3 }
 0xeb0   : > { %v5444_v49 = vpop.f32.mrf.mxu1 }
 0xeb1   : > { %v5445_v0 = vadd.f32 %v5444_v49, %v5089_v26 }
 0xeb2   : > { %v5446_v44 = vpop.f32.mrf.mxu1 }
 0xeb3   : > { %v5447_v25 = vadd.f32 %v5446_v44, %v5089_v26  ;;  %v5509_v54 = vmul.f32 %v11976_v30, %v5445_v0 }
 0xeb5   : > { %v5510_v50 = vmul.f32 %v11973_v51, %v5447_v25 }
 0xeb7   : > { %5835 = vmatprep.subr.mxu0 %v5510_v50 }
 0xeb8   : > { %5836 = vmatpush1.msra.mxu0 %v5509_v54 }
 0xeb9   : > { %8682 = vmatmul.mubr.msk.f32.vlgmr.msra.gmra.mxu0 %vm1039_vm5, %v5511_v53 }
 0xeba   : > { %6379 = vmatprep.mubr.f32.mxu0 %v8971_v3 }
 0xefa   : > { %v5587_v34 = vpop.f32.mrf.mxu0 }
 0xefb   : > { %v5588_v22 = vadd.f32 %v5587_v34, %v11982_v17 }
 0xefc   : > { %v5589_v55 = vpop.f32.mrf.mxu0 }
 0xefd   : > { %vm5876_vm9 = vcmp.ge.f32.partialorder %v5588_v22, 0.0  ;;  %v5886_v37 = vmul.f32 0.2, %v5588_v22  ;;  %v5590_v6 = vadd.f32 %v5589_v55, %v11982_v17 }
 0xeff   : > { %v5896_v7 = vsel %vm5876_vm9, %v5588_v22, %v5886_v37  ;;  %v5887_v23 = vmul.f32 0.2, %v5590_v6  ;;  %vm5877_vm4 = vcmp.ge.f32.partialorder %v5590_v6, 0.0 }
 0xf00   : > { %v11987_v13 = vmul.f32 %v5896_v7, %v11929_v1 }
 0xf01   : > { %v5897_v28 = vsel %vm5877_vm4, %v5590_v6, %v5887_v23 }
 0xf02   : > { %6158 = vrot.lane.b32.xlu1 %v11987_v13, %s8978_s27  ;;  %6197 = vrot.lane.b32.xlu0 %v11987_v13, %s8979_s4  ;;  %v11994_v39 = vmul.f32 %v5897_v28, %v11926_v63 }
 0xf06   : > { %6079 = vrot.lane.b32.xlu1 %v11987_v13, %s8968_s5  ;;  %6119 = vrot.lane.b32.xlu0 %v11987_v13, %s8980_s0 }
 0xf0a   : > { %6160 = vrot.lane.b32.xlu1 %v11994_v39, %s8978_s27  ;;  %6039 = vrot.lane.b32.xlu0 %v11987_v13, %s14266_s29 }
 0xf0e   : > { %6081 = vrot.lane.b32.xlu1 %v11994_v39, %s8968_s5  ;;  %6001 = vrot.lane.b32.xlu0 %v11987_v13, %s8981_s6 }
 0xf12   : > { %6041 = vrot.lane.b32.xlu1 %v11994_v39, %s14266_s29  ;;  %5964 = vrot.lane.b32.xlu0 %v11987_v13, %s14274_s24 }
 0xf13   : > { %v5658_v26 = vpop.f32.mrf.mxu0 }
 0xf14   : > { %v5659_v61 = vadd.f32 %v5658_v26, %v11982_v17 }
 0xf15   : > { %v5660_v38 = vpop.f32.mrf.mxu0 }
 0xf16   : > { %6003 = vrot.lane.b32.xlu1 %v11994_v39, %s8981_s6  ;;  %5927 = vrot.lane.b32.xlu0 %v11987_v13, %s14275_s26  ;;  %v5888_v11 = vmul.f32 0.2, %v5659_v61  ;;  %vm5878_vm5 = vcmp.ge.f32.partialorder %v5659_v61, 0.0  ;;  %v5661_v35 = vadd.f32 %v5660_v38, %v11982_v17 }
 0xf18   : > { %v5898_v27 = vsel %vm5878_vm5, %v5659_v61, %v5888_v11  ;;  %v5889_v18 = vmul.f32 0.2, %v5661_v35  ;;  %vm5879_vm4 = vcmp.ge.f32.partialorder %v5661_v35, 0.0 }
 0xf19   : > { %v12027_v53 = vmul.f32 %v5898_v27, %v11943_v4 }
 0xf1a   : > { %5966 = vrot.lane.b32.xlu1 %v11994_v39, %s14274_s24  ;;  %6199 = vrot.lane.b32.xlu0 %v11994_v39, %s8979_s4  ;;  %v5899_v42 = vsel %vm5879_vm4, %v5661_v35, %v5889_v18 }
 0xf1b   : > { %v12038_v5 = vmul.f32 %v5899_v42, %v11939_v31 }
 0xf1e   : > { %5929 = vrot.lane.b32.xlu1 %v11994_v39, %s14275_s26  ;;  %6121 = vrot.lane.b32.xlu0 %v11994_v39, %s8980_s0 }
 0xf22   : > { %6201 = vrot.lane.b32.xlu1 %v12027_v53, %s8979_s4  ;;  %6162 = vrot.lane.b32.xlu0 %v12027_v53, %s8978_s27 }
 0xf26   : > { %6123 = vrot.lane.b32.xlu1 %v12027_v53, %s8980_s0  ;;  %6083 = vrot.lane.b32.xlu0 %v12027_v53, %s8968_s5 }
 0xf2a   : > { %6045 = vrot.lane.b32.xlu1 %v12038_v5, %s14266_s29  ;;  %6043 = vrot.lane.b32.xlu0 %v12027_v53, %s14266_s29 }
 0xf2e   : > { %6007 = vrot.lane.b32.xlu1 %v12038_v5, %s8981_s6  ;;  %6005 = vrot.lane.b32.xlu0 %v12027_v53, %s8981_s6 }
 0xf32   : > { %5970 = vrot.lane.b32.xlu1 %v12038_v5, %s14274_s24  ;;  %5968 = vrot.lane.b32.xlu0 %v12027_v53, %s14274_s24 }
 0xf36   : > { %5933 = vrot.lane.b32.xlu1 %v12038_v5, %s14275_s26  ;;  %5931 = vrot.lane.b32.xlu0 %v12027_v53, %s14275_s26 }
 0xf3a   : > { %6203 = vrot.lane.b32.xlu0 %v12038_v5, %s8979_s4 }
 0xf3e   : > { %6164 = vrot.lane.b32.xlu0 %v12038_v5, %s8978_s27 }
 0xf42   : > { %6125 = vrot.lane.b32.xlu0 %v12038_v5, %s8980_s0 }
 0xf46   : > { %6085 = vrot.lane.b32.xlu0 %v12038_v5, %s8968_s5 }
 0xf51   : > { %v5729_v62 = vpop.f32.mrf.mxu0 }
 0xf52   : > { %v5730_v8 = vadd.f32 %v5729_v62, %v11982_v17 }
 0xf53   : > { %v5731_v60 = vpop.f32.mrf.mxu0 }
 0xf54   : > { %vm5880_vm9 = vcmp.ge.f32.partialorder %v5730_v8, 0.0  ;;  %v5890_v43 = vmul.f32 0.2, %v5730_v8  ;;  %v5732_v9 = vadd.f32 %v5731_v60, %v11982_v17 }
 0xf56   : > { %v5900_v40 = vsel %vm5880_vm9, %v5730_v8, %v5890_v43  ;;  %v5891_v46 = vmul.f32 0.2, %v5732_v9  ;;  %vm5881_vm5 = vcmp.ge.f32.partialorder %v5732_v9, 0.0 }
 0xf57   : > { %v12066_v21 = vmul.f32 %v5900_v40, %v11953_v57 }
 0xf58   : > { %v5901_v41 = vsel %vm5881_vm5, %v5732_v9, %v5891_v46 }
 0xf59   : > { %6205 = vrot.lane.b32.xlu1 %v12066_v21, %s8979_s4  ;;  %6047 = vrot.lane.b32.xlu0 %v12066_v21, %s14266_s29  ;;  %v12086_v48 = vmul.f32 %v5901_v41, %v11951_v33 }
 0xf5d   : > { %6166 = vrot.lane.b32.xlu1 %v12066_v21, %s8978_s27  ;;  %6009 = vrot.lane.b32.xlu0 %v12066_v21, %s8981_s6 }
 0xf61   : > { %6127 = vrot.lane.b32.xlu1 %v12066_v21, %s8980_s0  ;;  %5972 = vrot.lane.b32.xlu0 %v12066_v21, %s14274_s24 }
 0xf65   : > { %6087 = vrot.lane.b32.xlu1 %v12066_v21, %s8968_s5  ;;  %5935 = vrot.lane.b32.xlu0 %v12066_v21, %s14275_s26 }
 0xf69   : > { %v5800_v24 = vpop.f32.mrf.mxu1  ;;  %6049 = vrot.lane.b32.xlu1 %v12086_v48, %s14266_s29  ;;  %6207 = vrot.lane.b32.xlu0 %v12086_v48, %s8979_s4 }
 0xf6a   : > { %v5801_v59 = vadd.f32 %v5800_v24, %v11982_v17 }
 0xf6b   : > { %v5802_v25 = vpop.f32.mrf.mxu1 }
 0xf6c   : > { %v5892_v58 = vmul.f32 0.2, %v5801_v59  ;;  %vm5882_vm4 = vcmp.ge.f32.partialorder %v5801_v59, 0.0  ;;  %v5803_v50 = vadd.f32 %v5802_v25, %v11982_v17 }
 0xf6d   : > { %6011 = vrot.lane.b32.xlu1 %v12086_v48, %s8981_s6  ;;  %6168 = vrot.lane.b32.xlu0 %v12086_v48, %s8978_s27 }
 0xf6e   : > { %v5902_v45 = vsel %vm5882_vm4, %v5801_v59, %v5892_v58  ;;  %v5893_v37 = vmul.f32 0.2, %v5803_v50  ;;  %vm5883_vm5 = vcmp.ge.f32.partialorder %v5803_v50, 0.0 }
 0xf6f   : > { %v12108_v52 = vmul.f32 %v5902_v45, %v11963_v15 }
 0xf70   : > { %v5903_v23 = vsel %vm5883_vm5, %v5803_v50, %v5893_v37 }
 0xf71   : > { %5974 = vrot.lane.b32.xlu1 %v12086_v48, %s14274_s24  ;;  %6129 = vrot.lane.b32.xlu0 %v12086_v48, %s8980_s0  ;;  %v12152_v11 = vmul.f32 %v5903_v23, %v11961_v20 }
 0xf74   : > { %v12101_v10 = vpop.permute.xlu1 %6158  ;;  %v6198_v32 = vpop.permute.xlu0 %6197 }
 0xf75   : > { %5937 = vrot.lane.b32.xlu1 %v12086_v48, %s14275_s26  ;;  %6089 = vrot.lane.b32.xlu0 %v12086_v48, %s8968_s5 }
 0xf78   : > { %v12110_v29 = vpop.permute.xlu1 %6079  ;;  %v12112_v14 = vpop.permute.xlu0 %6119 }
 0xf79   : > { %v5871_v47 = vpop.f32.mrf.mxu0  ;;  %6209 = vrot.lane.b32.xlu1 %v12108_v52, %s8979_s4  ;;  %6051 = vrot.lane.b32.xlu0 %v12108_v52, %s14266_s29 }
 0xf7a   : > { %v5872_v36 = vadd.f32 %v5871_v47, %v11982_v17 }
 0xf7b   : > { %v5873_v61 = vpop.f32.mrf.mxu0 }
 0xf7c   : > { %v5894_v49 = vmul.f32 0.2, %v5872_v36  ;;  %v6161_v0 = vpop.permute.xlu1 %6160  ;;  %v12119_v44 = vpop.permute.xlu0 %6039  ;;  %vm5884_vm9 = vcmp.ge.f32.partialorder %v5872_v36, 0.0  ;;  %v5874_v35 = vadd.f32 %v5873_v61, %v11982_v17 }
 0xf7d   : > { %6170 = vrot.lane.b32.xlu1 %v12108_v52, %s8978_s27  ;;  %6013 = vrot.lane.b32.xlu0 %v12108_v52, %s8981_s6  ;;  %v6178_v59 = vsel %vm5024_vm13, %v12101_v10, %v6161_v0 }
 0xf7e   : > { %v5904_v54 = vsel %vm5884_vm9, %v5872_v36, %v5894_v49  ;;  %v5895_v62 = vmul.f32 0.2, %v5874_v35  ;;  %vm5885_vm4 = vcmp.ge.f32.partialorder %v5874_v35, 0.0  ;;  %vm14276_vm9 = vcmask 760832   ;;  %v12241_v49 = vld [vmem:[%s14188_s18] sm:$0xff] }
 0xf7f   : > { %v12133_v55 = vmul.f32 %v5904_v54, %v11976_v30  ;;  %vm14277_vm5 = vmmov %vm14276_vm9  ;;  %v5917_v54 = vld [vmem:[%s14189_s19] sm:$0xff] }
 0xf80   : > { %v6082_v34 = vpop.permute.xlu1 %6081  ;;  %v12126_v22 = vpop.permute.xlu0 %6001  ;;  %v5905_v43 = vsel %vm5885_vm4, %v5874_v35, %v5895_v62  ;;  %vm14278_vm4 = vmmov %vm14277_vm5 }
 0xf81   : > { %6131 = vrot.lane.b32.xlu1 %v12108_v52, %s8980_s0  ;;  %5976 = vrot.lane.b32.xlu0 %v12108_v52, %s14274_s24  ;;  %v12181_v46 = vmul.f32 %v5905_v43, %v11973_v51  ;;  %v6099_v10 = vsel %vm746_vm7, %v12110_v29, %v6082_v34 }
 0xf84   : > { %v12135_v6 = vpop.permute.xlu1 %6041  ;;  %v12137_v7 = vpop.permute.xlu0 %5964 }
 0xf85   : > { %6091 = vrot.lane.b32.xlu1 %v12108_v52, %s8968_s5  ;;  %6135 = vrot.lane.b32.xlu0 %v12133_v55, %s8980_s0 }
 0xf88   : > { %v12143_v28 = vpop.permute.xlu1 %6003  ;;  %v12145_v26 = vpop.permute.xlu0 %5927 }
 0xf89   : > { %6213 = vrot.lane.b32.xlu1 %v12133_v55, %s8979_s4  ;;  %6055 = vrot.lane.b32.xlu0 %v12133_v55, %s14266_s29  ;;  %v6019_v29 = vsel %vm4861_vm2, %v12126_v22, %v12143_v28 }
 0xf8c   : > { %v12154_v38 = vpop.permute.xlu1 %5966  ;;  %v6200_v27 = vpop.permute.xlu0 %6199 }
 0xf8d   : > { %6174 = vrot.lane.b32.xlu1 %v12133_v55, %s8978_s27  ;;  %6211 = vrot.lane.b32.xlu0 %v12152_v11, %s8979_s4  ;;  %v6217_v60 = vsel %vm14277_vm5, %v6198_v32, %v6200_v27  ;;  %vm14280_vm5 = vmmov %vm14278_vm4 }
 0xf90   : > { %v12161_v18 = vpop.permute.xlu1 %5929  ;;  %v6122_v42 = vpop.permute.xlu0 %6121 }
 0xf91   : > { %6095 = vrot.lane.b32.xlu1 %v12133_v55, %s8968_s5  ;;  %6172 = vrot.lane.b32.xlu0 %v12152_v11, %s8978_s27  ;;  %v6139_v45 = vsel %vm4983_vm8, %v12112_v14, %v6122_v42  ;;  %v6059_v14 = vsel %vm735_vm1, %v12119_v44, %v12135_v6  ;;  %v5945_v36 = vsel %vm4785_vm14, %v12145_v26, %v12161_v18 }
 0xf94   : > { %v12167_v8 = vpop.permute.xlu1 %6201  ;;  %v12169_v17 = vpop.permute.xlu0 %6162 }
 0xf95   : > { %6133 = vrot.lane.b32.xlu1 %v12152_v11, %s8980_s0  ;;  %6093 = vrot.lane.b32.xlu0 %v12152_v11, %s8968_s5  ;;  %v6218_v40 = vsel %vm14276_vm9, %v6200_v27, %v12167_v8  ;;  %v6179_v9 = vsel %vm5024_vm13, %v6161_v0, %v12169_v17  ;;  %vm14279_vm9 = vmmov %vm14278_vm4 }
 0xf96   : > { %6258 = vmatprep.subr.mxu1 %v6218_v40 }
 0xf97   : > { %6259 = vmatpush1.msra.mxu1 %v6217_v60 }
 0xf98   : > { %v12183_v41 = vpop.permute.xlu1 %6123  ;;  %6260 = vmatprep.subr.mxu1 %v6179_v9  ;;  %v12185_v24 = vpop.permute.xlu0 %6083 }
 0xf99   : > { %6261 = vmatpush1.msra.mxu1 %v6178_v59  ;;  %6053 = vrot.lane.b32.xlu1 %v12152_v11, %s14266_s29  ;;  %v6140_v58 = vsel %vm4983_vm8, %v6122_v42, %v12183_v41  ;;  %v6100_v32 = vsel %vm746_vm7, %v6082_v34, %v12185_v24 }
 0xf9a   : > { %6215 = vrot.lane.b32.xlu0 %v12181_v46, %s8979_s4  ;;  %6262 = vmatprep.subr.mxu1 %v6140_v58 }
 0xf9b   : > { %6263 = vmatpush1.msra.mxu1 %v6139_v45 }
 0xf9c   : > { %6264 = vmatprep.subr.mxu1 %v6100_v32  ;;  %v12201_v47 = vpop.permute.xlu0 %6043  ;;  %v12259_v25 = vpop.permute.xlu1 %6045 }
 0xf9d   : > { %6265 = vmatpush1.msra.mxu1 %v6099_v10  ;;  %6015 = vrot.lane.b32.xlu1 %v12152_v11, %s8981_s6 }
 0xf9e   : > { %6137 = vrot.lane.b32.xlu0 %v12181_v46, %s8980_s0  ;;  %6266 = vmatprep.subr.mxu1 %v11994_v39  ;;  %v5982_v39 = vsel %vm4823_vm6, %v12137_v7, %v12154_v38 }
 0xf9f   : > { %6267 = vmatpush1.msra.mxu1 %v11987_v13 }
 0xfa0   : > { %6268 = vmatprep.subr.mxu1 %v6059_v14  ;;  %v12222_v13 = vpop.permute.xlu0 %6005  ;;  %v12266_v34 = vpop.permute.xlu1 %6007 }
 0xfa1   : > { %8684 = vmatpush1.msk.msra.mxu1 %vm10166_vm12, %v12119_v44  ;;  %5978 = vrot.lane.b32.xlu1 %v12152_v11, %s14274_s24 }
 0xfa2   : > { %6017 = vrot.lane.b32.xlu0 %v12133_v55, %s8981_s6  ;;  %6270 = vmatprep.subr.mxu1 %v6019_v29 }
 0xfa3   : > { %8686 = vmatpush1.msk.msra.mxu1 %vm11707_vm15, %v12126_v22 }
 0xfa4   : > { %6272 = vmatprep.subr.mxu1 %v5982_v39  ;;  %v5969_v0 = vpop.permute.xlu0 %5968  ;;  %v12268_v37 = vpop.permute.xlu1 %5970  ;;  %v6060_v39 = vsel %vm735_vm1, %v12135_v6, %v12201_v47 }
 0xfa5   : > { %8688 = vmatpush1.msk.msra.mxu1 %vm11725_vm10, %v12137_v7  ;;  %6176 = vrot.lane.b32.xlu1 %v12181_v46, %s8978_s27  ;;  %v5983_v6 = vsel %vm4823_vm6, %v12154_v38, %v5969_v0 }
 0xfa6   : > { %5941 = vrot.lane.b32.xlu0 %v12152_v11, %s14275_s26  ;;  %6274 = vmatprep.subr.mxu1 %v5945_v36 }
 0xfa7   : > { %8690 = vmatpush1.msk.msra.mxu1 %vm11739_vm0, %v12145_v26 }
 0xfa8   : > { %8691 = vmatmul.mubr.msk.f32.vlgmr.msra.gmra.mxu1 %vm3451_vm3, %v12241_v49  ;;  %v5932_v44 = vpop.permute.xlu0 %5931  ;;  %v12270_v23 = vpop.permute.xlu1 %5933 }
 0xfa9   : > { %6097 = vrot.lane.b32.xlu1 %v12181_v46, %s8968_s5  ;;  %6450 = vmatprep.mubr.f32.mxu1 %v8971_v3 }
 0xfaa   : > { %5943 = vrot.lane.b32.xlu0 %v12133_v55, %s14275_s26 }
 0xfac   : > { %v6204_v50 = vpop.permute.xlu0 %6203 }
 0xfad   : > { %6057 = vrot.lane.b32.xlu1 %v12181_v46, %s14266_s29  ;;  %v6219_v42 = vsel %vm14279_vm9, %v12167_v8, %v6204_v50  ;;  %vm14281_vm9 = vmmov %vm14278_vm4 }
 0xfb0   : > { %v6165_v22 = vpop.permute.xlu0 %6164 }
 0xfb1   : > { %5939 = vrot.lane.b32.xlu1 %v12108_v52, %s14275_s26  ;;  %v6180_v60 = vsel %vm5024_vm13, %v12169_v17, %v6165_v22 }
 0xfb4   : > { %v6126_v7 = vpop.permute.xlu0 %6125 }
 0xfb5   : > { %5980 = vrot.lane.b32.xlu1 %v12133_v55, %s14274_s24  ;;  %v6141_v8 = vsel %vm4983_vm8, %v12183_v41, %v6126_v7  ;;  %v6061_v41 = vsel %vm735_vm1, %v12201_v47, %v12259_v25  ;;  %v5947_v47 = vsel %vm4785_vm14, %v5932_v44, %v12270_v23 }
 0xfb8   : > { %v6086_v26 = vpop.permute.xlu0 %6085 }
 0xfb9   : > { %6238 = vperm.xlu1 %8951, %v5917_v54   ;;  %v6101_v17 = vsel %vm746_vm7, %v12185_v24, %v6086_v26  ;;  %v6021_v24 = vsel %vm4861_vm2, %v12222_v13, %v12266_v34 }
 0xfcb   : > { %v6206_v61 = vpop.permute.xlu1 %6205  ;;  %v12272_v27 = vpop.permute.xlu0 %6047 }
 0xfcc   : > { %v6220_v35 = vsel %vm14278_vm4, %v6204_v50, %v6206_v61  ;;  %v5984_v50 = vsel %vm4823_vm6, %v5969_v0, %v12268_v37 }
 0xfcd   : > { %6329 = vmatprep.subr.mxu0 %v6220_v35 }
 0xfce   : > { %6330 = vmatpush1.msra.mxu0 %v6219_v42 }
 0xfcf   : > { %v6167_v62 = vpop.permute.xlu1 %6166  ;;  %v12277_v43 = vpop.permute.xlu0 %6009 }
 0xfd0   : > { %v6181_v40 = vsel %vm5024_vm13, %v6165_v22, %v6167_v62 }
 0xfd1   : > { %6331 = vmatprep.subr.mxu0 %v6181_v40 }
 0xfd2   : > { %6332 = vmatpush1.msra.mxu0 %v6180_v60 }
 0xfd3   : > { %v6128_v9 = vpop.permute.xlu1 %6127  ;;  %v12282_v59 = vpop.permute.xlu0 %5972 }
 0xfd4   : > { %v6142_v58 = vsel %vm4983_vm8, %v6126_v7, %v6128_v9  ;;  %v5946_v7 = vsel %vm4785_vm14, %v12161_v18, %v5932_v44 }
 0xfd5   : > { %6333 = vmatprep.subr.mxu0 %v6142_v58 }
 0xfd6   : > { %6334 = vmatpush1.msra.mxu0 %v6141_v8 }
 0xfd7   : > { %v6088_v45 = vpop.permute.xlu1 %6087  ;;  %v12287_v32 = vpop.permute.xlu0 %5935 }
 0xfd8   : > { %v6102_v10 = vsel %vm746_vm7, %v6086_v26, %v6088_v45 }
 0xfd9   : > { %6335 = vmatprep.subr.mxu0 %v6102_v10 }
 0xfda   : > { %6336 = vmatpush1.msra.mxu0 %v6101_v17 }
 0xfdb   : > { %v12292_v14 = vpop.permute.xlu1 %6049  ;;  %6337 = vmatprep.subr.mxu0 %v12038_v5  ;;  %v6208_v29 = vpop.permute.xlu0 %6207 }
 0xfdc   : > { %6338 = vmatpush1.msra.mxu0 %v12027_v53  ;;  %v6020_v53 = vsel %vm4861_vm2, %v12143_v28, %v12222_v13  ;;  %v6221_v35 = vsel %vm14278_vm4, %v6206_v61, %v6208_v29 }
 0xfdd   : > { %6339 = vmatprep.subr.mxu0 %v6061_v41 }
 0xfde   : > { %6340 = vmatpush1.msra.mxu0 %v6060_v39 }
 0xfdf   : > { %v12305_v36 = vpop.permute.xlu1 %6011  ;;  %6341 = vmatprep.subr.mxu0 %v6021_v24  ;;  %v6169_v5 = vpop.permute.xlu0 %6168  ;;  %v6062_v24 = vsel %vm735_vm1, %v12259_v25, %v12272_v27 }
 0xfe0   : > { %6342 = vmatpush1.msra.mxu0 %v6020_v53  ;;  %v6182_v40 = vsel %vm5024_vm13, %v6167_v62, %v6169_v5 }
 0xfe1   : > { %6343 = vmatprep.subr.mxu0 %v5984_v50 }
 0xfe2   : > { %6344 = vmatpush1.msra.mxu0 %v5983_v6 }
 0xfe3   : > { %v12316_v54 = vpop.permute.xlu1 %5974  ;;  %6345 = vmatprep.subr.mxu0 %v5947_v47  ;;  %v6130_v22 = vpop.permute.xlu0 %6129  ;;  %v5948_v47 = vsel %vm4785_vm14, %v12270_v23, %v12287_v32 }
 0xfe4   : > { %6346 = vmatpush1.msra.mxu0 %v5946_v7  ;;  %v6143_v10 = vsel %vm4983_vm8, %v6128_v9, %v6130_v22  ;;  %v6063_v9 = vsel %vm735_vm1, %v12272_v27, %v12292_v14  ;;  %v5986_v50 = vsel %vm4823_vm6, %v12282_v59, %v12316_v54  ;;  %v5985_v27 = vsel %vm4823_vm6, %v12268_v37, %v12282_v59 }
 0xfe5   : > { %8692 = vmatmul.mubr.msk.f32.vlgmr.msra.gmra.mxu0 %vm3451_vm3, %v12241_v49 }
 0xfe6   : > { %6521 = vmatprep.mubr.f32.mxu0 %v8971_v3 }
 0xfe7   : > { %v12323_v28 = vpop.permute.xlu1 %5937  ;;  %v6090_v38 = vpop.permute.xlu0 %6089 }
 0xfe8   : > { %v6103_v41 = vsel %vm746_vm7, %v6088_v45, %v6090_v38  ;;  %v6023_v45 = vsel %vm4861_vm2, %v12277_v43, %v12305_v36 }
 0xfeb   : > { %v6210_v13 = vpop.permute.xlu1 %6209  ;;  %v12325_v0 = vpop.permute.xlu0 %6051 }
 0xfec   : > { %v6222_v26 = vsel %vm14280_vm5, %v6208_v29, %v6210_v13  ;;  %vm14282_vm5 = vmmov %vm14278_vm4 }
 0xfed   : > { %6400 = vmatprep.subr.mxu1 %v6222_v26 }
 0xfee   : > { %6401 = vmatpush1.msra.mxu1 %v6221_v35 }
 0xfef   : > { %v6171_v42 = vpop.permute.xlu1 %6170  ;;  %v12329_v18 = vpop.permute.xlu0 %6013 }
 0xff0   : > { %v6183_v44 = vsel %vm5024_vm13, %v6169_v5, %v6171_v42 }
 0xff1   : > { %6402 = vmatprep.subr.mxu1 %v6183_v44 }
 0xff2   : > { %6403 = vmatpush1.msra.mxu1 %v6182_v40 }
 0xff3   : > { %v6132_v60 = vpop.permute.xlu1 %6131  ;;  %v12333_v58 = vpop.permute.xlu0 %5976 }
 0xff4   : > { %v6144_v8 = vsel %vm4983_vm8, %v6130_v22, %v6132_v60 }
 0xff5   : > { %6404 = vmatprep.subr.mxu1 %v6144_v8 }
 0xff6   : > { %6405 = vmatpush1.msra.mxu1 %v6143_v10 }
 0xff7   : > { %v6092_v61 = vpop.permute.xlu1 %6091  ;;  %v12337_v17 = vpop.permute.xlu0 %6135 }
 0xff8   : > { %v6104_v29 = vsel %vm746_vm7, %v6090_v38, %v6092_v61 }
 0xff9   : > { %6406 = vmatprep.subr.mxu1 %v6104_v29 }
 0xffa   : > { %6407 = vmatpush1.msra.mxu1 %v6103_v41 }
 0xffb   : > { %v6214_v62 = vpop.permute.xlu1 %6213  ;;  %6408 = vmatprep.subr.mxu1 %v12086_v48  ;;  %v12342_v39 = vpop.permute.xlu0 %6055 }
 0xffc   : > { %6409 = vmatpush1.msra.mxu1 %v12066_v21  ;;  %v6022_v21 = vsel %vm4861_vm2, %v12266_v34, %v12277_v43  ;;  %v5949_v34 = vsel %vm4785_vm14, %v12287_v32, %v12323_v28 }
 0xffd   : > { %6410 = vmatprep.subr.mxu1 %v6063_v9 }
 0xffe   : > { %6411 = vmatpush1.msra.mxu1 %v6062_v24 }
 0xfff   : > { %v6175_v5 = vpop.permute.xlu1 %6174  ;;  %6412 = vmatprep.subr.mxu1 %v6023_v45  ;;  %v6212_v48 = vpop.permute.xlu0 %6211 }
0x1000   : > { %v6223_v53 = vsel %vm14281_vm9, %v6210_v13, %v6212_v48  ;;  %6413 = vmatpush1.msra.mxu1 %v6022_v21  ;;  %v6224_v25 = vsel %vm14282_vm5, %v6212_v48, %v6214_v62  ;;  %vm14283_vm9 = vcmask 793600   ;;  %vm14284_vm5 = vcmask 809984  }
0x1001   : > { %6414 = vmatprep.subr.mxu1 %v5986_v50  ;;  %6471 = vmatprep.subr.mxu0 %v6224_v25 }
0x1002   : > { %6415 = vmatpush1.msra.mxu1 %v5985_v27  ;;  %6472 = vmatpush1.msra.mxu0 %v6223_v53 }
0x1003   : > { %v6096_v43 = vpop.permute.xlu1 %6095  ;;  %6416 = vmatprep.subr.mxu1 %v5949_v34  ;;  %v6173_v6 = vpop.permute.xlu0 %6172 }
0x1004   : > { %v6184_v22 = vsel %vm5024_vm13, %v6171_v42, %v6173_v6  ;;  %6417 = vmatpush1.msra.mxu1 %v5948_v47  ;;  %v6185_v7 = vsel %vm5024_vm13, %v6173_v6, %v6175_v5 }
0x1005   : > { %8693 = vmatmul.mubr.msk.f32.vlgmr.msra.gmra.mxu1 %vm3451_vm3, %v12241_v49  ;;  %6473 = vmatprep.subr.mxu0 %v6185_v7 }
0x1006   : > { %6474 = vmatpush1.msra.mxu0 %v6184_v22  ;;  %6542 = vmatprep.subr.mxu1 %v8971_v3 }
0x1007   : > { %v6134_v37 = vpop.permute.xlu1 %6133  ;;  %v6094_v59 = vpop.permute.xlu0 %6093  ;;  %6592 = vmatprep.mubr.f32.mxu1 %v8971_v3 }
0x1008   : > { %v6145_v38 = vsel %vm4983_vm8, %v6132_v60, %v6134_v37  ;;  %v6146_v23 = vsel %vm4983_vm8, %v6134_v37, %v12337_v17  ;;  %v6106_v32 = vsel %vm746_vm7, %v6094_v59, %v6096_v43  ;;  %v6105_v13 = vsel %vm746_vm7, %v6092_v61, %v6094_v59 }
0x1009   : > { %6475 = vmatprep.subr.mxu0 %v6146_v23  ;;  %v6064_v60 = vsel %vm735_vm1, %v12292_v14, %v12325_v0  ;;  %v5987_v14 = vsel %vm4823_vm6, %v12316_v54, %v12333_v58 }
0x100a   : > { %6476 = vmatpush1.msra.mxu0 %v6145_v38 }
0x100b   : > { %v6054_v26 = vpop.permute.xlu1 %6053  ;;  %6477 = vmatprep.subr.mxu0 %v6106_v32 }
0x100c   : > { %v6216_v35 = vpop.permute.xlu0 %6215  ;;  %6478 = vmatpush1.msra.mxu0 %v6105_v13  ;;  %v6065_v44 = vsel %vm735_vm1, %v12325_v0, %v6054_v26 }
0x100d   : > { %v6225_v42 = vsel %vm14278_vm4, %v6214_v62, %v6216_v35  ;;  %6479 = vmatprep.subr.mxu0 %v12152_v11  ;;  %vm14285_vm4 = vcmask 23552  }
0x100e   : > { %8695 = vmatpush1.msk.msra.mxu1 %vm14283_vm9, %v6225_v42  ;;  %6480 = vmatpush1.msra.mxu0 %v12108_v52  ;;  %v6024_v52 = vsel %vm4861_vm2, %v12305_v36, %v12329_v18 }
0x100f   : > { %v6016_v40 = vpop.permute.xlu1 %6015  ;;  %6481 = vmatprep.subr.mxu0 %v6065_v44  ;;  %6544 = vmatprep.subr.mxu1 %v8971_v3 }
0x1010   : > { %6482 = vmatpush1.msra.mxu0 %v6064_v60  ;;  %v6025_v8 = vsel %vm4861_vm2, %v12329_v18, %v6016_v40  ;;  %v6138_v61 = vpop.permute.xlu0 %6137 }
0x1011   : > { %6483 = vmatprep.subr.mxu0 %v6025_v8  ;;  %v6147_v36 = vsel %vm4983_vm8, %v12337_v17, %v6138_v61  ;;  %v6066_v17 = vsel %vm735_vm1, %v6054_v26, %v12342_v39 }
0x1012   : > { %6484 = vmatpush1.msra.mxu0 %v6024_v52 }
0x1013   : > { %v5979_v11 = vpop.permute.xlu1 %5978 }
0x1014   : > { %v5988_v10 = vsel %vm4823_vm6, %v12333_v58, %v5979_v11  ;;  %v6018_v18 = vpop.permute.xlu0 %6017 }
0x1015   : > { %6485 = vmatprep.subr.mxu0 %v5988_v10  ;;  %v6026_v24 = vsel %vm4861_vm2, %v6016_v40, %v6018_v18 }
0x1016   : > { %6486 = vmatpush1.msra.mxu0 %v5987_v14 }
0x1017   : > { %v6177_v0 = vpop.permute.xlu1 %6176 }
0x1018   : > { %v6186_v29 = vsel %vm5024_vm13, %v6175_v5, %v6177_v0  ;;  %v5942_v9 = vpop.permute.xlu0 %5941 }
0x1019   : > { %8696 = vmatpush1.msk.msra.mxu1 %vm5043_vm11, %v6186_v29 }
0x101a   : > { %6546 = vmatprep.subr.mxu1 %v8971_v3 }
0x101b   : > { %v6098_v41 = vpop.permute.xlu1 %6097  ;;  %8697 = vmatpush1.msk.msra.mxu1 %vm14284_vm5, %v6147_v36 }
0x101c   : > { %v6107_v62 = vsel %vm746_vm7, %v6096_v43, %v6098_v41  ;;  %8698 = vmatprep.subr.msk.mxu1 %vm14285_vm4, %v6098_v41 }
0x101d   : > { %6549 = vmatpush1.msra.mxu1 %v6107_v62 }
0x101e   : > { %6550 = vmatprep.subr.mxu1 %v12181_v46 }
0x101f   : > { %v6058_v54 = vpop.permute.xlu1 %6057  ;;  %6551 = vmatpush1.msra.mxu1 %v12133_v55  ;;  %v5944_v55 = vpop.permute.xlu0 %5943 }
0x1020   : > { %v6067_v58 = vsel %vm735_vm1, %v12342_v39, %v6058_v54  ;;  %v5952_v21 = vsel %vm4785_vm14, %v5942_v9, %v5944_v55 }
0x1021   : > { %6552 = vmatprep.subr.mxu1 %v6067_v58 }
0x1022   : > { %6553 = vmatpush1.msra.mxu1 %v6066_v17 }
0x1023   : > { %v5940_v45 = vpop.permute.xlu1 %5939  ;;  %6554 = vmatprep.subr.mxu1 %v6018_v18 }
0x1024   : > { %v5950_v5 = vsel %vm4785_vm14, %v12323_v28, %v5940_v45  ;;  %6555 = vmatpush1.msra.mxu1 %v6026_v24  ;;  %v5951_v46 = vsel %vm4785_vm14, %v5940_v45, %v5942_v9 }
0x1025   : > { %6487 = vmatprep.subr.mxu0 %v5951_v46 }
0x1026   : > { %6488 = vmatpush1.msra.mxu0 %v5950_v5 }
0x1027   : > { %v5981_v48 = vpop.permute.xlu1 %5980  ;;  %8694 = vmatmul.mubr.msk.f32.vlgmr.msra.gmra.mxu0 %vm3451_vm3, %v12241_v49 }
0x1028   : > { %v5989_v39 = vsel %vm4823_vm6, %v5979_v11, %v5981_v48  ;;  %6556 = vmatprep.subr.mxu1 %v5981_v48  ;;  %7031 = vmatprep.mubr.f32.mxu0 %v8971_v3 }
0x1029   : > { %6557 = vmatpush1.msra.mxu1 %v5989_v39 }
0x102a   : > { %6558 = vmatprep.subr.mxu1 %v5944_v55 }
0x102b   : > { %6559 = vmatpush1.msra.mxu1 %v5952_v21 }
0x102c   : > { %8699 = vmatmul.mubr.msk.f32.vlgmr.msra.gmra.mxu1 %vm3451_vm3, %v12241_v49 }
0x102d   : > { %7102 = vmatprep.mubr.f32.mxu1 %v8971_v3 }
0x1034   : > { %v12428_v28 = vpop.permute.xlu1 %6238 }
0x1068   : > { %v6310_v53 = vpop.f32.mrf.mxu1 }
0x1069   : > { %v6311_v50 = vadd.f32 %v6310_v53, %v12428_v28 }
0x106a   : > { %v6312_v25 = vpop.f32.mrf.mxu1 }
0x106b   : > { %vm6599_vm9 = vcmp.ge.f32.partialorder %v6311_v50, 0.0  ;;  %v6609_v27 = vmul.f32 0.2, %v6311_v50  ;;  %v6313_v34 = vadd.f32 %v6312_v25, %v12428_v28 }
0x106d   : > { %v6619_v43 = vsel %vm6599_vm9, %v6311_v50, %v6609_v27  ;;  %vm6600_vm5 = vcmp.ge.f32.partialorder %v6313_v34, 0.0  ;;  %v6610_v6 = vmul.f32 0.2, %v6313_v34 }
0x106e   : > { %v12433_v47 = vmul.f32 %v6619_v43, %v11929_v1 }
0x106f   : > { %v6620_v22 = vsel %vm6600_vm5, %v6313_v34, %v6610_v6 }
0x1070   : > { %6881 = vrot.lane.b32.xlu1 %v12433_v47, %s8978_s27  ;;  %6920 = vrot.lane.b32.xlu0 %v12433_v47, %s8979_s4  ;;  %v12440_v49 = vmul.f32 %v6620_v22, %v11926_v63 }
0x1074   : > { %6726 = vrot.lane.b32.xlu1 %v12440_v49, %s8981_s6  ;;  %6764 = vrot.lane.b32.xlu0 %v12440_v49, %s14266_s29 }
0x1078   : > { %6652 = vrot.lane.b32.xlu1 %v12440_v49, %s14275_s26  ;;  %6689 = vrot.lane.b32.xlu0 %v12440_v49, %s14274_s24 }
0x107c   : > { %6883 = vrot.lane.b32.xlu1 %v12440_v49, %s8978_s27  ;;  %6922 = vrot.lane.b32.xlu0 %v12440_v49, %s8979_s4 }
0x1080   : > { %6844 = vrot.lane.b32.xlu0 %v12440_v49, %s8980_s0 }
0x10a5   : > { %v6381_v7 = vpop.f32.mrf.mxu0 }
0x10a6   : > { %v6382_v37 = vadd.f32 %v6381_v7, %v12428_v28 }
0x10a7   : > { %v6383_v32 = vpop.f32.mrf.mxu0 }
0x10a8   : > { %vm6601_vm4 = vcmp.ge.f32.partialorder %v6382_v37, 0.0  ;;  %v6611_v59 = vmul.f32 0.2, %v6382_v37  ;;  %v6384_v13 = vadd.f32 %v6383_v32, %v12428_v28 }
0x10aa   : > { %v6621_v38 = vsel %vm6601_vm4, %v6382_v37, %v6611_v59  ;;  %v6612_v26 = vmul.f32 0.2, %v6384_v13  ;;  %vm6602_vm9 = vcmp.ge.f32.partialorder %v6384_v13, 0.0 }
0x10ab   : > { %v12458_v23 = vmul.f32 %v6621_v38, %v11943_v4 }
0x10ac   : > { %v6622_v35 = vsel %vm6602_vm9, %v6384_v13, %v6612_v26 }
0x10ad   : > { %6885 = vrot.lane.b32.xlu1 %v12458_v23, %s8978_s27  ;;  %6924 = vrot.lane.b32.xlu0 %v12458_v23, %s8979_s4  ;;  %v12478_v42 = vmul.f32 %v6622_v35, %v11939_v31 }
0x10b1   : > { %6806 = vrot.lane.b32.xlu1 %v12458_v23, %s8968_s5  ;;  %6846 = vrot.lane.b32.xlu0 %v12458_v23, %s8980_s0 }
0x10b5   : > { %6728 = vrot.lane.b32.xlu1 %v12458_v23, %s8981_s6  ;;  %6766 = vrot.lane.b32.xlu0 %v12458_v23, %s14266_s29 }
0x10b9   : > { %6654 = vrot.lane.b32.xlu1 %v12458_v23, %s14275_s26  ;;  %6691 = vrot.lane.b32.xlu0 %v12458_v23, %s14274_s24 }
0x10bd   : > { %6887 = vrot.lane.b32.xlu1 %v12478_v42, %s8978_s27  ;;  %6926 = vrot.lane.b32.xlu0 %v12478_v42, %s8979_s4 }
0x10c1   : > { %6808 = vrot.lane.b32.xlu1 %v12478_v42, %s8968_s5  ;;  %6848 = vrot.lane.b32.xlu0 %v12478_v42, %s8980_s0 }
0x10c5   : > { %6768 = vrot.lane.b32.xlu1 %v12478_v42, %s14266_s29  ;;  %6730 = vrot.lane.b32.xlu0 %v12478_v42, %s8981_s6  ;;  %v6452_v44 = vpop.f32.mrf.mxu1 }
0x10c6   : > { %v6453_v40 = vadd.f32 %v6452_v44, %v12428_v28 }
0x10c7   : > { %v6454_v11 = vpop.f32.mrf.mxu1 }
0x10c8   : > { %vm6603_vm5 = vcmp.ge.f32.partialorder %v6453_v40, 0.0  ;;  %v6613_v60 = vmul.f32 0.2, %v6453_v40  ;;  %v6455_v14 = vadd.f32 %v6454_v11, %v12428_v28 }
0x10c9   : > { %6693 = vrot.lane.b32.xlu1 %v12478_v42, %s14274_s24  ;;  %6656 = vrot.lane.b32.xlu0 %v12478_v42, %s14275_s26 }
0x10ca   : > { %v6623_v8 = vsel %vm6603_vm5, %v6453_v40, %v6613_v60  ;;  %v6614_v18 = vmul.f32 0.2, %v6455_v14  ;;  %vm6604_vm9 = vcmp.ge.f32.partialorder %v6455_v14, 0.0 }
0x10cb   : > { %v12498_v52 = vmul.f32 %v6623_v8, %v11953_v57 }
0x10cc   : > { %v6624_v62 = vsel %vm6604_vm9, %v6455_v14, %v6614_v18  ;;  %vm14286_vm9 = vcmask 760832  }
0x10cd   : > { %6889 = vrot.lane.b32.xlu0 %v12498_v52, %s8978_s27  ;;  %6928 = vrot.lane.b32.xlu1 %v12498_v52, %s8979_s4  ;;  %v12523_v58 = vmul.f32 %v6624_v62, %v11951_v33 }
0x10d1   : > { %6810 = vrot.lane.b32.xlu0 %v12498_v52, %s8968_s5  ;;  %6850 = vrot.lane.b32.xlu1 %v12498_v52, %s8980_s0 }
0x10e2   : > { %v6921_v46 = vpop.permute.xlu0 %6920  ;;  %v6882_v48 = vpop.permute.xlu1 %6881 }
0x10e6   : > { %v12549_v39 = vpop.permute.xlu0 %6764  ;;  %v12558_v50 = vpop.permute.xlu1 %6726 }
0x10e7   : > { %v6523_v10 = vpop.f32.mrf.mxu0 }
0x10e8   : > { %v6524_v61 = vadd.f32 %v6523_v10, %v12428_v28 }
0x10e9   : > { %v6525_v41 = vpop.f32.mrf.mxu0 }
0x10ea   : > { %vm6605_vm4 = vcmp.ge.f32.partialorder %v6524_v61, 0.0  ;;  %v6615_v0 = vmul.f32 0.2, %v6524_v61  ;;  %v6526_v54 = vadd.f32 %v6525_v41, %v12428_v28  ;;  %v12560_v25 = vpop.permute.xlu0 %6689  ;;  %v12570_v27 = vpop.permute.xlu1 %6652 }
0x10ec   : > { %v6625_v29 = vsel %vm6605_vm4, %v6524_v61, %v6615_v0  ;;  %v6616_v17 = vmul.f32 0.2, %v6526_v54  ;;  %vm6606_vm5 = vcmp.ge.f32.partialorder %v6526_v54, 0.0  ;;  %v6594_v45 = vpop.f32.mrf.mxu1 }
0x10ed   : > { %v12511_v36 = vmul.f32 %v6625_v29, %v11963_v15  ;;  %v6595_v5 = vadd.f32 %v6594_v45, %v12428_v28 }
0x10ee   : > { %v6626_v9 = vsel %vm6606_vm5, %v6526_v54, %v6616_v17  ;;  %v6923_v34 = vpop.permute.xlu0 %6922  ;;  %v6884_v43 = vpop.permute.xlu1 %6883  ;;  %vm14287_vm5 = vmmov %vm14286_vm9 }
0x10ef   : > { %6893 = vrot.lane.b32.xlu1 %v12511_v36, %s8978_s27  ;;  %6932 = vrot.lane.b32.xlu0 %v12511_v36, %s8979_s4  ;;  %v12534_v24 = vmul.f32 %v6626_v9, %v11961_v20  ;;  %v6617_v55 = vmul.f32 0.2, %v6595_v5  ;;  %vm6607_vm4 = vcmp.ge.f32.partialorder %v6595_v5, 0.0  ;;  %v6940_v59 = vsel %vm14287_vm5, %v6921_v46, %v6923_v34  ;;  %v6596_v60 = vpop.f32.mrf.mxu1 }
0x10f0   : > { %v6901_v26 = vsel %vm5024_vm13, %v6882_v48, %v6884_v43  ;;  %v6597_v10 = vadd.f32 %v6596_v60, %v12428_v28 }
0x10f1   : > { %v6627_v21 = vsel %vm6607_vm4, %v6595_v5, %v6617_v55 }
0x10f2   : > { %v12556_v53 = vmul.f32 %v6627_v21, %v11976_v30  ;;  %v12576_v6 = vpop.permute.xlu0 %6844  ;;  %v6618_v0 = vmul.f32 0.2, %v6597_v10  ;;  %vm6608_vm4 = vcmp.ge.f32.partialorder %v6597_v10, 0.0 }
0x10f3   : > { %6814 = vrot.lane.b32.xlu1 %v12511_v36, %s8968_s5  ;;  %6854 = vrot.lane.b32.xlu0 %v12511_v36, %s8980_s0 }
0x10f4   : > { %v6628_v41 = vsel %vm6608_vm4, %v6597_v10, %v6618_v0  ;;  %vm14289_vm4 = vmmov %vm14287_vm5 }
0x10f5   : > { %v12630_v54 = vmul.f32 %v6628_v41, %v11973_v51 }
0x10f7   : > { %6772 = vrot.lane.b32.xlu1 %v12523_v58, %s14266_s29  ;;  %6774 = vrot.lane.b32.xlu0 %v12511_v36, %s14266_s29 }
0x10fb   : > { %6736 = vrot.lane.b32.xlu1 %v12511_v36, %s8981_s6  ;;  %6734 = vrot.lane.b32.xlu0 %v12523_v58, %s8981_s6 }
0x10ff   : > { %6895 = vrot.lane.b32.xlu1 %v12534_v24, %s8978_s27  ;;  %6699 = vrot.lane.b32.xlu0 %v12511_v36, %s14274_s24 }
0x1103   : > { %6816 = vrot.lane.b32.xlu1 %v12534_v24, %s8968_s5  ;;  %6934 = vrot.lane.b32.xlu0 %v12534_v24, %s8979_s4 }
0x1107   : > { %6776 = vrot.lane.b32.xlu1 %v12534_v24, %s14266_s29  ;;  %6856 = vrot.lane.b32.xlu0 %v12534_v24, %s8980_s0 }
0x110b   : > { %6701 = vrot.lane.b32.xlu1 %v12534_v24, %s14274_s24  ;;  %6738 = vrot.lane.b32.xlu0 %v12534_v24, %s8981_s6 }
0x110f   : > { %6897 = vrot.lane.b32.xlu0 %v12556_v53, %s8978_s27  ;;  %6936 = vrot.lane.b32.xlu1 %v12556_v53, %s8979_s4 }
0x1113   : > { %6818 = vrot.lane.b32.xlu0 %v12556_v53, %s8968_s5  ;;  %6858 = vrot.lane.b32.xlu1 %v12556_v53, %s8980_s0 }
0x1117   : > { %6842 = vrot.lane.b32.xlu0 %v12433_v47, %s8980_s0  ;;  %6697 = vrot.lane.b32.xlu1 %v12523_v58, %s14274_s24 }
0x111b   : > { %6664 = vrot.lane.b32.xlu0 %v12534_v24, %s14275_s26  ;;  %6662 = vrot.lane.b32.xlu1 %v12511_v36, %s14275_s26 }
0x111f   : > { %v6886_v22 = vpop.permute.xlu1 %6885  ;;  %6660 = vrot.lane.b32.xlu0 %v12523_v58, %s14275_s26  ;;  %6804 = vrot.lane.b32.xlu1 %v12440_v49, %s8968_s5  ;;  %v6925_v7 = vpop.permute.xlu0 %6924 }
0x1120   : > { %v6941_v37 = vsel %vm14286_vm9, %v6923_v34, %v6925_v7  ;;  %v6902_v32 = vsel %vm5024_vm13, %v6884_v43, %v6886_v22  ;;  %vm14288_vm9 = vmmov %vm14287_vm5 }
0x1121   : > { %6981 = vmatprep.subr.mxu0 %v6941_v37 }
0x1122   : > { %6982 = vmatpush1.msra.mxu0 %v6940_v59 }
0x1123   : > { %v12588_v38 = vpop.permute.xlu1 %6806  ;;  %6762 = vrot.lane.b32.xlu0 %v12433_v47, %s14266_s29  ;;  %6802 = vrot.lane.b32.xlu1 %v12433_v47, %s8968_s5  ;;  %v6847_v13 = vpop.permute.xlu0 %6846 }
0x1124   : > { %6983 = vmatprep.subr.mxu0 %v6902_v32  ;;  %v6863_v35 = vsel %vm4983_vm8, %v12576_v6, %v6847_v13 }
0x1125   : > { %6984 = vmatpush1.msra.mxu0 %v6901_v26 }
0x1126   : > { %6985 = vmatprep.subr.mxu0 %v6863_v35 }
0x1127   : > { %v12598_v44 = vpop.permute.xlu1 %6728  ;;  %6687 = vrot.lane.b32.xlu0 %v12433_v47, %s14274_s24  ;;  %6724 = vrot.lane.b32.xlu1 %v12433_v47, %s8981_s6  ;;  %v6767_v40 = vpop.permute.xlu0 %6766 }
0x1128   : > { %v6743_v26 = vsel %vm4861_vm2, %v12558_v50, %v12598_v44 }
0x112b   : > { %v12604_v8 = vpop.permute.xlu1 %6654  ;;  %6930 = vrot.lane.b32.xlu0 %v12523_v58, %s8979_s4  ;;  %6650 = vrot.lane.b32.xlu1 %v12433_v47, %s14275_s26  ;;  %v12610_v11 = vpop.permute.xlu0 %6691 }
0x112c   : > { %v6669_v10 = vsel %vm4785_vm14, %v12570_v27, %v12604_v8 }
0x112f   : > { %v6888_v61 = vpop.permute.xlu1 %6887  ;;  %6852 = vrot.lane.b32.xlu0 %v12523_v58, %s8980_s0  ;;  %6891 = vrot.lane.b32.xlu1 %v12523_v58, %s8978_s27  ;;  %v6927_v14 = vpop.permute.xlu0 %6926 }
0x1130   : > { %v6942_v55 = vsel %vm14287_vm5, %v6925_v7, %v6927_v14  ;;  %v6903_v34 = vsel %vm5024_vm13, %v6886_v22, %v6888_v61 }
0x1133   : > { %v6809_v29 = vpop.permute.xlu1 %6808  ;;  %6770 = vrot.lane.b32.xlu0 %v12498_v52, %s14266_s29  ;;  %6812 = vrot.lane.b32.xlu1 %v12523_v58, %s8968_s5  ;;  %v6849_v18 = vpop.permute.xlu0 %6848 }
0x1134   : > { %v6864_v37 = vsel %vm4983_vm8, %v6847_v13, %v6849_v18  ;;  %v6824_v22 = vsel %vm746_vm7, %v12588_v38, %v6809_v29  ;;  %v6783_v13 = vsel %vm735_vm1, %v12549_v39, %v6767_v40 }
0x1137   : > { %v12621_v28 = vpop.permute.xlu1 %6768  ;;  %6695 = vrot.lane.b32.xlu0 %v12498_v52, %s14274_s24  ;;  %6732 = vrot.lane.b32.xlu1 %v12498_v52, %s8981_s6  ;;  %v12627_v62 = vpop.permute.xlu0 %6730 }
0x1138   : > { %v6784_v32 = vsel %vm735_vm1, %v6767_v40, %v12621_v28  ;;  %v6706_v40 = vsel %vm4823_vm6, %v12560_v25, %v12610_v11 }
0x113b   : > { %v12632_v17 = vpop.permute.xlu1 %6693  ;;  %6938 = vrot.lane.b32.xlu0 %v12630_v54, %s8979_s4  ;;  %6658 = vrot.lane.b32.xlu1 %v12498_v52, %s14275_s26  ;;  %v12638_v9 = vpop.permute.xlu0 %6656 }
0x113c   : > { %v6707_v35 = vsel %vm4823_vm6, %v12610_v11, %v12632_v17  ;;  %v6670_v60 = vsel %vm4785_vm14, %v12604_v8, %v12638_v9 }
0x113f   : > { %v12640_v45 = vpop.permute.xlu1 %6928  ;;  %6860 = vrot.lane.b32.xlu0 %v12630_v54, %s8980_s0  ;;  %6899 = vrot.lane.b32.xlu1 %v12630_v54, %s8978_s27  ;;  %v12646_v5 = vpop.permute.xlu0 %6889 }
0x1140   : > { %v6943_v46 = vsel %vm14288_vm9, %v6927_v14, %v12640_v45  ;;  %v6904_v21 = vsel %vm5024_vm13, %v6888_v61, %v12646_v5  ;;  %vm14290_vm9 = vmmov %vm14289_vm4 }
0x1141   : > { %7052 = vmatprep.subr.mxu1 %v6943_v46 }
0x1142   : > { %7053 = vmatpush1.msra.mxu1 %v6942_v55 }
0x1143   : > { %v12651_v48 = vpop.permute.xlu1 %6850  ;;  %6778 = vrot.lane.b32.xlu0 %v12556_v53, %s14266_s29  ;;  %6820 = vrot.lane.b32.xlu1 %v12630_v54, %s8968_s5  ;;  %v12660_v43 = vpop.permute.xlu0 %6810 }
0x1144   : > { %7054 = vmatprep.subr.mxu1 %v6904_v21  ;;  %v6865_v7 = vsel %vm4983_vm8, %v6849_v18, %v12651_v48  ;;  %v6825_v59 = vsel %vm746_vm7, %v6809_v29, %v12660_v43 }
0x1145   : > { %7055 = vmatpush1.msra.mxu1 %v6903_v34 }
0x1146   : > { %7056 = vmatprep.subr.mxu1 %v6865_v7 }
0x1147   : > { %7057 = vmatpush1.msra.mxu1 %v6864_v37  ;;  %6740 = vrot.lane.b32.xlu0 %v12556_v53, %s8981_s6 }
0x1148   : > { %6780 = vrot.lane.b32.xlu1 %v12630_v54, %s14266_s29  ;;  %7058 = vmatprep.subr.mxu1 %v6825_v59 }
0x1149   : > { %7059 = vmatpush1.msra.mxu1 %v6824_v22 }
0x114a   : > { %7060 = vmatprep.subr.mxu1 %v12478_v42  ;;  %v6744_v42 = vsel %vm4861_vm2, %v12598_v44, %v12627_v62  ;;  %v12704_v44 = vld [vmem:[%s14190_s20] sm:$0x7] }
0x114b   : > { %7061 = vmatpush1.msra.mxu1 %v12458_v23  ;;  %6666 = vrot.lane.b32.xlu0 %v12556_v53, %s14275_s26  ;;  %v6640_v23 = vld [vmem:[%s14191_s21] sm:$0x7] }
0x114c   : > { %6703 = vrot.lane.b32.xlu1 %v12556_v53, %s14274_s24  ;;  %7062 = vmatprep.subr.mxu1 %v6784_v32  ;;  %s14291_s24 = sld [smem:[#allocation4_spill]] }
0x114d   : > { %7063 = vmatpush1.msra.mxu1 %v6783_v13 }
0x114e   : > { %7064 = vmatprep.subr.mxu1 %v6744_v42 }
0x114f   : > { %7065 = vmatpush1.msra.mxu1 %v6743_v26 }
0x1150   : > { %6961 = vperm.xlu1 %8951, %v6640_v23   ;;  %7066 = vmatprep.subr.mxu1 %v6707_v35 }
0x1151   : > { %7067 = vmatpush1.msra.mxu1 %v6706_v40 }
0x1152   : > { %7068 = vmatprep.subr.mxu1 %v6670_v60  ;;  %v7422_v19 = vld [vmem:[%s14291_s24 + $0x2d0] sm:$0xff]  ;;  %v7413_v56 = vld [vmem:[%s14291_s24 + $0x288] sm:$0xff] }
0x1153   : > { %7069 = vmatpush1.msra.mxu1 %v6669_v10 }
0x1154   : > { %8709 = vmatmul.mubr.msk.f32.vlgmr.msra.gmra.mxu1 %vm3451_vm3, %v12704_v44 }
0x1155   : > { %7244 = vmatprep.mubr.f32.mxu1 %v8971_v3 }
0x1161   : > { %v12712_v11 = vpop.permute.xlu1 %6893  ;;  %v12714_v61 = vpop.permute.xlu0 %6932 }
0x1165   : > { %v12716_v14 = vpop.permute.xlu1 %6814  ;;  %v12718_v0 = vpop.permute.xlu0 %6854 }
0x1169   : > { %v12720_v29 = vpop.permute.xlu1 %6772  ;;  %v6775_v18 = vpop.permute.xlu0 %6774 }
0x116d   : > { %v6737_v41 = vpop.permute.xlu1 %6736  ;;  %v12722_v8 = vpop.permute.xlu0 %6734 }
0x1171   : > { %v6896_v46 = vpop.permute.xlu1 %6895  ;;  %v6700_v55 = vpop.permute.xlu0 %6699 }
0x1172   : > { %v6907_v35 = vsel %vm5024_vm13, %v12712_v11, %v6896_v46 }
0x1175   : > { %v6817_v21 = vpop.permute.xlu1 %6816  ;;  %v6935_v34 = vpop.permute.xlu0 %6934 }
0x1176   : > { %v6946_v23 = vsel %vm14290_vm9, %v12714_v61, %v6935_v34 }
0x1179   : > { %v12724_v7 = vpop.permute.xlu1 %6776  ;;  %v6857_v37 = vpop.permute.xlu0 %6856 }
0x117d   : > { %v12726_v59 = vpop.permute.xlu1 %6701  ;;  %v12728_v22 = vpop.permute.xlu0 %6738 }
0x1181   : > { %v12730_v32 = vpop.permute.xlu1 %6936  ;;  %v12732_v13 = vpop.permute.xlu0 %6897 }
0x1182   : > { %v6947_v42 = vsel %vm14289_vm4, %v6935_v34, %v12730_v32  ;;  %v6908_v26 = vsel %vm5024_vm13, %v6896_v46, %v12732_v13  ;;  %v6868_v34 = vsel %vm4983_vm8, %v12718_v0, %v6857_v37  ;;  %v6828_v46 = vsel %vm746_vm7, %v12716_v14, %v6817_v21 }
0x1183   : > { %7194 = vmatprep.subr.mxu1 %v6947_v42 }
0x1184   : > { %7195 = vmatpush1.msra.mxu1 %v6946_v23 }
0x1185   : > { %v12742_v40 = vpop.permute.xlu1 %6858  ;;  %7196 = vmatprep.subr.mxu1 %v6908_v26  ;;  %v12744_v60 = vpop.permute.xlu0 %6818 }
0x1186   : > { %7197 = vmatpush1.msra.mxu1 %v6907_v35  ;;  %v6869_v10 = vsel %vm4983_vm8, %v6857_v37, %v12742_v40  ;;  %v6829_v42 = vsel %vm746_vm7, %v6817_v21, %v12744_v60  ;;  %v6788_v37 = vsel %vm735_vm1, %v6775_v18, %v12724_v7 }
0x1187   : > { %7198 = vmatprep.subr.mxu1 %v6869_v10  ;;  %v6787_v10 = vsel %vm735_vm1, %v12720_v29, %v6775_v18 }
0x1188   : > { %7199 = vmatpush1.msra.mxu1 %v6868_v34 }
0x1189   : > { %v12754_v23 = vpop.permute.xlu1 %6697  ;;  %7200 = vmatprep.subr.mxu1 %v6829_v42  ;;  %v6843_v26 = vpop.permute.xlu0 %6842  ;;  %v6747_v42 = vsel %vm4861_vm2, %v12722_v8, %v6737_v41 }
0x118a   : > { %v6862_v35 = vsel %vm4983_vm8, %v6843_v26, %v12576_v6  ;;  %7201 = vmatpush1.msra.mxu1 %v6828_v46  ;;  %v6748_v6 = vsel %vm4861_vm2, %v6737_v41, %v12728_v22 }
0x118b   : > { %6986 = vmatpush1.msra.mxu0 %v6862_v35  ;;  %7202 = vmatprep.subr.mxu1 %v12534_v24  ;;  %v6710_v24 = vsel %vm4823_vm6, %v12754_v23, %v6700_v55 }
0x118c   : > { %7203 = vmatpush1.msra.mxu1 %v12511_v36  ;;  %v6711_v36 = vsel %vm4823_vm6, %v6700_v55, %v12726_v59  ;;  %v7482_v55 = vld [vmem:[%s14291_s24 + $0x4b0] sm:$0xff] }
0x118d   : > { %v6663_v21 = vpop.permute.xlu1 %6662  ;;  %7204 = vmatprep.subr.mxu1 %v6788_v37  ;;  %v12764_v34 = vpop.permute.xlu0 %6664  ;;  %v7483_v37 = vld [vmem:[%s14291_s24 + $0x4b8] sm:$0xff] }
0x118e   : > { %7205 = vmatpush1.msra.mxu1 %v6787_v10  ;;  %v6674_v41 = vsel %vm4785_vm14, %v6663_v21, %v12764_v34  ;;  %v7473_v10 = vld [vmem:[%s14291_s24 + $0x468] sm:$0xff] }
0x118f   : > { %7206 = vmatprep.subr.mxu1 %v6748_v6 }
0x1190   : > { %7207 = vmatpush1.msra.mxu1 %v6747_v42 }
0x1191   : > { %v6805_v18 = vpop.permute.xlu1 %6804  ;;  %7208 = vmatprep.subr.mxu1 %v6711_v36  ;;  %v12774_v46 = vpop.permute.xlu0 %6660  ;;  %v7463_v36 = vld [vmem:[%s14291_s24 + $0x418] sm:$0xff] }
0x1192   : > { %v6673_v26 = vsel %vm4785_vm14, %v12774_v46, %v6663_v21  ;;  %7209 = vmatpush1.msra.mxu1 %v6710_v24  ;;  %v6823_v35 = vsel %vm746_vm7, %v6805_v18, %v12588_v38  ;;  %v7472_v21 = vld [vmem:[%s14291_s24 + $0x460] sm:$0xff]  ;;  %v7462_v24 = vld [vmem:[%s14291_s24 + $0x410] sm:$0xff] }
0x1193   : > { %6987 = vmatprep.subr.mxu0 %v6823_v35  ;;  %7210 = vmatprep.subr.mxu1 %v6674_v41 }
0x1194   : > { %7211 = vmatpush1.msra.mxu1 %v6673_v26 }
0x1195   : > { %v6803_v6 = vpop.permute.xlu1 %6802  ;;  %8711 = vmatmul.mubr.msk.f32.vlgmr.msra.gmra.mxu1 %vm3451_vm3, %v12704_v44  ;;  %v6763_v38 = vpop.permute.xlu0 %6762  ;;  %7775 = vmatprep.subr.mxu1 %v7483_v37  ;;  %v7452_v37 = vld [vmem:[%s14291_s24 + $0x3c0] sm:$0xff] }
0x1196   : > { %v6822_v42 = vsel %vm746_vm7, %v6803_v6, %v6805_v18  ;;  %7776 = vmatpush1.msra.mxu1 %v7482_v55  ;;  %7839 = vmatprep.mubr.f32.mxu1 %v9127_v2  ;;  %v7453_v18 = vld [vmem:[%s14291_s24 + $0x3c8] sm:$0xff]  ;;  %v6782_v41 = vsel %vm735_vm1, %v6763_v38, %v12549_v39  ;;  %v7443_v55 = vld [vmem:[%s14291_s24 + $0x378] sm:$0xff]  ;;  %v7432_v6 = vld [vmem:[%s14291_s24 + $0x320] sm:$0xff] }
0x1197   : > { %6988 = vmatpush1.msra.mxu0 %v6822_v42  ;;  %7777 = vmatprep.subr.mxu1 %v7473_v10  ;;  %v7433_v39 = vld [vmem:[%s14291_s24 + $0x328] sm:$0xff] }
0x1198   : > { %6989 = vmatprep.subr.mxu0 %v12440_v49  ;;  %7778 = vmatpush1.msra.mxu1 %v7472_v21  ;;  %v7423_v21 = vld [vmem:[%s14291_s24 + $0x2d8] sm:$0xff] }
0x1199   : > { %v6725_v26 = vpop.permute.xlu1 %6724  ;;  %6990 = vmatpush1.msra.mxu0 %v12433_v47  ;;  %v6688_v35 = vpop.permute.xlu0 %6687  ;;  %7779 = vmatprep.subr.mxu1 %v7463_v36  ;;  %v7442_v47 = vld [vmem:[%s14291_s24 + $0x370] sm:$0xff] }
0x119a   : > { %6991 = vmatprep.subr.mxu0 %v6782_v41  ;;  %v6742_v49 = vsel %vm4861_vm2, %v6725_v26, %v12558_v50  ;;  %7780 = vmatpush1.msra.mxu1 %v7462_v24  ;;  %v6705_v12 = vsel %vm4823_vm6, %v6688_v35, %v12560_v25  ;;  %v7412_v24 = vld [vmem:[%s14291_s24 + $0x280] sm:$0xff]  ;;  %v7393_v41 = vld [vmem:[%s14291_s24 + $0x1e8] sm:$0xff] }
0x119b   : > { %8701 = vmatpush1.msk.msra.mxu0 %vm10166_vm12, %v6763_v38  ;;  %7781 = vmatprep.subr.mxu1 %v7453_v18  ;;  %vm14292_vm12 = vmmov %vm14289_vm4  ;;  %v7402_v18 = vld [vmem:[%s14291_s24 + $0x230] sm:$0xff] }
0x119c   : > { %6993 = vmatprep.subr.mxu0 %v6742_v49  ;;  %7782 = vmatpush1.msra.mxu1 %v7452_v37  ;;  %v7392_v49 = vld [vmem:[%s14291_s24 + $0x1e0] sm:$0xff] }
0x119d   : > { %v6651_v50 = vpop.permute.xlu1 %6650  ;;  %8703 = vmatpush1.msk.msra.mxu0 %vm11707_vm15, %v6725_v26  ;;  %v6931_v10 = vpop.permute.xlu0 %6930  ;;  %7783 = vmatprep.subr.mxu1 %v7443_v55  ;;  %vm14293_vm15 = vmmov %vm14289_vm4 }
0x119e   : > { %6995 = vmatprep.subr.mxu0 %v6705_v12  ;;  %v6668_v38 = vsel %vm4785_vm14, %v6651_v50, %v12570_v27  ;;  %7784 = vmatpush1.msra.mxu1 %v7442_v47  ;;  %v6945_v42 = vsel %vm14292_vm12, %v6931_v10, %v12714_v61  ;;  %v6944_v36 = vsel %vm14293_vm15, %v12640_v45, %v6931_v10  ;;  %v7403_v61 = vld [vmem:[%s14291_s24 + $0x238] sm:$0xff] }
0x119f   : > { %8705 = vmatpush1.msk.msra.mxu0 %vm11725_vm10, %v6688_v35  ;;  %7785 = vmatprep.subr.mxu1 %v7433_v39  ;;  %v7373_v39 = vld [vmem:[%s14291_s24 + $0x148] sm:$0xff]  ;;  %v7363_v10 = vld [vmem:[%s14291_s24 + $0xf8] sm:$0xff]  ;;  %vm14294_vm10 = vmmov %vm14289_vm4 }
0x11a0   : > { %6997 = vmatprep.subr.mxu0 %v6668_v38  ;;  %7786 = vmatpush1.msra.mxu1 %v7432_v6  ;;  %v7353_v38 = vld [vmem:[%s14291_s24 + $0xa8] sm:$0xff] }
0x11a1   : > { %v6892_v25 = vpop.permute.xlu1 %6891  ;;  %8707 = vmatpush1.msk.msra.mxu0 %vm11739_vm0, %v6651_v50  ;;  %v6853_v27 = vpop.permute.xlu0 %6852  ;;  %7787 = vmatprep.subr.mxu1 %v7423_v21  ;;  %vm14295_vm0 = vcmask 793600  }
0x11a2   : > { %8708 = vmatmul.mubr.msk.f32.vlgmr.msra.gmra.mxu0 %vm3451_vm3, %v12704_v44  ;;  %7123 = vmatprep.subr.mxu0 %v6945_v42  ;;  %v6906_v16 = vsel %vm5024_vm13, %v6892_v25, %v12712_v11  ;;  %v6905_v45 = vsel %vm5024_vm13, %v12646_v5, %v6892_v25  ;;  %v6867_v35 = vsel %vm4983_vm8, %v6853_v27, %v12718_v0  ;;  %v7383_v0 = vld [vmem:[%s14291_s24 + $0x198] sm:$0xff] }
0x11a3   : > { %7124 = vmatpush1.msra.mxu0 %v6944_v36  ;;  %7788 = vmatpush1.msra.mxu1 %v7422_v19  ;;  %v6866_v5 = vsel %vm4983_vm8, %v12651_v48, %v6853_v27  ;;  %v7382_v48 = vld [vmem:[%s14291_s24 + $0x190] sm:$0xff]  ;;  %v7352_v19 = vld [vmem:[%s14291_s24 + $0xa0] sm:$0xff] }
0x11a4   : > { %7125 = vmatprep.subr.mxu0 %v6906_v16  ;;  %7789 = vmatprep.subr.mxu1 %v7413_v56  ;;  %v7333_v56 = vld [vmem:[%s14291_s24 + $0x8] sm:$0xff] }
0x11a5   : > { %v6813_v11 = vpop.permute.xlu1 %6812  ;;  %7126 = vmatpush1.msra.mxu0 %v6905_v45  ;;  %v6771_v26 = vpop.permute.xlu0 %6770  ;;  %7790 = vmatpush1.msra.mxu1 %v7412_v24  ;;  %v7643_v24 = vld [vmem:[%s14291_s24 + $0x9b8] sm:$0xff]  ;;  %v7633_v45 = vld [vmem:[%s14291_s24 + $0x968] sm:$0xff] }
0x11a6   : > { %7127 = vmatprep.subr.mxu0 %v6867_v35  ;;  %v6827_v37 = vsel %vm746_vm7, %v6813_v11, %v12716_v14  ;;  %7791 = vmatprep.subr.mxu1 %v7403_v61  ;;  %v6826_v55 = vsel %vm746_vm7, %v12660_v43, %v6813_v11  ;;  %v7372_v43 = vld [vmem:[%s14291_s24 + $0x140] sm:$0xff]  ;;  %v6786_v50 = vsel %vm735_vm1, %v6771_v26, %v12720_v29  ;;  %v7642_v61 = vld [vmem:[%s14291_s24 + $0x9b0] sm:$0xff]  ;;  %v7623_v11 = vld [vmem:[%s14291_s24 + $0x918] sm:$0xff] }
0x11a7   : > { %7128 = vmatpush1.msra.mxu0 %v6866_v5  ;;  %7792 = vmatpush1.msra.mxu1 %v7402_v18  ;;  %v6785_v12 = vsel %vm735_vm1, %v12621_v28, %v6771_v26  ;;  %v7613_v5 = vld [vmem:[%s14291_s24 + $0x8c8] sm:$0xff] }
0x11a8   : > { %7129 = vmatprep.subr.mxu0 %v6827_v37  ;;  %7793 = vmatprep.subr.mxu1 %v7393_v41 }
0x11a9   : > { %v6733_v14 = vpop.permute.xlu1 %6732  ;;  %7130 = vmatpush1.msra.mxu0 %v6826_v55  ;;  %v6696_v47 = vpop.permute.xlu0 %6695  ;;  %7794 = vmatpush1.msra.mxu1 %v7392_v49  ;;  %v7603_v49 = vld [vmem:[%s14291_s24 + $0x878] sm:$0xff] }
0x11aa   : > { %7131 = vmatprep.subr.mxu0 %v12523_v58  ;;  %7795 = vmatprep.subr.mxu1 %v7383_v0  ;;  %v7362_v58 = vld [vmem:[%s14291_s24 + $0xf0] sm:$0xff]  ;;  %v6746_v29 = vsel %vm4861_vm2, %v6733_v14, %v12722_v8  ;;  %v6745_v28 = vsel %vm4861_vm2, %v12627_v62, %v6733_v14  ;;  %v6709_v21 = vsel %vm4823_vm6, %v6696_v47, %v12754_v23  ;;  %v7343_v62 = vld [vmem:[%s14291_s24 + $0x58] sm:$0xff] }
0x11ab   : > { %7132 = vmatpush1.msra.mxu0 %v12498_v52  ;;  %7796 = vmatpush1.msra.mxu1 %v7382_v48  ;;  %v6708_v8 = vsel %vm4823_vm6, %v12632_v17, %v6696_v47  ;;  %v7342_v17 = vld [vmem:[%s14291_s24 + $0x50] sm:$0xff]  ;;  %v7583_v47 = vld [vmem:[%s14291_s24 + $0x7d8] sm:$0xff] }
0x11ac   : > { %7133 = vmatprep.subr.mxu0 %v6786_v50  ;;  %7797 = vmatprep.subr.mxu1 %v7373_v39  ;;  %v7573_v50 = vld [vmem:[%s14291_s24 + $0x788] sm:$0xff] }
0x11ad   : > { %v6659_v6 = vpop.permute.xlu1 %6658  ;;  %7134 = vmatpush1.msra.mxu0 %v6785_v12  ;;  %v6939_v52 = vpop.permute.xlu0 %6938  ;;  %7798 = vmatpush1.msra.mxu1 %v7372_v43  ;;  %v7563_v12 = vld [vmem:[%s14291_s24 + $0x738] sm:$0xff] }
0x11ae   : > { %7135 = vmatprep.subr.mxu0 %v6746_v29  ;;  %7799 = vmatprep.subr.mxu1 %v7363_v10  ;;  %v6672_v23 = vsel %vm4785_vm14, %v6659_v6, %v12774_v46  ;;  %v6671_v42 = vsel %vm4785_vm14, %v12638_v9, %v6659_v6  ;;  %v6948_v46 = vsel %vm14294_vm10, %v12730_v32, %v6939_v52  ;;  %v7332_v9 = vld [vmem:[%s14291_s24] sm:$0xff]  ;;  %v7562_v6 = vld [vmem:[%s14291_s24 + $0x730] sm:$0xff]  ;;  %v7713_v29 = vld [vmem:[%s14291_s24 + $0xbe8] sm:$0xff] }
0x11af   : > { %7136 = vmatpush1.msra.mxu0 %v6745_v28  ;;  %7800 = vmatpush1.msra.mxu1 %v7362_v58  ;;  %v7572_v10 = vld [vmem:[%s14291_s24 + $0x780] sm:$0xff]  ;;  %v7723_v58 = vld [vmem:[%s14291_s24 + $0xc38] sm:$0xff]  ;;  %v7722_v52 = vld [vmem:[%s14291_s24 + $0xc30] sm:$0xff] }
0x11b0   : > { %7137 = vmatprep.subr.mxu0 %v6709_v21  ;;  %7801 = vmatprep.subr.mxu1 %v7353_v38  ;;  %v7552_v38 = vld [vmem:[%s14291_s24 + $0x6e0] sm:$0xff]  ;;  %v7543_v21 = vld [vmem:[%s14291_s24 + $0x698] sm:$0xff] }
0x11b1   : > { %v6900_v25 = vpop.permute.xlu1 %6899  ;;  %7138 = vmatpush1.msra.mxu0 %v6708_v8  ;;  %v6861_v27 = vpop.permute.xlu0 %6860  ;;  %7173 = vmatprep.mubr.f32.mxu0 %v8971_v3  ;;  %v7712_v28 = vld [vmem:[%s14291_s24 + $0xbe0] sm:$0xff]  ;;  %v7542_v8 = vld [vmem:[%s14291_s24 + $0x690] sm:$0xff] }
0x11b2   : > { %7139 = vmatprep.subr.mxu0 %v6672_v23  ;;  %7802 = vmatpush1.msra.mxu1 %v7352_v19  ;;  %v6909_v32 = vsel %vm5024_vm13, %v12732_v13, %v6900_v25  ;;  %v6870_v18 = vsel %vm4983_vm8, %v12742_v40, %v6861_v27  ;;  %v7632_v13 = vld [vmem:[%s14291_s24 + $0x960] sm:$0xff]  ;;  %vm14296_vm13 = vcmask 809984   ;;  %v7622_v40 = vld [vmem:[%s14291_s24 + $0x910] sm:$0xff]  ;;  %v7703_v19 = vld [vmem:[%s14291_s24 + $0xb98] sm:$0xff] }
0x11b3   : > { %7140 = vmatpush1.msra.mxu0 %v6671_v42  ;;  %7803 = vmatprep.subr.mxu1 %v7343_v62  ;;  %v7702_v62 = vld [vmem:[%s14291_s24 + $0xb90] sm:$0xff]  ;;  %v7533_v25 = vld [vmem:[%s14291_s24 + $0x648] sm:$0xff]  ;;  %v7532_v23 = vld [vmem:[%s14291_s24 + $0x640] sm:$0xff] }
0x11b4   : > { %8710 = vmatmul.mubr.msk.f32.vlgmr.msra.gmra.mxu0 %vm3451_vm3, %v12704_v44  ;;  %7265 = vmatprep.subr.mxu0 %v8971_v3  ;;  %v7693_v27 = vld [vmem:[%s14291_s24 + $0xb48] sm:$0xff]  ;;  %v7692_v42 = vld [vmem:[%s14291_s24 + $0xb40] sm:$0xff] }
0x11b5   : > { %v6821_v36 = vpop.permute.xlu1 %6820  ;;  %8712 = vmatpush1.msk.msra.mxu0 %vm14295_vm0, %v6948_v46  ;;  %7804 = vmatpush1.msra.mxu1 %v7342_v17  ;;  %v6779_v16 = vpop.permute.xlu0 %6778  ;;  %v7523_v17 = vld [vmem:[%s14291_s24 + $0x5f8] sm:$0xff]  ;;  %v7522_v46 = vld [vmem:[%s14291_s24 + $0x5f0] sm:$0xff] }
0x11b6   : > { %7267 = vmatprep.subr.mxu0 %v8971_v3  ;;  %7805 = vmatprep.subr.mxu1 %v7333_v56  ;;  %v6830_v26 = vsel %vm746_vm7, %v12744_v60, %v6821_v36  ;;  %v7612_v60 = vld [vmem:[%s14291_s24 + $0x8c0] sm:$0xff]  ;;  %v6789_v0 = vsel %vm735_vm1, %v12724_v7, %v6779_v16  ;;  %v7683_v56 = vld [vmem:[%s14291_s24 + $0xaf8] sm:$0xff] }
0x11b7   : > { %8713 = vmatpush1.msk.msra.mxu0 %vm5043_vm11, %v6909_v32  ;;  %7806 = vmatpush1.msra.mxu1 %v7332_v9  ;;  %vm14297_vm11 = vcmask 23552   ;;  %v7592_v7 = vld [vmem:[%s14291_s24 + $0x820] sm:$0xff]  ;;  %v7682_v9 = vld [vmem:[%s14291_s24 + $0xaf0] sm:$0xff] }
0x11b8   : > { %7269 = vmatprep.subr.mxu0 %v8971_v3  ;;  %7807 = vmatprep.subr.mxu1 %v7643_v24  ;;  %v7512_v24 = vld [vmem:[%s14291_s24 + $0x5a0] sm:$0xff] }
0x11b9   : > { %8714 = vmatpush1.msk.msra.mxu0 %vm14296_vm13, %v6870_v18  ;;  %7808 = vmatpush2.msra.mxu1 %v7642_v61  ;;  %v6741_v41 = vpop.permute.xlu0 %6740  ;;  %v7672_v32 = vld [vmem:[%s14291_s24 + $0xaa0] sm:$0xff]  ;;  %v7503_v61 = vld [vmem:[%s14291_s24 + $0x558] sm:$0xff]  ;;  %v7502_v18 = vld [vmem:[%s14291_s24 + $0x550] sm:$0xff] }
0x11ba   : > { %v6781_v35 = vpop.permute.xlu1 %6780  ;;  %8715 = vmatprep.subr.msk.mxu0 %vm14297_vm11, %v6821_v36  ;;  %7809 = vmatprep.subr.mxu1 %v7633_v45  ;;  %v6749_v48 = vsel %vm4861_vm2, %v12728_v22, %v6741_v41  ;;  %v7582_v22 = vld [vmem:[%s14291_s24 + $0x7d0] sm:$0xff]  ;;  %v7513_v36 = vld [vmem:[%s14291_s24 + $0x5a8] sm:$0xff]  ;;  %v7663_v45 = vld [vmem:[%s14291_s24 + $0xa58] sm:$0xff]  ;;  %vm8519_vm11 = vcmask 30724  }
0x11bb   : > { %7272 = vmatpush1.msra.mxu0 %v6830_v26  ;;  %7810 = vmatpush2.msra.mxu1 %v7632_v13  ;;  %v6790_v37 = vsel %vm735_vm1, %v6779_v16, %v6781_v35  ;;  %vm14298_vm1 = vcmask 1043456   ;;  %v7673_v16 = vld [vmem:[%s14291_s24 + $0xaa8] sm:$0xff]  ;;  %v7662_v13 = vld [vmem:[%s14291_s24 + $0xa50] sm:$0xff]  ;;  %v7492_v35 = vld [vmem:[%s14291_s24 + $0x500] sm:$0xff] }
0x11bc   : > { %7273 = vmatprep.subr.mxu0 %v12630_v54  ;;  %7811 = vmatprep.subr.mxu1 %v7623_v11  ;;  %v7602_v54 = vld [vmem:[%s14291_s24 + $0x870] sm:$0xff]  ;;  %vm14299_vm7 = vmmov %vm14298_vm1  ;;  %v7493_v11 = vld [vmem:[%s14291_s24 + $0x508] sm:$0xff] }
0x11bd   : > { %7274 = vmatpush1.msra.mxu0 %v12556_v53  ;;  %7812 = vmatpush2.msra.mxu1 %v7622_v40  ;;  %v7593_v53 = vld [vmem:[%s14291_s24 + $0x828] sm:$0xff]  ;;  %v6667_v14 = vpop.permute.xlu0 %6666  ;;  %v7652_v40 = vld [vmem:[%s14291_s24 + $0xa00] sm:$0xff]  ;;  %vm14301_vm8 = vmmov %vm14298_vm1 }
0x11be   : > { %7275 = vmatprep.subr.mxu0 %v6790_v37  ;;  %7813 = vmatprep.subr.mxu1 %v7613_v5  ;;  %v6704_v55 = vpop.permute.xlu1 %6703  ;;  %v6675_v43 = vsel %vm4785_vm14, %v12764_v34, %v6667_v14  ;;  %v7732_v34 = vld [vmem:[%s14291_s24 + $0xc80] sm:$0xf]  ;;  %v7653_v26 = vld [vmem:[%s14291_s24 + $0xa08] sm:$0xff]  ;;  %v7735_v5 = vld [vmem:[%s14291_s24 + $0xc98] sm:$0xf] }
0x11bf   : > { %7276 = vmatpush1.msra.mxu0 %v6789_v0  ;;  %7814 = vmatpush2.msra.mxu1 %v7612_v60  ;;  %v6712_v39 = vsel %vm4823_vm6, %v12726_v59, %v6704_v55  ;;  %v7733_v59 = vld [vmem:[%s14291_s24 + $0xc88] sm:$0xf]  ;;  %v7484_v60 = vld [vmem:[%s14291_s24 + $0x4c0] sm:$0xff]  ;;  %v7475_v0 = vld [vmem:[%s14291_s24 + $0x478] sm:$0xff] }
0x11c0   : > { %7277 = vmatprep.subr.mxu0 %v6741_v41  ;;  %7815 = vmatprep.subr.mxu1 %v7603_v49  ;;  %v7485_v41 = vld [vmem:[%s14291_s24 + $0x4c8] sm:$0xff]  ;;  %v13131_v37 = vld [vmem:[%s9113_s23] sm:$0x77]  ;;  %v7734_v49 = vld [vmem:[%s14291_s24 + $0xc90] sm:$0xf] }
0x11c1   : > { %7278 = vmatpush1.msra.mxu0 %v6749_v48  ;;  %7816 = vmatpush2.msra.mxu1 %v7602_v54  ;;  %v13141_v54 = vld [vmem:[%s9113_s23 + $0x8] sm:$0x7]  ;;  %v7724_v48 = vld [vmem:[%s14291_s24 + $0xc40] sm:$0xff]  ;;  %vm14302_vm2 = vmmov %vm14298_vm1 }
0x11c2   : > { %7279 = vmatprep.subr.mxu0 %v6704_v55  ;;  %7817 = vmatprep.subr.mxu1 %v7593_v53  ;;  %v7725_v55 = vld [vmem:[%s14291_s24 + $0xc48] sm:$0xff]  ;;  %v7474_v53 = vld [vmem:[%s14291_s24 + $0x470] sm:$0xff]  ;;  %vm14304_vm14 = vmmov %vm14298_vm1 }
0x11c3   : > { %7280 = vmatpush1.msra.mxu0 %v6712_v39  ;;  %7818 = vmatpush2.msra.mxu1 %v7592_v7  ;;  %v7465_v7 = vld [vmem:[%s14291_s24 + $0x428] sm:$0xff]  ;;  %v7714_v39 = vld [vmem:[%s14291_s24 + $0xbf0] sm:$0xff]  ;;  %vm14305_vm5 = vmmov %vm14298_vm1 }
0x11c4   : > { %7281 = vmatprep.subr.mxu0 %v6667_v14  ;;  %7819 = vmatprep.subr.mxu1 %v7583_v47  ;;  %v7715_v14 = vld [vmem:[%s14291_s24 + $0xbf8] sm:$0xff]  ;;  %v7464_v47 = vld [vmem:[%s14291_s24 + $0x420] sm:$0xff]  ;;  %vm14307_vm9 = vmmov %vm14298_vm1 }
0x11c5   : > { %7282 = vmatpush1.msra.mxu0 %v6675_v43  ;;  %7315 = vmatprep.mubr.f32.mxu0 %v8971_v3  ;;  %v7705_v43 = vld [vmem:[%s14291_s24 + $0xba8] sm:$0xff]  ;;  %vm14308_vm12 = vmmov %vm14298_vm1 }
0x11c6   : > { %7820 = vmatpush2.msra.mxu1 %v7582_v22  ;;  %8716 = vmatmul.mubr.msk.f32.vlgmr.msra.gmra.mxu0 %vm3451_vm3, %v12704_v44  ;;  %v7553_v44 = vld [vmem:[%s14291_s24 + $0x6e8] sm:$0xff]  ;;  %vm14300_vm3 = vcmask 556032   ;;  %v7455_v22 = vld [vmem:[%s14291_s24 + $0x3d8] sm:$0xff]  ;;  %vm14310_vm10 = vmmov %vm14298_vm1 }
0x11c7   : > { %7821 = vmatprep.subr.mxu1 %v7573_v50  ;;  %8717 = vmatprep.subr.msk.mxu0 %vm14298_vm1, %v7733_v59  ;;  %v7454_v50 = vld [vmem:[%s14291_s24 + $0x3d0] sm:$0xff]  ;;  %v7704_v59 = vld [vmem:[%s14291_s24 + $0xba0] sm:$0xff]  ;;  %vm14303_vm6 = vmmov %vm14300_vm3 }
0x11c8   : > { %7822 = vmatpush2.msra.mxu1 %v7572_v10  ;;  %8718 = vmatpush1.msk.msra.mxu0 %vm14299_vm7, %v7732_v34  ;;  %v7445_v10 = vld [vmem:[%s14291_s24 + $0x388] sm:$0xff]  ;;  %v7695_v34 = vld [vmem:[%s14291_s24 + $0xb58] sm:$0xff]  ;;  %vm14306_vm4 = vmmov %vm14300_vm3 }
0x11c9   : > { %7823 = vmatprep.subr.mxu1 %v7563_v12  ;;  %7862 = vmatprep.subr.mxu0 %v7723_v58  ;;  %v7444_v12 = vld [vmem:[%s14291_s24 + $0x380] sm:$0xff]  ;;  %v7694_v58 = vld [vmem:[%s14291_s24 + $0xb50] sm:$0xff]  ;;  %vm14309_vm15 = vmmov %vm14300_vm3 }
0x11ca   : > { %7824 = vmatpush2.msra.mxu1 %v7562_v6  ;;  %7863 = vmatpush1.msra.mxu0 %v7722_v52  ;;  %v7435_v6 = vld [vmem:[%s14291_s24 + $0x338] sm:$0xff]  ;;  %v7685_v52 = vld [vmem:[%s14291_s24 + $0xb08] sm:$0xff]  ;;  %vm14311_vm0 = vmmov %vm14298_vm1  ;;  %vm14313_vm1 = vcmask 1042432  }
0x11cb   : > { %7825 = vmatprep.subr.mxu1 %v7553_v44  ;;  %7864 = vmatprep.subr.mxu0 %v7713_v29  ;;  %v7434_v44 = vld [vmem:[%s14291_s24 + $0x330] sm:$0xff]  ;;  %v7684_v29 = vld [vmem:[%s14291_s24 + $0xb00] sm:$0xff]  ;;  %vm14312_vm13 = vmmov %vm14300_vm3 }
0x11cc   : > { %7826 = vmatpush2.msra.mxu1 %v7552_v38  ;;  %7865 = vmatpush1.msra.mxu0 %v7712_v28  ;;  %v7425_v38 = vld [vmem:[%s14291_s24 + $0x2e8] sm:$0xff]  ;;  %v7675_v28 = vld [vmem:[%s14291_s24 + $0xab8] sm:$0xff]  ;;  %vm8520_vm7 = vmor %vm8519_vm11, %vm14313_vm1 }
0x11cd   : > { %7827 = vmatprep.subr.mxu1 %v7543_v21  ;;  %7866 = vmatprep.subr.mxu0 %v7703_v19  ;;  %v7424_v21 = vld [vmem:[%s14291_s24 + $0x2e0] sm:$0xff]  ;;  %v7674_v19 = vld [vmem:[%s14291_s24 + $0xab0] sm:$0xff] }
0x11ce   : > { %7828 = vmatpush2.msra.mxu1 %v7542_v8  ;;  %7867 = vmatpush1.msra.mxu0 %v7702_v62  ;;  %v7415_v8 = vld [vmem:[%s14291_s24 + $0x298] sm:$0xff]  ;;  %v7665_v62 = vld [vmem:[%s14291_s24 + $0xa68] sm:$0xff] }
0x11cf   : > { %7829 = vmatprep.subr.mxu1 %v7533_v25  ;;  %7868 = vmatprep.subr.mxu0 %v7693_v27  ;;  %v7414_v25 = vld [vmem:[%s14291_s24 + $0x290] sm:$0xff]  ;;  %v7664_v27 = vld [vmem:[%s14291_s24 + $0xa60] sm:$0xff] }
0x11d0   : > { %7830 = vmatpush2.msra.mxu1 %v7532_v23  ;;  %7869 = vmatpush1.msra.mxu0 %v7692_v42  ;;  %v7405_v23 = vld [vmem:[%s14291_s24 + $0x248] sm:$0xff]  ;;  %v7655_v42 = vld [vmem:[%s14291_s24 + $0xa18] sm:$0xff] }
0x11d1   : > { %7831 = vmatprep.subr.mxu1 %v7523_v17  ;;  %7870 = vmatprep.subr.mxu0 %v7683_v56  ;;  %v7404_v17 = vld [vmem:[%s14291_s24 + $0x240] sm:$0xff]  ;;  %v7654_v56 = vld [vmem:[%s14291_s24 + $0xa10] sm:$0xff] }
0x11d2   : > { %7832 = vmatpush2.msra.mxu1 %v7522_v46  ;;  %7871 = vmatpush1.msra.mxu0 %v7682_v9  ;;  %v7395_v46 = vld [vmem:[%s14291_s24 + $0x1f8] sm:$0xff] }
0x11d3   : > { %7833 = vmatprep.subr.mxu1 %v7513_v36  ;;  %7872 = vmatprep.subr.mxu0 %v7673_v16  ;;  %v7487_v9 = vld [vmem:[%s14291_s24 + $0x4d8] sm:$0xff]  ;;  %v7394_v36 = vld [vmem:[%s14291_s24 + $0x1f0] sm:$0xff] }
0x11d4   : > { %7834 = vmatpush2.msra.mxu1 %v7512_v24  ;;  %7873 = vmatpush1.msra.mxu0 %v7672_v32  ;;  %v7486_v16 = vld [vmem:[%s14291_s24 + $0x4d0] sm:$0xff]  ;;  %v7385_v24 = vld [vmem:[%s14291_s24 + $0x1a8] sm:$0xff] }
0x11d5   : > { %7835 = vmatprep.subr.mxu1 %v7503_v61  ;;  %7874 = vmatprep.subr.mxu0 %v7663_v45  ;;  %v7477_v32 = vld [vmem:[%s14291_s24 + $0x488] sm:$0xff]  ;;  %v7384_v61 = vld [vmem:[%s14291_s24 + $0x1a0] sm:$0xff] }
0x11d6   : > { %7836 = vmatpush2.msra.mxu1 %v7502_v18  ;;  %7875 = vmatpush1.msra.mxu0 %v7662_v13  ;;  %v7476_v45 = vld [vmem:[%s14291_s24 + $0x480] sm:$0xff]  ;;  %v7375_v18 = vld [vmem:[%s14291_s24 + $0x158] sm:$0xff] }
0x11d7   : > { %7837 = vmatprep.subr.mxu1 %v7493_v11  ;;  %7876 = vmatprep.subr.mxu0 %v7653_v26  ;;  %v7467_v13 = vld [vmem:[%s14291_s24 + $0x438] sm:$0xff]  ;;  %v7374_v11 = vld [vmem:[%s14291_s24 + $0x150] sm:$0xff] }
0x11d8   : > { %7838 = vmatpush2.msra.mxu1 %v7492_v35  ;;  %7877 = vmatpush1.msra.mxu0 %v7652_v40  ;;  %v7466_v26 = vld [vmem:[%s14291_s24 + $0x430] sm:$0xff]  ;;  %v7365_v35 = vld [vmem:[%s14291_s24 + $0x108] sm:$0xff] }
0x11d9   : > { %7910 = vmatprep.mubr.f32.mxu0 %v8971_v3  ;;  %7840 = vmatmul.mubr.f32.vlgmr.msra.gmra.mxu1 %v13131_v37  ;;  %v7457_v40 = vld [vmem:[%s14291_s24 + $0x3e8] sm:$0xff] }
0x11da   : > { %8719 = vmatmul.mubr.msk.f32.vlgmr.msra.gmra.mxu0 %vm14300_vm3, %v13141_v54  ;;  %7917 = vmatprep.subr.mxu0 %v7485_v41  ;;  %v7364_v41 = vld [vmem:[%s14291_s24 + $0x100] sm:$0xff] }
0x11db   : > { %8720 = vmatprep.subr.msk.mxu1 %vm14301_vm8, %v7735_v5  ;;  %7918 = vmatpush1.msra.mxu0 %v7484_v60  ;;  %v7456_v5 = vld [vmem:[%s14291_s24 + $0x3e0] sm:$0xff]  ;;  %v7355_v60 = vld [vmem:[%s14291_s24 + $0xb8] sm:$0xff] }
0x11dc   : > { %8721 = vmatpush1.msk.msra.mxu1 %vm14302_vm2, %v7734_v49  ;;  %7919 = vmatprep.subr.mxu0 %v7475_v0  ;;  %v7447_v49 = vld [vmem:[%s14291_s24 + $0x398] sm:$0xff]  ;;  %v7354_v0 = vld [vmem:[%s14291_s24 + $0xb0] sm:$0xff] }
0x11dd   : > { %8004 = vmatprep.subr.mxu1 %v7725_v55  ;;  %7920 = vmatpush1.msra.mxu0 %v7474_v53  ;;  %v7446_v55 = vld [vmem:[%s14291_s24 + $0x390] sm:$0xff]  ;;  %v7345_v53 = vld [vmem:[%s14291_s24 + $0x68] sm:$0xff] }
0x11de   : > { %8005 = vmatpush1.msra.mxu1 %v7724_v48  ;;  %7921 = vmatprep.subr.mxu0 %v7465_v7  ;;  %v7437_v48 = vld [vmem:[%s14291_s24 + $0x348] sm:$0xff]  ;;  %v7344_v7 = vld [vmem:[%s14291_s24 + $0x60] sm:$0xff] }
0x11df   : > { %8006 = vmatprep.subr.mxu1 %v7715_v14  ;;  %7922 = vmatpush1.msra.mxu0 %v7464_v47  ;;  %v7436_v14 = vld [vmem:[%s14291_s24 + $0x340] sm:$0xff]  ;;  %v7335_v47 = vld [vmem:[%s14291_s24 + $0x18] sm:$0xff] }
0x11e0   : > { %8007 = vmatpush1.msra.mxu1 %v7714_v39  ;;  %7923 = vmatprep.subr.mxu0 %v7455_v22  ;;  %v7427_v39 = vld [vmem:[%s14291_s24 + $0x2f8] sm:$0xff]  ;;  %v7334_v22 = vld [vmem:[%s14291_s24 + $0x10] sm:$0xff] }
0x11e1   : > { %8008 = vmatprep.subr.mxu1 %v7705_v43  ;;  %7924 = vmatpush1.msra.mxu0 %v7454_v50  ;;  %v7426_v43 = vld [vmem:[%s14291_s24 + $0x2f0] sm:$0xff]  ;;  %v7645_v50 = vld [vmem:[%s14291_s24 + $0x9c8] sm:$0xff] }
0x11e2   : > { %8009 = vmatpush1.msra.mxu1 %v7704_v59  ;;  %7925 = vmatprep.subr.mxu0 %v7445_v10  ;;  %v7417_v59 = vld [vmem:[%s14291_s24 + $0x2a8] sm:$0xff]  ;;  %v7644_v10 = vld [vmem:[%s14291_s24 + $0x9c0] sm:$0xff] }
0x11e3   : > { %8010 = vmatprep.subr.mxu1 %v7695_v34  ;;  %7926 = vmatpush1.msra.mxu0 %v7444_v12  ;;  %v7416_v34 = vld [vmem:[%s14291_s24 + $0x2a0] sm:$0xff]  ;;  %v7635_v12 = vld [vmem:[%s14291_s24 + $0x978] sm:$0xff] }
0x11e4   : > { %8011 = vmatpush1.msra.mxu1 %v7694_v58  ;;  %7927 = vmatprep.subr.mxu0 %v7435_v6  ;;  %v7407_v58 = vld [vmem:[%s14291_s24 + $0x258] sm:$0xff]  ;;  %v7634_v6 = vld [vmem:[%s14291_s24 + $0x970] sm:$0xff] }
0x11e5   : > { %8012 = vmatprep.subr.mxu1 %v7685_v52  ;;  %7928 = vmatpush1.msra.mxu0 %v7434_v44  ;;  %v7406_v52 = vld [vmem:[%s14291_s24 + $0x250] sm:$0xff]  ;;  %v7625_v44 = vld [vmem:[%s14291_s24 + $0x928] sm:$0xff] }
0x11e6   : > { %8013 = vmatpush1.msra.mxu1 %v7684_v29  ;;  %7929 = vmatprep.subr.mxu0 %v7425_v38  ;;  %v7397_v29 = vld [vmem:[%s14291_s24 + $0x208] sm:$0xff]  ;;  %v7624_v38 = vld [vmem:[%s14291_s24 + $0x920] sm:$0xff] }
0x11e7   : > { %8014 = vmatprep.subr.mxu1 %v7675_v28  ;;  %7930 = vmatpush1.msra.mxu0 %v7424_v21  ;;  %v7396_v28 = vld [vmem:[%s14291_s24 + $0x200] sm:$0xff]  ;;  %v7615_v21 = vld [vmem:[%s14291_s24 + $0x8d8] sm:$0xff] }
0x11e8   : > { %8015 = vmatpush1.msra.mxu1 %v7674_v19  ;;  %7931 = vmatprep.subr.mxu0 %v7415_v8  ;;  %v7387_v19 = vld [vmem:[%s14291_s24 + $0x1b8] sm:$0xff]  ;;  %v7614_v8 = vld [vmem:[%s14291_s24 + $0x8d0] sm:$0xff] }
0x11e9   : > { %8016 = vmatprep.subr.mxu1 %v7665_v62  ;;  %7932 = vmatpush1.msra.mxu0 %v7414_v25  ;;  %v7386_v62 = vld [vmem:[%s14291_s24 + $0x1b0] sm:$0xff]  ;;  %v7605_v25 = vld [vmem:[%s14291_s24 + $0x888] sm:$0xff] }
0x11ea   : > { %8017 = vmatpush1.msra.mxu1 %v7664_v27  ;;  %7933 = vmatprep.subr.mxu0 %v7405_v23  ;;  %v7377_v27 = vld [vmem:[%s14291_s24 + $0x168] sm:$0xff]  ;;  %v7604_v23 = vld [vmem:[%s14291_s24 + $0x880] sm:$0xff] }
0x11eb   : > { %8018 = vmatprep.subr.mxu1 %v7655_v42  ;;  %7934 = vmatpush1.msra.mxu0 %v7404_v17  ;;  %v7376_v42 = vld [vmem:[%s14291_s24 + $0x160] sm:$0xff]  ;;  %v7595_v17 = vld [vmem:[%s14291_s24 + $0x838] sm:$0xff] }
0x11ec   : > { %8019 = vmatpush1.msra.mxu1 %v7654_v56  ;;  %7935 = vmatprep.subr.mxu0 %v7395_v46  ;;  %v7367_v56 = vld [vmem:[%s14291_s24 + $0x118] sm:$0xff]  ;;  %v7594_v46 = vld [vmem:[%s14291_s24 + $0x830] sm:$0xff] }
0x11ed   : > { %8052 = vmatprep.mubr.f32.mxu1 %v8971_v3  ;;  %8059 = vmatprep.subr.mxu1 %v7487_v9  ;;  %v7366_v9 = vld [vmem:[%s14291_s24 + $0x110] sm:$0xff] }
0x11ee   : > { %7936 = vmatpush1.msra.mxu0 %v7394_v36  ;;  %8722 = vmatmul.mubr.msk.f32.vlgmr.msra.gmra.mxu1 %vm14303_vm6, %v13141_v54  ;;  %v7585_v36 = vld [vmem:[%s14291_s24 + $0x7e8] sm:$0xff] }
0x11ef   : > { %8060 = vmatpush1.msra.mxu1 %v7486_v16  ;;  %7937 = vmatprep.subr.mxu0 %v7385_v24  ;;  %v7357_v16 = vld [vmem:[%s14291_s24 + $0xc8] sm:$0xff]  ;;  %v7584_v24 = vld [vmem:[%s14291_s24 + $0x7e0] sm:$0xff] }
0x11f0   : > { %8061 = vmatprep.subr.mxu1 %v7477_v32  ;;  %7938 = vmatpush1.msra.mxu0 %v7384_v61  ;;  %v7356_v32 = vld [vmem:[%s14291_s24 + $0xc0] sm:$0xff]  ;;  %v7575_v61 = vld [vmem:[%s14291_s24 + $0x798] sm:$0xff] }
0x11f1   : > { %8062 = vmatpush1.msra.mxu1 %v7476_v45  ;;  %7939 = vmatprep.subr.mxu0 %v7375_v18  ;;  %v7347_v45 = vld [vmem:[%s14291_s24 + $0x78] sm:$0xff]  ;;  %v7574_v18 = vld [vmem:[%s14291_s24 + $0x790] sm:$0xff] }
0x11f2   : > { %8063 = vmatprep.subr.mxu1 %v7467_v13  ;;  %7940 = vmatpush1.msra.mxu0 %v7374_v11  ;;  %v7346_v13 = vld [vmem:[%s14291_s24 + $0x70] sm:$0xff]  ;;  %v7565_v11 = vld [vmem:[%s14291_s24 + $0x748] sm:$0xff] }
0x11f3   : > { %8064 = vmatpush1.msra.mxu1 %v7466_v26  ;;  %7941 = vmatprep.subr.mxu0 %v7365_v35  ;;  %v7337_v26 = vld [vmem:[%s14291_s24 + $0x28] sm:$0xff]  ;;  %v7564_v35 = vld [vmem:[%s14291_s24 + $0x740] sm:$0xff] }
0x11f4   : > { %8065 = vmatprep.subr.mxu1 %v7457_v40  ;;  %7942 = vmatpush1.msra.mxu0 %v7364_v41  ;;  %v7336_v40 = vld [vmem:[%s14291_s24 + $0x20] sm:$0xff]  ;;  %v7555_v41 = vld [vmem:[%s14291_s24 + $0x6f8] sm:$0xff] }
0x11f5   : > { %8066 = vmatpush1.msra.mxu1 %v7456_v5  ;;  %7943 = vmatprep.subr.mxu0 %v7355_v60  ;;  %v7647_v5 = vld [vmem:[%s14291_s24 + $0x9d8] sm:$0xff]  ;;  %v7554_v60 = vld [vmem:[%s14291_s24 + $0x6f0] sm:$0xff] }
0x11f6   : > { %8067 = vmatprep.subr.mxu1 %v7447_v49  ;;  %7944 = vmatpush1.msra.mxu0 %v7354_v0  ;;  %v7646_v49 = vld [vmem:[%s14291_s24 + $0x9d0] sm:$0xff]  ;;  %v7545_v0 = vld [vmem:[%s14291_s24 + $0x6a8] sm:$0xff] }
0x11f7   : > { %8068 = vmatpush1.msra.mxu1 %v7446_v55  ;;  %7945 = vmatprep.subr.mxu0 %v7345_v53  ;;  %v7637_v55 = vld [vmem:[%s14291_s24 + $0x988] sm:$0xff]  ;;  %v7544_v53 = vld [vmem:[%s14291_s24 + $0x6a0] sm:$0xff] }
0x11f8   : > { %8069 = vmatprep.subr.mxu1 %v7437_v48  ;;  %7946 = vmatpush1.msra.mxu0 %v7344_v7  ;;  %v7636_v48 = vld [vmem:[%s14291_s24 + $0x980] sm:$0xff]  ;;  %v7535_v7 = vld [vmem:[%s14291_s24 + $0x658] sm:$0xff] }
0x11f9   : > { %8070 = vmatpush1.msra.mxu1 %v7436_v14  ;;  %7947 = vmatprep.subr.mxu0 %v7335_v47  ;;  %v7627_v14 = vld [vmem:[%s14291_s24 + $0x938] sm:$0xff]  ;;  %v7534_v47 = vld [vmem:[%s14291_s24 + $0x650] sm:$0xff] }
0x11fa   : > { %8071 = vmatprep.subr.mxu1 %v7427_v39  ;;  %7948 = vmatpush1.msra.mxu0 %v7334_v22  ;;  %v7626_v39 = vld [vmem:[%s14291_s24 + $0x930] sm:$0xff]  ;;  %v7525_v22 = vld [vmem:[%s14291_s24 + $0x608] sm:$0xff] }
0x11fb   : > { %8072 = vmatpush1.msra.mxu1 %v7426_v43  ;;  %7949 = vmatprep.subr.mxu0 %v7645_v50  ;;  %v7617_v43 = vld [vmem:[%s14291_s24 + $0x8e8] sm:$0xff]  ;;  %v7524_v50 = vld [vmem:[%s14291_s24 + $0x600] sm:$0xff] }
0x11fc   : > { %8073 = vmatprep.subr.mxu1 %v7417_v59  ;;  %7950 = vmatpush2.msra.mxu0 %v7644_v10  ;;  %v7616_v59 = vld [vmem:[%s14291_s24 + $0x8e0] sm:$0xff]  ;;  %v7515_v10 = vld [vmem:[%s14291_s24 + $0x5b8] sm:$0xff] }
0x11fd   : > { %8074 = vmatpush1.msra.mxu1 %v7416_v34  ;;  %7951 = vmatprep.subr.mxu0 %v7635_v12  ;;  %v7607_v34 = vld [vmem:[%s14291_s24 + $0x898] sm:$0xff]  ;;  %v7514_v12 = vld [vmem:[%s14291_s24 + $0x5b0] sm:$0xff] }
0x11fe   : > { %8075 = vmatprep.subr.mxu1 %v7407_v58  ;;  %7952 = vmatpush2.msra.mxu0 %v7634_v6  ;;  %v7606_v58 = vld [vmem:[%s14291_s24 + $0x890] sm:$0xff]  ;;  %v7505_v6 = vld [vmem:[%s14291_s24 + $0x568] sm:$0xff] }
0x11ff   : > { %8076 = vmatpush1.msra.mxu1 %v7406_v52  ;;  %7953 = vmatprep.subr.mxu0 %v7625_v44  ;;  %v7597_v52 = vld [vmem:[%s14291_s24 + $0x848] sm:$0xff]  ;;  %v7504_v44 = vld [vmem:[%s14291_s24 + $0x560] sm:$0xff] }
0x1200   : > { %8077 = vmatprep.subr.mxu1 %v7397_v29  ;;  %7954 = vmatpush2.msra.mxu0 %v7624_v38  ;;  %v7596_v29 = vld [vmem:[%s14291_s24 + $0x840] sm:$0xff]  ;;  %v7495_v38 = vld [vmem:[%s14291_s24 + $0x518] sm:$0xff] }
0x1201   : > { %8078 = vmatpush1.msra.mxu1 %v7396_v28  ;;  %7955 = vmatprep.subr.mxu0 %v7615_v21  ;;  %v7587_v28 = vld [vmem:[%s14291_s24 + $0x7f8] sm:$0xff]  ;;  %v7494_v21 = vld [vmem:[%s14291_s24 + $0x510] sm:$0xff] }
0x1202   : > { %8079 = vmatprep.subr.mxu1 %v7387_v19  ;;  %7956 = vmatpush2.msra.mxu0 %v7614_v8  ;;  %v7586_v19 = vld [vmem:[%s14291_s24 + $0x7f0] sm:$0xff]  ;;  %v7577_v8 = vld [vmem:[%s14291_s24 + $0x7a8] sm:$0xff] }
0x1203   : > { %8080 = vmatpush1.msra.mxu1 %v7386_v62  ;;  %7957 = vmatprep.subr.mxu0 %v7605_v25  ;;  %v7737_v62 = vld [vmem:[%s14291_s24 + $0xca8] sm:$0xf]  ;;  %v7576_v25 = vld [vmem:[%s14291_s24 + $0x7a0] sm:$0xff] }
0x1204   : > { %8081 = vmatprep.subr.mxu1 %v7377_v27  ;;  %7958 = vmatpush2.msra.mxu0 %v7604_v23  ;;  %v7736_v27 = vld [vmem:[%s14291_s24 + $0xca0] sm:$0xf]  ;;  %v7567_v23 = vld [vmem:[%s14291_s24 + $0x758] sm:$0xff] }
0x1205   : > { %8082 = vmatpush1.msra.mxu1 %v7376_v42  ;;  %7959 = vmatprep.subr.mxu0 %v7595_v17  ;;  %v7727_v42 = vld [vmem:[%s14291_s24 + $0xc58] sm:$0xff]  ;;  %v7566_v17 = vld [vmem:[%s14291_s24 + $0x750] sm:$0xff] }
0x1206   : > { %8083 = vmatprep.subr.mxu1 %v7367_v56  ;;  %7960 = vmatpush2.msra.mxu0 %v7594_v46  ;;  %v7726_v56 = vld [vmem:[%s14291_s24 + $0xc50] sm:$0xff]  ;;  %v7557_v46 = vld [vmem:[%s14291_s24 + $0x708] sm:$0xff] }
0x1207   : > { %8084 = vmatpush1.msra.mxu1 %v7366_v9  ;;  %7961 = vmatprep.subr.mxu0 %v7585_v36  ;;  %v7717_v9 = vld [vmem:[%s14291_s24 + $0xc08] sm:$0xff]  ;;  %v7556_v36 = vld [vmem:[%s14291_s24 + $0x700] sm:$0xff] }
0x1208   : > { %8085 = vmatprep.subr.mxu1 %v7357_v16  ;;  %7962 = vmatpush2.msra.mxu0 %v7584_v24  ;;  %v7716_v16 = vld [vmem:[%s14291_s24 + $0xc00] sm:$0xff]  ;;  %v7547_v24 = vld [vmem:[%s14291_s24 + $0x6b8] sm:$0xff] }
0x1209   : > { %8086 = vmatpush1.msra.mxu1 %v7356_v32  ;;  %7963 = vmatprep.subr.mxu0 %v7575_v61  ;;  %v7707_v32 = vld [vmem:[%s14291_s24 + $0xbb8] sm:$0xff]  ;;  %v7546_v61 = vld [vmem:[%s14291_s24 + $0x6b0] sm:$0xff] }
0x120a   : > { %8087 = vmatprep.subr.mxu1 %v7347_v45  ;;  %7964 = vmatpush2.msra.mxu0 %v7574_v18  ;;  %v7706_v45 = vld [vmem:[%s14291_s24 + $0xbb0] sm:$0xff]  ;;  %v7537_v18 = vld [vmem:[%s14291_s24 + $0x668] sm:$0xff] }
0x120b   : > { %8088 = vmatpush1.msra.mxu1 %v7346_v13  ;;  %7965 = vmatprep.subr.mxu0 %v7565_v11  ;;  %v7697_v13 = vld [vmem:[%s14291_s24 + $0xb68] sm:$0xff]  ;;  %v7536_v11 = vld [vmem:[%s14291_s24 + $0x660] sm:$0xff] }
0x120c   : > { %8089 = vmatprep.subr.mxu1 %v7337_v26  ;;  %7966 = vmatpush2.msra.mxu0 %v7564_v35  ;;  %v7696_v26 = vld [vmem:[%s14291_s24 + $0xb60] sm:$0xff]  ;;  %v7527_v35 = vld [vmem:[%s14291_s24 + $0x618] sm:$0xff] }
0x120d   : > { %8090 = vmatpush1.msra.mxu1 %v7336_v40  ;;  %7967 = vmatprep.subr.mxu0 %v7555_v41  ;;  %v7687_v40 = vld [vmem:[%s14291_s24 + $0xb18] sm:$0xff]  ;;  %v7526_v41 = vld [vmem:[%s14291_s24 + $0x610] sm:$0xff] }
0x120e   : > { %8091 = vmatprep.subr.mxu1 %v7647_v5  ;;  %7968 = vmatpush2.msra.mxu0 %v7554_v60  ;;  %v7686_v5 = vld [vmem:[%s14291_s24 + $0xb10] sm:$0xff]  ;;  %v7517_v60 = vld [vmem:[%s14291_s24 + $0x5c8] sm:$0xff] }
0x120f   : > { %8092 = vmatpush2.msra.mxu1 %v7646_v49  ;;  %7969 = vmatprep.subr.mxu0 %v7545_v0  ;;  %v7677_v49 = vld [vmem:[%s14291_s24 + $0xac8] sm:$0xff]  ;;  %v7516_v0 = vld [vmem:[%s14291_s24 + $0x5c0] sm:$0xff] }
0x1210   : > { %8093 = vmatprep.subr.mxu1 %v7637_v55  ;;  %7970 = vmatpush2.msra.mxu0 %v7544_v53  ;;  %v7676_v55 = vld [vmem:[%s14291_s24 + $0xac0] sm:$0xff]  ;;  %v7507_v53 = vld [vmem:[%s14291_s24 + $0x578] sm:$0xff] }
0x1211   : > { %8094 = vmatpush2.msra.mxu1 %v7636_v48  ;;  %7971 = vmatprep.subr.mxu0 %v7535_v7  ;;  %v7667_v48 = vld [vmem:[%s14291_s24 + $0xa78] sm:$0xff]  ;;  %v7506_v7 = vld [vmem:[%s14291_s24 + $0x570] sm:$0xff] }
0x1212   : > { %8095 = vmatprep.subr.mxu1 %v7627_v14  ;;  %7972 = vmatpush2.msra.mxu0 %v7534_v47  ;;  %v7666_v14 = vld [vmem:[%s14291_s24 + $0xa70] sm:$0xff]  ;;  %v7497_v47 = vld [vmem:[%s14291_s24 + $0x528] sm:$0xff] }
0x1213   : > { %8096 = vmatpush2.msra.mxu1 %v7626_v39  ;;  %7973 = vmatprep.subr.mxu0 %v7525_v22  ;;  %v7657_v39 = vld [vmem:[%s14291_s24 + $0xa28] sm:$0xff]  ;;  %v7496_v22 = vld [vmem:[%s14291_s24 + $0x520] sm:$0xff] }
0x1214   : > { %8097 = vmatprep.subr.mxu1 %v7617_v43  ;;  %7974 = vmatpush2.msra.mxu0 %v7524_v50  ;;  %v7656_v43 = vld [vmem:[%s14291_s24 + $0xa20] sm:$0xff]  ;;  %v7489_v50 = vld [vmem:[%s14291_s24 + $0x4e8] sm:$0xff] }
0x1215   : > { %8098 = vmatpush2.msra.mxu1 %v7616_v59  ;;  %7975 = vmatprep.subr.mxu0 %v7515_v10  ;;  %v7739_v59 = vld [vmem:[%s14291_s24 + $0xcb8] sm:$0xf]  ;;  %v7488_v10 = vld [vmem:[%s14291_s24 + $0x4e0] sm:$0xff] }
0x1216   : > { %8099 = vmatprep.subr.mxu1 %v7607_v34  ;;  %7976 = vmatpush2.msra.mxu0 %v7514_v12  ;;  %v7738_v34 = vld [vmem:[%s14291_s24 + $0xcb0] sm:$0xf]  ;;  %v7479_v12 = vld [vmem:[%s14291_s24 + $0x498] sm:$0xff] }
0x1217   : > { %8100 = vmatpush2.msra.mxu1 %v7606_v58  ;;  %7977 = vmatprep.subr.mxu0 %v7505_v6  ;;  %v7729_v58 = vld [vmem:[%s14291_s24 + $0xc68] sm:$0xff]  ;;  %v7728_v6 = vld [vmem:[%s14291_s24 + $0xc60] sm:$0xff] }
0x1218   : > { %8101 = vmatprep.subr.mxu1 %v7597_v52  ;;  %7978 = vmatpush2.msra.mxu0 %v7504_v44  ;;  %v7469_v52 = vld [vmem:[%s14291_s24 + $0x448] sm:$0xff]  ;;  %v7719_v44 = vld [vmem:[%s14291_s24 + $0xc18] sm:$0xff] }
0x1219   : > { %8102 = vmatpush2.msra.mxu1 %v7596_v29  ;;  %7979 = vmatprep.subr.mxu0 %v7495_v38  ;;  %v7468_v29 = vld [vmem:[%s14291_s24 + $0x440] sm:$0xff]  ;;  %v7718_v38 = vld [vmem:[%s14291_s24 + $0xc10] sm:$0xff] }
0x121a   : > { %8103 = vmatprep.subr.mxu1 %v7587_v28  ;;  %7980 = vmatpush2.msra.mxu0 %v7494_v21  ;;  %v7459_v28 = vld [vmem:[%s14291_s24 + $0x3f8] sm:$0xff]  ;;  %v7709_v21 = vld [vmem:[%s14291_s24 + $0xbc8] sm:$0xff] }
0x121b   : > { %7981 = vmatprep.mubr.f32.mxu0 %v9127_v2  ;;  %8104 = vmatpush2.msra.mxu1 %v7586_v19  ;;  %v7458_v19 = vld [vmem:[%s14291_s24 + $0x3f0] sm:$0xff] }
0x121c   : > { %7982 = vmatmul.mubr.f32.vlgmr.msra.gmra.mxu0 %v13131_v37  ;;  %8105 = vmatprep.subr.mxu1 %v7577_v8  ;;  %v7708_v8 = vld [vmem:[%s14291_s24 + $0xbc0] sm:$0xff] }
0x121d   : > { %8723 = vmatprep.subr.msk.mxu0 %vm14304_vm14, %v7737_v62  ;;  %8106 = vmatpush2.msra.mxu1 %v7576_v25  ;;  %v7449_v62 = vld [vmem:[%s14291_s24 + $0x3a8] sm:$0xff]  ;;  %v7699_v25 = vld [vmem:[%s14291_s24 + $0xb78] sm:$0xff] }
0x121e   : > { %8724 = vmatpush1.msk.msra.mxu0 %vm14305_vm5, %v7736_v27  ;;  %8107 = vmatprep.subr.mxu1 %v7567_v23  ;;  %v7448_v27 = vld [vmem:[%s14291_s24 + $0x3a0] sm:$0xff]  ;;  %v7698_v23 = vld [vmem:[%s14291_s24 + $0xb70] sm:$0xff] }
0x121f   : > { %8146 = vmatprep.subr.mxu0 %v7727_v42  ;;  %8108 = vmatpush2.msra.mxu1 %v7566_v17  ;;  %v7439_v42 = vld [vmem:[%s14291_s24 + $0x358] sm:$0xff]  ;;  %v7689_v17 = vld [vmem:[%s14291_s24 + $0xb28] sm:$0xff] }
0x1220   : > { %8147 = vmatpush1.msra.mxu0 %v7726_v56  ;;  %8109 = vmatprep.subr.mxu1 %v7557_v46  ;;  %v7438_v56 = vld [vmem:[%s14291_s24 + $0x350] sm:$0xff]  ;;  %v7688_v46 = vld [vmem:[%s14291_s24 + $0xb20] sm:$0xff] }
0x1221   : > { %8148 = vmatprep.subr.mxu0 %v7717_v9  ;;  %8110 = vmatpush2.msra.mxu1 %v7556_v36  ;;  %v7429_v9 = vld [vmem:[%s14291_s24 + $0x308] sm:$0xff]  ;;  %v7679_v36 = vld [vmem:[%s14291_s24 + $0xad8] sm:$0xff] }
0x1222   : > { %8149 = vmatpush1.msra.mxu0 %v7716_v16  ;;  %8111 = vmatprep.subr.mxu1 %v7547_v24  ;;  %v7428_v16 = vld [vmem:[%s14291_s24 + $0x300] sm:$0xff]  ;;  %v7678_v24 = vld [vmem:[%s14291_s24 + $0xad0] sm:$0xff] }
0x1223   : > { %8150 = vmatprep.subr.mxu0 %v7707_v32  ;;  %8112 = vmatpush2.msra.mxu1 %v7546_v61  ;;  %v7419_v32 = vld [vmem:[%s14291_s24 + $0x2b8] sm:$0xff]  ;;  %v7669_v61 = vld [vmem:[%s14291_s24 + $0xa88] sm:$0xff] }
0x1224   : > { %8151 = vmatpush1.msra.mxu0 %v7706_v45  ;;  %8113 = vmatprep.subr.mxu1 %v7537_v18  ;;  %v7418_v45 = vld [vmem:[%s14291_s24 + $0x2b0] sm:$0xff]  ;;  %v7668_v18 = vld [vmem:[%s14291_s24 + $0xa80] sm:$0xff] }
0x1225   : > { %8152 = vmatprep.subr.mxu0 %v7697_v13  ;;  %8114 = vmatpush2.msra.mxu1 %v7536_v11  ;;  %v7409_v13 = vld [vmem:[%s14291_s24 + $0x268] sm:$0xff]  ;;  %v7659_v11 = vld [vmem:[%s14291_s24 + $0xa38] sm:$0xff] }
0x1226   : > { %8153 = vmatpush1.msra.mxu0 %v7696_v26  ;;  %8115 = vmatprep.subr.mxu1 %v7527_v35  ;;  %v7408_v26 = vld [vmem:[%s14291_s24 + $0x260] sm:$0xff]  ;;  %v7658_v35 = vld [vmem:[%s14291_s24 + $0xa30] sm:$0xff] }
0x1227   : > { %8154 = vmatprep.subr.mxu0 %v7687_v40  ;;  %8116 = vmatpush2.msra.mxu1 %v7526_v41  ;;  %v7399_v40 = vld [vmem:[%s14291_s24 + $0x218] sm:$0xff] }
0x1228   : > { %8155 = vmatpush1.msra.mxu0 %v7686_v5  ;;  %8117 = vmatprep.subr.mxu1 %v7517_v60  ;;  %v7491_v41 = vld [vmem:[%s14291_s24 + $0x4f8] sm:$0xff]  ;;  %v7398_v5 = vld [vmem:[%s14291_s24 + $0x210] sm:$0xff] }
0x1229   : > { %8156 = vmatprep.subr.mxu0 %v7677_v49  ;;  %8118 = vmatpush2.msra.mxu1 %v7516_v0  ;;  %v7490_v60 = vld [vmem:[%s14291_s24 + $0x4f0] sm:$0xff]  ;;  %v7389_v49 = vld [vmem:[%s14291_s24 + $0x1c8] sm:$0xff] }
0x122a   : > { %8157 = vmatpush1.msra.mxu0 %v7676_v55  ;;  %8119 = vmatprep.subr.mxu1 %v7507_v53  ;;  %v7481_v0 = vld [vmem:[%s14291_s24 + $0x4a8] sm:$0xff]  ;;  %v7388_v55 = vld [vmem:[%s14291_s24 + $0x1c0] sm:$0xff] }
0x122b   : > { %8158 = vmatprep.subr.mxu0 %v7667_v48  ;;  %8120 = vmatpush2.msra.mxu1 %v7506_v7  ;;  %v7480_v53 = vld [vmem:[%s14291_s24 + $0x4a0] sm:$0xff]  ;;  %v7379_v48 = vld [vmem:[%s14291_s24 + $0x178] sm:$0xff] }
0x122c   : > { %8159 = vmatpush1.msra.mxu0 %v7666_v14  ;;  %8121 = vmatprep.subr.mxu1 %v7497_v47  ;;  %v7471_v7 = vld [vmem:[%s14291_s24 + $0x458] sm:$0xff]  ;;  %v7378_v14 = vld [vmem:[%s14291_s24 + $0x170] sm:$0xff]  ;;  %v7369_v47 = vld [vmem:[%s14291_s24 + $0x128] sm:$0xff] }
0x122d   : > { %8160 = vmatprep.subr.mxu0 %v7657_v39  ;;  %8122 = vmatpush2.msra.mxu1 %v7496_v22  ;;  %v7461_v39 = vld [vmem:[%s14291_s24 + $0x408] sm:$0xff]  ;;  %v7368_v22 = vld [vmem:[%s14291_s24 + $0x120] sm:$0xff] }
0x122e   : > { %8123 = vmatprep.mubr.f32.mxu1 %v9127_v2  ;;  %8161 = vmatpush1.msra.mxu0 %v7656_v43  ;;  %v7460_v43 = vld [vmem:[%s14291_s24 + $0x400] sm:$0xff] }
0x122f   : > { %8194 = vmatprep.mubr.f32.mxu0 %v8971_v3  ;;  %8124 = vmatmul.mubr.f32.vlgmr.msra.gmra.mxu1 %v13131_v37  ;;  %v7478_v37 = vld [vmem:[%s14291_s24 + $0x490] sm:$0xff] }
0x1230   : > { %8725 = vmatmul.mubr.msk.f32.vlgmr.msra.gmra.mxu0 %vm14306_vm4, %v13141_v54  ;;  %8201 = vmatprep.subr.mxu0 %v7489_v50  ;;  %v7359_v50 = vld [vmem:[%s14291_s24 + $0xd8] sm:$0xff] }
0x1231   : > { %8726 = vmatprep.subr.msk.mxu1 %vm14307_vm9, %v7739_v59  ;;  %8202 = vmatpush1.msra.mxu0 %v7488_v10  ;;  %v7451_v59 = vld [vmem:[%s14291_s24 + $0x3b8] sm:$0xff]  ;;  %v7358_v10 = vld [vmem:[%s14291_s24 + $0xd0] sm:$0xff] }
0x1232   : > { %8727 = vmatpush1.msk.msra.mxu1 %vm14308_vm12, %v7738_v34  ;;  %8203 = vmatprep.subr.mxu0 %v7479_v12  ;;  %v7450_v34 = vld [vmem:[%s14291_s24 + $0x3b0] sm:$0xff]  ;;  %v7349_v12 = vld [vmem:[%s14291_s24 + $0x88] sm:$0xff] }
0x1233   : > { %8288 = vmatprep.subr.mxu1 %v7729_v58  ;;  %8204 = vmatpush1.msra.mxu0 %v7478_v37  ;;  %v7441_v58 = vld [vmem:[%s14291_s24 + $0x368] sm:$0xff]  ;;  %v7348_v37 = vld [vmem:[%s14291_s24 + $0x80] sm:$0xff] }
0x1234   : > { %8289 = vmatpush1.msra.mxu1 %v7728_v6  ;;  %8205 = vmatprep.subr.mxu0 %v7469_v52  ;;  %v7440_v6 = vld [vmem:[%s14291_s24 + $0x360] sm:$0xff]  ;;  %v7339_v52 = vld [vmem:[%s14291_s24 + $0x38] sm:$0xff] }
0x1235   : > { %8290 = vmatprep.subr.mxu1 %v7719_v44  ;;  %8206 = vmatpush1.msra.mxu0 %v7468_v29  ;;  %v7431_v44 = vld [vmem:[%s14291_s24 + $0x318] sm:$0xff]  ;;  %v7338_v29 = vld [vmem:[%s14291_s24 + $0x30] sm:$0xff] }
0x1236   : > { %8291 = vmatpush1.msra.mxu1 %v7718_v38  ;;  %8207 = vmatprep.subr.mxu0 %v7459_v28  ;;  %v7430_v38 = vld [vmem:[%s14291_s24 + $0x310] sm:$0xff]  ;;  %v7649_v28 = vld [vmem:[%s14291_s24 + $0x9e8] sm:$0xff] }
0x1237   : > { %8292 = vmatprep.subr.mxu1 %v7709_v21  ;;  %8208 = vmatpush1.msra.mxu0 %v7458_v19  ;;  %v7421_v21 = vld [vmem:[%s14291_s24 + $0x2c8] sm:$0xff]  ;;  %v7648_v19 = vld [vmem:[%s14291_s24 + $0x9e0] sm:$0xff] }
0x1238   : > { %8293 = vmatpush1.msra.mxu1 %v7708_v8  ;;  %8209 = vmatprep.subr.mxu0 %v7449_v62  ;;  %v7420_v8 = vld [vmem:[%s14291_s24 + $0x2c0] sm:$0xff]  ;;  %v7639_v62 = vld [vmem:[%s14291_s24 + $0x998] sm:$0xff] }
0x1239   : > { %8294 = vmatprep.subr.mxu1 %v7699_v25  ;;  %8210 = vmatpush1.msra.mxu0 %v7448_v27  ;;  %v7411_v25 = vld [vmem:[%s14291_s24 + $0x278] sm:$0xff]  ;;  %v7638_v27 = vld [vmem:[%s14291_s24 + $0x990] sm:$0xff] }
0x123a   : > { %8295 = vmatpush1.msra.mxu1 %v7698_v23  ;;  %8211 = vmatprep.subr.mxu0 %v7439_v42  ;;  %v7410_v23 = vld [vmem:[%s14291_s24 + $0x270] sm:$0xff]  ;;  %v7629_v42 = vld [vmem:[%s14291_s24 + $0x948] sm:$0xff] }
0x123b   : > { %8296 = vmatprep.subr.mxu1 %v7689_v17  ;;  %8212 = vmatpush1.msra.mxu0 %v7438_v56  ;;  %v7401_v17 = vld [vmem:[%s14291_s24 + $0x228] sm:$0xff]  ;;  %v7628_v56 = vld [vmem:[%s14291_s24 + $0x940] sm:$0xff] }
0x123c   : > { %8297 = vmatpush1.msra.mxu1 %v7688_v46  ;;  %8213 = vmatprep.subr.mxu0 %v7429_v9  ;;  %v7400_v46 = vld [vmem:[%s14291_s24 + $0x220] sm:$0xff]  ;;  %v7619_v9 = vld [vmem:[%s14291_s24 + $0x8f8] sm:$0xff] }
0x123d   : > { %8298 = vmatprep.subr.mxu1 %v7679_v36  ;;  %8214 = vmatpush1.msra.mxu0 %v7428_v16  ;;  %v7391_v36 = vld [vmem:[%s14291_s24 + $0x1d8] sm:$0xff]  ;;  %v7618_v16 = vld [vmem:[%s14291_s24 + $0x8f0] sm:$0xff] }
0x123e   : > { %8299 = vmatpush1.msra.mxu1 %v7678_v24  ;;  %8215 = vmatprep.subr.mxu0 %v7419_v32  ;;  %v7390_v24 = vld [vmem:[%s14291_s24 + $0x1d0] sm:$0xff]  ;;  %v7609_v32 = vld [vmem:[%s14291_s24 + $0x8a8] sm:$0xff] }
0x123f   : > { %8300 = vmatprep.subr.mxu1 %v7669_v61  ;;  %8216 = vmatpush1.msra.mxu0 %v7418_v45  ;;  %v7381_v61 = vld [vmem:[%s14291_s24 + $0x188] sm:$0xff]  ;;  %v7608_v45 = vld [vmem:[%s14291_s24 + $0x8a0] sm:$0xff] }
0x1240   : > { %8301 = vmatpush1.msra.mxu1 %v7668_v18  ;;  %8217 = vmatprep.subr.mxu0 %v7409_v13  ;;  %v7380_v18 = vld [vmem:[%s14291_s24 + $0x180] sm:$0xff]  ;;  %v7599_v13 = vld [vmem:[%s14291_s24 + $0x858] sm:$0xff] }
0x1241   : > { %8302 = vmatprep.subr.mxu1 %v7659_v11  ;;  %8218 = vmatpush1.msra.mxu0 %v7408_v26  ;;  %v7371_v11 = vld [vmem:[%s14291_s24 + $0x138] sm:$0xff]  ;;  %v7598_v26 = vld [vmem:[%s14291_s24 + $0x850] sm:$0xff] }
0x1242   : > { %8303 = vmatpush1.msra.mxu1 %v7658_v35  ;;  %8219 = vmatprep.subr.mxu0 %v7399_v40  ;;  %v7370_v35 = vld [vmem:[%s14291_s24 + $0x130] sm:$0xff]  ;;  %v7589_v40 = vld [vmem:[%s14291_s24 + $0x808] sm:$0xff] }
0x1243   : > { %8336 = vmatprep.mubr.f32.mxu1 %v8971_v3  ;;  %8343 = vmatprep.subr.mxu1 %v7491_v41  ;;  %v7361_v41 = vld [vmem:[%s14291_s24 + $0xe8] sm:$0xff] }
0x1244   : > { %8220 = vmatpush1.msra.mxu0 %v7398_v5  ;;  %8728 = vmatmul.mubr.msk.f32.vlgmr.msra.gmra.mxu1 %vm14309_vm15, %v13141_v54  ;;  %v7470_v54 = vld [vmem:[%s14291_s24 + $0x450] sm:$0xff]  ;;  %v7588_v5 = vld [vmem:[%s14291_s24 + $0x800] sm:$0xff] }
0x1245   : > { %8344 = vmatpush1.msra.mxu1 %v7490_v60  ;;  %8221 = vmatprep.subr.mxu0 %v7389_v49  ;;  %v7360_v60 = vld [vmem:[%s14291_s24 + $0xe0] sm:$0xff]  ;;  %v7579_v49 = vld [vmem:[%s14291_s24 + $0x7b8] sm:$0xff] }
0x1246   : > { %8345 = vmatprep.subr.mxu1 %v7481_v0  ;;  %8222 = vmatpush1.msra.mxu0 %v7388_v55  ;;  %v7351_v0 = vld [vmem:[%s14291_s24 + $0x98] sm:$0xff]  ;;  %v7578_v55 = vld [vmem:[%s14291_s24 + $0x7b0] sm:$0xff] }
0x1247   : > { %8346 = vmatpush1.msra.mxu1 %v7480_v53  ;;  %8223 = vmatprep.subr.mxu0 %v7379_v48  ;;  %v7350_v53 = vld [vmem:[%s14291_s24 + $0x90] sm:$0xff]  ;;  %v7569_v48 = vld [vmem:[%s14291_s24 + $0x768] sm:$0xff] }
0x1248   : > { %8347 = vmatprep.subr.mxu1 %v7471_v7  ;;  %8224 = vmatpush1.msra.mxu0 %v7378_v14  ;;  %v7341_v7 = vld [vmem:[%s14291_s24 + $0x48] sm:$0xff]  ;;  %v7568_v14 = vld [vmem:[%s14291_s24 + $0x760] sm:$0xff] }
0x1249   : > { %8348 = vmatpush1.msra.mxu1 %v7470_v54  ;;  %8225 = vmatprep.subr.mxu0 %v7369_v47  ;;  %v7340_v54 = vld [vmem:[%s14291_s24 + $0x40] sm:$0xff]  ;;  %v7559_v47 = vld [vmem:[%s14291_s24 + $0x718] sm:$0xff] }
0x124a   : > { %8349 = vmatprep.subr.mxu1 %v7461_v39  ;;  %8226 = vmatpush1.msra.mxu0 %v7368_v22  ;;  %v7651_v39 = vld [vmem:[%s14291_s24 + $0x9f8] sm:$0xff]  ;;  %v7558_v22 = vld [vmem:[%s14291_s24 + $0x710] sm:$0xff] }
0x124b   : > { %8350 = vmatpush1.msra.mxu1 %v7460_v43  ;;  %8227 = vmatprep.subr.mxu0 %v7359_v50  ;;  %v7650_v43 = vld [vmem:[%s14291_s24 + $0x9f0] sm:$0xff]  ;;  %v7549_v50 = vld [vmem:[%s14291_s24 + $0x6c8] sm:$0xff] }
0x124c   : > { %8351 = vmatprep.subr.mxu1 %v7451_v59  ;;  %8228 = vmatpush1.msra.mxu0 %v7358_v10  ;;  %v7641_v59 = vld [vmem:[%s14291_s24 + $0x9a8] sm:$0xff]  ;;  %v7548_v10 = vld [vmem:[%s14291_s24 + $0x6c0] sm:$0xff] }
0x124d   : > { %8352 = vmatpush1.msra.mxu1 %v7450_v34  ;;  %8229 = vmatprep.subr.mxu0 %v7349_v12  ;;  %v7640_v34 = vld [vmem:[%s14291_s24 + $0x9a0] sm:$0xff]  ;;  %v7539_v12 = vld [vmem:[%s14291_s24 + $0x678] sm:$0xff] }
0x124e   : > { %8353 = vmatprep.subr.mxu1 %v7441_v58  ;;  %8230 = vmatpush1.msra.mxu0 %v7348_v37  ;;  %v7631_v58 = vld [vmem:[%s14291_s24 + $0x958] sm:$0xff]  ;;  %v7538_v37 = vld [vmem:[%s14291_s24 + $0x670] sm:$0xff] }
0x124f   : > { %8354 = vmatpush1.msra.mxu1 %v7440_v6  ;;  %8231 = vmatprep.subr.mxu0 %v7339_v52  ;;  %v7630_v6 = vld [vmem:[%s14291_s24 + $0x950] sm:$0xff]  ;;  %v7529_v52 = vld [vmem:[%s14291_s24 + $0x628] sm:$0xff] }
0x1250   : > { %8355 = vmatprep.subr.mxu1 %v7431_v44  ;;  %8232 = vmatpush1.msra.mxu0 %v7338_v29  ;;  %v7621_v44 = vld [vmem:[%s14291_s24 + $0x908] sm:$0xff]  ;;  %v7528_v29 = vld [vmem:[%s14291_s24 + $0x620] sm:$0xff] }
0x1251   : > { %8356 = vmatpush1.msra.mxu1 %v7430_v38  ;;  %8233 = vmatprep.subr.mxu0 %v7649_v28  ;;  %v7620_v38 = vld [vmem:[%s14291_s24 + $0x900] sm:$0xff]  ;;  %v7519_v28 = vld [vmem:[%s14291_s24 + $0x5d8] sm:$0xff] }
0x1252   : > { %8357 = vmatprep.subr.mxu1 %v7421_v21  ;;  %8234 = vmatpush2.msra.mxu0 %v7648_v19  ;;  %v7611_v21 = vld [vmem:[%s14291_s24 + $0x8b8] sm:$0xff]  ;;  %v7518_v19 = vld [vmem:[%s14291_s24 + $0x5d0] sm:$0xff] }
0x1253   : > { %8358 = vmatpush1.msra.mxu1 %v7420_v8  ;;  %8235 = vmatprep.subr.mxu0 %v7639_v62  ;;  %v7610_v8 = vld [vmem:[%s14291_s24 + $0x8b0] sm:$0xff]  ;;  %v7509_v62 = vld [vmem:[%s14291_s24 + $0x588] sm:$0xff] }
0x1254   : > { %8359 = vmatprep.subr.mxu1 %v7411_v25  ;;  %8236 = vmatpush2.msra.mxu0 %v7638_v27  ;;  %v7601_v25 = vld [vmem:[%s14291_s24 + $0x868] sm:$0xff]  ;;  %v7508_v27 = vld [vmem:[%s14291_s24 + $0x580] sm:$0xff] }
0x1255   : > { %8360 = vmatpush1.msra.mxu1 %v7410_v23  ;;  %8237 = vmatprep.subr.mxu0 %v7629_v42  ;;  %v7600_v23 = vld [vmem:[%s14291_s24 + $0x860] sm:$0xff]  ;;  %v7499_v42 = vld [vmem:[%s14291_s24 + $0x538] sm:$0xff] }
0x1256   : > { %8361 = vmatprep.subr.mxu1 %v7401_v17  ;;  %8238 = vmatpush2.msra.mxu0 %v7628_v56  ;;  %v7591_v17 = vld [vmem:[%s14291_s24 + $0x818] sm:$0xff]  ;;  %v7498_v56 = vld [vmem:[%s14291_s24 + $0x530] sm:$0xff] }
0x1257   : > { %8362 = vmatpush1.msra.mxu1 %v7400_v46  ;;  %8239 = vmatprep.subr.mxu0 %v7619_v9  ;;  %v7590_v46 = vld [vmem:[%s14291_s24 + $0x810] sm:$0xff]  ;;  %v7581_v9 = vld [vmem:[%s14291_s24 + $0x7c8] sm:$0xff] }
0x1258   : > { %8363 = vmatprep.subr.mxu1 %v7391_v36  ;;  %8240 = vmatpush2.msra.mxu0 %v7618_v16  ;;  %v7741_v36 = vld [vmem:[%s14291_s24 + $0xcc8] sm:$0xf]  ;;  %v7580_v16 = vld [vmem:[%s14291_s24 + $0x7c0] sm:$0xff] }
0x1259   : > { %8364 = vmatpush1.msra.mxu1 %v7390_v24  ;;  %8241 = vmatprep.subr.mxu0 %v7609_v32  ;;  %v7740_v24 = vld [vmem:[%s14291_s24 + $0xcc0] sm:$0xf]  ;;  %v7571_v32 = vld [vmem:[%s14291_s24 + $0x778] sm:$0xff] }
0x125a   : > { %8365 = vmatprep.subr.mxu1 %v7381_v61  ;;  %8242 = vmatpush2.msra.mxu0 %v7608_v45  ;;  %v14042_v61 = vld [vmem:[%s9113_s23] sm:$0x77]  ;;  %v7731_v45 = vld [vmem:[%s14291_s24 + $0xc78] sm:$0xff] }
0x125b   : > { %8366 = vmatpush1.msra.mxu1 %v7380_v18  ;;  %8243 = vmatprep.subr.mxu0 %v7599_v13  ;;  %v7570_v18 = vld [vmem:[%s14291_s24 + $0x770] sm:$0xff] }
0x125c   : > { %8367 = vmatprep.subr.mxu1 %v7371_v11  ;;  %8244 = vmatpush2.msra.mxu0 %v7598_v26  ;;  %v7730_v13 = vld [vmem:[%s14291_s24 + $0xc70] sm:$0xff]  ;;  %v7561_v11 = vld [vmem:[%s14291_s24 + $0x728] sm:$0xff] }
0x125d   : > { %8368 = vmatpush1.msra.mxu1 %v7370_v35  ;;  %8245 = vmatprep.subr.mxu0 %v7589_v40  ;;  %v7721_v26 = vld [vmem:[%s14291_s24 + $0xc28] sm:$0xff]  ;;  %v7560_v35 = vld [vmem:[%s14291_s24 + $0x720] sm:$0xff] }
0x125e   : > { %8369 = vmatprep.subr.mxu1 %v7361_v41  ;;  %8246 = vmatpush2.msra.mxu0 %v7588_v5  ;;  %v7720_v40 = vld [vmem:[%s14291_s24 + $0xc20] sm:$0xff]  ;;  %v7551_v41 = vld [vmem:[%s14291_s24 + $0x6d8] sm:$0xff] }
0x125f   : > { %8370 = vmatpush1.msra.mxu1 %v7360_v60  ;;  %8247 = vmatprep.subr.mxu0 %v7579_v49  ;;  %v7711_v5 = vld [vmem:[%s14291_s24 + $0xbd8] sm:$0xff]  ;;  %v7550_v60 = vld [vmem:[%s14291_s24 + $0x6d0] sm:$0xff] }
0x1260   : > { %8371 = vmatprep.subr.mxu1 %v7351_v0  ;;  %8248 = vmatpush2.msra.mxu0 %v7578_v55  ;;  %v7710_v49 = vld [vmem:[%s14291_s24 + $0xbd0] sm:$0xff]  ;;  %v7541_v0 = vld [vmem:[%s14291_s24 + $0x688] sm:$0xff] }
0x1261   : > { %8372 = vmatpush1.msra.mxu1 %v7350_v53  ;;  %8249 = vmatprep.subr.mxu0 %v7569_v48  ;;  %v7701_v55 = vld [vmem:[%s14291_s24 + $0xb88] sm:$0xff]  ;;  %v7540_v53 = vld [vmem:[%s14291_s24 + $0x680] sm:$0xff] }
0x1262   : > { %8373 = vmatprep.subr.mxu1 %v7341_v7  ;;  %8250 = vmatpush2.msra.mxu0 %v7568_v14  ;;  %v7700_v48 = vld [vmem:[%s14291_s24 + $0xb80] sm:$0xff]  ;;  %v7531_v7 = vld [vmem:[%s14291_s24 + $0x638] sm:$0xff] }
0x1263   : > { %8374 = vmatpush1.msra.mxu1 %v7340_v54  ;;  %8251 = vmatprep.subr.mxu0 %v7559_v47  ;;  %v7691_v14 = vld [vmem:[%s14291_s24 + $0xb38] sm:$0xff]  ;;  %v7530_v54 = vld [vmem:[%s14291_s24 + $0x630] sm:$0xff] }
0x1264   : > { %8375 = vmatprep.subr.mxu1 %v7651_v39  ;;  %8252 = vmatpush2.msra.mxu0 %v7558_v22  ;;  %v7690_v47 = vld [vmem:[%s14291_s24 + $0xb30] sm:$0xff]  ;;  %v7521_v39 = vld [vmem:[%s14291_s24 + $0x5e8] sm:$0xff] }
0x1265   : > { %8376 = vmatpush2.msra.mxu1 %v7650_v43  ;;  %8253 = vmatprep.subr.mxu0 %v7549_v50  ;;  %v7681_v22 = vld [vmem:[%s14291_s24 + $0xae8] sm:$0xff]  ;;  %v7520_v43 = vld [vmem:[%s14291_s24 + $0x5e0] sm:$0xff] }
0x1266   : > { %8377 = vmatprep.subr.mxu1 %v7641_v59  ;;  %8254 = vmatpush2.msra.mxu0 %v7548_v10  ;;  %v7680_v50 = vld [vmem:[%s14291_s24 + $0xae0] sm:$0xff]  ;;  %v7511_v59 = vld [vmem:[%s14291_s24 + $0x598] sm:$0xff] }
0x1267   : > { %8378 = vmatpush2.msra.mxu1 %v7640_v34  ;;  %8255 = vmatprep.subr.mxu0 %v7539_v12  ;;  %v7671_v10 = vld [vmem:[%s14291_s24 + $0xa98] sm:$0xff]  ;;  %v7510_v34 = vld [vmem:[%s14291_s24 + $0x590] sm:$0xff] }
0x1268   : > { %8379 = vmatprep.subr.mxu1 %v7631_v58  ;;  %8256 = vmatpush2.msra.mxu0 %v7538_v37  ;;  %v7670_v12 = vld [vmem:[%s14291_s24 + $0xa90] sm:$0xff]  ;;  %v7501_v58 = vld [vmem:[%s14291_s24 + $0x548] sm:$0xff] }
0x1269   : > { %8380 = vmatpush2.msra.mxu1 %v7630_v6  ;;  %8257 = vmatprep.subr.mxu0 %v7529_v52  ;;  %v7661_v37 = vld [vmem:[%s14291_s24 + $0xa48] sm:$0xff]  ;;  %v7500_v6 = vld [vmem:[%s14291_s24 + $0x540] sm:$0xff] }
0x126a   : > { %8381 = vmatprep.subr.mxu1 %v7621_v44  ;;  %8258 = vmatpush2.msra.mxu0 %v7528_v29  ;;  %v7660_v52 = vld [vmem:[%s14291_s24 + $0xa40] sm:$0xff]  ;;  %v8958_v44 = vld [vmem:[%s9113_s23 + $0x8] sm:$0x7]  ;;  %v7033_v29 = vpop.f32.mrf.mxu0  ;;  %s8924_s23 = smul.u32 40, %s14315_s28 }
0x126b   : > { %8382 = vmatpush2.msra.mxu1 %v7620_v38  ;;  %8259 = vmatprep.subr.mxu0 %v7519_v28  ;;  %v7104_v28 = vpop.f32.mrf.mxu1 }
0x126c   : > { %8383 = vmatprep.subr.mxu1 %v7611_v21  ;;  %8260 = vmatpush2.msra.mxu0 %v7518_v19  ;;  %v7035_v38 = vpop.f32.mrf.mxu0  ;;  %s14151_s25 = scalar_lea.vmem %s14192_s22, %s8924_s23 }
0x126d   : > { %8384 = vmatpush2.msra.mxu1 %v7610_v8  ;;  %8261 = vmatprep.subr.mxu0 %v7509_v62  ;;  %v7106_v19 = vpop.f32.mrf.mxu1 }
0x126e   : > { %8385 = vmatprep.subr.mxu1 %v7601_v25  ;;  %8262 = vmatpush2.msra.mxu0 %v7508_v27 }
0x126f   : > { %8386 = vmatpush2.msra.mxu1 %v7600_v23  ;;  %8263 = vmatprep.subr.mxu0 %v7499_v42  ;;  %v7246_v62 = vpop.f32.mrf.mxu1  ;;  %v6962_v23 = vpop.permute.xlu1 %6961 }
0x1270   : > { %8387 = vmatprep.subr.mxu1 %v7591_v17  ;;  %8264 = vmatpush2.msra.mxu0 %v7498_v56  ;;  %v7034_v42 = vadd.f32 %v7033_v29, %v6962_v23  ;;  %v7036_v17 = vadd.f32 %v7035_v38, %v6962_v23 }
0x1271   : > { %8265 = vmatprep.mubr.f32.mxu0 %v9127_v2  ;;  %8388 = vmatpush2.msra.mxu1 %v7590_v46  ;;  %v7248_v27 = vpop.f32.mrf.mxu1 }
0x1272   : > { %8266 = vmatmul.mubr.f32.vlgmr.msra.gmra.mxu0 %v14042_v61  ;;  %8389 = vmatprep.subr.mxu1 %v7581_v9 }
0x1273   : > { %8729 = vmatprep.subr.msk.mxu0 %vm14310_vm10, %v7741_v36  ;;  %8390 = vmatpush2.msra.mxu1 %v7580_v16  ;;  %v7322_v16 = vmul.f32 %v7034_v42, %v11929_v1 }
0x1274   : > { %8730 = vmatpush1.msk.msra.mxu0 %vm14311_vm0, %v7740_v24  ;;  %8391 = vmatprep.subr.mxu1 %v7571_v32  ;;  %v7175_v21 = vpop.f32.mrf.mxu0  ;;  %v7323_v24 = vmul.f32 %v7036_v17, %v11926_v63 }
0x1275   : > { %8430 = vmatprep.subr.mxu0 %v7731_v45  ;;  %8392 = vmatpush2.msra.mxu1 %v7570_v18 }
0x1276   : > { %8431 = vmatpush1.msra.mxu0 %v7730_v13  ;;  %8393 = vmatprep.subr.mxu1 %v7561_v11  ;;  %v7177_v8 = vpop.f32.mrf.mxu0  ;;  %v7105_v11 = vadd.f32 %v7104_v28, %v6962_v23 }
0x1277   : > { %8432 = vmatprep.subr.mxu0 %v7721_v26  ;;  %8394 = vmatpush2.msra.mxu1 %v7560_v35  ;;  %v7107_v26 = vadd.f32 %v7106_v19, %v6962_v23 }
0x1278   : > { %8433 = vmatpush1.msra.mxu0 %v7720_v40  ;;  %8395 = vmatprep.subr.mxu1 %v7551_v41  ;;  %v7324_v63 = vmul.f32 %v7105_v11, %v11943_v4 }
0x1279   : > { %8434 = vmatprep.subr.mxu0 %v7711_v5  ;;  %8396 = vmatpush2.msra.mxu1 %v7550_v60  ;;  %v7325_v5 = vmul.f32 %v7107_v26, %v11939_v31 }
0x127a   : > { %8435 = vmatpush1.msra.mxu0 %v7710_v49  ;;  %8397 = vmatprep.subr.mxu1 %v7541_v0 }
0x127b   : > { %8436 = vmatprep.subr.mxu0 %v7701_v55  ;;  %8398 = vmatpush2.msra.mxu1 %v7540_v53  ;;  %v7176_v53 = vadd.f32 %v7175_v21, %v6962_v23 }
0x127c   : > { %8437 = vmatpush1.msra.mxu0 %v7700_v48  ;;  %8399 = vmatprep.subr.mxu1 %v7531_v7  ;;  %v7178_v48 = vadd.f32 %v7177_v8, %v6962_v23 }
0x127d   : > { %8438 = vmatprep.subr.mxu0 %v7691_v14  ;;  %8400 = vmatpush2.msra.mxu1 %v7530_v54 }
0x127e   : > { %8439 = vmatpush1.msra.mxu0 %v7690_v47  ;;  %8401 = vmatprep.subr.mxu1 %v7521_v39 }
0x127f   : > { %8440 = vmatprep.subr.mxu0 %v7681_v22  ;;  %8402 = vmatpush2.msra.mxu1 %v7520_v43  ;;  %v7326_v22 = vmul.f32 %v7176_v53, %v11953_v57  ;;  %v7327_v43 = vmul.f32 %v7178_v48, %v11951_v33 }
0x1280   : > { %8441 = vmatpush1.msra.mxu0 %v7680_v50  ;;  %8403 = vmatprep.subr.mxu1 %v7511_v59 }
0x1281   : > { %8442 = vmatprep.subr.mxu0 %v7671_v10  ;;  %8404 = vmatpush2.msra.mxu1 %v7510_v34  ;;  %v7247_v34 = vadd.f32 %v7246_v62, %v6962_v23 }
0x1282   : > { %8443 = vmatpush1.msra.mxu0 %v7670_v12  ;;  %8405 = vmatprep.subr.mxu1 %v7501_v58  ;;  %v7249_v12 = vadd.f32 %v7248_v27, %v6962_v23 }
0x1283   : > { %8444 = vmatprep.subr.mxu0 %v7661_v37  ;;  %8406 = vmatpush2.msra.mxu1 %v7500_v6 }
0x1284   : > { %8407 = vmatprep.mubr.f32.mxu1 %v9127_v2  ;;  %8445 = vmatpush1.msra.mxu0 %v7660_v52  ;;  %v7329_v29 = vmul.f32 %v7249_v12, %v11961_v20 }
0x1285   : > { %8478 = vmatprep.mubr.f32.mxu0 %v8971_v3  ;;  %8408 = vmatmul.mubr.f32.vlgmr.msra.gmra.mxu1 %v14042_v61 }
0x1286   : > { %8731 = vmatmul.mubr.msk.f32.vlgmr.msra.gmra.mxu0 %vm14312_vm13, %v8958_v44  ;;  %v7317_v25 = vpop.f32.mrf.mxu0  ;;  %v7328_v44 = vmul.f32 %v7247_v34, %v11963_v15 }
0x1287   : > { %v7318_v21 = vadd.f32 %v7317_v25, %v6962_v23 }
0x1288   : > { %v7319_v2 = vpop.f32.mrf.mxu0 }
0x1289   : > { %v7320_v19 = vadd.f32 %v7319_v2, %v6962_v23 }
0x1299   : > { %v7841_v3 = vpop.f32.mrf.mxu1 }
0x129a   : > { %v7912_v56 = vpop.f32.mrf.mxu0 }
0x129b   : > { %v7913_v46 = vadd.f32 %v7912_v56, %v7841_v3  ;;  %v7843_v9 = vpop.f32.mrf.mxu1  ;;  %v7330_v3 = vmul.f32 %v7318_v21, %v11976_v30  ;;  %v7331_v56 = vmul.f32 %v7320_v19, %v11973_v51 }
0x129c   : > { %v7914_v36 = vpop.f32.mrf.mxu0 }
0x129d   : > { %v7915_v32 = vadd.f32 %v7914_v36, %v7843_v9  ;;  %v8485_v61 = vadd.f32 %v7913_v46, %v7322_v16 }
0x129f   : > { %v8486_v45 = vadd.f32 %v7915_v32, %v7323_v24 }
0x12a1   : > { %v8505_v18 = vcombine.low %v8485_v61, %v8486_v45 }
0x12a3   : > { %8515 = vst [vmem:[%s14151_s25] sm:$0x77] %v8505_v18 }
0x12ae   : > { %v8054_v13 = vpop.f32.mrf.mxu1 }
0x12b0   : > { %v8056_v1 = vpop.f32.mrf.mxu1 }
0x12dc   : > { %v7983_v35 = vpop.f32.mrf.mxu0 }
0x12dd   : > { %v8055_v40 = vadd.f32 %v8054_v13, %v7983_v35 }
0x12de   : > { %v7985_v41 = vpop.f32.mrf.mxu0 }
0x12df   : > { %v8057_v60 = vadd.f32 %v8056_v1, %v7985_v41  ;;  %v8487_v49 = vadd.f32 %v8055_v40, %v7324_v63 }
0x12e1   : > { %v8488_v0 = vadd.f32 %v8057_v60, %v7325_v5 }
0x12e3   : > { %v8506_v55 = vcombine.low %v8487_v49, %v8488_v0 }
0x12e5   : > { %8516 = vst [vmem:[%s14151_s25 + $0x8] sm:$0x77] %v8506_v55 }
0x12ef   : > { %v8125_v7 = vpop.f32.mrf.mxu1 }
0x12f0   : > { %v8196_v14 = vpop.f32.mrf.mxu0 }
0x12f1   : > { %v8197_v54 = vadd.f32 %v8196_v14, %v8125_v7  ;;  %v8127_v47 = vpop.f32.mrf.mxu1 }
0x12f2   : > { %v8198_v39 = vpop.f32.mrf.mxu0 }
0x12f3   : > { %v8199_v4 = vadd.f32 %v8198_v39, %v8127_v47  ;;  %v8489_v50 = vadd.f32 %v8197_v54, %v7326_v22 }
0x12f5   : > { %v8490_v31 = vadd.f32 %v8199_v4, %v7327_v43 }
0x12f7   : > { %v8507_v59 = vcombine.low %v8489_v50, %v8490_v31 }
0x12f9   : > { %8517 = vst [vmem:[%s14151_s25 + $0x10] sm:$0x77] %v8507_v59 }
0x1304   : > { %v8338_v10 = vpop.f32.mrf.mxu1 }
0x1306   : > { %v8340_v6 = vpop.f32.mrf.mxu1 }
0x1332   : > { %v8267_v58 = vpop.f32.mrf.mxu0 }
0x1333   : > { %v8339_v37 = vadd.f32 %v8338_v10, %v8267_v58 }
0x1334   : > { %v8269_v52 = vpop.f32.mrf.mxu0 }
0x1335   : > { %v8341_v57 = vadd.f32 %v8340_v6, %v8269_v52  ;;  %v8491_v38 = vadd.f32 %v8339_v37, %v7328_v44 }
0x1337   : > { %v8492_v33 = vadd.f32 %v8341_v57, %v7329_v29 }
0x1339   : > { %v8508_v28 = vcombine.low %v8491_v38, %v8492_v33 }
0x133b   : > { %8518 = vst [vmem:[%s14151_s25 + $0x18] sm:$0x77] %v8508_v28 }
0x1345   : > { %v8409_v8 = vpop.f32.mrf.mxu1 }
0x1346   : > { %v8480_v42 = vpop.f32.mrf.mxu0 }
0x1347   : > { %v8481_v62 = vadd.f32 %v8480_v42, %v8409_v8  ;;  %v8411_v27 = vpop.f32.mrf.mxu1 }
0x1348   : > { %v8482_v17 = vpop.f32.mrf.mxu0 }
0x1349   : > { %v8483_v15 = vadd.f32 %v8482_v17, %v8411_v27  ;;  %v8493_v20 = vadd.f32 %v8481_v62, %v7330_v3 }
0x134b   : > { %v8494_v46 = vadd.f32 %v8483_v15, %v7331_v56 }
0x134d   : > { %v8509_v9 = vcombine.low %v8493_v20, %v8494_v46 }
0x134f   : > { %8521 = vst.msk [vmem:[%s14151_s25 + $0x20] sm:$0x77] %vm8520_vm7, %v8509_v9 }
0x1350 PF: > { %s32_s3 = sadd.s32 1, %s8965_s3  }
0x1351   : > { %p29_p4 = scmp.ge.s32.totalorder %s32_s3, 4  }
0x1353   :  { %31 = sbr.rel (!%p29_p4) target bundleno = 8 (0x8), region = 143 }

</bundles_post_ra>
